<compile_context>
chip_gen: v5e
topology: v5e:2x2
jax: 0.10.0
libtpu: 0.0.40
codegen_flags: <defaults>
</compile_context>

<pallas_src>
import functools

import jax
import jax.numpy as jnp
from jax.experimental import pallas as pl
from jax.experimental.pallas import tpu as pltpu

INPUT_SIZE = 64
HIDDEN_SIZE = 64
NUM_LAYERS = 2
NUM_CLASSES = 2

HP = 128          # per-gate lane-padded hidden width (gate slices on vreg bounds)
FC_PAD = 128      # lane-dense padded output width for the FC head
B_TILE_MIN = 8    # one sublane tile
B_TILE_CAP = 128  # default cap; tunable up to 256 (VMEM-safe incl. v7x 64 MiB)


def _choose_b_tile(batch):
    """Pick a batch-tile size: big M for the MXU, >=2 grid tiles when possible."""
    if batch <= B_TILE_MIN:
        return B_TILE_MIN
    half = -(-batch // 2)                       # ceil(batch / 2) -> >= 2 tiles (v7x)
    bt = ((half + 7) // 8) * 8                  # sublane multiple
    return max(B_TILE_MIN, min(B_TILE_CAP, bt))


# ---------------------------------------------------------------------------
# Fused kernel: LSTM x2 + last-step FC head
# ---------------------------------------------------------------------------
def fused_rnn_kernel(x_ref, wih0_ref, whh0_ref, b0_ref, w1_ref, b1_ref,
                     wfc_ref, bfc_ref, out_ref,
                     gx_ref, h0_ref, c0_ref, h1_ref, c1_ref,
                     *, seq_len, hp):
    """Whole forward pass for one batch tile.

    x_ref   : (T, bt, D)        time-major input tile (bf16)
    wih0_ref: (D, 4*Hp)         layer-0 W_ih^T, gate-lane-padded, bf16
    whh0_ref: (Hp, 4*Hp)        layer-0 W_hh^T, padded, bf16
    b0_ref  : (1, 4*Hp)         layer-0 b_ih + b_hh, padded, f32
    w1_ref  : (2*Hp, 4*Hp)      layer-1 [[W_ih^T];[W_hh^T]] fused, padded, bf16
    b1_ref  : (1, 4*Hp)         layer-1 b_ih + b_hh, padded, f32
    wfc_ref : (Hp, FC_PAD)      FC weight^T, row- and lane-padded, bf16
    bfc_ref : (1, FC_PAD)       FC bias, lane-padded, f32
    out_ref : (bt, FC_PAD)      lane-dense logits tile (only HBM output)
    gx_ref  : (T*bt, 4*Hp) f32  VMEM scratch for the hoisted input projection
    h*_ref/c*_ref: (bt, Hp) f32 VMEM scratch for the recurrent states
    """
    bt = x_ref.shape[1]
    d_in = x_ref.shape[2]

    # --- hoisted layer-0 input projection: ONE (T*bt, D) @ (D, 4Hp) matmul ---
    # Merging the two leading dims of the time-major tile keeps the lane dim
    # and the 8-sublane tiling intact (bt % 8 == 0): free view, no relayout.
    x2d = x_ref[...].reshape(seq_len * bt, d_in)
    gx_ref[...] = (jnp.dot(x2d, wih0_ref[...],
                           preferred_element_type=jnp.float32)
                   + b0_ref[...])                       # bias added once

    # hoist the layer-1 bias broadcast out of the unrolled loop
    b1b = jnp.broadcast_to(b1_ref[...], (bt, 4 * hp))

    # zero initial states (scratch persists across grid steps -> re-init here)
    h0_ref[...] = jnp.zeros_like(h0_ref)
    c0_ref[...] = jnp.zeros_like(c0_ref)
    h1_ref[...] = jnp.zeros_like(h1_ref)
    c1_ref[...] = jnp.zeros_like(c1_ref)

    def lstm_cell(gates, c):
        # Lane-aligned 128-wide gate slices (PyTorch order i, f, g, o).
        # Elementwise math kept in f32 (v5e has no bf16 VPU/EUP).
        i_g = jax.nn.sigmoid(gates[:, 0 * hp:1 * hp])
        f_g = jax.nn.sigmoid(gates[:, 1 * hp:2 * hp])
        g_g = jnp.tanh(gates[:, 2 * hp:3 * hp])
        o_g = jax.nn.sigmoid(gates[:, 3 * hp:4 * hp])
        c_new = f_g * c + i_g * g_g
        h_new = o_g * jnp.tanh(c_new)
        return h_new, c_new

    # --- fully unrolled recurrence over the small, static time axis ----------
    # (layer 1 interleaved step-by-step with layer 0; intermediate sequences
    #  never leave VMEM; states read/written through explicit scratch refs so
    #  the unrolled loop does not inflate register live ranges)
    h1 = h1_ref[...]
    for t in range(seq_len):
        # layer 0: contiguous per-step slab of the hoisted projection
        g0 = (gx_ref[t * bt:(t + 1) * bt, :]
              + jnp.dot(h0_ref[...].astype(jnp.bfloat16), whh0_ref[...],
                        preferred_element_type=jnp.float32))
        h0, c0 = lstm_cell(g0, c0_ref[...])
        h0_ref[...] = h0
        c0_ref[...] = c0

        # TODO(synk): inter-layer LSTM dropout (p=0.8) is identity in eval mode.
        # layer 1: single fused matmul on [h0_t | h1_{t-1}], K = 2*Hp
        x1 = jnp.concatenate([h0, h1_ref[...]], axis=-1).astype(jnp.bfloat16)
        g1 = jnp.dot(x1, w1_ref[...], preferred_element_type=jnp.float32) + b1b
        h1, c1 = lstm_cell(g1, c1_ref[...])
        h1_ref[...] = h1
        c1_ref[...] = c1

    # --- FC head on the last hidden state only (dropout_1 = identity) --------
    # FC output padded to 128 lanes -> unmasked, lane-dense HBM writeback.
    logits = (jnp.dot(h1.astype(jnp.bfloat16), wfc_ref[...],
                      preferred_element_type=jnp.float32) + bfc_ref[...])
    out_ref[...] = logits.astype(out_ref.dtype)


# ---------------------------------------------------------------------------
# Wrapper
# ---------------------------------------------------------------------------
@functools.partial(jax.jit, static_argnames=("b_tile",))
def rnn_network_forward(x, kparams, b_tile=None):
    """Equivalent of RNN_network.forward (eval mode). x: (B, T, 64) batch-first."""
    B, T, D = x.shape
    if b_tile is None:
        b_tile = _choose_b_tile(B)
    n_tiles = pl.cdiv(B, b_tile)
    Bp = n_tiles * b_tile

    # Wrapper-side layout plumbing: time-major + bf16 halves the x DMA bytes
    # and makes per-step gx slabs contiguous inside the kernel.
    xt = jnp.transpose(x.astype(jnp.bfloat16), (1, 0, 2))        # (T, B, D)
    if Bp != B:
        xt = jnp.pad(xt, ((0, 0), (0, Bp - B), (0, 0)))

    kernel = functools.partial(fused_rnn_kernel, seq_len=T, hp=HP)
    out = pl.pallas_call(
        kernel,
        out_shape=jax.ShapeDtypeStruct((Bp, FC_PAD), jnp.float32),
        grid_spec=pltpu.PrefetchScalarGridSpec(
            num_scalar_prefetch=0,
            grid=(n_tiles,),
            in_specs=[
                pl.BlockSpec((T, b_tile, D), lambda i: (0, i, 0)),
                # constant-index weight tiles (grid-invariant); pl.Buffered(1)
                # could single-buffer them but the ~0.5 MiB saving is negligible
                pl.BlockSpec((D, 4 * HP), lambda i: (0, 0)),
                pl.BlockSpec((HP, 4 * HP), lambda i: (0, 0)),
                pl.BlockSpec((1, 4 * HP), lambda i: (0, 0)),
                pl.BlockSpec((2 * HP, 4 * HP), lambda i: (0, 0)),
                pl.BlockSpec((1, 4 * HP), lambda i: (0, 0)),
                pl.BlockSpec((HP, FC_PAD), lambda i: (0, 0)),
                pl.BlockSpec((1, FC_PAD), lambda i: (0, 0)),
            ],
            out_specs=pl.BlockSpec((b_tile, FC_PAD), lambda i: (i, 0)),
            scratch_shapes=[
                pltpu.VMEM((T * b_tile, 4 * HP), jnp.float32),   # hoisted proj
                pltpu.VMEM((b_tile, HP), jnp.float32),           # h layer 0
                pltpu.VMEM((b_tile, HP), jnp.float32),           # c layer 0
                pltpu.VMEM((b_tile, HP), jnp.float32),           # h layer 1
                pltpu.VMEM((b_tile, HP), jnp.float32),           # c layer 1
            ],
        ),
        compiler_params=pltpu.CompilerParams(
            # batch tiles are independent -> shard across cores (v7x: 2 TCs)
            dimension_semantics=("parallel",),
        ),
    )(xt, kparams["wih0"], kparams["whh0"], kparams["b0"],
      kparams["w1"], kparams["b1"], kparams["wfc"], kparams["bfc"])
    return out[:B, :NUM_CLASSES]


# ---------------------------------------------------------------------------
# Parameters: raw PyTorch layout + kernel-ready (padded / fused / bf16) layout
# ---------------------------------------------------------------------------
def init_raw_params(key):
    """Raw parameters in PyTorch layout (uniform(-k, k), k = 1/sqrt(H))."""
    raw = {}
    k = 1.0 / float(HIDDEN_SIZE) ** 0.5
    keys = jax.random.split(key, NUM_LAYERS * 4 + 2)
    ki = 0
    for layer in range(NUM_LAYERS):
        d_in = INPUT_SIZE if layer == 0 else HIDDEN_SIZE
        raw[f"w_ih_{layer}"] = jax.random.uniform(
            keys[ki], (4 * HIDDEN_SIZE, d_in), jnp.float32, -k, k); ki += 1
        raw[f"w_hh_{layer}"] = jax.random.uniform(
            keys[ki], (4 * HIDDEN_SIZE, HIDDEN_SIZE), jnp.float32, -k, k); ki += 1
        raw[f"b_ih_{layer}"] = jax.random.uniform(
            keys[ki], (4 * HIDDEN_SIZE,), jnp.float32, -k, k); ki += 1
        raw[f"b_hh_{layer}"] = jax.random.uniform(
            keys[ki], (4 * HIDDEN_SIZE,), jnp.float32, -k, k); ki += 1
    raw["w_fc"] = jax.random.uniform(
        keys[ki], (NUM_CLASSES, HIDDEN_SIZE), jnp.float32, -k, k); ki += 1
    raw["b_fc"] = jax.random.uniform(
        keys[ki], (NUM_CLASSES,), jnp.float32, -k, k); ki += 1
    return raw


def _pad_gate_cols(w_t, h, hp):
    """(D, 4h) -> (D, 4hp): each gate block zero-padded from h to hp lanes."""
    d = w_t.shape[0]
    out = jnp.zeros((d, 4 * hp), w_t.dtype)
    for g in range(4):
        out = out.at[:, g * hp:g * hp + h].set(w_t[:, g * h:(g + 1) * h])
    return out


def _pad_rows(w, rows):
    pad = rows - w.shape[0]
    return jnp.concatenate([w, jnp.zeros((pad,) + w.shape[1:], w.dtype)], axis=0)


def prepare_kernel_params(raw):
    """Transpose / lane-pad / fuse / cast the PyTorch-layout params for the kernel."""
    h, hp = HIDDEN_SIZE, HP
    # layer 0
    wih0 = _pad_gate_cols(raw["w_ih_0"].T, h, hp)                   # (D, 4Hp)
    whh0 = _pad_rows(_pad_gate_cols(raw["w_hh_0"].T, h, hp), hp)    # (Hp, 4Hp)
    b0 = _pad_gate_cols((raw["b_ih_0"] + raw["b_hh_0"])[None, :], h, hp)
    # layer 1: fused [[W_ih^T];[W_hh^T]] so the recurrence does one K=2*Hp matmul
    wih1 = _pad_rows(_pad_gate_cols(raw["w_ih_1"].T, h, hp), hp)    # (Hp, 4Hp)
    whh1 = _pad_rows(_pad_gate_cols(raw["w_hh_1"].T, h, hp), hp)    # (Hp, 4Hp)
    w1 = jnp.concatenate([wih1, whh1], axis=0)                      # (2Hp, 4Hp)
    b1 = _pad_gate_cols((raw["b_ih_1"] + raw["b_hh_1"])[None, :], h, hp)
    # FC head, padded to a lane-dense 128-wide output (classes in lanes 0..1)
    wfc = _pad_rows(raw["w_fc"].T, hp)                              # (Hp, C)
    wfc = jnp.pad(wfc, ((0, 0), (0, FC_PAD - NUM_CLASSES)))         # (Hp, 128)
    bfc = jnp.pad(raw["b_fc"][None, :], ((0, 0), (0, FC_PAD - NUM_CLASSES)))
    return {
        "wih0": wih0.astype(jnp.bfloat16),
        "whh0": whh0.astype(jnp.bfloat16),
        "b0": b0.astype(jnp.float32),
        "w1": w1.astype(jnp.bfloat16),
        "b1": b1.astype(jnp.float32),
        "wfc": wfc.astype(jnp.bfloat16),
        "bfc": bfc.astype(jnp.float32),
    }


# ---------------------------------------------------------------------------
# Pure-JAX f32 reference (mirrors PyTorch nn.LSTM + Linear, eval mode)
# ---------------------------------------------------------------------------
def reference_forward(x, raw):
    B, T, _ = x.shape
    H = HIDDEN_SIZE
    h_seq = x.astype(jnp.float32)
    for layer in range(NUM_LAYERS):
        w_ih = raw[f"w_ih_{layer}"]
        w_hh = raw[f"w_hh_{layer}"]
        b = raw[f"b_ih_{layer}"] + raw[f"b_hh_{layer}"]
        h = jnp.zeros((B, H), jnp.float32)
        c = jnp.zeros((B, H), jnp.float32)
        outs = []
        for t in range(T):
            gates = h_seq[:, t, :] @ w_ih.T + h @ w_hh.T + b
            i_g = jax.nn.sigmoid(gates[:, 0:H])
            f_g = jax.nn.sigmoid(gates[:, H:2 * H])
            g_g = jnp.tanh(gates[:, 2 * H:3 * H])
            o_g = jax.nn.sigmoid(gates[:, 3 * H:4 * H])
            c = f_g * c + i_g * g_g
            h = o_g * jnp.tanh(c)
            outs.append(h)
        h_seq = jnp.stack(outs, axis=1)
    return h_seq[:, -1, :] @ raw["w_fc"].T + raw["b_fc"]


if __name__ == "__main__":
    key = jax.random.PRNGKey(0)
    k_params, k_x, k_x2 = jax.random.split(key, 3)

    raw = init_raw_params(k_params)
    kparams = prepare_kernel_params(raw)

    # Small shape implied by the module: batch=2, seq=8, input=64.
    B, T = 2, 8
    x = jax.random.normal(k_x, (B, T, INPUT_SIZE), jnp.float32)
    out = jax.block_until_ready(rnn_network_forward(x, kparams))
    assert out.shape == (B, NUM_CLASSES)
    ref = reference_forward(x, raw)
    assert jnp.allclose(out, ref, atol=5e-2, rtol=5e-2), (
        f"max abs err {jnp.max(jnp.abs(out - ref))}")

    # Larger batch exercising the big B_TILE path (2 grid tiles, batch padding).
    B2 = 200
    x2 = jax.random.normal(k_x2, (B2, T, INPUT_SIZE), jnp.float32)
    out2 = jax.block_until_ready(rnn_network_forward(x2, kparams))
    assert out2.shape == (B2, NUM_CLASSES)
    ref2 = reference_forward(x2, raw)
    assert jnp.allclose(out2, ref2, atol=5e-2, rtol=5e-2), (
        f"max abs err {jnp.max(jnp.abs(out2 - ref2))}")

    print("KERNEL_OK")
</pallas_src>

<mosaic_0001>
module attributes {stable_mosaic.version = 11 : i64} {
  func.func @fused_rnn_kernel(%arg0: i32, %arg1: memref<8x8x64xbf16, #tpu.memory_space<vmem>>, %arg2: memref<64x512xbf16, #tpu.memory_space<vmem>>, %arg3: memref<128x512xbf16, #tpu.memory_space<vmem>>, %arg4: memref<1x512xf32, #tpu.memory_space<vmem>>, %arg5: memref<256x512xbf16, #tpu.memory_space<vmem>>, %arg6: memref<1x512xf32, #tpu.memory_space<vmem>>, %arg7: memref<128x128xbf16, #tpu.memory_space<vmem>>, %arg8: memref<1x128xf32, #tpu.memory_space<vmem>>, %arg9: memref<8x128xf32, #tpu.memory_space<vmem>>, %arg10: memref<64x512xf32, #tpu.memory_space<vmem>>, %arg11: memref<8x128xf32, #tpu.memory_space<vmem>>, %arg12: memref<8x128xf32, #tpu.memory_space<vmem>>, %arg13: memref<8x128xf32, #tpu.memory_space<vmem>>, %arg14: memref<8x128xf32, #tpu.memory_space<vmem>>) attributes {dimension_semantics = [#tpu.dimension_semantics<parallel>], iteration_bounds = array<i64: 1>, scalar_prefetch = 0 : i64, scratch_operands = 5 : i64, tpu.core_type = #tpu.core_type<tc>, window_params = [{transform_indices = @transform_0, window_bounds = array<i64: 8, 8, 64>}, {pipeline_mode = #tpu.pipeline_mode<synchronous>, transform_indices = @transform_1, window_bounds = array<i64: 64, 512>}, {pipeline_mode = #tpu.pipeline_mode<synchronous>, transform_indices = @transform_2, window_bounds = array<i64: 128, 512>}, {pipeline_mode = #tpu.pipeline_mode<synchronous>, transform_indices = @transform_3, window_bounds = array<i64: 1, 512>}, {pipeline_mode = #tpu.pipeline_mode<synchronous>, transform_indices = @transform_4, window_bounds = array<i64: 256, 512>}, {pipeline_mode = #tpu.pipeline_mode<synchronous>, transform_indices = @transform_5, window_bounds = array<i64: 1, 512>}, {pipeline_mode = #tpu.pipeline_mode<synchronous>, transform_indices = @transform_6, window_bounds = array<i64: 128, 128>}, {pipeline_mode = #tpu.pipeline_mode<synchronous>, transform_indices = @transform_7, window_bounds = array<i64: 1, 128>}, {transform_indices = @transform_8, window_bounds = array<i64: 8, 128>}]} {
    %c0 = arith.constant 0 : index
    %c0_0 = arith.constant 0 : index
    %c0_1 = arith.constant 0 : index
    %0 = vector.load %arg1[%c0, %c0_0, %c0_1] : memref<8x8x64xbf16, #tpu.memory_space<vmem>>, vector<8x8x64xbf16>
    %1 = vector.shape_cast %0 : vector<8x8x64xbf16> to vector<64x64xbf16>
    %c0_2 = arith.constant 0 : index
    %c0_3 = arith.constant 0 : index
    %2 = vector.load %arg2[%c0_2, %c0_3] : memref<64x512xbf16, #tpu.memory_space<vmem>>, vector<64x512xbf16>
    %cst = arith.constant dense<0.000000e+00> : vector<64x512xf32>
    %3 = tpu.matmul %1, %2, %cst {dimension_numbers = #tpu.dot_dimension_numbers<[1], [0], [0], [1], [0, 0, 1, 1], [], []>} : vector<64x64xbf16>, vector<64x512xbf16>, vector<64x512xf32> -> vector<64x512xf32>
    %c0_4 = arith.constant 0 : index
    %c0_5 = arith.constant 0 : index
    %4 = vector.load %arg4[%c0_4, %c0_5] : memref<1x512xf32, #tpu.memory_space<vmem>>, vector<1x512xf32>
    %5 = vector.broadcast %4 : vector<1x512xf32> to vector<64x512xf32>
    %6 = arith.addf %3, %5 : vector<64x512xf32>
    %c0_6 = arith.constant 0 : index
    %c0_7 = arith.constant 0 : index
    %7 = vector.load %arg10[%c0_6, %c0_7] : memref<64x512xf32, #tpu.memory_space<vmem>>, vector<64x512xf32>
    tpu.vector_store %arg10[%c0_6, %c0_7], %6 {strides = array<i32>} : memref<64x512xf32, #tpu.memory_space<vmem>>, vector<64x512xf32>,
    %c0_8 = arith.constant 0 : index
    %c0_9 = arith.constant 0 : index
    %8 = vector.load %arg6[%c0_8, %c0_9] : memref<1x512xf32, #tpu.memory_space<vmem>>, vector<1x512xf32>
    %9 = vector.shape_cast %8 : vector<1x512xf32> to vector<1x512xf32>
    %10 = vector.broadcast %9 : vector<1x512xf32> to vector<8x512xf32>
    %cst_10 = arith.constant 0.000000e+00 : f32
    %11 = vector.broadcast %cst_10 : f32 to vector<8x128xf32>
    %c0_11 = arith.constant 0 : index
    %c0_12 = arith.constant 0 : index
    %12 = vector.load %arg11[%c0_11, %c0_12] : memref<8x128xf32, #tpu.memory_space<vmem>>, vector<8x128xf32>
    tpu.vector_store %arg11[%c0_11, %c0_12], %11 {strides = array<i32>} : memref<8x128xf32, #tpu.memory_space<vmem>>, vector<8x128xf32>,
    %cst_13 = arith.constant 0.000000e+00 : f32
    %13 = vector.broadcast %cst_13 : f32 to vector<8x128xf32>
    %c0_14 = arith.constant 0 : index
    %c0_15 = arith.constant 0 : index
    %14 = vector.load %arg12[%c0_14, %c0_15] : memref<8x128xf32, #tpu.memory_space<vmem>>, vector<8x128xf32>
    tpu.vector_store %arg12[%c0_14, %c0_15], %13 {strides = array<i32>} : memref<8x128xf32, #tpu.memory_space<vmem>>, vector<8x128xf32>,
    %cst_16 = arith.constant 0.000000e+00 : f32
    %15 = vector.broadcast %cst_16 : f32 to vector<8x128xf32>
    %c0_17 = arith.constant 0 : index
    %c0_18 = arith.constant 0 : index
    %16 = vector.load %arg13[%c0_17, %c0_18] : memref<8x128xf32, #tpu.memory_space<vmem>>, vector<8x128xf32>
    tpu.vector_store %arg13[%c0_17, %c0_18], %15 {strides = array<i32>} : memref<8x128xf32, #tpu.memory_space<vmem>>, vector<8x128xf32>,
    %cst_19 = arith.constant 0.000000e+00 : f32
    %17 = vector.broadcast %cst_19 : f32 to vector<8x128xf32>
    %c0_20 = arith.constant 0 : index
    %c0_21 = arith.constant 0 : index
    %18 = vector.load %arg14[%c0_20, %c0_21] : memref<8x128xf32, #tpu.memory_space<vmem>>, vector<8x128xf32>
    tpu.vector_store %arg14[%c0_20, %c0_21], %17 {strides = array<i32>} : memref<8x128xf32, #tpu.memory_space<vmem>>, vector<8x128xf32>,
    %c0_22 = arith.constant 0 : index
    %c0_23 = arith.constant 0 : index
    %19 = vector.load %arg10[%c0_22, %c0_23] : memref<64x512xf32, #tpu.memory_space<vmem>>, vector<8x512xf32>
    %c0_24 = arith.constant 0 : index
    %c0_25 = arith.constant 0 : index
    %20 = vector.load %arg11[%c0_24, %c0_25] : memref<8x128xf32, #tpu.memory_space<vmem>>, vector<8x128xf32>
    %21 = arith.truncf %20 : vector<8x128xf32> to vector<8x128xbf16>
    %c0_26 = arith.constant 0 : index
    %c0_27 = arith.constant 0 : index
    %22 = vector.load %arg3[%c0_26, %c0_27] : memref<128x512xbf16, #tpu.memory_space<vmem>>, vector<128x512xbf16>
    %cst_28 = arith.constant dense<0.000000e+00> : vector<8x512xf32>
    %23 = tpu.matmul %21, %22, %cst_28 {dimension_numbers = #tpu.dot_dimension_numbers<[1], [0], [0], [1], [0, 0, 1, 1], [], []>} : vector<8x128xbf16>, vector<128x512xbf16>, vector<8x512xf32> -> vector<8x512xf32>
    %24 = arith.addf %19, %23 : vector<8x512xf32>
    %c0_29 = arith.constant 0 : index
    %c0_30 = arith.constant 0 : index
    %25 = vector.load %arg12[%c0_29, %c0_30] : memref<8x128xf32, #tpu.memory_space<vmem>>, vector<8x128xf32>
    %26 = vector.extract_strided_slice %24 {offsets = [0, 0], sizes = [8, 128], strides = [1, 1]} : vector<8x512xf32> to vector<8x128xf32>
    %27 = arith.negf %26 : vector<8x128xf32>
    %28 = math.exp %27 : vector<8x128xf32>
    %cst_31 = arith.constant 1.000000e+00 : f32
    %29 = vector.broadcast %cst_31 : f32 to vector<8x128xf32>
    %30 = arith.addf %29, %28 : vector<8x128xf32>
    %31 = arith.divf %29, %30 : vector<8x128xf32>
    %32 = vector.extract_strided_slice %24 {offsets = [0, 128], sizes = [8, 128], strides = [1, 1]} : vector<8x512xf32> to vector<8x128xf32>
    %33 = arith.negf %32 : vector<8x128xf32>
    %34 = math.exp %33 : vector<8x128xf32>
    %cst_32 = arith.constant 1.000000e+00 : f32
    %35 = vector.broadcast %cst_32 : f32 to vector<8x128xf32>
    %36 = arith.addf %35, %34 : vector<8x128xf32>
    %37 = arith.divf %35, %36 : vector<8x128xf32>
    %38 = vector.extract_strided_slice %24 {offsets = [0, 256], sizes = [8, 128], strides = [1, 1]} : vector<8x512xf32> to vector<8x128xf32>
    %39 = math.tanh %38 : vector<8x128xf32>
    %40 = vector.extract_strided_slice %24 {offsets = [0, 384], sizes = [8, 128], strides = [1, 1]} : vector<8x512xf32> to vector<8x128xf32>
    %41 = arith.negf %40 : vector<8x128xf32>
    %42 = math.exp %41 : vector<8x128xf32>
    %cst_33 = arith.constant 1.000000e+00 : f32
    %43 = vector.broadcast %cst_33 : f32 to vector<8x128xf32>
    %44 = arith.addf %43, %42 : vector<8x128xf32>
    %45 = arith.divf %43, %44 : vector<8x128xf32>
    %46 = arith.mulf %37, %25 : vector<8x128xf32>
    %47 = arith.mulf %31, %39 : vector<8x128xf32>
    %48 = arith.addf %46, %47 : vector<8x128xf32>
    %49 = math.tanh %48 : vector<8x128xf32>
    %50 = arith.mulf %45, %49 : vector<8x128xf32>
    %c0_34 = arith.constant 0 : index
    %c0_35 = arith.constant 0 : index
    %51 = vector.load %arg11[%c0_34, %c0_35] : memref<8x128xf32, #tpu.memory_space<vmem>>, vector<8x128xf32>
    tpu.vector_store %arg11[%c0_34, %c0_35], %50 {strides = array<i32>} : memref<8x128xf32, #tpu.memory_space<vmem>>, vector<8x128xf32>,
    %c0_36 = arith.constant 0 : index
    %c0_37 = arith.constant 0 : index
    %52 = vector.load %arg12[%c0_36, %c0_37] : memref<8x128xf32, #tpu.memory_space<vmem>>, vector<8x128xf32>
    tpu.vector_store %arg12[%c0_36, %c0_37], %48 {strides = array<i32>} : memref<8x128xf32, #tpu.memory_space<vmem>>, vector<8x128xf32>,
    %c0_38 = arith.constant 0 : index
    %c0_39 = arith.constant 0 : index
    %53 = vector.load %arg13[%c0_38, %c0_39] : memref<8x128xf32, #tpu.memory_space<vmem>>, vector<8x128xf32>
    %54 = tpu.concatenate %50, %53 in 1 : vector<8x128xf32>, vector<8x128xf32> -> vector<8x256xf32>
    %55 = arith.truncf %54 : vector<8x256xf32> to vector<8x256xbf16>
    %c0_40 = arith.constant 0 : index
    %c0_41 = arith.constant 0 : index
    %56 = vector.load %arg5[%c0_40, %c0_41] : memref<256x512xbf16, #tpu.memory_space<vmem>>, vector<256x512xbf16>
    %cst_42 = arith.constant dense<0.000000e+00> : vector<8x512xf32>
    %57 = tpu.matmul %55, %56, %cst_42 {dimension_numbers = #tpu.dot_dimension_numbers<[1], [0], [0], [1], [0, 0, 1, 1], [], []>} : vector<8x256xbf16>, vector<256x512xbf16>, vector<8x512xf32> -> vector<8x512xf32>
    %58 = arith.addf %57, %10 : vector<8x512xf32>
    %c0_43 = arith.constant 0 : index
    %c0_44 = arith.constant 0 : index
    %59 = vector.load %arg14[%c0_43, %c0_44] : memref<8x128xf32, #tpu.memory_space<vmem>>, vector<8x128xf32>
    %60 = vector.extract_strided_slice %58 {offsets = [0, 0], sizes = [8, 128], strides = [1, 1]} : vector<8x512xf32> to vector<8x128xf32>
    %61 = arith.negf %60 : vector<8x128xf32>
    %62 = math.exp %61 : vector<8x128xf32>
    %cst_45 = arith.constant 1.000000e+00 : f32
    %63 = vector.broadcast %cst_45 : f32 to vector<8x128xf32>
    %64 = arith.addf %63, %62 : vector<8x128xf32>
    %65 = arith.divf %63, %64 : vector<8x128xf32>
    %66 = vector.extract_strided_slice %58 {offsets = [0, 128], sizes = [8, 128], strides = [1, 1]} : vector<8x512xf32> to vector<8x128xf32>
    %67 = arith.negf %66 : vector<8x128xf32>
    %68 = math.exp %67 : vector<8x128xf32>
    %cst_46 = arith.constant 1.000000e+00 : f32
    %69 = vector.broadcast %cst_46 : f32 to vector<8x128xf32>
    %70 = arith.addf %69, %68 : vector<8x128xf32>
    %71 = arith.divf %69, %70 : vector<8x128xf32>
    %72 = vector.extract_strided_slice %58 {offsets = [0, 256], sizes = [8, 128], strides = [1, 1]} : vector<8x512xf32> to vector<8x128xf32>
    %73 = math.tanh %72 : vector<8x128xf32>
    %74 = vector.extract_strided_slice %58 {offsets = [0, 384], sizes = [8, 128], strides = [1, 1]} : vector<8x512xf32> to vector<8x128xf32>
    %75 = arith.negf %74 : vector<8x128xf32>
    %76 = math.exp %75 : vector<8x128xf32>
    %cst_47 = arith.constant 1.000000e+00 : f32
    %77 = vector.broadcast %cst_47 : f32 to vector<8x128xf32>
    %78 = arith.addf %77, %76 : vector<8x128xf32>
    %79 = arith.divf %77, %78 : vector<8x128xf32>
    %80 = arith.mulf %71, %59 : vector<8x128xf32>
    %81 = arith.mulf %65, %73 : vector<8x128xf32>
    %82 = arith.addf %80, %81 : vector<8x128xf32>
    %83 = math.tanh %82 : vector<8x128xf32>
    %84 = arith.mulf %79, %83 : vector<8x128xf32>
    %c0_48 = arith.constant 0 : index
    %c0_49 = arith.constant 0 : index
    %85 = vector.load %arg13[%c0_48, %c0_49] : memref<8x128xf32, #tpu.memory_space<vmem>>, vector<8x128xf32>
    tpu.vector_store %arg13[%c0_48, %c0_49], %84 {strides = array<i32>} : memref<8x128xf32, #tpu.memory_space<vmem>>, vector<8x128xf32>,
    %c0_50 = arith.constant 0 : index
    %c0_51 = arith.constant 0 : index
    %86 = vector.load %arg14[%c0_50, %c0_51] : memref<8x128xf32, #tpu.memory_space<vmem>>, vector<8x128xf32>
    tpu.vector_store %arg14[%c0_50, %c0_51], %82 {strides = array<i32>} : memref<8x128xf32, #tpu.memory_space<vmem>>, vector<8x128xf32>,
    %c8 = arith.constant 8 : index
    %c0_52 = arith.constant 0 : index
    %87 = vector.load %arg10[%c8, %c0_52] : memref<64x512xf32, #tpu.memory_space<vmem>>, vector<8x512xf32>
    %c0_53 = arith.constant 0 : index
    %c0_54 = arith.constant 0 : index
    %88 = vector.load %arg11[%c0_53, %c0_54] : memref<8x128xf32, #tpu.memory_space<vmem>>, vector<8x128xf32>
    %89 = arith.truncf %88 : vector<8x128xf32> to vector<8x128xbf16>
    %c0_55 = arith.constant 0 : index
    %c0_56 = arith.constant 0 : index
    %90 = vector.load %arg3[%c0_55, %c0_56] : memref<128x512xbf16, #tpu.memory_space<vmem>>, vector<128x512xbf16>
    %cst_57 = arith.constant dense<0.000000e+00> : vector<8x512xf32>
    %91 = tpu.matmul %89, %90, %cst_57 {dimension_numbers = #tpu.dot_dimension_numbers<[1], [0], [0], [1], [0, 0, 1, 1], [], []>} : vector<8x128xbf16>, vector<128x512xbf16>, vector<8x512xf32> -> vector<8x512xf32>
    %92 = arith.addf %87, %91 : vector<8x512xf32>
    %c0_58 = arith.constant 0 : index
    %c0_59 = arith.constant 0 : index
    %93 = vector.load %arg12[%c0_58, %c0_59] : memref<8x128xf32, #tpu.memory_space<vmem>>, vector<8x128xf32>
    %94 = vector.extract_strided_slice %92 {offsets = [0, 0], sizes = [8, 128], strides = [1, 1]} : vector<8x512xf32> to vector<8x128xf32>
    %95 = arith.negf %94 : vector<8x128xf32>
    %96 = math.exp %95 : vector<8x128xf32>
    %cst_60 = arith.constant 1.000000e+00 : f32
    %97 = vector.broadcast %cst_60 : f32 to vector<8x128xf32>
    %98 = arith.addf %97, %96 : vector<8x128xf32>
    %99 = arith.divf %97, %98 : vector<8x128xf32>
    %100 = vector.extract_strided_slice %92 {offsets = [0, 128], sizes = [8, 128], strides = [1, 1]} : vector<8x512xf32> to vector<8x128xf32>
    %101 = arith.negf %100 : vector<8x128xf32>
    %102 = math.exp %101 : vector<8x128xf32>
    %cst_61 = arith.constant 1.000000e+00 : f32
    %103 = vector.broadcast %cst_61 : f32 to vector<8x128xf32>
    %104 = arith.addf %103, %102 : vector<8x128xf32>
    %105 = arith.divf %103, %104 : vector<8x128xf32>
    %106 = vector.extract_strided_slice %92 {offsets = [0, 256], sizes = [8, 128], strides = [1, 1]} : vector<8x512xf32> to vector<8x128xf32>
    %107 = math.tanh %106 : vector<8x128xf32>
    %108 = vector.extract_strided_slice %92 {offsets = [0, 384], sizes = [8, 128], strides = [1, 1]} : vector<8x512xf32> to vector<8x128xf32>
    %109 = arith.negf %108 : vector<8x128xf32>
    %110 = math.exp %109 : vector<8x128xf32>
    %cst_62 = arith.constant 1.000000e+00 : f32
    %111 = vector.broadcast %cst_62 : f32 to vector<8x128xf32>
    %112 = arith.addf %111, %110 : vector<8x128xf32>
    %113 = arith.divf %111, %112 : vector<8x128xf32>
    %114 = arith.mulf %105, %93 : vector<8x128xf32>
    %115 = arith.mulf %99, %107 : vector<8x128xf32>
    %116 = arith.addf %114, %115 : vector<8x128xf32>
    %117 = math.tanh %116 : vector<8x128xf32>
    %118 = arith.mulf %113, %117 : vector<8x128xf32>
    %c0_63 = arith.constant 0 : index
    %c0_64 = arith.constant 0 : index
    %119 = vector.load %arg11[%c0_63, %c0_64] : memref<8x128xf32, #tpu.memory_space<vmem>>, vector<8x128xf32>
    tpu.vector_store %arg11[%c0_63, %c0_64], %118 {strides = array<i32>} : memref<8x128xf32, #tpu.memory_space<vmem>>, vector<8x128xf32>,
    %c0_65 = arith.constant 0 : index
    %c0_66 = arith.constant 0 : index
    %120 = vector.load %arg12[%c0_65, %c0_66] : memref<8x128xf32, #tpu.memory_space<vmem>>, vector<8x128xf32>
    tpu.vector_store %arg12[%c0_65, %c0_66], %116 {strides = array<i32>} : memref<8x128xf32, #tpu.memory_space<vmem>>, vector<8x128xf32>,
    %c0_67 = arith.constant 0 : index
    %c0_68 = arith.constant 0 : index
    %121 = vector.load %arg13[%c0_67, %c0_68] : memref<8x128xf32, #tpu.memory_space<vmem>>, vector<8x128xf32>
    %122 = tpu.concatenate %118, %121 in 1 : vector<8x128xf32>, vector<8x128xf32> -> vector<8x256xf32>
    %123 = arith.truncf %122 : vector<8x256xf32> to vector<8x256xbf16>
    %c0_69 = arith.constant 0 : index
    %c0_70 = arith.constant 0 : index
    %124 = vector.load %arg5[%c0_69, %c0_70] : memref<256x512xbf16, #tpu.memory_space<vmem>>, vector<256x512xbf16>
    %cst_71 = arith.constant dense<0.000000e+00> : vector<8x512xf32>
    %125 = tpu.matmul %123, %124, %cst_71 {dimension_numbers = #tpu.dot_dimension_numbers<[1], [0], [0], [1], [0, 0, 1, 1], [], []>} : vector<8x256xbf16>, vector<256x512xbf16>, vector<8x512xf32> -> vector<8x512xf32>
    %126 = arith.addf %125, %10 : vector<8x512xf32>
    %c0_72 = arith.constant 0 : index
    %c0_73 = arith.constant 0 : index
    %127 = vector.load %arg14[%c0_72, %c0_73] : memref<8x128xf32, #tpu.memory_space<vmem>>, vector<8x128xf32>
    %128 = vector.extract_strided_slice %126 {offsets = [0, 0], sizes = [8, 128], strides = [1, 1]} : vector<8x512xf32> to vector<8x128xf32>
    %129 = arith.negf %128 : vector<8x128xf32>
    %130 = math.exp %129 : vector<8x128xf32>
    %cst_74 = arith.constant 1.000000e+00 : f32
    %131 = vector.broadcast %cst_74 : f32 to vector<8x128xf32>
    %132 = arith.addf %131, %130 : vector<8x128xf32>
    %133 = arith.divf %131, %132 : vector<8x128xf32>
    %134 = vector.extract_strided_slice %126 {offsets = [0, 128], sizes = [8, 128], strides = [1, 1]} : vector<8x512xf32> to vector<8x128xf32>
    %135 = arith.negf %134 : vector<8x128xf32>
    %136 = math.exp %135 : vector<8x128xf32>
    %cst_75 = arith.constant 1.000000e+00 : f32
    %137 = vector.broadcast %cst_75 : f32 to vector<8x128xf32>
    %138 = arith.addf %137, %136 : vector<8x128xf32>
    %139 = arith.divf %137, %138 : vector<8x128xf32>
    %140 = vector.extract_strided_slice %126 {offsets = [0, 256], sizes = [8, 128], strides = [1, 1]} : vector<8x512xf32> to vector<8x128xf32>
    %141 = math.tanh %140 : vector<8x128xf32>
    %142 = vector.extract_strided_slice %126 {offsets = [0, 384], sizes = [8, 128], strides = [1, 1]} : vector<8x512xf32> to vector<8x128xf32>
    %143 = arith.negf %142 : vector<8x128xf32>
    %144 = math.exp %143 : vector<8x128xf32>
    %cst_76 = arith.constant 1.000000e+00 : f32
    %145 = vector.broadcast %cst_76 : f32 to vector<8x128xf32>
    %146 = arith.addf %145, %144 : vector<8x128xf32>
    %147 = arith.divf %145, %146 : vector<8x128xf32>
    %148 = arith.mulf %139, %127 : vector<8x128xf32>
    %149 = arith.mulf %133, %141 : vector<8x128xf32>
    %150 = arith.addf %148, %149 : vector<8x128xf32>
    %151 = math.tanh %150 : vector<8x128xf32>
    %152 = arith.mulf %147, %151 : vector<8x128xf32>
    %c0_77 = arith.constant 0 : index
    %c0_78 = arith.constant 0 : index
    %153 = vector.load %arg13[%c0_77, %c0_78] : memref<8x128xf32, #tpu.memory_space<vmem>>, vector<8x128xf32>
    tpu.vector_store %arg13[%c0_77, %c0_78], %152 {strides = array<i32>} : memref<8x128xf32, #tpu.memory_space<vmem>>, vector<8x128xf32>,
    %c0_79 = arith.constant 0 : index
    %c0_80 = arith.constant 0 : index
    %154 = vector.load %arg14[%c0_79, %c0_80] : memref<8x128xf32, #tpu.memory_space<vmem>>, vector<8x128xf32>
    tpu.vector_store %arg14[%c0_79, %c0_80], %150 {strides = array<i32>} : memref<8x128xf32, #tpu.memory_space<vmem>>, vector<8x128xf32>,
    %c16 = arith.constant 16 : index
    %c0_81 = arith.constant 0 : index
    %155 = vector.load %arg10[%c16, %c0_81] : memref<64x512xf32, #tpu.memory_space<vmem>>, vector<8x512xf32>
    %c0_82 = arith.constant 0 : index
    %c0_83 = arith.constant 0 : index
    %156 = vector.load %arg11[%c0_82, %c0_83] : memref<8x128xf32, #tpu.memory_space<vmem>>, vector<8x128xf32>
    %157 = arith.truncf %156 : vector<8x128xf32> to vector<8x128xbf16>
    %c0_84 = arith.constant 0 : index
    %c0_85 = arith.constant 0 : index
    %158 = vector.load %arg3[%c0_84, %c0_85] : memref<128x512xbf16, #tpu.memory_space<vmem>>, vector<128x512xbf16>
    %cst_86 = arith.constant dense<0.000000e+00> : vector<8x512xf32>
    %159 = tpu.matmul %157, %158, %cst_86 {dimension_numbers = #tpu.dot_dimension_numbers<[1], [0], [0], [1], [0, 0, 1, 1], [], []>} : vector<8x128xbf16>, vector<128x512xbf16>, vector<8x512xf32> -> vector<8x512xf32>
    %160 = arith.addf %155, %159 : vector<8x512xf32>
    %c0_87 = arith.constant 0 : index
    %c0_88 = arith.constant 0 : index
    %161 = vector.load %arg12[%c0_87, %c0_88] : memref<8x128xf32, #tpu.memory_space<vmem>>, vector<8x128xf32>
    %162 = vector.extract_strided_slice %160 {offsets = [0, 0], sizes = [8, 128], strides = [1, 1]} : vector<8x512xf32> to vector<8x128xf32>
    %163 = arith.negf %162 : vector<8x128xf32>
    %164 = math.exp %163 : vector<8x128xf32>
    %cst_89 = arith.constant 1.000000e+00 : f32
    %165 = vector.broadcast %cst_89 : f32 to vector<8x128xf32>
    %166 = arith.addf %165, %164 : vector<8x128xf32>
    %167 = arith.divf %165, %166 : vector<8x128xf32>
    %168 = vector.extract_strided_slice %160 {offsets = [0, 128], sizes = [8, 128], strides = [1, 1]} : vector<8x512xf32> to vector<8x128xf32>
    %169 = arith.negf %168 : vector<8x128xf32>
    %170 = math.exp %169 : vector<8x128xf32>
    %cst_90 = arith.constant 1.000000e+00 : f32
    %171 = vector.broadcast %cst_90 : f32 to vector<8x128xf32>
    %172 = arith.addf %171, %170 : vector<8x128xf32>
    %173 = arith.divf %171, %172 : vector<8x128xf32>
    %174 = vector.extract_strided_slice %160 {offsets = [0, 256], sizes = [8, 128], strides = [1, 1]} : vector<8x512xf32> to vector<8x128xf32>
    %175 = math.tanh %174 : vector<8x128xf32>
    %176 = vector.extract_strided_slice %160 {offsets = [0, 384], sizes = [8, 128], strides = [1, 1]} : vector<8x512xf32> to vector<8x128xf32>
    %177 = arith.negf %176 : vector<8x128xf32>
    %178 = math.exp %177 : vector<8x128xf32>
    %cst_91 = arith.constant 1.000000e+00 : f32
    %179 = vector.broadcast %cst_91 : f32 to vector<8x128xf32>
    %180 = arith.addf %179, %178 : vector<8x128xf32>
    %181 = arith.divf %179, %180 : vector<8x128xf32>
    %182 = arith.mulf %173, %161 : vector<8x128xf32>
    %183 = arith.mulf %167, %175 : vector<8x128xf32>
    %184 = arith.addf %182, %183 : vector<8x128xf32>
    %185 = math.tanh %184 : vector<8x128xf32>
    %186 = arith.mulf %181, %185 : vector<8x128xf32>
    %c0_92 = arith.constant 0 : index
    %c0_93 = arith.constant 0 : index
    %187 = vector.load %arg11[%c0_92, %c0_93] : memref<8x128xf32, #tpu.memory_space<vmem>>, vector<8x128xf32>
    tpu.vector_store %arg11[%c0_92, %c0_93], %186 {strides = array<i32>} : memref<8x128xf32, #tpu.memory_space<vmem>>, vector<8x128xf32>,
    %c0_94 = arith.constant 0 : index
    %c0_95 = arith.constant 0 : index
    %188 = vector.load %arg12[%c0_94, %c0_95] : memref<8x128xf32, #tpu.memory_space<vmem>>, vector<8x128xf32>
    tpu.vector_store %arg12[%c0_94, %c0_95], %184 {strides = array<i32>} : memref<8x128xf32, #tpu.memory_space<vmem>>, vector<8x128xf32>,
    %c0_96 = arith.constant 0 : index
    %c0_97 = arith.constant 0 : index
    %189 = vector.load %arg13[%c0_96, %c0_97] : memref<8x128xf32, #tpu.memory_space<vmem>>, vector<8x128xf32>
    %190 = tpu.concatenate %186, %189 in 1 : vector<8x128xf32>, vector<8x128xf32> -> vector<8x256xf32>
    %191 = arith.truncf %190 : vector<8x256xf32> to vector<8x256xbf16>
    %c0_98 = arith.constant 0 : index
    %c0_99 = arith.constant 0 : index
    %192 = vector.load %arg5[%c0_98, %c0_99] : memref<256x512xbf16, #tpu.memory_space<vmem>>, vector<256x512xbf16>
    %cst_100 = arith.constant dense<0.000000e+00> : vector<8x512xf32>
    %193 = tpu.matmul %191, %192, %cst_100 {dimension_numbers = #tpu.dot_dimension_numbers<[1], [0], [0], [1], [0, 0, 1, 1], [], []>} : vector<8x256xbf16>, vector<256x512xbf16>, vector<8x512xf32> -> vector<8x512xf32>
    %194 = arith.addf %193, %10 : vector<8x512xf32>
    %c0_101 = arith.constant 0 : index
    %c0_102 = arith.constant 0 : index
    %195 = vector.load %arg14[%c0_101, %c0_102] : memref<8x128xf32, #tpu.memory_space<vmem>>, vector<8x128xf32>
    %196 = vector.extract_strided_slice %194 {offsets = [0, 0], sizes = [8, 128], strides = [1, 1]} : vector<8x512xf32> to vector<8x128xf32>
    %197 = arith.negf %196 : vector<8x128xf32>
    %198 = math.exp %197 : vector<8x128xf32>
    %cst_103 = arith.constant 1.000000e+00 : f32
    %199 = vector.broadcast %cst_103 : f32 to vector<8x128xf32>
    %200 = arith.addf %199, %198 : vector<8x128xf32>
    %201 = arith.divf %199, %200 : vector<8x128xf32>
    %202 = vector.extract_strided_slice %194 {offsets = [0, 128], sizes = [8, 128], strides = [1, 1]} : vector<8x512xf32> to vector<8x128xf32>
    %203 = arith.negf %202 : vector<8x128xf32>
    %204 = math.exp %203 : vector<8x128xf32>
    %cst_104 = arith.constant 1.000000e+00 : f32
    %205 = vector.broadcast %cst_104 : f32 to vector<8x128xf32>
    %206 = arith.addf %205, %204 : vector<8x128xf32>
    %207 = arith.divf %205, %206 : vector<8x128xf32>
    %208 = vector.extract_strided_slice %194 {offsets = [0, 256], sizes = [8, 128], strides = [1, 1]} : vector<8x512xf32> to vector<8x128xf32>
    %209 = math.tanh %208 : vector<8x128xf32>
    %210 = vector.extract_strided_slice %194 {offsets = [0, 384], sizes = [8, 128], strides = [1, 1]} : vector<8x512xf32> to vector<8x128xf32>
    %211 = arith.negf %210 : vector<8x128xf32>
    %212 = math.exp %211 : vector<8x128xf32>
    %cst_105 = arith.constant 1.000000e+00 : f32
    %213 = vector.broadcast %cst_105 : f32 to vector<8x128xf32>
    %214 = arith.addf %213, %212 : vector<8x128xf32>
    %215 = arith.divf %213, %214 : vector<8x128xf32>
    %216 = arith.mulf %207, %195 : vector<8x128xf32>
    %217 = arith.mulf %201, %209 : vector<8x128xf32>
    %218 = arith.addf %216, %217 : vector<8x128xf32>
    %219 = math.tanh %218 : vector<8x128xf32>
    %220 = arith.mulf %215, %219 : vector<8x128xf32>
    %c0_106 = arith.constant 0 : index
    %c0_107 = arith.constant 0 : index
    %221 = vector.load %arg13[%c0_106, %c0_107] : memref<8x128xf32, #tpu.memory_space<vmem>>, vector<8x128xf32>
    tpu.vector_store %arg13[%c0_106, %c0_107], %220 {strides = array<i32>} : memref<8x128xf32, #tpu.memory_space<vmem>>, vector<8x128xf32>,
    %c0_108 = arith.constant 0 : index
    %c0_109 = arith.constant 0 : index
    %222 = vector.load %arg14[%c0_108, %c0_109] : memref<8x128xf32, #tpu.memory_space<vmem>>, vector<8x128xf32>
    tpu.vector_store %arg14[%c0_108, %c0_109], %218 {strides = array<i32>} : memref<8x128xf32, #tpu.memory_space<vmem>>, vector<8x128xf32>,
    %c24 = arith.constant 24 : index
    %c0_110 = arith.constant 0 : index
    %223 = vector.load %arg10[%c24, %c0_110] : memref<64x512xf32, #tpu.memory_space<vmem>>, vector<8x512xf32>
    %c0_111 = arith.constant 0 : index
    %c0_112 = arith.constant 0 : index
    %224 = vector.load %arg11[%c0_111, %c0_112] : memref<8x128xf32, #tpu.memory_space<vmem>>, vector<8x128xf32>
    %225 = arith.truncf %224 : vector<8x128xf32> to vector<8x128xbf16>
    %c0_113 = arith.constant 0 : index
    %c0_114 = arith.constant 0 : index
    %226 = vector.load %arg3[%c0_113, %c0_114] : memref<128x512xbf16, #tpu.memory_space<vmem>>, vector<128x512xbf16>
    %cst_115 = arith.constant dense<0.000000e+00> : vector<8x512xf32>
    %227 = tpu.matmul %225, %226, %cst_115 {dimension_numbers = #tpu.dot_dimension_numbers<[1], [0], [0], [1], [0, 0, 1, 1], [], []>} : vector<8x128xbf16>, vector<128x512xbf16>, vector<8x512xf32> -> vector<8x512xf32>
    %228 = arith.addf %223, %227 : vector<8x512xf32>
    %c0_116 = arith.constant 0 : index
    %c0_117 = arith.constant 0 : index
    %229 = vector.load %arg12[%c0_116, %c0_117] : memref<8x128xf32, #tpu.memory_space<vmem>>, vector<8x128xf32>
    %230 = vector.extract_strided_slice %228 {offsets = [0, 0], sizes = [8, 128], strides = [1, 1]} : vector<8x512xf32> to vector<8x128xf32>
    %231 = arith.negf %230 : vector<8x128xf32>
    %232 = math.exp %231 : vector<8x128xf32>
    %cst_118 = arith.constant 1.000000e+00 : f32
    %233 = vector.broadcast %cst_118 : f32 to vector<8x128xf32>
    %234 = arith.addf %233, %232 : vector<8x128xf32>
    %235 = arith.divf %233, %234 : vector<8x128xf32>
    %236 = vector.extract_strided_slice %228 {offsets = [0, 128], sizes = [8, 128], strides = [1, 1]} : vector<8x512xf32> to vector<8x128xf32>
    %237 = arith.negf %236 : vector<8x128xf32>
    %238 = math.exp %237 : vector<8x128xf32>
    %cst_119 = arith.constant 1.000000e+00 : f32
    %239 = vector.broadcast %cst_119 : f32 to vector<8x128xf32>
    %240 = arith.addf %239, %238 : vector<8x128xf32>
    %241 = arith.divf %239, %240 : vector<8x128xf32>
    %242 = vector.extract_strided_slice %228 {offsets = [0, 256], sizes = [8, 128], strides = [1, 1]} : vector<8x512xf32> to vector<8x128xf32>
    %243 = math.tanh %242 : vector<8x128xf32>
    %244 = vector.extract_strided_slice %228 {offsets = [0, 384], sizes = [8, 128], strides = [1, 1]} : vector<8x512xf32> to vector<8x128xf32>
    %245 = arith.negf %244 : vector<8x128xf32>
    %246 = math.exp %245 : vector<8x128xf32>
    %cst_120 = arith.constant 1.000000e+00 : f32
    %247 = vector.broadcast %cst_120 : f32 to vector<8x128xf32>
    %248 = arith.addf %247, %246 : vector<8x128xf32>
    %249 = arith.divf %247, %248 : vector<8x128xf32>
    %250 = arith.mulf %241, %229 : vector<8x128xf32>
    %251 = arith.mulf %235, %243 : vector<8x128xf32>
    %252 = arith.addf %250, %251 : vector<8x128xf32>
    %253 = math.tanh %252 : vector<8x128xf32>
    %254 = arith.mulf %249, %253 : vector<8x128xf32>
    %c0_121 = arith.constant 0 : index
    %c0_122 = arith.constant 0 : index
    %255 = vector.load %arg11[%c0_121, %c0_122] : memref<8x128xf32, #tpu.memory_space<vmem>>, vector<8x128xf32>
    tpu.vector_store %arg11[%c0_121, %c0_122], %254 {strides = array<i32>} : memref<8x128xf32, #tpu.memory_space<vmem>>, vector<8x128xf32>,
    %c0_123 = arith.constant 0 : index
    %c0_124 = arith.constant 0 : index
    %256 = vector.load %arg12[%c0_123, %c0_124] : memref<8x128xf32, #tpu.memory_space<vmem>>, vector<8x128xf32>
    tpu.vector_store %arg12[%c0_123, %c0_124], %252 {strides = array<i32>} : memref<8x128xf32, #tpu.memory_space<vmem>>, vector<8x128xf32>,
    %c0_125 = arith.constant 0 : index
    %c0_126 = arith.constant 0 : index
    %257 = vector.load %arg13[%c0_125, %c0_126] : memref<8x128xf32, #tpu.memory_space<vmem>>, vector<8x128xf32>
    %258 = tpu.concatenate %254, %257 in 1 : vector<8x128xf32>, vector<8x128xf32> -> vector<8x256xf32>
    %259 = arith.truncf %258 : vector<8x256xf32> to vector<8x256xbf16>
    %c0_127 = arith.constant 0 : index
    %c0_128 = arith.constant 0 : index
    %260 = vector.load %arg5[%c0_127, %c0_128] : memref<256x512xbf16, #tpu.memory_space<vmem>>, vector<256x512xbf16>
    %cst_129 = arith.constant dense<0.000000e+00> : vector<8x512xf32>
    %261 = tpu.matmul %259, %260, %cst_129 {dimension_numbers = #tpu.dot_dimension_numbers<[1], [0], [0], [1], [0, 0, 1, 1], [], []>} : vector<8x256xbf16>, vector<256x512xbf16>, vector<8x512xf32> -> vector<8x512xf32>
    %262 = arith.addf %261, %10 : vector<8x512xf32>
    %c0_130 = arith.constant 0 : index
    %c0_131 = arith.constant 0 : index
    %263 = vector.load %arg14[%c0_130, %c0_131] : memref<8x128xf32, #tpu.memory_space<vmem>>, vector<8x128xf32>
    %264 = vector.extract_strided_slice %262 {offsets = [0, 0], sizes = [8, 128], strides = [1, 1]} : vector<8x512xf32> to vector<8x128xf32>
    %265 = arith.negf %264 : vector<8x128xf32>
    %266 = math.exp %265 : vector<8x128xf32>
    %cst_132 = arith.constant 1.000000e+00 : f32
    %267 = vector.broadcast %cst_132 : f32 to vector<8x128xf32>
    %268 = arith.addf %267, %266 : vector<8x128xf32>
    %269 = arith.divf %267, %268 : vector<8x128xf32>
    %270 = vector.extract_strided_slice %262 {offsets = [0, 128], sizes = [8, 128], strides = [1, 1]} : vector<8x512xf32> to vector<8x128xf32>
    %271 = arith.negf %270 : vector<8x128xf32>
    %272 = math.exp %271 : vector<8x128xf32>
    %cst_133 = arith.constant 1.000000e+00 : f32
    %273 = vector.broadcast %cst_133 : f32 to vector<8x128xf32>
    %274 = arith.addf %273, %272 : vector<8x128xf32>
    %275 = arith.divf %273, %274 : vector<8x128xf32>
    %276 = vector.extract_strided_slice %262 {offsets = [0, 256], sizes = [8, 128], strides = [1, 1]} : vector<8x512xf32> to vector<8x128xf32>
    %277 = math.tanh %276 : vector<8x128xf32>
    %278 = vector.extract_strided_slice %262 {offsets = [0, 384], sizes = [8, 128], strides = [1, 1]} : vector<8x512xf32> to vector<8x128xf32>
    %279 = arith.negf %278 : vector<8x128xf32>
    %280 = math.exp %279 : vector<8x128xf32>
    %cst_134 = arith.constant 1.000000e+00 : f32
    %281 = vector.broadcast %cst_134 : f32 to vector<8x128xf32>
    %282 = arith.addf %281, %280 : vector<8x128xf32>
    %283 = arith.divf %281, %282 : vector<8x128xf32>
    %284 = arith.mulf %275, %263 : vector<8x128xf32>
    %285 = arith.mulf %269, %277 : vector<8x128xf32>
    %286 = arith.addf %284, %285 : vector<8x128xf32>
    %287 = math.tanh %286 : vector<8x128xf32>
    %288 = arith.mulf %283, %287 : vector<8x128xf32>
    %c0_135 = arith.constant 0 : index
    %c0_136 = arith.constant 0 : index
    %289 = vector.load %arg13[%c0_135, %c0_136] : memref<8x128xf32, #tpu.memory_space<vmem>>, vector<8x128xf32>
    tpu.vector_store %arg13[%c0_135, %c0_136], %288 {strides = array<i32>} : memref<8x128xf32, #tpu.memory_space<vmem>>, vector<8x128xf32>,
    %c0_137 = arith.constant 0 : index
    %c0_138 = arith.constant 0 : index
    %290 = vector.load %arg14[%c0_137, %c0_138] : memref<8x128xf32, #tpu.memory_space<vmem>>, vector<8x128xf32>
    tpu.vector_store %arg14[%c0_137, %c0_138], %286 {strides = array<i32>} : memref<8x128xf32, #tpu.memory_space<vmem>>, vector<8x128xf32>,
    %c32 = arith.constant 32 : index
    %c0_139 = arith.constant 0 : index
    %291 = vector.load %arg10[%c32, %c0_139] : memref<64x512xf32, #tpu.memory_space<vmem>>, vector<8x512xf32>
    %c0_140 = arith.constant 0 : index
    %c0_141 = arith.constant 0 : index
    %292 = vector.load %arg11[%c0_140, %c0_141] : memref<8x128xf32, #tpu.memory_space<vmem>>, vector<8x128xf32>
    %293 = arith.truncf %292 : vector<8x128xf32> to vector<8x128xbf16>
    %c0_142 = arith.constant 0 : index
    %c0_143 = arith.constant 0 : index
    %294 = vector.load %arg3[%c0_142, %c0_143] : memref<128x512xbf16, #tpu.memory_space<vmem>>, vector<128x512xbf16>
    %cst_144 = arith.constant dense<0.000000e+00> : vector<8x512xf32>
    %295 = tpu.matmul %293, %294, %cst_144 {dimension_numbers = #tpu.dot_dimension_numbers<[1], [0], [0], [1], [0, 0, 1, 1], [], []>} : vector<8x128xbf16>, vector<128x512xbf16>, vector<8x512xf32> -> vector<8x512xf32>
    %296 = arith.addf %291, %295 : vector<8x512xf32>
    %c0_145 = arith.constant 0 : index
    %c0_146 = arith.constant 0 : index
    %297 = vector.load %arg12[%c0_145, %c0_146] : memref<8x128xf32, #tpu.memory_space<vmem>>, vector<8x128xf32>
    %298 = vector.extract_strided_slice %296 {offsets = [0, 0], sizes = [8, 128], strides = [1, 1]} : vector<8x512xf32> to vector<8x128xf32>
    %299 = arith.negf %298 : vector<8x128xf32>
    %300 = math.exp %299 : vector<8x128xf32>
    %cst_147 = arith.constant 1.000000e+00 : f32
    %301 = vector.broadcast %cst_147 : f32 to vector<8x128xf32>
    %302 = arith.addf %301, %300 : vector<8x128xf32>
    %303 = arith.divf %301, %302 : vector<8x128xf32>
    %304 = vector.extract_strided_slice %296 {offsets = [0, 128], sizes = [8, 128], strides = [1, 1]} : vector<8x512xf32> to vector<8x128xf32>
    %305 = arith.negf %304 : vector<8x128xf32>
    %306 = math.exp %305 : vector<8x128xf32>
    %cst_148 = arith.constant 1.000000e+00 : f32
    %307 = vector.broadcast %cst_148 : f32 to vector<8x128xf32>
    %308 = arith.addf %307, %306 : vector<8x128xf32>
    %309 = arith.divf %307, %308 : vector<8x128xf32>
    %310 = vector.extract_strided_slice %296 {offsets = [0, 256], sizes = [8, 128], strides = [1, 1]} : vector<8x512xf32> to vector<8x128xf32>
    %311 = math.tanh %310 : vector<8x128xf32>
    %312 = vector.extract_strided_slice %296 {offsets = [0, 384], sizes = [8, 128], strides = [1, 1]} : vector<8x512xf32> to vector<8x128xf32>
    %313 = arith.negf %312 : vector<8x128xf32>
    %314 = math.exp %313 : vector<8x128xf32>
    %cst_149 = arith.constant 1.000000e+00 : f32
    %315 = vector.broadcast %cst_149 : f32 to vector<8x128xf32>
    %316 = arith.addf %315, %314 : vector<8x128xf32>
    %317 = arith.divf %315, %316 : vector<8x128xf32>
    %318 = arith.mulf %309, %297 : vector<8x128xf32>
    %319 = arith.mulf %303, %311 : vector<8x128xf32>
    %320 = arith.addf %318, %319 : vector<8x128xf32>
    %321 = math.tanh %320 : vector<8x128xf32>
    %322 = arith.mulf %317, %321 : vector<8x128xf32>
    %c0_150 = arith.constant 0 : index
    %c0_151 = arith.constant 0 : index
    %323 = vector.load %arg11[%c0_150, %c0_151] : memref<8x128xf32, #tpu.memory_space<vmem>>, vector<8x128xf32>
    tpu.vector_store %arg11[%c0_150, %c0_151], %322 {strides = array<i32>} : memref<8x128xf32, #tpu.memory_space<vmem>>, vector<8x128xf32>,
    %c0_152 = arith.constant 0 : index
    %c0_153 = arith.constant 0 : index
    %324 = vector.load %arg12[%c0_152, %c0_153] : memref<8x128xf32, #tpu.memory_space<vmem>>, vector<8x128xf32>
    tpu.vector_store %arg12[%c0_152, %c0_153], %320 {strides = array<i32>} : memref<8x128xf32, #tpu.memory_space<vmem>>, vector<8x128xf32>,
    %c0_154 = arith.constant 0 : index
    %c0_155 = arith.constant 0 : index
    %325 = vector.load %arg13[%c0_154, %c0_155] : memref<8x128xf32, #tpu.memory_space<vmem>>, vector<8x128xf32>
    %326 = tpu.concatenate %322, %325 in 1 : vector<8x128xf32>, vector<8x128xf32> -> vector<8x256xf32>
    %327 = arith.truncf %326 : vector<8x256xf32> to vector<8x256xbf16>
    %c0_156 = arith.constant 0 : index
    %c0_157 = arith.constant 0 : index
    %328 = vector.load %arg5[%c0_156, %c0_157] : memref<256x512xbf16, #tpu.memory_space<vmem>>, vector<256x512xbf16>
    %cst_158 = arith.constant dense<0.000000e+00> : vector<8x512xf32>
    %329 = tpu.matmul %327, %328, %cst_158 {dimension_numbers = #tpu.dot_dimension_numbers<[1], [0], [0], [1], [0, 0, 1, 1], [], []>} : vector<8x256xbf16>, vector<256x512xbf16>, vector<8x512xf32> -> vector<8x512xf32>
    %330 = arith.addf %329, %10 : vector<8x512xf32>
    %c0_159 = arith.constant 0 : index
    %c0_160 = arith.constant 0 : index
    %331 = vector.load %arg14[%c0_159, %c0_160] : memref<8x128xf32, #tpu.memory_space<vmem>>, vector<8x128xf32>
    %332 = vector.extract_strided_slice %330 {offsets = [0, 0], sizes = [8, 128], strides = [1, 1]} : vector<8x512xf32> to vector<8x128xf32>
    %333 = arith.negf %332 : vector<8x128xf32>
    %334 = math.exp %333 : vector<8x128xf32>
    %cst_161 = arith.constant 1.000000e+00 : f32
    %335 = vector.broadcast %cst_161 : f32 to vector<8x128xf32>
    %336 = arith.addf %335, %334 : vector<8x128xf32>
    %337 = arith.divf %335, %336 : vector<8x128xf32>
    %338 = vector.extract_strided_slice %330 {offsets = [0, 128], sizes = [8, 128], strides = [1, 1]} : vector<8x512xf32> to vector<8x128xf32>
    %339 = arith.negf %338 : vector<8x128xf32>
    %340 = math.exp %339 : vector<8x128xf32>
    %cst_162 = arith.constant 1.000000e+00 : f32
    %341 = vector.broadcast %cst_162 : f32 to vector<8x128xf32>
    %342 = arith.addf %341, %340 : vector<8x128xf32>
    %343 = arith.divf %341, %342 : vector<8x128xf32>
    %344 = vector.extract_strided_slice %330 {offsets = [0, 256], sizes = [8, 128], strides = [1, 1]} : vector<8x512xf32> to vector<8x128xf32>
    %345 = math.tanh %344 : vector<8x128xf32>
    %346 = vector.extract_strided_slice %330 {offsets = [0, 384], sizes = [8, 128], strides = [1, 1]} : vector<8x512xf32> to vector<8x128xf32>
    %347 = arith.negf %346 : vector<8x128xf32>
    %348 = math.exp %347 : vector<8x128xf32>
    %cst_163 = arith.constant 1.000000e+00 : f32
    %349 = vector.broadcast %cst_163 : f32 to vector<8x128xf32>
    %350 = arith.addf %349, %348 : vector<8x128xf32>
    %351 = arith.divf %349, %350 : vector<8x128xf32>
    %352 = arith.mulf %343, %331 : vector<8x128xf32>
    %353 = arith.mulf %337, %345 : vector<8x128xf32>
    %354 = arith.addf %352, %353 : vector<8x128xf32>
    %355 = math.tanh %354 : vector<8x128xf32>
    %356 = arith.mulf %351, %355 : vector<8x128xf32>
    %c0_164 = arith.constant 0 : index
    %c0_165 = arith.constant 0 : index
    %357 = vector.load %arg13[%c0_164, %c0_165] : memref<8x128xf32, #tpu.memory_space<vmem>>, vector<8x128xf32>
    tpu.vector_store %arg13[%c0_164, %c0_165], %356 {strides = array<i32>} : memref<8x128xf32, #tpu.memory_space<vmem>>, vector<8x128xf32>,
    %c0_166 = arith.constant 0 : index
    %c0_167 = arith.constant 0 : index
    %358 = vector.load %arg14[%c0_166, %c0_167] : memref<8x128xf32, #tpu.memory_space<vmem>>, vector<8x128xf32>
    tpu.vector_store %arg14[%c0_166, %c0_167], %354 {strides = array<i32>} : memref<8x128xf32, #tpu.memory_space<vmem>>, vector<8x128xf32>,
    %c40 = arith.constant 40 : index
    %c0_168 = arith.constant 0 : index
    %359 = vector.load %arg10[%c40, %c0_168] : memref<64x512xf32, #tpu.memory_space<vmem>>, vector<8x512xf32>
    %c0_169 = arith.constant 0 : index
    %c0_170 = arith.constant 0 : index
    %360 = vector.load %arg11[%c0_169, %c0_170] : memref<8x128xf32, #tpu.memory_space<vmem>>, vector<8x128xf32>
    %361 = arith.truncf %360 : vector<8x128xf32> to vector<8x128xbf16>
    %c0_171 = arith.constant 0 : index
    %c0_172 = arith.constant 0 : index
    %362 = vector.load %arg3[%c0_171, %c0_172] : memref<128x512xbf16, #tpu.memory_space<vmem>>, vector<128x512xbf16>
    %cst_173 = arith.constant dense<0.000000e+00> : vector<8x512xf32>
    %363 = tpu.matmul %361, %362, %cst_173 {dimension_numbers = #tpu.dot_dimension_numbers<[1], [0], [0], [1], [0, 0, 1, 1], [], []>} : vector<8x128xbf16>, vector<128x512xbf16>, vector<8x512xf32> -> vector<8x512xf32>
    %364 = arith.addf %359, %363 : vector<8x512xf32>
    %c0_174 = arith.constant 0 : index
    %c0_175 = arith.constant 0 : index
    %365 = vector.load %arg12[%c0_174, %c0_175] : memref<8x128xf32, #tpu.memory_space<vmem>>, vector<8x128xf32>
    %366 = vector.extract_strided_slice %364 {offsets = [0, 0], sizes = [8, 128], strides = [1, 1]} : vector<8x512xf32> to vector<8x128xf32>
    %367 = arith.negf %366 : vector<8x128xf32>
    %368 = math.exp %367 : vector<8x128xf32>
    %cst_176 = arith.constant 1.000000e+00 : f32
    %369 = vector.broadcast %cst_176 : f32 to vector<8x128xf32>
    %370 = arith.addf %369, %368 : vector<8x128xf32>
    %371 = arith.divf %369, %370 : vector<8x128xf32>
    %372 = vector.extract_strided_slice %364 {offsets = [0, 128], sizes = [8, 128], strides = [1, 1]} : vector<8x512xf32> to vector<8x128xf32>
    %373 = arith.negf %372 : vector<8x128xf32>
    %374 = math.exp %373 : vector<8x128xf32>
    %cst_177 = arith.constant 1.000000e+00 : f32
    %375 = vector.broadcast %cst_177 : f32 to vector<8x128xf32>
    %376 = arith.addf %375, %374 : vector<8x128xf32>
    %377 = arith.divf %375, %376 : vector<8x128xf32>
    %378 = vector.extract_strided_slice %364 {offsets = [0, 256], sizes = [8, 128], strides = [1, 1]} : vector<8x512xf32> to vector<8x128xf32>
    %379 = math.tanh %378 : vector<8x128xf32>
    %380 = vector.extract_strided_slice %364 {offsets = [0, 384], sizes = [8, 128], strides = [1, 1]} : vector<8x512xf32> to vector<8x128xf32>
    %381 = arith.negf %380 : vector<8x128xf32>
    %382 = math.exp %381 : vector<8x128xf32>
    %cst_178 = arith.constant 1.000000e+00 : f32
    %383 = vector.broadcast %cst_178 : f32 to vector<8x128xf32>
    %384 = arith.addf %383, %382 : vector<8x128xf32>
    %385 = arith.divf %383, %384 : vector<8x128xf32>
    %386 = arith.mulf %377, %365 : vector<8x128xf32>
    %387 = arith.mulf %371, %379 : vector<8x128xf32>
    %388 = arith.addf %386, %387 : vector<8x128xf32>
    %389 = math.tanh %388 : vector<8x128xf32>
    %390 = arith.mulf %385, %389 : vector<8x128xf32>
    %c0_179 = arith.constant 0 : index
    %c0_180 = arith.constant 0 : index
    %391 = vector.load %arg11[%c0_179, %c0_180] : memref<8x128xf32, #tpu.memory_space<vmem>>, vector<8x128xf32>
    tpu.vector_store %arg11[%c0_179, %c0_180], %390 {strides = array<i32>} : memref<8x128xf32, #tpu.memory_space<vmem>>, vector<8x128xf32>,
    %c0_181 = arith.constant 0 : index
    %c0_182 = arith.constant 0 : index
    %392 = vector.load %arg12[%c0_181, %c0_182] : memref<8x128xf32, #tpu.memory_space<vmem>>, vector<8x128xf32>
    tpu.vector_store %arg12[%c0_181, %c0_182], %388 {strides = array<i32>} : memref<8x128xf32, #tpu.memory_space<vmem>>, vector<8x128xf32>,
    %c0_183 = arith.constant 0 : index
    %c0_184 = arith.constant 0 : index
    %393 = vector.load %arg13[%c0_183, %c0_184] : memref<8x128xf32, #tpu.memory_space<vmem>>, vector<8x128xf32>
    %394 = tpu.concatenate %390, %393 in 1 : vector<8x128xf32>, vector<8x128xf32> -> vector<8x256xf32>
    %395 = arith.truncf %394 : vector<8x256xf32> to vector<8x256xbf16>
    %c0_185 = arith.constant 0 : index
    %c0_186 = arith.constant 0 : index
    %396 = vector.load %arg5[%c0_185, %c0_186] : memref<256x512xbf16, #tpu.memory_space<vmem>>, vector<256x512xbf16>
    %cst_187 = arith.constant dense<0.000000e+00> : vector<8x512xf32>
    %397 = tpu.matmul %395, %396, %cst_187 {dimension_numbers = #tpu.dot_dimension_numbers<[1], [0], [0], [1], [0, 0, 1, 1], [], []>} : vector<8x256xbf16>, vector<256x512xbf16>, vector<8x512xf32> -> vector<8x512xf32>
    %398 = arith.addf %397, %10 : vector<8x512xf32>
    %c0_188 = arith.constant 0 : index
    %c0_189 = arith.constant 0 : index
    %399 = vector.load %arg14[%c0_188, %c0_189] : memref<8x128xf32, #tpu.memory_space<vmem>>, vector<8x128xf32>
    %400 = vector.extract_strided_slice %398 {offsets = [0, 0], sizes = [8, 128], strides = [1, 1]} : vector<8x512xf32> to vector<8x128xf32>
    %401 = arith.negf %400 : vector<8x128xf32>
    %402 = math.exp %401 : vector<8x128xf32>
    %cst_190 = arith.constant 1.000000e+00 : f32
    %403 = vector.broadcast %cst_190 : f32 to vector<8x128xf32>
    %404 = arith.addf %403, %402 : vector<8x128xf32>
    %405 = arith.divf %403, %404 : vector<8x128xf32>
    %406 = vector.extract_strided_slice %398 {offsets = [0, 128], sizes = [8, 128], strides = [1, 1]} : vector<8x512xf32> to vector<8x128xf32>
    %407 = arith.negf %406 : vector<8x128xf32>
    %408 = math.exp %407 : vector<8x128xf32>
    %cst_191 = arith.constant 1.000000e+00 : f32
    %409 = vector.broadcast %cst_191 : f32 to vector<8x128xf32>
    %410 = arith.addf %409, %408 : vector<8x128xf32>
    %411 = arith.divf %409, %410 : vector<8x128xf32>
    %412 = vector.extract_strided_slice %398 {offsets = [0, 256], sizes = [8, 128], strides = [1, 1]} : vector<8x512xf32> to vector<8x128xf32>
    %413 = math.tanh %412 : vector<8x128xf32>
    %414 = vector.extract_strided_slice %398 {offsets = [0, 384], sizes = [8, 128], strides = [1, 1]} : vector<8x512xf32> to vector<8x128xf32>
    %415 = arith.negf %414 : vector<8x128xf32>
    %416 = math.exp %415 : vector<8x128xf32>
    %cst_192 = arith.constant 1.000000e+00 : f32
    %417 = vector.broadcast %cst_192 : f32 to vector<8x128xf32>
    %418 = arith.addf %417, %416 : vector<8x128xf32>
    %419 = arith.divf %417, %418 : vector<8x128xf32>
    %420 = arith.mulf %411, %399 : vector<8x128xf32>
    %421 = arith.mulf %405, %413 : vector<8x128xf32>
    %422 = arith.addf %420, %421 : vector<8x128xf32>
    %423 = math.tanh %422 : vector<8x128xf32>
    %424 = arith.mulf %419, %423 : vector<8x128xf32>
    %c0_193 = arith.constant 0 : index
    %c0_194 = arith.constant 0 : index
    %425 = vector.load %arg13[%c0_193, %c0_194] : memref<8x128xf32, #tpu.memory_space<vmem>>, vector<8x128xf32>
    tpu.vector_store %arg13[%c0_193, %c0_194], %424 {strides = array<i32>} : memref<8x128xf32, #tpu.memory_space<vmem>>, vector<8x128xf32>,
    %c0_195 = arith.constant 0 : index
    %c0_196 = arith.constant 0 : index
    %426 = vector.load %arg14[%c0_195, %c0_196] : memref<8x128xf32, #tpu.memory_space<vmem>>, vector<8x128xf32>
    tpu.vector_store %arg14[%c0_195, %c0_196], %422 {strides = array<i32>} : memref<8x128xf32, #tpu.memory_space<vmem>>, vector<8x128xf32>,
    %c48 = arith.constant 48 : index
    %c0_197 = arith.constant 0 : index
    %427 = vector.load %arg10[%c48, %c0_197] : memref<64x512xf32, #tpu.memory_space<vmem>>, vector<8x512xf32>
    %c0_198 = arith.constant 0 : index
    %c0_199 = arith.constant 0 : index
    %428 = vector.load %arg11[%c0_198, %c0_199] : memref<8x128xf32, #tpu.memory_space<vmem>>, vector<8x128xf32>
    %429 = arith.truncf %428 : vector<8x128xf32> to vector<8x128xbf16>
    %c0_200 = arith.constant 0 : index
    %c0_201 = arith.constant 0 : index
    %430 = vector.load %arg3[%c0_200, %c0_201] : memref<128x512xbf16, #tpu.memory_space<vmem>>, vector<128x512xbf16>
    %cst_202 = arith.constant dense<0.000000e+00> : vector<8x512xf32>
    %431 = tpu.matmul %429, %430, %cst_202 {dimension_numbers = #tpu.dot_dimension_numbers<[1], [0], [0], [1], [0, 0, 1, 1], [], []>} : vector<8x128xbf16>, vector<128x512xbf16>, vector<8x512xf32> -> vector<8x512xf32>
    %432 = arith.addf %427, %431 : vector<8x512xf32>
    %c0_203 = arith.constant 0 : index
    %c0_204 = arith.constant 0 : index
    %433 = vector.load %arg12[%c0_203, %c0_204] : memref<8x128xf32, #tpu.memory_space<vmem>>, vector<8x128xf32>
    %434 = vector.extract_strided_slice %432 {offsets = [0, 0], sizes = [8, 128], strides = [1, 1]} : vector<8x512xf32> to vector<8x128xf32>
    %435 = arith.negf %434 : vector<8x128xf32>
    %436 = math.exp %435 : vector<8x128xf32>
    %cst_205 = arith.constant 1.000000e+00 : f32
    %437 = vector.broadcast %cst_205 : f32 to vector<8x128xf32>
    %438 = arith.addf %437, %436 : vector<8x128xf32>
    %439 = arith.divf %437, %438 : vector<8x128xf32>
    %440 = vector.extract_strided_slice %432 {offsets = [0, 128], sizes = [8, 128], strides = [1, 1]} : vector<8x512xf32> to vector<8x128xf32>
    %441 = arith.negf %440 : vector<8x128xf32>
    %442 = math.exp %441 : vector<8x128xf32>
    %cst_206 = arith.constant 1.000000e+00 : f32
    %443 = vector.broadcast %cst_206 : f32 to vector<8x128xf32>
    %444 = arith.addf %443, %442 : vector<8x128xf32>
    %445 = arith.divf %443, %444 : vector<8x128xf32>
    %446 = vector.extract_strided_slice %432 {offsets = [0, 256], sizes = [8, 128], strides = [1, 1]} : vector<8x512xf32> to vector<8x128xf32>
    %447 = math.tanh %446 : vector<8x128xf32>
    %448 = vector.extract_strided_slice %432 {offsets = [0, 384], sizes = [8, 128], strides = [1, 1]} : vector<8x512xf32> to vector<8x128xf32>
    %449 = arith.negf %448 : vector<8x128xf32>
    %450 = math.exp %449 : vector<8x128xf32>
    %cst_207 = arith.constant 1.000000e+00 : f32
    %451 = vector.broadcast %cst_207 : f32 to vector<8x128xf32>
    %452 = arith.addf %451, %450 : vector<8x128xf32>
    %453 = arith.divf %451, %452 : vector<8x128xf32>
    %454 = arith.mulf %445, %433 : vector<8x128xf32>
    %455 = arith.mulf %439, %447 : vector<8x128xf32>
    %456 = arith.addf %454, %455 : vector<8x128xf32>
    %457 = math.tanh %456 : vector<8x128xf32>
    %458 = arith.mulf %453, %457 : vector<8x128xf32>
    %c0_208 = arith.constant 0 : index
    %c0_209 = arith.constant 0 : index
    %459 = vector.load %arg11[%c0_208, %c0_209] : memref<8x128xf32, #tpu.memory_space<vmem>>, vector<8x128xf32>
    tpu.vector_store %arg11[%c0_208, %c0_209], %458 {strides = array<i32>} : memref<8x128xf32, #tpu.memory_space<vmem>>, vector<8x128xf32>,
    %c0_210 = arith.constant 0 : index
    %c0_211 = arith.constant 0 : index
    %460 = vector.load %arg12[%c0_210, %c0_211] : memref<8x128xf32, #tpu.memory_space<vmem>>, vector<8x128xf32>
    tpu.vector_store %arg12[%c0_210, %c0_211], %456 {strides = array<i32>} : memref<8x128xf32, #tpu.memory_space<vmem>>, vector<8x128xf32>,
    %c0_212 = arith.constant 0 : index
    %c0_213 = arith.constant 0 : index
    %461 = vector.load %arg13[%c0_212, %c0_213] : memref<8x128xf32, #tpu.memory_space<vmem>>, vector<8x128xf32>
    %462 = tpu.concatenate %458, %461 in 1 : vector<8x128xf32>, vector<8x128xf32> -> vector<8x256xf32>
    %463 = arith.truncf %462 : vector<8x256xf32> to vector<8x256xbf16>
    %c0_214 = arith.constant 0 : index
    %c0_215 = arith.constant 0 : index
    %464 = vector.load %arg5[%c0_214, %c0_215] : memref<256x512xbf16, #tpu.memory_space<vmem>>, vector<256x512xbf16>
    %cst_216 = arith.constant dense<0.000000e+00> : vector<8x512xf32>
    %465 = tpu.matmul %463, %464, %cst_216 {dimension_numbers = #tpu.dot_dimension_numbers<[1], [0], [0], [1], [0, 0, 1, 1], [], []>} : vector<8x256xbf16>, vector<256x512xbf16>, vector<8x512xf32> -> vector<8x512xf32>
    %466 = arith.addf %465, %10 : vector<8x512xf32>
    %c0_217 = arith.constant 0 : index
    %c0_218 = arith.constant 0 : index
    %467 = vector.load %arg14[%c0_217, %c0_218] : memref<8x128xf32, #tpu.memory_space<vmem>>, vector<8x128xf32>
    %468 = vector.extract_strided_slice %466 {offsets = [0, 0], sizes = [8, 128], strides = [1, 1]} : vector<8x512xf32> to vector<8x128xf32>
    %469 = arith.negf %468 : vector<8x128xf32>
    %470 = math.exp %469 : vector<8x128xf32>
    %cst_219 = arith.constant 1.000000e+00 : f32
    %471 = vector.broadcast %cst_219 : f32 to vector<8x128xf32>
    %472 = arith.addf %471, %470 : vector<8x128xf32>
    %473 = arith.divf %471, %472 : vector<8x128xf32>
    %474 = vector.extract_strided_slice %466 {offsets = [0, 128], sizes = [8, 128], strides = [1, 1]} : vector<8x512xf32> to vector<8x128xf32>
    %475 = arith.negf %474 : vector<8x128xf32>
    %476 = math.exp %475 : vector<8x128xf32>
    %cst_220 = arith.constant 1.000000e+00 : f32
    %477 = vector.broadcast %cst_220 : f32 to vector<8x128xf32>
    %478 = arith.addf %477, %476 : vector<8x128xf32>
    %479 = arith.divf %477, %478 : vector<8x128xf32>
    %480 = vector.extract_strided_slice %466 {offsets = [0, 256], sizes = [8, 128], strides = [1, 1]} : vector<8x512xf32> to vector<8x128xf32>
    %481 = math.tanh %480 : vector<8x128xf32>
    %482 = vector.extract_strided_slice %466 {offsets = [0, 384], sizes = [8, 128], strides = [1, 1]} : vector<8x512xf32> to vector<8x128xf32>
    %483 = arith.negf %482 : vector<8x128xf32>
    %484 = math.exp %483 : vector<8x128xf32>
    %cst_221 = arith.constant 1.000000e+00 : f32
    %485 = vector.broadcast %cst_221 : f32 to vector<8x128xf32>
    %486 = arith.addf %485, %484 : vector<8x128xf32>
    %487 = arith.divf %485, %486 : vector<8x128xf32>
    %488 = arith.mulf %479, %467 : vector<8x128xf32>
    %489 = arith.mulf %473, %481 : vector<8x128xf32>
    %490 = arith.addf %488, %489 : vector<8x128xf32>
    %491 = math.tanh %490 : vector<8x128xf32>
    %492 = arith.mulf %487, %491 : vector<8x128xf32>
    %c0_222 = arith.constant 0 : index
    %c0_223 = arith.constant 0 : index
    %493 = vector.load %arg13[%c0_222, %c0_223] : memref<8x128xf32, #tpu.memory_space<vmem>>, vector<8x128xf32>
    tpu.vector_store %arg13[%c0_222, %c0_223], %492 {strides = array<i32>} : memref<8x128xf32, #tpu.memory_space<vmem>>, vector<8x128xf32>,
    %c0_224 = arith.constant 0 : index
    %c0_225 = arith.constant 0 : index
    %494 = vector.load %arg14[%c0_224, %c0_225] : memref<8x128xf32, #tpu.memory_space<vmem>>, vector<8x128xf32>
    tpu.vector_store %arg14[%c0_224, %c0_225], %490 {strides = array<i32>} : memref<8x128xf32, #tpu.memory_space<vmem>>, vector<8x128xf32>,
    %c56 = arith.constant 56 : index
    %c0_226 = arith.constant 0 : index
    %495 = vector.load %arg10[%c56, %c0_226] : memref<64x512xf32, #tpu.memory_space<vmem>>, vector<8x512xf32>
    %c0_227 = arith.constant 0 : index
    %c0_228 = arith.constant 0 : index
    %496 = vector.load %arg11[%c0_227, %c0_228] : memref<8x128xf32, #tpu.memory_space<vmem>>, vector<8x128xf32>
    %497 = arith.truncf %496 : vector<8x128xf32> to vector<8x128xbf16>
    %c0_229 = arith.constant 0 : index
    %c0_230 = arith.constant 0 : index
    %498 = vector.load %arg3[%c0_229, %c0_230] : memref<128x512xbf16, #tpu.memory_space<vmem>>, vector<128x512xbf16>
    %cst_231 = arith.constant dense<0.000000e+00> : vector<8x512xf32>
    %499 = tpu.matmul %497, %498, %cst_231 {dimension_numbers = #tpu.dot_dimension_numbers<[1], [0], [0], [1], [0, 0, 1, 1], [], []>} : vector<8x128xbf16>, vector<128x512xbf16>, vector<8x512xf32> -> vector<8x512xf32>
    %500 = arith.addf %495, %499 : vector<8x512xf32>
    %c0_232 = arith.constant 0 : index
    %c0_233 = arith.constant 0 : index
    %501 = vector.load %arg12[%c0_232, %c0_233] : memref<8x128xf32, #tpu.memory_space<vmem>>, vector<8x128xf32>
    %502 = vector.extract_strided_slice %500 {offsets = [0, 0], sizes = [8, 128], strides = [1, 1]} : vector<8x512xf32> to vector<8x128xf32>
    %503 = arith.negf %502 : vector<8x128xf32>
    %504 = math.exp %503 : vector<8x128xf32>
    %cst_234 = arith.constant 1.000000e+00 : f32
    %505 = vector.broadcast %cst_234 : f32 to vector<8x128xf32>
    %506 = arith.addf %505, %504 : vector<8x128xf32>
    %507 = arith.divf %505, %506 : vector<8x128xf32>
    %508 = vector.extract_strided_slice %500 {offsets = [0, 128], sizes = [8, 128], strides = [1, 1]} : vector<8x512xf32> to vector<8x128xf32>
    %509 = arith.negf %508 : vector<8x128xf32>
    %510 = math.exp %509 : vector<8x128xf32>
    %cst_235 = arith.constant 1.000000e+00 : f32
    %511 = vector.broadcast %cst_235 : f32 to vector<8x128xf32>
    %512 = arith.addf %511, %510 : vector<8x128xf32>
    %513 = arith.divf %511, %512 : vector<8x128xf32>
    %514 = vector.extract_strided_slice %500 {offsets = [0, 256], sizes = [8, 128], strides = [1, 1]} : vector<8x512xf32> to vector<8x128xf32>
    %515 = math.tanh %514 : vector<8x128xf32>
    %516 = vector.extract_strided_slice %500 {offsets = [0, 384], sizes = [8, 128], strides = [1, 1]} : vector<8x512xf32> to vector<8x128xf32>
    %517 = arith.negf %516 : vector<8x128xf32>
    %518 = math.exp %517 : vector<8x128xf32>
    %cst_236 = arith.constant 1.000000e+00 : f32
    %519 = vector.broadcast %cst_236 : f32 to vector<8x128xf32>
    %520 = arith.addf %519, %518 : vector<8x128xf32>
    %521 = arith.divf %519, %520 : vector<8x128xf32>
    %522 = arith.mulf %513, %501 : vector<8x128xf32>
    %523 = arith.mulf %507, %515 : vector<8x128xf32>
    %524 = arith.addf %522, %523 : vector<8x128xf32>
    %525 = math.tanh %524 : vector<8x128xf32>
    %526 = arith.mulf %521, %525 : vector<8x128xf32>
    %c0_237 = arith.constant 0 : index
    %c0_238 = arith.constant 0 : index
    %527 = vector.load %arg11[%c0_237, %c0_238] : memref<8x128xf32, #tpu.memory_space<vmem>>, vector<8x128xf32>
    tpu.vector_store %arg11[%c0_237, %c0_238], %526 {strides = array<i32>} : memref<8x128xf32, #tpu.memory_space<vmem>>, vector<8x128xf32>,
    %c0_239 = arith.constant 0 : index
    %c0_240 = arith.constant 0 : index
    %528 = vector.load %arg12[%c0_239, %c0_240] : memref<8x128xf32, #tpu.memory_space<vmem>>, vector<8x128xf32>
    tpu.vector_store %arg12[%c0_239, %c0_240], %524 {strides = array<i32>} : memref<8x128xf32, #tpu.memory_space<vmem>>, vector<8x128xf32>,
    %c0_241 = arith.constant 0 : index
    %c0_242 = arith.constant 0 : index
    %529 = vector.load %arg13[%c0_241, %c0_242] : memref<8x128xf32, #tpu.memory_space<vmem>>, vector<8x128xf32>
    %530 = tpu.concatenate %526, %529 in 1 : vector<8x128xf32>, vector<8x128xf32> -> vector<8x256xf32>
    %531 = arith.truncf %530 : vector<8x256xf32> to vector<8x256xbf16>
    %c0_243 = arith.constant 0 : index
    %c0_244 = arith.constant 0 : index
    %532 = vector.load %arg5[%c0_243, %c0_244] : memref<256x512xbf16, #tpu.memory_space<vmem>>, vector<256x512xbf16>
    %cst_245 = arith.constant dense<0.000000e+00> : vector<8x512xf32>
    %533 = tpu.matmul %531, %532, %cst_245 {dimension_numbers = #tpu.dot_dimension_numbers<[1], [0], [0], [1], [0, 0, 1, 1], [], []>} : vector<8x256xbf16>, vector<256x512xbf16>, vector<8x512xf32> -> vector<8x512xf32>
    %534 = arith.addf %533, %10 : vector<8x512xf32>
    %c0_246 = arith.constant 0 : index
    %c0_247 = arith.constant 0 : index
    %535 = vector.load %arg14[%c0_246, %c0_247] : memref<8x128xf32, #tpu.memory_space<vmem>>, vector<8x128xf32>
    %536 = vector.extract_strided_slice %534 {offsets = [0, 0], sizes = [8, 128], strides = [1, 1]} : vector<8x512xf32> to vector<8x128xf32>
    %537 = arith.negf %536 : vector<8x128xf32>
    %538 = math.exp %537 : vector<8x128xf32>
    %cst_248 = arith.constant 1.000000e+00 : f32
    %539 = vector.broadcast %cst_248 : f32 to vector<8x128xf32>
    %540 = arith.addf %539, %538 : vector<8x128xf32>
    %541 = arith.divf %539, %540 : vector<8x128xf32>
    %542 = vector.extract_strided_slice %534 {offsets = [0, 128], sizes = [8, 128], strides = [1, 1]} : vector<8x512xf32> to vector<8x128xf32>
    %543 = arith.negf %542 : vector<8x128xf32>
    %544 = math.exp %543 : vector<8x128xf32>
    %cst_249 = arith.constant 1.000000e+00 : f32
    %545 = vector.broadcast %cst_249 : f32 to vector<8x128xf32>
    %546 = arith.addf %545, %544 : vector<8x128xf32>
    %547 = arith.divf %545, %546 : vector<8x128xf32>
    %548 = vector.extract_strided_slice %534 {offsets = [0, 256], sizes = [8, 128], strides = [1, 1]} : vector<8x512xf32> to vector<8x128xf32>
    %549 = math.tanh %548 : vector<8x128xf32>
    %550 = vector.extract_strided_slice %534 {offsets = [0, 384], sizes = [8, 128], strides = [1, 1]} : vector<8x512xf32> to vector<8x128xf32>
    %551 = arith.negf %550 : vector<8x128xf32>
    %552 = math.exp %551 : vector<8x128xf32>
    %cst_250 = arith.constant 1.000000e+00 : f32
    %553 = vector.broadcast %cst_250 : f32 to vector<8x128xf32>
    %554 = arith.addf %553, %552 : vector<8x128xf32>
    %555 = arith.divf %553, %554 : vector<8x128xf32>
    %556 = arith.mulf %547, %535 : vector<8x128xf32>
    %557 = arith.mulf %541, %549 : vector<8x128xf32>
    %558 = arith.addf %556, %557 : vector<8x128xf32>
    %559 = math.tanh %558 : vector<8x128xf32>
    %560 = arith.mulf %555, %559 : vector<8x128xf32>
    %c0_251 = arith.constant 0 : index
    %c0_252 = arith.constant 0 : index
    %561 = vector.load %arg13[%c0_251, %c0_252] : memref<8x128xf32, #tpu.memory_space<vmem>>, vector<8x128xf32>
    tpu.vector_store %arg13[%c0_251, %c0_252], %560 {strides = array<i32>} : memref<8x128xf32, #tpu.memory_space<vmem>>, vector<8x128xf32>,
    %c0_253 = arith.constant 0 : index
    %c0_254 = arith.constant 0 : index
    %562 = vector.load %arg14[%c0_253, %c0_254] : memref<8x128xf32, #tpu.memory_space<vmem>>, vector<8x128xf32>
    tpu.vector_store %arg14[%c0_253, %c0_254], %558 {strides = array<i32>} : memref<8x128xf32, #tpu.memory_space<vmem>>, vector<8x128xf32>,
    %563 = arith.truncf %560 : vector<8x128xf32> to vector<8x128xbf16>
    %c0_255 = arith.constant 0 : index
    %c0_256 = arith.constant 0 : index
    %564 = vector.load %arg7[%c0_255, %c0_256] : memref<128x128xbf16, #tpu.memory_space<vmem>>, vector<128x128xbf16>
    %cst_257 = arith.constant dense<0.000000e+00> : vector<8x128xf32>
    %565 = tpu.matmul %563, %564, %cst_257 {dimension_numbers = #tpu.dot_dimension_numbers<[1], [0], [0], [1], [0, 0, 1, 1], [], []>} : vector<8x128xbf16>, vector<128x128xbf16>, vector<8x128xf32> -> vector<8x128xf32>
    %c0_258 = arith.constant 0 : index
    %c0_259 = arith.constant 0 : index
    %566 = vector.load %arg8[%c0_258, %c0_259] : memref<1x128xf32, #tpu.memory_space<vmem>>, vector<1x128xf32>
    %567 = vector.broadcast %566 : vector<1x128xf32> to vector<8x128xf32>
    %568 = arith.addf %565, %567 : vector<8x128xf32>
    %c0_260 = arith.constant 0 : index
    %c0_261 = arith.constant 0 : index
    %569 = vector.load %arg9[%c0_260, %c0_261] : memref<8x128xf32, #tpu.memory_space<vmem>>, vector<8x128xf32>
    tpu.vector_store %arg9[%c0_260, %c0_261], %568 {strides = array<i32>} : memref<8x128xf32, #tpu.memory_space<vmem>>, vector<8x128xf32>,
    return
  }
  func.func @transform_0(%arg0: i32) -> (i32, i32, i32) {
    %c0_i32 = arith.constant 0 : i32
    %c0_i32_0 = arith.constant 0 : i32
    %c0_i32_1 = arith.constant 0 : i32
    return %c0_i32, %arg0, %c0_i32_0 : i32, i32, i32
  }
  func.func @transform_1(%arg0: i32) -> (i32, i32) {
    %c0_i32 = arith.constant 0 : i32
    %c0_i32_0 = arith.constant 0 : i32
    %c0_i32_1 = arith.constant 0 : i32
    return %c0_i32, %c0_i32_0 : i32, i32
  }
  func.func @transform_2(%arg0: i32) -> (i32, i32) {
    %c0_i32 = arith.constant 0 : i32
    %c0_i32_0 = arith.constant 0 : i32
    %c0_i32_1 = arith.constant 0 : i32
    return %c0_i32, %c0_i32_0 : i32, i32
  }
  func.func @transform_3(%arg0: i32) -> (i32, i32) {
    %c0_i32 = arith.constant 0 : i32
    %c0_i32_0 = arith.constant 0 : i32
    %c0_i32_1 = arith.constant 0 : i32
    return %c0_i32, %c0_i32_0 : i32, i32
  }
  func.func @transform_4(%arg0: i32) -> (i32, i32) {
    %c0_i32 = arith.constant 0 : i32
    %c0_i32_0 = arith.constant 0 : i32
    %c0_i32_1 = arith.constant 0 : i32
    return %c0_i32, %c0_i32_0 : i32, i32
  }
  func.func @transform_5(%arg0: i32) -> (i32, i32) {
    %c0_i32 = arith.constant 0 : i32
    %c0_i32_0 = arith.constant 0 : i32
    %c0_i32_1 = arith.constant 0 : i32
    return %c0_i32, %c0_i32_0 : i32, i32
  }
  func.func @transform_6(%arg0: i32) -> (i32, i32) {
    %c0_i32 = arith.constant 0 : i32
    %c0_i32_0 = arith.constant 0 : i32
    %c0_i32_1 = arith.constant 0 : i32
    return %c0_i32, %c0_i32_0 : i32, i32
  }
  func.func @transform_7(%arg0: i32) -> (i32, i32) {
    %c0_i32 = arith.constant 0 : i32
    %c0_i32_0 = arith.constant 0 : i32
    %c0_i32_1 = arith.constant 0 : i32
    return %c0_i32, %c0_i32_0 : i32, i32
  }
  func.func @transform_8(%arg0: i32) -> (i32, i32) {
    %c0_i32 = arith.constant 0 : i32
    %c0_i32_0 = arith.constant 0 : i32
    return %arg0, %c0_i32 : i32, i32
  }
}

</mosaic_0001>

<bundles_post_ra>
// kernel: rnn_network_forward.1
= control target key start
LH: loop header
LB: loop body
LE: loop exit
PB: predicated region body
PF: predicated region fallthrough
CT: control target
= control target key end

     0   :  { %13 = vsyncpa [#allocation8], 0  ;;  %s13248_s0 = inlined_call_operand.vmem [shape: bf16[8,8,64], index: 0, kind: input, shape index: {}]   ;;  %s13249_s1 = inlined_call_operand.hbm [shape: bf16[64,512], index: 1, kind: input, shape index: {}]   ;;  %s13250_s2 = inlined_call_operand.hbm [shape: bf16[128,512], index: 2, kind: input, shape index: {}]   ;;  %s13251_s3 = inlined_call_operand.vmem [shape: f32[1,512], index: 3, kind: input, shape index: {}]   ;;  %s13252_s4 = inlined_call_operand.hbm [shape: bf16[256,512], index: 4, kind: input, shape index: {}]   ;;  %s13253_s5 = inlined_call_operand.hbm [shape: f32[1,512], index: 5, kind: input, shape index: {}]   ;;  %s13254_s6 = inlined_call_operand.vmem [shape: bf16[128,128], index: 6, kind: input, shape index: {}]   ;;  %s13255_s7 = inlined_call_operand.vmem [shape: f32[1,128], index: 7, kind: input, shape index: {}]   ;;  %s13256_s8 = inlined_call_operand.vmem [shape: f32[8,128], index: 8, kind: output, shape index: {}]  }
   0x1   :  { %14 = vsyncpa [#allocation10], 0 }
   0x2   :  { %15 = vsyncpa [#allocation13], 0  ;;  %s35_s29 = sshll.u32 %s13250_s2, 4  ;;  %s11920_s30 = smov [#allocation9]   ;;  %s36_s29 = int_to_ptr.hbm [resolvable:$true] %s35_s29 }
   0x3   :  { %s37_s9 = sshll.u32 %s11920_s30, 4  ;;  %s22_s12 = sshll.u32 %s13249_s1, 4  ;;  %s38_s9 = int_to_ptr.vmem [resolvable:$true] %s37_s9  ;;  %s23_s12 = int_to_ptr.hbm [resolvable:$true] %s22_s12 }
   0x4   :  { %s11921_s13 = smov 256   ;;  %s11922_s14 = smov 16  }
   0x5   :  { %43 = dma.hbm_to_vmem [thread:$0]  %s36_s29, 4096, %s38_s9, [#allocation10], %s11921_s13, %s11921_s13, %s11922_s14  }
   0x6   :  { %s11923_s15 = smov [#allocation7]   ;;  %s50_s19 = sshll.u32 %s13252_s4, 4  ;;  %s51_s19 = int_to_ptr.hbm [resolvable:$true] %s50_s19 }
   0x7   :  { %s24_s16 = sshll.u32 %s11923_s15, 4  ;;  %s64_s21 = sshll.u32 %s13253_s5, 4  ;;  %s25_s16 = int_to_ptr.vmem [resolvable:$true] %s24_s16  ;;  %s65_s21 = int_to_ptr.hbm [resolvable:$true] %s64_s21 }
   0x8   :  { %30 = dma.hbm_to_vmem [thread:$0]  %s23_s12, 2048, %s25_s16, [#allocation8], %s11921_s13, %s11921_s13, %s11922_s14  }
   0x9   :  { %s11924_s22 = smov [#allocation11]   ;;  %s11925_s1 = smov [#allocation12]  }
   0xa   :  { %s52_s23 = sshll.u32 %s11924_s22, 4  ;;  %s66_s24 = sshll.u32 %s11925_s1, 4  ;;  %s53_s23 = int_to_ptr.vmem [resolvable:$true] %s52_s23  ;;  %s67_s24 = int_to_ptr.vmem [resolvable:$true] %s66_s24 }
   0xb   :  { %58 = dma.hbm_to_vmem [thread:$0]  %s51_s19, 8192, %s53_s23, [#allocation10], %s11921_s13, %s11921_s13, %s11922_s14  }
   0xc   :  { %69 = dma.hbm_to_vmem [thread:$0]  %s65_s21, 64, %s67_s24, [#allocation13]  }
   0xd   :  { %11914 = dma.done.wait [#allocation8], 2048  }
   0xe   :  { %11915 = vsyncadd [#allocation8], 4294965248 }
   0xf   :  { %11916 = dma.done.wait [#allocation10], 12288  }
  0x10   :  { %11917 = vsyncadd [#allocation10], 4294955008 }
  0x11   :  { %11918 = dma.done.wait [#allocation13], 64  }
  0x12   :  { %11919 = vsyncadd [#allocation13], 4294967232  ;;  %v7572_v0 = vld [vmem:[#allocation7 + $0x60] sm:$0xf]  ;;  %v10772_v1 = vld [vmem:[#allocation7 + $0x6c] sm:$0xf0] }
  0x13   :  { %v7580_v2 = vld [vmem:[#allocation7 + $0x68] sm:$0xf]  ;;  %v7573_v3 = vor.u32 %v10772_v1, %v7572_v0  ;;  %v10773_v4 = vld [vmem:[#allocation7 + $0x74] sm:$0xf0]  ;;  %v10771_v5 = vld [vmem:[#allocation7 + $0x6c] sm:$0xf] }
  0x14   :  { %v7582_v6 = vld [vmem:[#allocation7 + $0x78] sm:$0xf0]  ;;  %v7581_v7 = vor.u32 %v10773_v4, %v7580_v2  ;;  %v7556_v9 = vld [vmem:[#allocation7 + $0x40] sm:$0xf]  ;;  %v10768_v10 = vld [vmem:[#allocation7 + $0x4c] sm:$0xf0] }
  0x15   :  { %v7585_v8 = vor.u32 %v10771_v5, %v7582_v6  ;;  %v7564_v11 = vld [vmem:[#allocation7 + $0x48] sm:$0xf]  ;;  %242 = vmatpush.bf16.msra.mxu0 %v7573_v3  ;;  %11550 = vmatpush.bf16.msra.mxu1 %v7573_v3  ;;  %v7557_v12 = vor.u32 %v10768_v10, %v7556_v9  ;;  %v10769_v13 = vld [vmem:[#allocation7 + $0x54] sm:$0xf0]  ;;  %v10767_v14 = vld [vmem:[#allocation7 + $0x4c] sm:$0xf] }
  0x16   :  { %v7566_v15 = vld [vmem:[#allocation7 + $0x58] sm:$0xf0]  ;;  %300 = vmatpush.bf16.msra.mxu2 %v7581_v7  ;;  %v7565_v16 = vor.u32 %v10769_v13, %v7564_v11  ;;  %v7540_v18 = vld [vmem:[#allocation7 + $0x20] sm:$0xf]  ;;  %v10764_v19 = vld [vmem:[#allocation7 + $0x2c] sm:$0xf0] }
  0x17   :  { %329 = vmatpush.bf16.msra.mxu3 %v7585_v8  ;;  %v7569_v17 = vor.u32 %v10767_v14, %v7566_v15  ;;  %v7548_v20 = vld [vmem:[#allocation7 + $0x28] sm:$0xf]  ;;  %v10765_v21 = vld [vmem:[#allocation7 + $0x34] sm:$0xf0]  ;;  %v10763_v22 = vld [vmem:[#allocation7 + $0x2c] sm:$0xf]  ;;  %v7541_v24 = vor.u32 %v10764_v19, %v7540_v18 }
  0x18   :  { %v7550_v23 = vld [vmem:[#allocation7 + $0x38] sm:$0xf0]  ;;  %v7549_v25 = vor.u32 %v10765_v21, %v7548_v20  ;;  %v7524_v27 = vld [vmem:[#allocation7] sm:$0xf]  ;;  %v10760_v28 = vld [vmem:[#allocation7 + $0xc] sm:$0xf0] }
  0x19   :  { %243 = vmatpush.bf16.msra.mxu0 %v7557_v12  ;;  %11551 = vmatpush.bf16.msra.mxu1 %v7557_v12  ;;  %v7553_v26 = vor.u32 %v10763_v22, %v7550_v23  ;;  %v7532_v29 = vld [vmem:[#allocation7 + $0x8] sm:$0xf]  ;;  %v10761_v30 = vld [vmem:[#allocation7 + $0x14] sm:$0xf0]  ;;  %v10759_v31 = vld [vmem:[#allocation7 + $0xc] sm:$0xf]  ;;  %v7525_v35 = vor.u32 %v10760_v28, %v7524_v27 }
  0x1a   :  { %301 = vmatpush.bf16.msra.mxu2 %v7565_v16  ;;  %v7534_v32 = vld [vmem:[#allocation7 + $0x18] sm:$0xf0]  ;;  %v10770_v33 = vld [vmem:[#allocation7 + $0x64] sm:$0xf]  ;;  %v7574_v34 = vld [vmem:[#allocation7 + $0x70] sm:$0xf0]  ;;  %v7533_v36 = vor.u32 %v10761_v30, %v7532_v29 }
  0x1b   :  { %330 = vmatpush.bf16.msra.mxu3 %v7569_v17  ;;  %v7537_v37 = vor.u32 %v10759_v31, %v7534_v32  ;;  %v11987_v38 = vld [vmem:[%s13248_s0] sm:$0xff]  ;;  %v11992_v39 = vld [vmem:[%s13248_s0 + $0x18] sm:$0xff]  ;;  %v10804_v41 = vld [vmem:[#allocation9 + $0xec] sm:$0xf0]  ;;  %v7577_v42 = vor.u32 %v10770_v33, %v7574_v34  ;;  %vm225_vm0 = vcmask 523264  }
  0x1c   :  { %v7716_v40 = vld [vmem:[#allocation9 + $0xe0] sm:$0xf]  ;;  %v10766_v43 = vld [vmem:[#allocation7 + $0x44] sm:$0xf]  ;;  %v7558_v44 = vld [vmem:[#allocation7 + $0x50] sm:$0xf0] }
  0x1d   :  { %244 = vmatpush.bf16.msra.mxu0 %v7541_v24  ;;  %11552 = vmatpush.bf16.msra.mxu1 %v7541_v24  ;;  %v7717_v45 = vor.u32 %v10804_v41, %v7716_v40  ;;  %v10803_v46 = vld [vmem:[#allocation9 + $0xec] sm:$0xf]  ;;  %v7700_v47 = vld [vmem:[#allocation9 + $0xc0] sm:$0xf]  ;;  %v10800_v48 = vld [vmem:[#allocation9 + $0xcc] sm:$0xf0]  ;;  %v7561_v54 = vor.u32 %v10766_v43, %v7558_v44 }
  0x1e   :  { %302 = vmatpush.bf16.msra.mxu2 %v7549_v25  ;;  %v7726_v49 = vld [vmem:[#allocation9 + $0xf8] sm:$0xf0]  ;;  %v10762_v50 = vld [vmem:[#allocation7 + $0x24] sm:$0xf]  ;;  %v7542_v51 = vld [vmem:[#allocation7 + $0x30] sm:$0xf0]  ;;  %v7701_v55 = vor.u32 %v10800_v48, %v7700_v47 }
  0x1f   :  { %331 = vmatpush.bf16.msra.mxu3 %v7553_v26  ;;  %v7729_v52 = vor.u32 %v10803_v46, %v7726_v49  ;;  %v10799_v53 = vld [vmem:[#allocation9 + $0xcc] sm:$0xf]  ;;  %v7710_v56 = vld [vmem:[#allocation9 + $0xd8] sm:$0xf0]  ;;  %v7724_v57 = vld [vmem:[#allocation9 + $0xe8] sm:$0xf]  ;;  %v7545_v2 = vor.u32 %v10762_v50, %v7542_v51 }
  0x20   :  { %v10805_v58 = vld [vmem:[#allocation9 + $0xf4] sm:$0xf0]  ;;  %v7684_v59 = vld [vmem:[#allocation9 + $0xa0] sm:$0xf]  ;;  %v10796_v60 = vld [vmem:[#allocation9 + $0xac] sm:$0xf0]  ;;  %v7713_v63 = vor.u32 %v10799_v53, %v7710_v56 }
  0x21   :  { %245 = vmatpush.bf16.msra.mxu0 %v7525_v35  ;;  %11553 = vmatpush.bf16.msra.mxu1 %v7525_v35  ;;  %v7725_v61 = vor.u32 %v10805_v58, %v7724_v57  ;;  %v10758_v62 = vld [vmem:[#allocation7 + $0x4] sm:$0xf]  ;;  %v7708_v0 = vld [vmem:[#allocation9 + $0xc8] sm:$0xf]  ;;  %v10801_v1 = vld [vmem:[#allocation9 + $0xd4] sm:$0xf0]  ;;  %v7685_v4 = vor.u32 %v10796_v60, %v7684_v59 }
  0x22   :  { %303 = vmatpush.bf16.msra.mxu2 %v7533_v36  ;;  %v7526_v3 = vld [vmem:[#allocation7 + $0x10] sm:$0xf0]  ;;  %v7709_v5 = vor.u32 %v10801_v1, %v7708_v0  ;;  %v10795_v6 = vld [vmem:[#allocation9 + $0xac] sm:$0xf]  ;;  %v7694_v7 = vld [vmem:[#allocation9 + $0xb8] sm:$0xf0] }
  0x23   :  { %332 = vmatpush.bf16.msra.mxu3 %v7537_v37  ;;  %v10802_v8 = vld [vmem:[#allocation9 + $0xe4] sm:$0xf]  ;;  %v7668_v9 = vld [vmem:[#allocation9 + $0x80] sm:$0xf]  ;;  %v10792_v10 = vld [vmem:[#allocation9 + $0x8c] sm:$0xf0]  ;;  %v7697_v14 = vor.u32 %v10795_v6, %v7694_v7  ;;  %v7529_v17 = vor.u32 %v10758_v62, %v7526_v3 }
  0x24   :  { %7586 = vmatmul.msk.bf16.vlgmr.msra.gmra.mxu0 %vm225_vm0, %v11987_v38  ;;  %7589 = vmatmul.msk.bf16.vlgmr.msra.gmra.mxu1 %vm225_vm0, %v11992_v39  ;;  %v7718_v11 = vld [vmem:[#allocation9 + $0xf0] sm:$0xf0]  ;;  %v7692_v12 = vld [vmem:[#allocation9 + $0xa8] sm:$0xf]  ;;  %v10797_v13 = vld [vmem:[#allocation9 + $0xb4] sm:$0xf0]  ;;  %v7669_v18 = vor.u32 %v10792_v10, %v7668_v9 }
  0x25   :  { %271 = vmatpush.bf16.msrb.mxu1 %v7577_v42  ;;  %598 = vmatpush.bf16.msrb.mxu0 %v7717_v45  ;;  %v7693_v15 = vor.u32 %v10797_v13, %v7692_v12  ;;  %v7676_v16 = vld [vmem:[#allocation9 + $0x88] sm:$0xf]  ;;  %v10793_v19 = vld [vmem:[#allocation9 + $0x94] sm:$0xf0]  ;;  %v10791_v20 = vld [vmem:[#allocation9 + $0x8c] sm:$0xf]  ;;  %v7721_v22 = vor.u32 %v10802_v8, %v7718_v11 }
  0x26   :  { %7594 = vmatmul.msk.bf16.vlgmr.msra.gmra.mxu2 %vm225_vm0, %v11987_v38  ;;  %7598 = vmatmul.msk.bf16.vlgmr.msra.gmra.mxu3 %vm225_vm0, %v11987_v38  ;;  %v7678_v21 = vld [vmem:[#allocation9 + $0x98] sm:$0xf0]  ;;  %v7652_v23 = vld [vmem:[#allocation9 + $0x60] sm:$0xf]  ;;  %v10788_v24 = vld [vmem:[#allocation9 + $0x6c] sm:$0xf0]  ;;  %v7677_v25 = vor.u32 %v10793_v19, %v7676_v16 }
  0x27   :  { %637 = vmatpush.bf16.msrb.mxu3 %v7729_v52  ;;  %624 = vmatpush.bf16.msrb.mxu2 %v7725_v61  ;;  %v7681_v26 = vor.u32 %v10791_v20, %v7678_v21  ;;  %v10798_v27 = vld [vmem:[#allocation9 + $0xc4] sm:$0xf]  ;;  %v7702_v28 = vld [vmem:[#allocation9 + $0xd0] sm:$0xf0]  ;;  %v7653_v29 = vor.u32 %v10788_v24, %v7652_v23  ;;  %v12005_v30 = vld [vmem:[%s13248_s0 + $0x8] sm:$0xff]  ;;  %v11926_v21 = vmov 0.0|0.0  }
  0x28   :  { %v7636_v31 = vld [vmem:[#allocation9 + $0x40] sm:$0xf]  ;;  %v10784_v32 = vld [vmem:[#allocation9 + $0x4c] sm:$0xf0]  ;;  %v7705_v33 = vor.u32 %v10798_v27, %v7702_v28  ;;  %v10794_v34 = vld [vmem:[#allocation9 + $0xa4] sm:$0xf] }
  0x29   :  { %272 = vmatpush.bf16.msrb.mxu1 %v7561_v54  ;;  %599 = vmatpush.bf16.msrb.mxu0 %v7701_v55  ;;  %v7686_v35 = vld [vmem:[#allocation9 + $0xb0] sm:$0xf0]  ;;  %v7637_v36 = vor.u32 %v10784_v32, %v7636_v31  ;;  %v7660_v37 = vld [vmem:[#allocation9 + $0x68] sm:$0xf]  ;;  %v10789_v40 = vld [vmem:[#allocation9 + $0x74] sm:$0xf0] }
  0x2a   :  { %v10787_v41 = vld [vmem:[#allocation9 + $0x6c] sm:$0xf]  ;;  %v7620_v42 = vld [vmem:[#allocation9 + $0x20] sm:$0xf]  ;;  %v10780_v43 = vld [vmem:[#allocation9 + $0x2c] sm:$0xf0]  ;;  %v7661_v44 = vor.u32 %v10789_v40, %v7660_v37  ;;  %v7689_v50 = vor.u32 %v10794_v34, %v7686_v35 }
  0x2b   :  { %638 = vmatpush.bf16.msrb.mxu3 %v7713_v63  ;;  %625 = vmatpush.bf16.msrb.mxu2 %v7709_v5  ;;  %v7662_v45 = vld [vmem:[#allocation9 + $0x78] sm:$0xf0]  ;;  %v10790_v46 = vld [vmem:[#allocation9 + $0x84] sm:$0xf]  ;;  %v7670_v47 = vld [vmem:[#allocation9 + $0x90] sm:$0xf0]  ;;  %v7621_v53 = vor.u32 %v10780_v43, %v7620_v42 }
  0x2c   :  { %v7665_v48 = vor.u32 %v10787_v41, %v7662_v45  ;;  %v7644_v49 = vld [vmem:[#allocation9 + $0x48] sm:$0xf]  ;;  %v10785_v51 = vld [vmem:[#allocation9 + $0x54] sm:$0xf0]  ;;  %v10783_v52 = vld [vmem:[#allocation9 + $0x4c] sm:$0xf]  ;;  %v7673_v62 = vor.u32 %v10790_v46, %v7670_v47 }
  0x2d   :  { %273 = vmatpush.bf16.msrb.mxu1 %v7545_v2  ;;  %600 = vmatpush.bf16.msrb.mxu0 %v7685_v4  ;;  %v7604_v54 = vld [vmem:[#allocation9] sm:$0xf]  ;;  %v10776_v55 = vld [vmem:[#allocation9 + $0xc] sm:$0xf0]  ;;  %v7645_v56 = vor.u32 %v10785_v51, %v7644_v49  ;;  %v7628_v58 = vld [vmem:[#allocation9 + $0x28] sm:$0xf] }
  0x2e   :  { %v10781_v59 = vld [vmem:[#allocation9 + $0x34] sm:$0xf0]  ;;  %v10779_v60 = vld [vmem:[#allocation9 + $0x2c] sm:$0xf]  ;;  %v7630_v61 = vld [vmem:[#allocation9 + $0x38] sm:$0xf0]  ;;  %v7605_v1 = vor.u32 %v10776_v55, %v7604_v54 }
  0x2f   :  { %639 = vmatpush.bf16.msrb.mxu3 %v7697_v14  ;;  %626 = vmatpush.bf16.msrb.mxu2 %v7693_v15  ;;  %v10786_v63 = vld [vmem:[#allocation9 + $0x64] sm:$0xf]  ;;  %v7629_v0 = vor.u32 %v10781_v59, %v7628_v58  ;;  %v7654_v2 = vld [vmem:[#allocation9 + $0x70] sm:$0xf0]  ;;  %v7633_v3 = vor.u32 %v10779_v60, %v7630_v61  ;;  %v7612_v4 = vld [vmem:[#allocation9 + $0x8] sm:$0xf] }
  0x30   :  { %v10777_v5 = vld [vmem:[#allocation9 + $0x14] sm:$0xf0]  ;;  %v10775_v6 = vld [vmem:[#allocation9 + $0xc] sm:$0xf]  ;;  %v7614_v7 = vld [vmem:[#allocation9 + $0x18] sm:$0xf0]  ;;  %v7657_v8 = vor.u32 %v10786_v63, %v7654_v2 }
  0x31   :  { %274 = vmatpush.bf16.msrb.mxu1 %v7529_v17  ;;  %601 = vmatpush.bf16.msrb.mxu0 %v7669_v18  ;;  %v7613_v9 = vor.u32 %v10777_v5, %v7612_v4  ;;  %v10782_v10 = vld [vmem:[#allocation9 + $0x44] sm:$0xf]  ;;  %v7638_v11 = vld [vmem:[#allocation9 + $0x50] sm:$0xf0]  ;;  %v7617_v12 = vor.u32 %v10775_v6, %v7614_v7  ;;  %v10868_v27 = vld [vmem:[#allocation11 + $0x1ec] sm:$0xf0] }
  0x32   :  { %v10756_v13 = vld [vmem:[%s13248_s0 + $0x10] sm:$0xff]  ;;  %v7641_v14 = vor.u32 %v10782_v10, %v7638_v11  ;;  %v10778_v15 = vld [vmem:[#allocation9 + $0x24] sm:$0xf]  ;;  %v7959_v34 = vld [vmem:[#allocation11 + $0x1c0] sm:$0xf] }
  0x33   :  { %627 = vmatpush.bf16.msrb.mxu2 %v7677_v25  ;;  %640 = vmatpush.bf16.msrb.mxu3 %v7681_v26  ;;  %v7622_v16 = vld [vmem:[#allocation9 + $0x30] sm:$0xf0]  ;;  %v10774_v18 = vld [vmem:[#allocation9 + $0x4] sm:$0xf]  ;;  %v10864_v35 = vld [vmem:[#allocation11 + $0x1cc] sm:$0xf0] }
  0x34   :  { %7587 = vmatmul.msk.bf16.gmra.mxu0 %vm225_vm0, %v12005_v30  ;;  %7590 = vmatmul.msk.bf16.vlgmr.msrb.gmra.mxu1 %vm225_vm0, %v11987_v38  ;;  %v7646_v38 = vld [vmem:[#allocation9 + $0x58] sm:$0xf0]  ;;  %v7625_v17 = vor.u32 %v10778_v15, %v7622_v16  ;;  %v7606_v19 = vld [vmem:[#allocation9 + $0x10] sm:$0xf0]  ;;  %v10866_v28 = vld [vmem:[#allocation11 + $0x1e4] sm:$0xf]  ;;  %v7960_v41 = vor.u32 %v10864_v35, %v7959_v34 }
  0x35   :  { %611 = vmatpush.bf16.msra.mxu1 %v7721_v22  ;;  %602 = vmatpush.bf16.msrb.mxu0 %v7653_v29  ;;  %v7649_v57 = vor.u32 %v10783_v52, %v7646_v38  ;;  %v7609_v20 = vor.u32 %v10774_v18, %v7606_v19  ;;  %v12037_v22 = vld [vmem:[%s13251_s3] sm:$0xf]  ;;  %v7961_v42 = vld [vmem:[#allocation11 + $0x1d0] sm:$0xf0]  ;;  %v10860_v45 = vld [vmem:[#allocation11 + $0x1ac] sm:$0xf0] }
  0x36   :  { %7595 = vmatmul.msk.bf16.gmra.mxu2 %vm225_vm0, %v12005_v30  ;;  %7599 = vmatmul.msk.bf16.gmra.mxu3 %vm225_vm0, %v12005_v30  ;;  %v12040_v23 = vperm.slane %v12037_v22, 0  ;;  %v10858_v46 = vld [vmem:[#allocation11 + $0x1a4] sm:$0xf]  ;;  %v7927_v52 = vld [vmem:[#allocation11 + $0x180] sm:$0xf]  ;;  %v12065_v2 = vperm.slane %v12037_v22, 2 }
  0x37   :  { %628 = vmatpush.bf16.msrb.mxu2 %v7661_v44  ;;  %641 = vmatpush.bf16.msrb.mxu3 %v7665_v48  ;;  %v7943_v44 = vld [vmem:[#allocation11 + $0x1a0] sm:$0xf]  ;;  %v7945_v48 = vld [vmem:[#allocation11 + $0x1b0] sm:$0xf0]  ;;  %v10856_v38 = vld [vmem:[#allocation11 + $0x18c] sm:$0xf0] }
  0x38   :  { %v7944_v47 = vor.u32 %v10860_v45, %v7943_v44  ;;  %v7948_v49 = vor.u32 %v10858_v46, %v7945_v48  ;;  %v7911_v60 = vld [vmem:[#allocation11 + $0x160] sm:$0xf]  ;;  %v10852_v61 = vld [vmem:[#allocation11 + $0x16c] sm:$0xf0]  ;;  %v10842_v18 = vld [vmem:[#allocation11 + $0x124] sm:$0xf] }
  0x39   :  { %612 = vmatpush.bf16.msra.mxu1 %v7705_v33  ;;  %603 = vmatpush.bf16.msrb.mxu0 %v7637_v36  ;;  %v10862_v36 = vld [vmem:[#allocation11 + $0x1c4] sm:$0xf]  ;;  %v7912_v63 = vor.u32 %v10852_v61, %v7911_v60  ;;  %v7895_v6 = vld [vmem:[#allocation11 + $0x140] sm:$0xf]  ;;  %v10848_v7 = vld [vmem:[#allocation11 + $0x14c] sm:$0xf0] }
  0x3a   :  { %v7964_v43 = vor.u32 %v10862_v36, %v7961_v42  ;;  %v7879_v16 = vld [vmem:[#allocation11 + $0x120] sm:$0xf]  ;;  %v7983_v42 = vld [vmem:[#allocation11 + $0x1e8] sm:$0xf]  ;;  %v7985_v48 = vld [vmem:[#allocation11 + $0x1f8] sm:$0xf0] }
  0x3b   :  { %629 = vmatpush.bf16.msrb.mxu2 %v7645_v56  ;;  %642 = vmatpush.bf16.msrb.mxu3 %v7649_v57  ;;  %v7928_v56 = vor.u32 %v10856_v38, %v7927_v52  ;;  %v7929_v57 = vld [vmem:[#allocation11 + $0x190] sm:$0xf0]  ;;  %v7847_v52 = vld [vmem:[#allocation11 + $0xe0] sm:$0xf]  ;;  %v10836_v38 = vld [vmem:[#allocation11 + $0xec] sm:$0xf0] }
  0x3d   :  { %613 = vmatpush.bf16.msra.mxu1 %v7689_v50  ;;  %604 = vmatpush.bf16.msrb.mxu0 %v7621_v53  ;;  %v10854_v53 = vld [vmem:[#allocation11 + $0x184] sm:$0xf] }
  0x3e   :  { %v7932_v59 = vor.u32 %v10854_v53, %v7929_v57  ;;  %v10834_v53 = vld [vmem:[#allocation11 + $0xe4] sm:$0xf]  ;;  %v7967_v57 = vld [vmem:[#allocation11 + $0x1c8] sm:$0xf] }
  0x3f   :  { %630 = vmatpush.bf16.msrb.mxu2 %v7629_v0  ;;  %643 = vmatpush.bf16.msrb.mxu3 %v7633_v3  ;;  %v7913_v0 = vld [vmem:[#allocation11 + $0x170] sm:$0xf0]  ;;  %v12068_v3 = vperm.slane %v12037_v22, 3 }
  0x41   :  { %614 = vmatpush.bf16.msra.mxu1 %v7673_v62  ;;  %605 = vmatpush.bf16.msrb.mxu0 %v7605_v1  ;;  %v10850_v62 = vld [vmem:[#allocation11 + $0x164] sm:$0xf] }
  0x42   :  { %v7916_v1 = vor.u32 %v10850_v62, %v7913_v0  ;;  %v10863_v62 = vld [vmem:[#allocation11 + $0x1cc] sm:$0xf] }
  0x43   :  { %631 = vmatpush.bf16.msrb.mxu2 %v7613_v9  ;;  %644 = vmatpush.bf16.msrb.mxu3 %v7617_v12 }
  0x44   :  { %7588 = vmatmul.msk.bf16.gmra.mxu0 %vm225_vm0, %v10756_v13  ;;  %7591 = vmatmul.msk.bf16.gmra.mxu1 %vm225_vm0, %v12005_v30  ;;  %v7977_v30 = vld [vmem:[#allocation11 + $0x1f0] sm:$0xf0] }
  0x45   :  { %615 = vmatpush.bf16.msra.mxu1 %v7657_v8  ;;  %v7980_v31 = vor.u32 %v10866_v28, %v7977_v30  ;;  %v10846_v8 = vld [vmem:[#allocation11 + $0x144] sm:$0xf]  ;;  %v10840_v30 = vld [vmem:[#allocation11 + $0x10c] sm:$0xf0] }
  0x46   :  { %7596 = vmatmul.msk.bf16.gmra.mxu2 %vm225_vm0, %v10756_v13  ;;  %7600 = vmatmul.msk.bf16.gmra.mxu3 %vm225_vm0, %v10756_v13 }
  0x47   :  { %1146 = vmatpush.bf16.msra.mxu3 %v7980_v31  ;;  %v10838_v31 = vld [vmem:[#allocation11 + $0x104] sm:$0xf] }
  0x49   :  { %616 = vmatpush.bf16.msra.mxu1 %v7641_v14  ;;  %v7897_v14 = vld [vmem:[#allocation11 + $0x150] sm:$0xf0] }
  0x4a   :  { %v7900_v15 = vor.u32 %v10846_v8, %v7897_v14 }
  0x4b   :  { %1147 = vmatpush.bf16.msra.mxu3 %v7964_v43  ;;  %v10869_v43 = vld [vmem:[#allocation11 + $0x1f4] sm:$0xf0] }
  0x4c   :  { %v7984_v46 = vor.u32 %v10869_v43, %v7983_v42  ;;  %v7817_v42 = vld [vmem:[#allocation11 + $0xb0] sm:$0xf0]  ;;  %v7935_v43 = vld [vmem:[#allocation11 + $0x188] sm:$0xf] }
  0x4d   :  { %617 = vmatpush.bf16.msra.mxu1 %v7625_v17  ;;  %v10844_v17 = vld [vmem:[#allocation11 + $0x12c] sm:$0xf0] }
  0x4e   :  { %v7880_v19 = vor.u32 %v10844_v17, %v7879_v16  ;;  %v7833_v17 = vld [vmem:[#allocation11 + $0xd0] sm:$0xf0] }
  0x4f   :  { %1148 = vmatpush.bf16.msra.mxu3 %v7948_v49 }
  0x51   :  { %618 = vmatpush.bf16.msra.mxu1 %v7609_v20  ;;  %v7881_v20 = vld [vmem:[#allocation11 + $0x130] sm:$0xf0] }
  0x53   :  { %1149 = vmatpush.bf16.msra.mxu3 %v7932_v59  ;;  %v10865_v59 = vld [vmem:[#allocation11 + $0x1d4] sm:$0xf0] }
  0x54   :  { %7592 = vmatmul.msk.bf16.gmra.mxu1 %vm225_vm0, %v10756_v13  ;;  %606 = vmatmul.bf16.vlgmr.msrb.gmra.mxu0 %v11926_v21  ;;  %v7896_v13 = vor.u32 %v10848_v7, %v7895_v6  ;;  %v7968_v61 = vor.u32 %v10865_v59, %v7967_v57  ;;  %v10832_v6 = vld [vmem:[#allocation11 + $0xcc] sm:$0xf0]  ;;  %v10830_v7 = vld [vmem:[#allocation11 + $0xc4] sm:$0xf] }
  0x55   :  { %v10824_v57 = vld [vmem:[#allocation11 + $0x8c] sm:$0xf0]  ;;  %v10822_v59 = vld [vmem:[#allocation11 + $0x84] sm:$0xf] }
  0x56   :  { %7597 = vmatmul.msk.bf16.gmra.mxu2 %vm225_vm0, %v11992_v39  ;;  %7601 = vmatmul.msk.bf16.gmra.mxu3 %vm225_vm0, %v11992_v39 }
  0x57   :  { %1150 = vmatpush.bf16.msra.mxu3 %v7916_v1 }
  0x5b   :  { %1151 = vmatpush.bf16.msra.mxu3 %v7900_v15 }
  0x64   :  { %7593 = vmatmul.msk.bf16.gmra.mxu1 %vm225_vm0, %v11992_v39  ;;  %v7975_v39 = vld [vmem:[#allocation11 + $0x1e0] sm:$0xf] }
  0x65   :  { %v7976_v29 = vor.u32 %v10868_v27, %v7975_v39  ;;  %v12081_v39 = vperm.slane %v12037_v22, 1 }
  0x66   :  { %632 = vmatmul.bf16.vlgmr.msrb.gmra.mxu2 %v11926_v21  ;;  %645 = vmatmul.bf16.vlgmr.msrb.gmra.mxu3 %v11926_v21 }
  0x67   :  { %1120 = vmatpush.bf16.msrb.mxu1 %v7976_v29  ;;  %v7863_v29 = vld [vmem:[#allocation11 + $0x100] sm:$0xf] }
  0x68   :  { %v7864_v36 = vor.u32 %v10840_v30, %v7863_v29  ;;  %v10859_v29 = vld [vmem:[#allocation11 + $0x1ac] sm:$0xf]  ;;  %v7953_v30 = vld [vmem:[#allocation11 + $0x1b8] sm:$0xf0] }
  0x6b   :  { %1121 = vmatpush.bf16.msrb.mxu1 %v7960_v41  ;;  %v7865_v41 = vld [vmem:[#allocation11 + $0x110] sm:$0xf0] }
  0x6c   :  { %v7868_v45 = vor.u32 %v10838_v31, %v7865_v41  ;;  %v7956_v31 = vor.u32 %v10859_v29, %v7953_v30  ;;  %v10818_v29 = vld [vmem:[#allocation11 + $0x64] sm:$0xf]  ;;  %v7785_v30 = vld [vmem:[#allocation11 + $0x70] sm:$0xf0] }
  0x6f   :  { %1122 = vmatpush.bf16.msrb.mxu1 %v7944_v47  ;;  %v10867_v47 = vld [vmem:[#allocation11 + $0x1ec] sm:$0xf] }
  0x70   :  { %v7988_v49 = vor.u32 %v10867_v47, %v7985_v48  ;;  %v10855_v48 = vld [vmem:[#allocation11 + $0x18c] sm:$0xf] }
  0x73   :  { %1123 = vmatpush.bf16.msrb.mxu1 %v7928_v56  ;;  %v7849_v56 = vld [vmem:[#allocation11 + $0xf0] sm:$0xf0] }
  0x74   :  { %619 = vmatmul.bf16.vlgmr.msra.gmra.mxu1 %v11926_v21  ;;  %v7852_v60 = vor.u32 %v10834_v53, %v7849_v56  ;;  %v7799_v56 = vld [vmem:[#allocation11 + $0x80] sm:$0xf] }
  0x76   :  { %1133 = vmatpush.bf16.msra.mxu2 %v7852_v60 }
  0x77   :  { %1124 = vmatpush.bf16.msrb.mxu1 %v7912_v63  ;;  %v7969_v63 = vld [vmem:[#allocation11 + $0x1d8] sm:$0xf0] }
  0x78   :  { %v7972_v0 = vor.u32 %v10863_v62, %v7969_v63  ;;  %v7800_v62 = vor.u32 %v10824_v57, %v7799_v56  ;;  %v7801_v63 = vld [vmem:[#allocation11 + $0x90] sm:$0xf0] }
  0x7b   :  { %1125 = vmatpush.bf16.msrb.mxu1 %v7896_v13 }
  0x7f   :  { %1126 = vmatpush.bf16.msrb.mxu1 %v7880_v19  ;;  %v10861_v19 = vld [vmem:[#allocation11 + $0x1b4] sm:$0xf0] }
  0x83   :  { %1127 = vmatpush.bf16.msrb.mxu1 %v7864_v36  ;;  %v10826_v36 = vld [vmem:[#allocation11 + $0xa4] sm:$0xf] }
  0x86   :  { %1128 = vmatmul.bf16.vlgmr.msrb.gmra.mxu1 %v11926_v21 }
  0x87   :  { %1172 = vmatpush.bf16.msra.mxu1 %v7984_v46  ;;  %v7820_v46 = vor.u32 %v10826_v36, %v7817_v42  ;;  %v10847_v36 = vld [vmem:[#allocation11 + $0x14c] sm:$0xf] }
  0x8b   :  { %1173 = vmatpush.bf16.msra.mxu1 %v7968_v61 }
  0xa1   :  { %v12042_v24 = vpop.f32.mrf.mxu0  ;;  %v262_v25 = vpop.f32.mrf.mxu1 }
  0xa2   :  { %v12045_v26 = vadd.f32 %v262_v25, %v12040_v23  ;;  %v7884_v25 = vor.u32 %v10842_v18, %v7881_v20  ;;  %v7951_v18 = vld [vmem:[#allocation11 + $0x1a8] sm:$0xf]  ;;  %v7836_v20 = vor.u32 %v10830_v7, %v7833_v17  ;;  %v10851_v7 = vld [vmem:[#allocation11 + $0x16c] sm:$0xf] }
  0xa4   :  { %13257 = vst [vmem:[#allocation17_spill] sm:$0xff] %v12045_v26  ;;  %1152 = vmatpush.bf16.msra.mxu3 %v7884_v25  ;;  %v7952_v25 = vor.u32 %v10861_v19, %v7951_v18  ;;  %1134 = vmatpush.bf16.msra.mxu2 %v7836_v20  ;;  %v7783_v19 = vld [vmem:[#allocation11 + $0x60] sm:$0xf]  ;;  %v10820_v20 = vld [vmem:[#allocation11 + $0x6c] sm:$0xf0] }
  0xa6   :  { %1174 = vmatpush.bf16.msra.mxu1 %v7952_v25  ;;  %v7784_v25 = vor.u32 %v10820_v20, %v7783_v19  ;;  %v7753_v20 = vld [vmem:[#allocation11 + $0x30] sm:$0xf0] }
  0xa8   :  { %1153 = vmatpush.bf16.msra.mxu3 %v7868_v45  ;;  %v10857_v45 = vld [vmem:[#allocation11 + $0x194] sm:$0xf0]  ;;  %1135 = vmatpush.bf16.msra.mxu2 %v7820_v46 }
  0xa9   :  { %v12047_v32 = vpop.f32.mrf.mxu2  ;;  %v12049_v33 = vpop.f32.mrf.mxu3  ;;  %v7936_v47 = vor.u32 %v10857_v45, %v7935_v43 }
  0xaa   :  { %v12051_v37 = vpop.f32.mrf.mxu0  ;;  %v12053_v40 = vpop.f32.mrf.mxu1 }
  0xab   :  { %13258 = vst [vmem:[#allocation18_spill] sm:$0xff] %v12053_v40  ;;  %1154 = vmatmul.bf16.vlgmr.msra.gmra.mxu3 %v11926_v21  ;;  %1175 = vmatpush.bf16.msra.mxu1 %v7936_v47  ;;  %v7767_v47 = vld [vmem:[#allocation11 + $0x40] sm:$0xf]  ;;  %v8231_v40 = vld [vmem:[#allocation11 + $0xd8] sm:$0xf0] }
  0xac   :  { %1198 = vmatpush.bf16.msrb.mxu3 %v7988_v49  ;;  %v7937_v49 = vld [vmem:[#allocation11 + $0x198] sm:$0xf0] }
  0xb0   :  { %1199 = vmatpush.bf16.msrb.mxu3 %v7972_v0  ;;  %v7919_v0 = vld [vmem:[#allocation11 + $0x168] sm:$0xf] }
  0xb1   :  { %v12055_v50 = vpop.f32.mrf.mxu2  ;;  %v12057_v51 = vpop.f32.mrf.mxu3 }
  0xb2   :  { %v252_v54 = vpop.f32.mrf.mxu0  ;;  %v12059_v55 = vpop.f32.mrf.mxu1 }
  0xb3   :  { %v12062_v58 = vadd.f32 %v252_v54, %v12040_v23  ;;  %v7848_v54 = vor.u32 %v10836_v38, %v7847_v52  ;;  %v7940_v52 = vor.u32 %v10855_v48, %v7937_v49  ;;  %v248_v38 = vadd.f32 %v12042_v24, %v12040_v23  ;;  %v10816_v48 = vld [vmem:[#allocation11 + $0x4c] sm:$0xf0]  ;;  %v10814_v49 = vld [vmem:[#allocation11 + $0x44] sm:$0xf] }
  0xb4   :  { %1200 = vmatpush.bf16.msrb.mxu3 %v7956_v31  ;;  %v7903_v31 = vld [vmem:[#allocation11 + $0x148] sm:$0xf] }
  0xb5   :  { %1107 = vmatpush.bf16.msra.mxu0 %v7848_v54 }
  0xb8   :  { %1201 = vmatpush.bf16.msrb.mxu3 %v7940_v52 }
  0xb9   :  { %v310_v4 = vpop.f32.mrf.mxu2  ;;  %v339_v5 = vpop.f32.mrf.mxu3 }
  0xba   :  { %v12071_v9 = vadd.f32 %v310_v4, %v12065_v2  ;;  %v12074_v10 = vadd.f32 %v339_v5, %v12068_v3  ;;  %v12076_v11 = vpop.f32.mrf.mxu0  ;;  %v12078_v12 = vpop.f32.mrf.mxu1  ;;  %v7831_v5 = vld [vmem:[#allocation11 + $0xc0] sm:$0xf] }
  0xbb   :  { %v7832_v16 = vor.u32 %v10832_v6, %v7831_v5  ;;  %v7804_v5 = vor.u32 %v10822_v59, %v7801_v63  ;;  %v7768_v59 = vor.u32 %v10816_v48, %v7767_v47  ;;  %v8116_v47 = vld [vmem:[#allocation9 + $0xf8] sm:$0xf0] }
  0xbd   :  { %1108 = vmatpush.bf16.msra.mxu0 %v7832_v16  ;;  %v7921_v16 = vld [vmem:[#allocation11 + $0x178] sm:$0xf0]  ;;  %1136 = vmatpush.bf16.msra.mxu2 %v7804_v5 }
  0xbe   :  { %v7924_v17 = vor.u32 %v10851_v7, %v7921_v16  ;;  %v7751_v7 = vld [vmem:[#allocation11 + $0x20] sm:$0xf]  ;;  %v10812_v16 = vld [vmem:[#allocation11 + $0x2c] sm:$0xf0] }
  0xbf   :  { %v7752_v19 = vor.u32 %v10812_v16, %v7751_v7  ;;  %v10835_v7 = vld [vmem:[#allocation11 + $0xec] sm:$0xf]  ;;  %v7857_v16 = vld [vmem:[#allocation11 + $0xf8] sm:$0xf0] }
  0xc0   :  { %1202 = vmatpush.bf16.msrb.mxu3 %v7924_v17  ;;  %v10810_v17 = vld [vmem:[#allocation11 + $0x24] sm:$0xf] }
  0xc1   :  { %v12083_v27 = vpop.f32.mrf.mxu2  ;;  %v12085_v28 = vpop.f32.mrf.mxu3 }
  0xc2   :  { %v257_v34 = vpop.f32.mrf.mxu0  ;;  %v281_v35 = vpop.f32.mrf.mxu1 }
  0xc3   :  { %v12088_v44 = vadd.f32 %v257_v34, %v12040_v23  ;;  %v12091_v22 = vadd.f32 %v281_v35, %v12081_v39  ;;  %v7815_v34 = vld [vmem:[#allocation11 + $0xa0] sm:$0xf]  ;;  %v10828_v35 = vld [vmem:[#allocation11 + $0xac] sm:$0xf0] }
  0xc4   :  { %v7816_v41 = vor.u32 %v10828_v35, %v7815_v34  ;;  %v7788_v34 = vor.u32 %v10818_v29, %v7785_v30  ;;  %v10849_v35 = vld [vmem:[#allocation11 + $0x154] sm:$0xf0]  ;;  %v7756_v29 = vor.u32 %v10810_v17, %v7753_v20  ;;  %v10894_v20 = vld [vmem:[#allocation9 + $0xc4] sm:$0xf] }
  0xc5   :  { %v7904_v42 = vor.u32 %v10849_v35, %v7903_v31  ;;  %v10841_v30 = vld [vmem:[#allocation11 + $0x114] sm:$0xf0]  ;;  %v10839_v31 = vld [vmem:[#allocation11 + $0x10c] sm:$0xf]  ;;  %v10898_v35 = vld [vmem:[#allocation9 + $0xe4] sm:$0xf] }
  0xc6   :  { %1109 = vmatpush.bf16.msra.mxu0 %v7816_v41  ;;  %v7905_v41 = vld [vmem:[#allocation11 + $0x158] sm:$0xf0]  ;;  %1137 = vmatpush.bf16.msra.mxu2 %v7788_v34 }
  0xc7   :  { %v7908_v43 = vor.u32 %v10847_v36, %v7905_v41  ;;  %v7873_v34 = vld [vmem:[#allocation11 + $0x118] sm:$0xf0] }
  0xc9   :  { %v315_v1 = vpop.f32.mrf.mxu2  ;;  %v344_v4 = vpop.f32.mrf.mxu3  ;;  %1203 = vmatpush.bf16.msrb.mxu3 %v7908_v43  ;;  %v7876_v43 = vor.u32 %v10839_v31, %v7873_v34  ;;  %v8100_v34 = vld [vmem:[#allocation9 + $0xd8] sm:$0xf0] }
  0xca   :  { %v12096_v8 = vadd.f32 %v315_v1, %v12065_v2  ;;  %v12099_v13 = vadd.f32 %v344_v4, %v12068_v3  ;;  %v12101_v14 = vpop.f32.mrf.mxu0  ;;  %v12103_v15 = vpop.f32.mrf.mxu1  ;;  %v10853_v1 = vld [vmem:[#allocation11 + $0x174] sm:$0xf0]  ;;  %1110 = vmatpush.bf16.msra.mxu0 %v7800_v62 }
  0xcb   :  { %v7920_v6 = vor.u32 %v10853_v1, %v7919_v0  ;;  %v10845_v62 = vld [vmem:[#allocation11 + $0x134] sm:$0xf0]  ;;  %v10843_v1 = vld [vmem:[#allocation11 + $0x12c] sm:$0xf] }
  0xcd   :  { %1176 = vmatpush.bf16.msra.mxu1 %v7920_v6 }
  0xce   :  { %1111 = vmatpush.bf16.msra.mxu0 %v7784_v25  ;;  %v7871_v25 = vld [vmem:[#allocation11 + $0x108] sm:$0xf] }
  0xd1   :  { %v12107_v53 = vpop.f32.mrf.mxu2  ;;  %v12109_v54 = vpop.f32.mrf.mxu3  ;;  %1177 = vmatpush.bf16.msra.mxu1 %v7904_v42  ;;  %v7872_v42 = vor.u32 %v10841_v30, %v7871_v25  ;;  %v8092_v25 = vld [vmem:[#allocation9 + $0xd0] sm:$0xf0] }
  0xd2   :  { %v286_v60 = vpop.f32.mrf.mxu1  ;;  %v607_v61 = vpop.f32.mrf.mxu0  ;;  %1112 = vmatpush.bf16.msra.mxu0 %v7768_v59  ;;  %v10808_v59 = vld [vmem:[#allocation11 + $0xc] sm:$0xf0]  ;;  %v8095_v31 = vor.u32 %v10894_v20, %v8092_v25  ;;  %v7823_v20 = vld [vmem:[#allocation11 + $0xa8] sm:$0xf]  ;;  %v10829_v25 = vld [vmem:[#allocation11 + $0xb4] sm:$0xf0] }
  0xd3   :  { %v12112_v4 = vadd.f32 %v286_v60, %v12081_v39  ;;  %v650_v24 = vadd.f32 %v607_v61, %v248_v38  ;;  %v7769_v60 = vld [vmem:[#allocation11 + $0x50] sm:$0xf0]  ;;  %v7887_v61 = vld [vmem:[#allocation11 + $0x128] sm:$0xf] }
  0xd4   :  { %v7772_v63 = vor.u32 %v10814_v49, %v7769_v60  ;;  %v7888_v0 = vor.u32 %v10845_v62, %v7887_v61 }
  0xd5   :  { %v7730_v18 = vmul.f32 -1.442695, %v650_v24  ;;  %v7889_v24 = vld [vmem:[#allocation11 + $0x138] sm:$0xf0] }
  0xd6   :  { %v7892_v5 = vor.u32 %v10843_v1, %v7889_v24  ;;  %1138 = vmatpush.bf16.msra.mxu2 %v7772_v63  ;;  %1178 = vmatpush.bf16.msra.mxu1 %v7888_v0  ;;  %v10806_v63 = vld [vmem:[#allocation11 + $0x4] sm:$0xf]  ;;  %v7737_v0 = vld [vmem:[#allocation11 + $0x10] sm:$0xf0]  ;;  %v7855_v1 = vld [vmem:[#allocation11 + $0xe8] sm:$0xf] }
  0xd7   :  { %11562 = vpow2.f32 %v7730_v18  ;;  %1113 = vmatpush.bf16.msra.mxu0 %v7752_v19  ;;  %v7860_v19 = vor.u32 %v10835_v7, %v7857_v16  ;;  %v8084_v16 = vld [vmem:[#allocation9 + $0xb8] sm:$0xf0] }
  0xd8   :  { %1204 = vmatpush.bf16.msrb.mxu3 %v7892_v5  ;;  %v7740_v5 = vor.u32 %v10806_v63, %v7737_v0  ;;  %v8076_v0 = vld [vmem:[#allocation9 + $0xb0] sm:$0xf0] }
  0xd9   :  { %v320_v45 = vpop.f32.mrf.mxu2  ;;  %v349_v46 = vpop.f32.mrf.mxu3 }
  0xda   :  { %v12115_v52 = vadd.f32 %v320_v45, %v12065_v2  ;;  %v12118_v38 = vadd.f32 %v349_v46, %v12068_v3  ;;  %v12120_v56 = vpop.f32.mrf.mxu1  ;;  %v609_v57 = vpop.f32.mrf.mxu0  ;;  %1139 = vmatpush.bf16.msra.mxu2 %v7756_v29  ;;  %v8108_v45 = vld [vmem:[#allocation9 + $0xf0] sm:$0xf0]  ;;  %v10899_v46 = vld [vmem:[#allocation9 + $0xec] sm:$0xf]  ;;  %1179 = vmatpush.bf16.msra.mxu1 %v7872_v42  ;;  %v10833_v42 = vld [vmem:[#allocation11 + $0xd4] sm:$0xf0] }
  0xdb   :  { %v7735_v57 = vld [vmem:[#allocation11] sm:$0xf]  ;;  %v8111_v61 = vor.u32 %v10898_v35, %v8108_v45  ;;  %v8119_v62 = vor.u32 %v10899_v46, %v8116_v47  ;;  %v10895_v29 = vld [vmem:[#allocation9 + $0xcc] sm:$0xf]  ;;  %v7839_v35 = vld [vmem:[#allocation11 + $0xc8] sm:$0xf] }
  0xdc   :  { %13259 = vst [vmem:[#allocation19_spill] sm:$0xff] %v12115_v52  ;;  %1205 = vmatpush.bf16.msrb.mxu3 %v7876_v43  ;;  %v7736_v24 = vor.u32 %v10808_v59, %v7735_v57  ;;  %v8103_v45 = vor.u32 %v10895_v29, %v8100_v34  ;;  %v7840_v46 = vor.u32 %v10833_v42, %v7839_v35  ;;  %v10831_v47 = vld [vmem:[#allocation11 + $0xcc] sm:$0xf]  ;;  %v10890_v57 = vld [vmem:[#allocation9 + $0xa4] sm:$0xf] }
  0xdd   :  { %v11563_v6 = vpop.eup %11562  ;;  %v306_v59 = vadd.f32 %v12047_v32, %v12065_v2  ;;  %1180 = vmatmul.bf16.vlgmr.msra.gmra.mxu1 %v11926_v21  ;;  %v8079_v7 = vor.u32 %v10890_v57, %v8076_v0  ;;  %v10827_v29 = vld [vmem:[#allocation11 + $0xac] sm:$0xf]  ;;  %v10886_v35 = vld [vmem:[#allocation9 + $0x84] sm:$0xf]  ;;  %v8060_v42 = vld [vmem:[#allocation9 + $0x90] sm:$0xf0] }
  0xde   :  { %v12122_v18 = vadd.f32 1.0, %v11563_v6  ;;  %v10837_v6 = vld [vmem:[#allocation11 + $0xf4] sm:$0xf0]  ;;  %1488 = vmatpush.bf16.msrb.mxu1 %v8111_v61  ;;  %1114 = vmatpush.bf16.msra.mxu0 %v7736_v24  ;;  %v335_v61 = vadd.f32 %v12049_v33, %v12068_v3  ;;  %v8068_v57 = vld [vmem:[#allocation9 + $0x98] sm:$0xf0] }
  0xdf   :  { %v7856_v17 = vor.u32 %v10837_v6, %v7855_v1  ;;  %1140 = vmatpush.bf16.msra.mxu2 %v7740_v5  ;;  %v10891_v1 = vld [vmem:[#allocation9 + $0xac] sm:$0xf]  ;;  %1206 = vmatmul.bf16.vlgmr.msrb.gmra.mxu3 %v11926_v21  ;;  %v7824_v21 = vor.u32 %v10829_v25, %v7823_v20  ;;  %v10825_v0 = vld [vmem:[#allocation11 + $0x94] sm:$0xf0]  ;;  %v277_v20 = vadd.f32 %v12059_v55, %v12081_v39  ;;  %v10878_v55 = vld [vmem:[#allocation9 + $0x44] sm:$0xf] }
  0xe0   :  { %11564 = vrcp.f32 %v12122_v18  ;;  %v668_v49 = vand.u32 2147483647, %v12122_v18  ;;  %1514 = vmatpush.bf16.msra.mxu3 %v8119_v62  ;;  %v670_v62 = vand.u32 2147483648, %v12122_v18  ;;  %vm664_vm2 = vweird.f32 %v12122_v18  ;;  %v10941_v52 = vld [vmem:[#allocation11 + $0x134] sm:$0xf0] }
  0xe1   :  { %v12125_v36 = vpop.f32.mrf.mxu2  ;;  %v12127_v41 = vpop.f32.mrf.mxu3 }
  0xe2   :  { %13260 = vst [vmem:[#allocation20_spill] sm:$0xff] %v12125_v36  ;;  %v291_v48 = vpop.f32.mrf.mxu1  ;;  %1159 = vmatpush.bf16.msrb.mxu0 %v7856_v17  ;;  %1489 = vmatpush.bf16.msrb.mxu1 %v8095_v31  ;;  %v7825_v31 = vld [vmem:[#allocation11 + $0xb8] sm:$0xf0]  ;;  %vm12151_vm3 = vcmp.eq.f32.partialorder %v668_v49, 8.507059e+37  ;;  %v10927_v36 = vld [vmem:[#allocation11 + $0xcc] sm:$0xf] }
  0xe3   :  { %13261 = vst [vmem:[#allocation21_spill] sm:$0xff] %v12127_v41  ;;  %v12131_v60 = vadd.f32 %v291_v48, %v12081_v39  ;;  %1185 = vmatpush.bf16.msrb.mxu2 %v7860_v19  ;;  %v7841_v48 = vld [vmem:[#allocation11 + $0xd8] sm:$0xf0]  ;;  %v8087_v19 = vor.u32 %v10891_v1, %v8084_v16  ;;  %v8044_v16 = vld [vmem:[#allocation9 + $0x70] sm:$0xf0] }
  0xe4   :  { %v7844_v63 = vor.u32 %v10831_v47, %v7841_v48  ;;  %1515 = vmatpush.bf16.msra.mxu3 %v8103_v45  ;;  %v671_v45 = vor.u32 1.1754944e-38, %v670_v62  ;;  %v7828_v47 = vor.u32 %v10827_v29, %v7825_v31  ;;  %v10887_v48 = vld [vmem:[#allocation9 + $0x8c] sm:$0xf] }
  0xe5   :  { %v8071_v49 = vor.u32 %v10887_v48, %v8068_v57  ;;  %v10823_v62 = vld [vmem:[#allocation11 + $0x8c] sm:$0xf]  ;;  %v7793_v57 = vld [vmem:[#allocation11 + $0x78] sm:$0xf0] }
  0xe6   :  { %v12133_v30 = vpop.eup %11564  ;;  %1160 = vmatpush.bf16.msrb.mxu0 %v7840_v46  ;;  %1490 = vmatpush.bf16.msrb.mxu1 %v8079_v7 }
  0xe7   :  { %v660_v43 = vmul.f32 %v12133_v30, %v12122_v18  ;;  %vm665_vm1 = vweird.f32 %v12133_v30  ;;  %1186 = vmatpush.bf16.msrb.mxu2 %v7844_v63  ;;  %v8063_v18 = vor.u32 %v10886_v35, %v8060_v42  ;;  %v7807_v63 = vld [vmem:[#allocation11 + $0x88] sm:$0xf]  ;;  %v10821_v42 = vld [vmem:[#allocation11 + $0x74] sm:$0xf0] }
  0xe8   :  { %vm12158_vm4 = vmor %vm664_vm2, %vm665_vm1  ;;  %1516 = vmatpush.bf16.msra.mxu3 %v8087_v19  ;;  %v8052_v19 = vld [vmem:[#allocation9 + $0x78] sm:$0xf0]  ;;  %v7791_v35 = vld [vmem:[#allocation11 + $0x68] sm:$0xf] }
  0xe9   :  { %v661_v24 = vsub.f32 1.0, %v660_v43  ;;  %v633_v5 = vpop.f32.mrf.mxu2  ;;  %v646_v6 = vpop.f32.mrf.mxu3 }
  0xea   :  { %v652_v32 = vadd.f32 %v633_v5, %v306_v59  ;;  %v653_v33 = vadd.f32 %v646_v6, %v335_v61  ;;  %v12145_v17 = vpop.f32.mrf.mxu1  ;;  %1161 = vmatpush.bf16.msrb.mxu0 %v7824_v21  ;;  %v7809_v5 = vld [vmem:[#allocation11 + $0x98] sm:$0xf0]  ;;  %v10882_v6 = vld [vmem:[#allocation9 + $0x64] sm:$0xf]  ;;  %1491 = vmatpush.bf16.msrb.mxu1 %v8063_v18  ;;  %v10879_v18 = vld [vmem:[#allocation9 + $0x4c] sm:$0xf] }
  0xeb   :  { %13262 = vst [vmem:[#allocation22_spill] sm:$0xff] %v12145_v17  ;;  %v662_v34 = vmul.f32 %v12133_v30, %v661_v24  ;;  %1187 = vmatpush.bf16.msrb.mxu2 %v7828_v47  ;;  %v7808_v24 = vor.u32 %v10825_v0, %v7807_v63  ;;  %v7812_v7 = vor.u32 %v10823_v62, %v7809_v5  ;;  %v10819_v47 = vld [vmem:[#allocation11 + $0x6c] sm:$0xf]  ;;  %v10817_v5 = vld [vmem:[#allocation11 + $0x54] sm:$0xf0] }
  0xec   :  { %11566 = vtanh.f32 %v652_v32  ;;  %v7732_v61 = vmul.f32 -1.442695, %v653_v33  ;;  %v10883_v33 = vld [vmem:[#allocation9 + $0x6c] sm:$0xf]  ;;  %1517 = vmatpush.bf16.msra.mxu3 %v8071_v49  ;;  %v7796_v46 = vor.u32 %v10819_v47, %v7793_v57  ;;  %v8036_v49 = vld [vmem:[#allocation9 + $0x58] sm:$0xf0] }
  0xed   :  { %v663_v59 = vadd.f32 %v12133_v30, %v662_v34  ;;  %v8055_v34 = vor.u32 %v10883_v33, %v8052_v19  ;;  %v8039_v62 = vor.u32 %v10879_v18, %v8036_v49  ;;  %v10875_v33 = vld [vmem:[#allocation9 + $0x2c] sm:$0xf]  ;;  %v10870_v47 = vld [vmem:[#allocation9 + $0x4] sm:$0xf]  ;;  %v8277_v17 = vld [vmem:[#allocation11 + $0x128] sm:$0xf] }
  0xee   :  { %11568 = vpow2.f32 %v7732_v61  ;;  %1162 = vmatpush.bf16.msrb.mxu0 %v7808_v24  ;;  %v7777_v61 = vld [vmem:[#allocation11 + $0x58] sm:$0xf0] }
  0xef   :  { %v667_v1 = vsel %vm12158_vm4, %v12133_v30, %v663_v59  ;;  %v8047_v30 = vor.u32 %v10882_v6, %v8044_v16  ;;  %1188 = vmatpush.bf16.msrb.mxu2 %v7812_v7  ;;  %v8028_v59 = vld [vmem:[#allocation9 + $0x50] sm:$0xf0]  ;;  %v10815_v6 = vld [vmem:[#allocation11 + $0x4c] sm:$0xf] }
  0xf0   :  { %v672_v32 = vsel %vm12151_vm3, %v671_v45, %v667_v1  ;;  %v7792_v45 = vor.u32 %v10821_v42, %v7791_v35  ;;  %1518 = vmatpush.bf16.msra.mxu3 %v8055_v34  ;;  %v8031_v0 = vor.u32 %v10878_v55, %v8028_v59  ;;  %v7775_v1 = vld [vmem:[#allocation11 + $0x48] sm:$0xf]  ;;  %v7780_v16 = vor.u32 %v10815_v6, %v7777_v61  ;;  %v8012_v7 = vld [vmem:[#allocation9 + $0x30] sm:$0xf0]  ;;  %v7761_v42 = vld [vmem:[#allocation11 + $0x38] sm:$0xf0] }
  0xf1   :  { %v648_v25 = vpop.f32.mrf.mxu3  ;;  %v635_v29 = vpop.f32.mrf.mxu2  ;;  %1492 = vmatpush.bf16.msrb.mxu1 %v8047_v30  ;;  %v7776_v24 = vor.u32 %v10817_v5, %v7775_v1  ;;  %v7759_v34 = vld [vmem:[#allocation11 + $0x28] sm:$0xf]  ;;  %v10871_v55 = vld [vmem:[#allocation9 + $0xc] sm:$0xf]  ;;  %v8004_v59 = vld [vmem:[#allocation9 + $0x18] sm:$0xf0] }
  0xf2   :  { %v11567_v21 = vpop.eup %11566  ;;  %v620_v31 = vpop.f32.mrf.mxu1  ;;  %1163 = vmatpush.bf16.msrb.mxu0 %v7792_v45  ;;  %v8020_v25 = vld [vmem:[#allocation9 + $0x38] sm:$0xf0]  ;;  %v8007_v18 = vor.u32 %v10871_v55, %v8004_v59 }
  0xf3   :  { %v12169_v48 = vmul.f32 %v11567_v21, %v672_v32  ;;  %v651_v43 = vadd.f32 %v620_v31, %v277_v20  ;;  %1189 = vmatpush.bf16.msrb.mxu2 %v7796_v46  ;;  %v10874_v32 = vld [vmem:[#allocation9 + $0x24] sm:$0xf]  ;;  %v8023_v30 = vor.u32 %v10875_v33, %v8020_v25  ;;  %v10813_v21 = vld [vmem:[#allocation11 + $0x34] sm:$0xf0]  ;;  %v10811_v31 = vld [vmem:[#allocation11 + $0x2c] sm:$0xf] }
  0xf4   :  { %v11569_v19 = vpop.eup %11568  ;;  %1519 = vmatpush.bf16.msra.mxu3 %v8039_v62  ;;  %v8015_v20 = vor.u32 %v10874_v32, %v8012_v7  ;;  %v7760_v35 = vor.u32 %v10813_v21, %v7759_v34  ;;  %v7764_v57 = vor.u32 %v10811_v31, %v7761_v42  ;;  %v10807_v62 = vld [vmem:[#allocation11 + $0xc] sm:$0xf]  ;;  %v7745_v6 = vld [vmem:[#allocation11 + $0x18] sm:$0xf0] }
  0xf5   :  { %v7731_v63 = vmul.f32 -1.442695, %v651_v43  ;;  %1493 = vmatpush.bf16.msrb.mxu1 %v8031_v0  ;;  %v7996_v43 = vld [vmem:[#allocation9 + $0x10] sm:$0xf0]  ;;  %v697_v45 = vadd.f32 1.0, %v11569_v19  ;;  %v7748_v61 = vor.u32 %v10807_v62, %v7745_v6 }
  0xf6   :  { %1164 = vmatpush.bf16.msrb.mxu0 %v7776_v24  ;;  %v7999_v46 = vor.u32 %v10870_v47, %v7996_v43  ;;  %v10809_v0 = vld [vmem:[#allocation11 + $0x14] sm:$0xf0]  ;;  %v8114_v62 = vld [vmem:[#allocation9 + $0xe8] sm:$0xf] }
  0xf7   :  { %11570 = vpow2.f32 %v7731_v63  ;;  %1190 = vmatpush.bf16.msrb.mxu2 %v7780_v16  ;;  %v7743_v63 = vld [vmem:[#allocation11 + $0x8] sm:$0xf]  ;;  %vm703_vm10 = vweird.f32 %v697_v45  ;;  %v707_v55 = vand.u32 2147483647, %v697_v45 }
  0xf8   :  { %1520 = vmatpush.bf16.msra.mxu3 %v8023_v30  ;;  %v7744_v5 = vor.u32 %v10809_v0, %v7743_v63  ;;  %11572 = vrcp.f32 %v697_v45  ;;  %v10900_v0 = vld [vmem:[#allocation9 + $0xec] sm:$0xf0] }
  0xf9   :  { %1494 = vmatpush.bf16.msrb.mxu1 %v8015_v20  ;;  %vm708_vm12 = vcmp.eq.f32.partialorder %v707_v55, 8.507059e+37  ;;  %v8042_v55 = vld [vmem:[#allocation9 + $0x60] sm:$0xf] }
  0xfa   :  { %v622_v29 = vpop.f32.mrf.mxu1  ;;  %1165 = vmatpush.bf16.msrb.mxu0 %v7760_v35 }
  0xfb   :  { %1191 = vmatpush.bf16.msrb.mxu2 %v7764_v57  ;;  %v709_v57 = vand.u32 2147483648, %v697_v45 }
  0xfc   :  { %1521 = vmatpush.bf16.msra.mxu3 %v8007_v18  ;;  %v8106_v18 = vld [vmem:[#allocation9 + $0xe0] sm:$0xf] }
  0xfd   :  { %v11571_v49 = vpop.eup %11570  ;;  %1495 = vmatpush.bf16.msrb.mxu1 %v7999_v46  ;;  %v710_v46 = vor.u32 1.1754944e-38, %v709_v57  ;;  %v8107_v6 = vor.u32 %v10900_v0, %v8106_v18  ;;  %v10885_v18 = vld [vmem:[#allocation9 + $0x74] sm:$0xf0]  ;;  %v8026_v0 = vld [vmem:[#allocation9 + $0x40] sm:$0xf] }
  0xfe   :  { %v677_v1 = vadd.f32 1.0, %v11571_v49  ;;  %1166 = vmatpush.bf16.msrb.mxu0 %v7744_v5  ;;  %v11573_v24 = vpop.eup %11572 }
  0xff   :  { %1192 = vmatpush.bf16.msrb.mxu2 %v7748_v61  ;;  %v699_v7 = vmul.f32 %v11573_v24, %v697_v45  ;;  %vm704_vm9 = vweird.f32 %v11573_v24 }
 0x100   :  { %11574 = vrcp.f32 %v677_v1  ;;  %v689_v19 = vand.u32 2147483648, %v677_v1  ;;  %v687_v25 = vand.u32 2147483647, %v677_v1  ;;  %vm683_vm6 = vweird.f32 %v677_v1  ;;  %vm705_vm11 = vmor %vm703_vm10, %vm704_vm9 }
 0x101   :  { %v700_v29 = vsub.f32 1.0, %v699_v7  ;;  %v8098_v7 = vld [vmem:[#allocation9 + $0xc8] sm:$0xf] }
 0x102   :  { %v690_v34 = vor.u32 1.1754944e-38, %v689_v19  ;;  %vm688_vm8 = vcmp.eq.f32.partialorder %v687_v25, 8.507059e+37  ;;  %v8074_v19 = vld [vmem:[#allocation9 + $0xa0] sm:$0xf]  ;;  %v8082_v25 = vld [vmem:[#allocation9 + $0xa8] sm:$0xf] }
 0x103   :  { %v701_v31 = vmul.f32 %v11573_v24, %v700_v29  ;;  %v10893_v29 = vld [vmem:[#allocation9 + $0xb4] sm:$0xf0] }
 0x105   :  { %v702_v43 = vadd.f32 %v11573_v24, %v701_v31  ;;  %v10888_v31 = vld [vmem:[#allocation9 + $0x8c] sm:$0xf0] }
 0x106   :  { %v11575_v16 = vpop.eup %11574 }
 0x107   :  { %v679_v32 = vmul.f32 %v11575_v16, %v677_v1  ;;  %vm684_vm5 = vweird.f32 %v11575_v16  ;;  %v706_v59 = vsel %vm705_vm11, %v11573_v24, %v702_v43  ;;  %v10901_v1 = vld [vmem:[#allocation9 + $0xf4] sm:$0xf0] }
 0x108   :  { %vm685_vm7 = vmor %vm683_vm6, %vm684_vm5  ;;  %v711_v63 = vsel %vm708_vm12, %v710_v46, %v706_v59  ;;  %v8115_v61 = vor.u32 %v10901_v1, %v8114_v62  ;;  %v10884_v59 = vld [vmem:[#allocation9 + $0x6c] sm:$0xf0]  ;;  %v8050_v46 = vld [vmem:[#allocation9 + $0x68] sm:$0xf] }
 0x109   :  { %v680_v33 = vsub.f32 1.0, %v679_v32  ;;  %v10896_v32 = vld [vmem:[#allocation9 + $0xcc] sm:$0xf0]  ;;  %v8034_v1 = vld [vmem:[#allocation9 + $0x48] sm:$0xf] }
 0x10a   :  { %v10880_v62 = vld [vmem:[#allocation9 + $0x4c] sm:$0xf0] }
 0x10b   :  { %v681_v20 = vmul.f32 %v11575_v16, %v680_v33  ;;  %v10897_v33 = vld [vmem:[#allocation9 + $0xd4] sm:$0xf0] }
 0x10c   :  { %v8099_v24 = vor.u32 %v10897_v33, %v8098_v7  ;;  %v8018_v7 = vld [vmem:[#allocation9 + $0x28] sm:$0xf]  ;;  %v10877_v33 = vld [vmem:[#allocation9 + $0x34] sm:$0xf0] }
 0x10d   :  { %v682_v30 = vadd.f32 %v11575_v16, %v681_v20  ;;  %v10892_v20 = vld [vmem:[#allocation9 + $0xac] sm:$0xf0] }
 0x10f   :  { %v686_v21 = vsel %vm685_vm7, %v11575_v16, %v682_v30  ;;  %v8090_v16 = vld [vmem:[#allocation9 + $0xc0] sm:$0xf]  ;;  %v8075_v30 = vor.u32 %v10892_v20, %v8074_v19  ;;  %v10872_v20 = vld [vmem:[#allocation9 + $0xc] sm:$0xf0] }
 0x110   :  { %v691_v35 = vsel %vm688_vm8, %v690_v34, %v686_v21  ;;  %v8091_v45 = vor.u32 %v10896_v32, %v8090_v16  ;;  %v8083_v34 = vor.u32 %v10893_v29, %v8082_v25  ;;  %v8058_v21 = vld [vmem:[#allocation9 + $0x80] sm:$0xf]  ;;  %v10876_v32 = vld [vmem:[#allocation9 + $0x2c] sm:$0xf0]  ;;  %v8002_v25 = vld [vmem:[#allocation9 + $0x8] sm:$0xf] }
 0x111   :  { %v713_v42 = vmul.f32 0.0, %v691_v35  ;;  %v8066_v35 = vld [vmem:[#allocation9 + $0x88] sm:$0xf]  ;;  %v8059_v43 = vor.u32 %v10888_v31, %v8058_v21  ;;  %v8010_v16 = vld [vmem:[#allocation9 + $0x20] sm:$0xf]  ;;  %v12185_v21 = vpop.f32.mrf.mxu1 }
 0x112   :  { %v7994_v19 = vld [vmem:[#allocation9] sm:$0xf]  ;;  %v10873_v29 = vld [vmem:[#allocation9 + $0x14] sm:$0xf0] }
 0x113   :  { %v12172_v47 = vadd.f32 %v12169_v48, %v713_v42  ;;  %v10889_v42 = vld [vmem:[#allocation9 + $0x94] sm:$0xf0] }
 0x114   :  { %v8067_v57 = vor.u32 %v10889_v42, %v8066_v35 }
 0x115   :  { %11576 = vtanh.f32 %v12172_v47 }
 0x119   :  { %v1131_v35 = vpop.f32.mrf.mxu1 }
 0x11b   :  { %v11577_v49 = vpop.eup %11576 }
 0x11c   :  { %v717_v5 = vmul.f32 %v11577_v49, %v711_v63  ;;  %v8043_v49 = vor.u32 %v10884_v59, %v8042_v55  ;;  %v8051_v63 = vor.u32 %v10885_v18, %v8050_v46  ;;  %v8365_v46 = vld [vmem:[#allocation11 + $0x1e0] sm:$0xf]  ;;  %v10964_v18 = vld [vmem:[#allocation11 + $0x1ec] sm:$0xf0] }
 0x11e   :  { %v12175_v48 = vpack.c.bf16 %v717_v5, %v717_v5  ;;  %v10881_v5 = vld [vmem:[#allocation9 + $0x54] sm:$0xf0] }
 0x120   :  { %1115 = vmatmul.bf16.vlgmr.msra.gmra.mxu0 %v12175_v48  ;;  %1141 = vmatmul.bf16.vlgmr.msra.gmra.mxu2 %v12175_v48 }
 0x121   :  { %1496 = vmatmul.bf16.vlgmr.msrb.gmra.mxu1 %v12175_v48  ;;  %1522 = vmatmul.bf16.vlgmr.msra.gmra.mxu3 %v12175_v48 }
 0x122   :  { %1475 = vmatpush.bf16.msra.mxu0 %v8107_v6  ;;  %1501 = vmatpush.bf16.msra.mxu2 %v8115_v61  ;;  %v8027_v6 = vor.u32 %v10880_v62, %v8026_v0  ;;  %v8035_v61 = vor.u32 %v10881_v5, %v8034_v1  ;;  %v8367_v0 = vld [vmem:[#allocation11 + $0x1f0] sm:$0xf0]  ;;  %v10960_v1 = vld [vmem:[#allocation11 + $0x1cc] sm:$0xf0]  ;;  %v10958_v5 = vld [vmem:[#allocation11 + $0x1c4] sm:$0xf] }
 0x126   :  { %1476 = vmatpush.bf16.msra.mxu0 %v8091_v45  ;;  %1502 = vmatpush.bf16.msra.mxu2 %v8099_v24  ;;  %v8011_v45 = vor.u32 %v10876_v32, %v8010_v16  ;;  %v8019_v24 = vor.u32 %v10877_v33, %v8018_v7  ;;  %v8333_v32 = vld [vmem:[#allocation11 + $0x1a0] sm:$0xf]  ;;  %v10956_v7 = vld [vmem:[#allocation11 + $0x1ac] sm:$0xf0]  ;;  %v10954_v33 = vld [vmem:[#allocation11 + $0x1a4] sm:$0xf] }
 0x12a   :  { %1477 = vmatpush.bf16.msra.mxu0 %v8075_v30  ;;  %1503 = vmatpush.bf16.msra.mxu2 %v8083_v34  ;;  %v7995_v30 = vor.u32 %v10872_v20, %v7994_v19  ;;  %v8003_v34 = vor.u32 %v10873_v29, %v8002_v25  ;;  %v8317_v20 = vld [vmem:[#allocation11 + $0x180] sm:$0xf]  ;;  %v10952_v25 = vld [vmem:[#allocation11 + $0x18c] sm:$0xf0]  ;;  %v10950_v29 = vld [vmem:[#allocation11 + $0x184] sm:$0xf] }
 0x12e   :  { %1478 = vmatpush.bf16.msra.mxu0 %v8059_v43  ;;  %1504 = vmatpush.bf16.msra.mxu2 %v8067_v57  ;;  %v12187_v31 = vpop.f32.mrf.mxu3 }
 0x130   :  { %1167 = vmatmul.bf16.vlgmr.msrb.gmra.mxu0 %v12175_v48  ;;  %1193 = vmatmul.bf16.vlgmr.msrb.gmra.mxu2 %v12175_v48 }
 0x132   :  { %1479 = vmatpush.bf16.msra.mxu0 %v8043_v49  ;;  %1505 = vmatpush.bf16.msra.mxu2 %v8051_v63  ;;  %v10962_v49 = vld [vmem:[#allocation11 + $0x1e4] sm:$0xf]  ;;  %v8366_v63 = vor.u32 %v10964_v18, %v8365_v46  ;;  %v8303_v18 = vld [vmem:[#allocation11 + $0x170] sm:$0xf0] }
 0x133   :  { %v8370_v62 = vor.u32 %v10962_v49, %v8367_v0  ;;  %v10932_v0 = vld [vmem:[#allocation11 + $0xec] sm:$0xf0] }
 0x134   :  { %1997 = vmatpush.bf16.msra.mxu1 %v8366_v63  ;;  %v8237_v63 = vld [vmem:[#allocation11 + $0xe0] sm:$0xf] }
 0x135   :  { %2023 = vmatpush.bf16.msrb.mxu3 %v8370_v62  ;;  %v10930_v62 = vld [vmem:[#allocation11 + $0xe4] sm:$0xf] }
 0x136   :  { %1480 = vmatpush.bf16.msra.mxu0 %v8027_v6  ;;  %1506 = vmatpush.bf16.msra.mxu2 %v8035_v61  ;;  %v1157_v42 = vpop.f32.mrf.mxu3  ;;  %v8351_v61 = vld [vmem:[#allocation11 + $0x1d0] sm:$0xf0] }
 0x137   :  { %v8354_v16 = vor.u32 %v10958_v5, %v8351_v61  ;;  %v8301_v42 = vld [vmem:[#allocation11 + $0x160] sm:$0xf] }
 0x138   :  { %v8285_v5 = vld [vmem:[#allocation11 + $0x140] sm:$0xf] }
 0x139   :  { %2024 = vmatpush.bf16.msrb.mxu3 %v8354_v16 }
 0x13a   :  { %1481 = vmatpush.bf16.msra.mxu0 %v8011_v45  ;;  %1507 = vmatpush.bf16.msra.mxu2 %v8019_v24  ;;  %v8334_v45 = vor.u32 %v10956_v7, %v8333_v32  ;;  %v8335_v24 = vld [vmem:[#allocation11 + $0x1b0] sm:$0xf0]  ;;  %v10942_v32 = vld [vmem:[#allocation11 + $0x144] sm:$0xf] }
 0x13b   :  { %v8338_v19 = vor.u32 %v10954_v33, %v8335_v24  ;;  %v8287_v7 = vld [vmem:[#allocation11 + $0x150] sm:$0xf0]  ;;  %v12193_v33 = vld [vmem:[#allocation12] sm:$0xf] }
 0x13c   :  { %v8221_v24 = vld [vmem:[#allocation11 + $0xc0] sm:$0xf] }
 0x13d   :  { %2025 = vmatpush.bf16.msrb.mxu3 %v8338_v19  ;;  %v10928_v19 = vld [vmem:[#allocation11 + $0xcc] sm:$0xf0] }
 0x13e   :  { %1482 = vmatpush.bf16.msra.mxu0 %v7995_v30  ;;  %1508 = vmatpush.bf16.msra.mxu2 %v8003_v34  ;;  %v8318_v30 = vor.u32 %v10952_v25, %v8317_v20  ;;  %v8319_v34 = vld [vmem:[#allocation11 + $0x190] sm:$0xf0]  ;;  %v10926_v20 = vld [vmem:[#allocation11 + $0xc4] sm:$0xf]  ;;  %v8222_v25 = vor.u32 %v10928_v19, %v8221_v24  ;;  %v10965_v19 = vld [vmem:[#allocation11 + $0x1f4] sm:$0xf0] }
 0x13f   :  { %v8322_v35 = vor.u32 %v10950_v29, %v8319_v34  ;;  %v8223_v29 = vld [vmem:[#allocation11 + $0xd0] sm:$0xf0]  ;;  %v10940_v34 = vld [vmem:[#allocation11 + $0x12c] sm:$0xf0] }
 0x141   :  { %1483 = vmatmul.bf16.vlgmr.msra.gmra.mxu0 %v12175_v48  ;;  %1509 = vmatmul.bf16.vlgmr.msra.gmra.mxu2 %v12175_v48  ;;  %v8349_v48 = vld [vmem:[#allocation11 + $0x1c0] sm:$0xf] }
 0x142   :  { %v8350_v6 = vor.u32 %v10960_v1, %v8349_v48  ;;  %2026 = vmatpush.bf16.msrb.mxu3 %v8322_v35  ;;  %v8238_v48 = vor.u32 %v10932_v0, %v8237_v63  ;;  %v8239_v1 = vld [vmem:[#allocation11 + $0xf0] sm:$0xf0]  ;;  %v8226_v35 = vor.u32 %v10926_v20, %v8223_v29  ;;  %v10924_v63 = vld [vmem:[#allocation11 + $0xac] sm:$0xf0]  ;;  %v10922_v0 = vld [vmem:[#allocation11 + $0xa4] sm:$0xf] }
 0x143   :  { %v8242_v61 = vor.u32 %v10930_v62, %v8239_v1  ;;  %v8253_v1 = vld [vmem:[#allocation11 + $0x100] sm:$0xf]  ;;  %v10963_v20 = vld [vmem:[#allocation11 + $0x1ec] sm:$0xf] }
 0x144   :  { %1998 = vmatpush.bf16.msra.mxu1 %v8350_v6  ;;  %v10944_v6 = vld [vmem:[#allocation11 + $0x14c] sm:$0xf0]  ;;  %1984 = vmatpush.bf16.msrb.mxu0 %v8238_v48  ;;  %v8207_v48 = vld [vmem:[#allocation11 + $0xb0] sm:$0xf0] }
 0x145   :  { %v8286_v16 = vor.u32 %v10944_v6, %v8285_v5  ;;  %2010 = vmatpush.bf16.msrb.mxu2 %v8242_v61  ;;  %v10936_v5 = vld [vmem:[#allocation11 + $0x10c] sm:$0xf0]  ;;  %v8210_v6 = vor.u32 %v10922_v0, %v8207_v48  ;;  %v8357_v48 = vld [vmem:[#allocation11 + $0x1c8] sm:$0xf] }
 0x146   :  { %v8254_v61 = vor.u32 %v10936_v5, %v8253_v1  ;;  %v10961_v1 = vld [vmem:[#allocation11 + $0x1d4] sm:$0xf0]  ;;  %v10959_v5 = vld [vmem:[#allocation11 + $0x1cc] sm:$0xf] }
 0x148   :  { %1999 = vmatpush.bf16.msra.mxu1 %v8334_v45  ;;  %v8290_v45 = vor.u32 %v10942_v32, %v8287_v7  ;;  %1985 = vmatpush.bf16.msrb.mxu0 %v8222_v25  ;;  %v8255_v32 = vld [vmem:[#allocation11 + $0x110] sm:$0xf0]  ;;  %v8373_v7 = vld [vmem:[#allocation11 + $0x1e8] sm:$0xf]  ;;  %v8375_v25 = vld [vmem:[#allocation11 + $0x1f8] sm:$0xf0] }
 0x149   :  { %2011 = vmatpush.bf16.msrb.mxu2 %v8226_v35  ;;  %v8378_v35 = vor.u32 %v10963_v20, %v8375_v25  ;;  %v10914_v20 = vld [vmem:[#allocation11 + $0x64] sm:$0xf]  ;;  %v8175_v25 = vld [vmem:[#allocation11 + $0x70] sm:$0xf0] }
 0x14c   :  { %2000 = vmatpush.bf16.msra.mxu1 %v8318_v30  ;;  %v8269_v30 = vld [vmem:[#allocation11 + $0x120] sm:$0xf] }
 0x14d   :  { %2012 = vmatpush.bf16.msrb.mxu2 %v8210_v6  ;;  %v8358_v6 = vor.u32 %v10961_v1, %v8357_v48 }
 0x15a   :  { %v12189_v43 = vpop.f32.mrf.mxu1 }
 0x162   :  { %v12191_v57 = vpop.f32.mrf.mxu3  ;;  %v1183_v55 = vpop.f32.mrf.mxu1 }
 0x163   :  { %v10948_v55 = vld [vmem:[#allocation11 + $0x16c] sm:$0xf0] }
 0x164   :  { %v8302_v46 = vor.u32 %v10948_v55, %v8301_v42  ;;  %v8270_v42 = vor.u32 %v10940_v34, %v8269_v30  ;;  %v10938_v55 = vld [vmem:[#allocation11 + $0x124] sm:$0xf]  ;;  %v8374_v34 = vor.u32 %v10965_v19, %v8373_v7  ;;  %v8173_v7 = vld [vmem:[#allocation11 + $0x60] sm:$0xf] }
 0x166   :  { %2001 = vmatpush.bf16.msra.mxu1 %v8302_v46  ;;  %v12196_v46 = vperm.slane %v12193_v33, 0 }
 0x16a   :  { %v1209_v59 = vpop.f32.mrf.mxu3  ;;  %2002 = vmatpush.bf16.msra.mxu1 %v8286_v16  ;;  %v10934_v16 = vld [vmem:[#allocation11 + $0x104] sm:$0xf] }
 0x16b   :  { %v10946_v59 = vld [vmem:[#allocation11 + $0x164] sm:$0xf]  ;;  %v8258_v24 = vor.u32 %v10934_v16, %v8255_v32 }
 0x16c   :  { %v8306_v49 = vor.u32 %v10946_v59, %v8303_v18  ;;  %v8271_v59 = vld [vmem:[#allocation11 + $0x130] sm:$0xf0] }
 0x16d   :  { %v8274_v18 = vor.u32 %v10938_v55, %v8271_v59  ;;  %v10920_v55 = vld [vmem:[#allocation11 + $0x8c] sm:$0xf0]  ;;  %v10918_v59 = vld [vmem:[#allocation11 + $0x84] sm:$0xf] }
 0x16e   :  { %2027 = vmatpush.bf16.msrb.mxu3 %v8306_v49  ;;  %2003 = vmatpush.bf16.msra.mxu1 %v8270_v42  ;;  %v8205_v49 = vld [vmem:[#allocation11 + $0xa0] sm:$0xf] }
 0x16f   :  { %v8206_v62 = vor.u32 %v10924_v63, %v8205_v49  ;;  %v8189_v42 = vld [vmem:[#allocation11 + $0x80] sm:$0xf]  ;;  %v8191_v63 = vld [vmem:[#allocation11 + $0x90] sm:$0xf0] }
 0x170   :  { %v8190_v49 = vor.u32 %v10920_v55, %v8189_v42  ;;  %v8341_v42 = vld [vmem:[#allocation11 + $0x1a8] sm:$0xf]  ;;  %v10957_v55 = vld [vmem:[#allocation11 + $0x1b4] sm:$0xf0] }
 0x171   :  { %1986 = vmatpush.bf16.msrb.mxu0 %v8206_v62  ;;  %v8194_v62 = vor.u32 %v10918_v59, %v8191_v63  ;;  %v10955_v59 = vld [vmem:[#allocation11 + $0x1ac] sm:$0xf]  ;;  %v8342_v63 = vor.u32 %v10957_v55, %v8341_v42  ;;  %v10908_v42 = vld [vmem:[#allocation11 + $0x2c] sm:$0xf0] }
 0x172   :  { %2028 = vmatpush.bf16.msrb.mxu3 %v8290_v45  ;;  %2004 = vmatpush.bf16.msra.mxu1 %v8254_v61  ;;  %v8359_v61 = vld [vmem:[#allocation11 + $0x1d8] sm:$0xf0] }
 0x173   :  { %2013 = vmatpush.bf16.msrb.mxu2 %v8194_v62  ;;  %v8362_v32 = vor.u32 %v10959_v5, %v8359_v61  ;;  %v8157_v5 = vld [vmem:[#allocation11 + $0x40] sm:$0xf]  ;;  %v10912_v61 = vld [vmem:[#allocation11 + $0x4c] sm:$0xf0] }
 0x175   :  { %1987 = vmatpush.bf16.msrb.mxu0 %v8190_v49 }
 0x176   :  { %2029 = vmatpush.bf16.msrb.mxu3 %v8274_v18  ;;  %v12200_v18 = vperm.slane %v12193_v33, 1  ;;  %2049 = vmatpush.bf16.msrb.mxu1 %v8374_v34 }
 0x17a   :  { %2030 = vmatpush.bf16.msrb.mxu3 %v8258_v24  ;;  %2050 = vmatpush.bf16.msrb.mxu1 %v8358_v6  ;;  %v8159_v6 = vld [vmem:[#allocation11 + $0x50] sm:$0xf0] }
 0x17e   :  { %2075 = vmatpush.bf16.msra.mxu3 %v8378_v35  ;;  %v8178_v35 = vor.u32 %v10914_v20, %v8175_v25  ;;  %2051 = vmatpush.bf16.msrb.mxu1 %v8342_v63  ;;  %v10953_v20 = vld [vmem:[#allocation11 + $0x194] sm:$0xf0]  ;;  %v10951_v25 = vld [vmem:[#allocation11 + $0x18c] sm:$0xf]  ;;  %v10906_v63 = vld [vmem:[#allocation11 + $0x24] sm:$0xf] }
 0x180   :  { %2014 = vmatpush.bf16.msrb.mxu2 %v8178_v35  ;;  %v8141_v35 = vld [vmem:[#allocation11 + $0x20] sm:$0xf] }
 0x182   :  { %2076 = vmatpush.bf16.msra.mxu3 %v8362_v32 }
 0x19d   :  { %v1116_v45 = vpop.f32.mrf.mxu0 }
 0x19e   :  { %v1117_v29 = vadd.f32 %v1116_v45, %v12196_v46  ;;  %v1497_v30 = vpop.f32.mrf.mxu1  ;;  %v10916_v45 = vld [vmem:[#allocation11 + $0x6c] sm:$0xf0] }
 0x19f   :  { %v8174_v24 = vor.u32 %v10916_v45, %v8173_v7  ;;  %v8158_v7 = vor.u32 %v10912_v61, %v8157_v5  ;;  %v10947_v61 = vld [vmem:[#allocation11 + $0x16c] sm:$0xf] }
 0x1a0   :  { %v1130_v0 = vadd.f32 %v12185_v21, %v1117_v29  ;;  %v279_v21 = vadd.f32 %v12078_v12, %v12081_v39 }
 0x1a1   :  { %1988 = vmatpush.bf16.msrb.mxu0 %v8174_v24 }
 0x1a2   :  { %v7989_v16 = vmul.f32 -1.442695, %v1130_v0  ;;  %v8343_v0 = vld [vmem:[#allocation11 + $0x1b8] sm:$0xf0]  ;;  %v1528_v62 = vadd.f32 %v1497_v30, %v279_v21 }
 0x1a3   :  { %v1142_v19 = vpop.f32.mrf.mxu2  ;;  %v8346_v12 = vor.u32 %v10955_v59, %v8343_v0  ;;  %v8327_v30 = vld [vmem:[#allocation11 + $0x198] sm:$0xf0]  ;;  %v8143_v0 = vld [vmem:[#allocation11 + $0x30] sm:$0xf0] }
 0x1a4   :  { %11578 = vpow2.f32 %v7989_v16  ;;  %v1143_v29 = vadd.f32 %v1142_v19, %v12200_v18  ;;  %v12206_v34 = vpop.f32.mrf.mxu3  ;;  %v10910_v16 = vld [vmem:[#allocation11 + $0x44] sm:$0xf]  ;;  %v8325_v19 = vld [vmem:[#allocation11 + $0x188] sm:$0xf]  ;;  %v8146_v5 = vor.u32 %v10906_v63, %v8143_v0  ;;  %v10931_v63 = vld [vmem:[#allocation11 + $0xec] sm:$0xf] }
 0x1a5   :  { %v1118_v49 = vpop.f32.mrf.mxu0  ;;  %2077 = vmatpush.bf16.msra.mxu3 %v8346_v12  ;;  %v8162_v45 = vor.u32 %v10910_v16, %v8159_v6  ;;  %1989 = vmatpush.bf16.msrb.mxu0 %v8158_v7  ;;  %v8326_v24 = vor.u32 %v10953_v20, %v8325_v19  ;;  %v8311_v16 = vld [vmem:[#allocation11 + $0x178] sm:$0xf0]  ;;  %v337_v20 = vadd.f32 %v12057_v51, %v12068_v3 }
 0x1a6   :  { %v1156_v48 = vadd.f32 %v12187_v31, %v1143_v29  ;;  %v1499_v1 = vpop.f32.mrf.mxu1  ;;  %v8121_v31 = vmul.f32 -1.442695, %v1528_v62  ;;  %v8330_v29 = vor.u32 %v10951_v25, %v8327_v30  ;;  %v8142_v49 = vor.u32 %v10908_v42, %v8141_v35  ;;  %v10949_v62 = vld [vmem:[#allocation11 + $0x174] sm:$0xf0]  ;;  %v10902_v25 = vld [vmem:[#allocation11 + $0x4] sm:$0xf] }
 0x1a7   :  { %2015 = vmatpush.bf16.msrb.mxu2 %v8162_v45  ;;  %2052 = vmatpush.bf16.msrb.mxu1 %v8326_v24  ;;  %v8309_v1 = vld [vmem:[#allocation11 + $0x168] sm:$0xf]  ;;  %v8314_v6 = vor.u32 %v10947_v61, %v8311_v16  ;;  %v10904_v45 = vld [vmem:[#allocation11 + $0xc] sm:$0xf0]  ;;  %v8127_v30 = vld [vmem:[#allocation11 + $0x10] sm:$0xf0] }
 0x1a8   :  { %v7990_v32 = vmul.f32 -1.442695, %v1156_v48  ;;  %v8310_v7 = vor.u32 %v10949_v62, %v8309_v1  ;;  %v12218_v35 = vperm.slane %v12193_v33, 3  ;;  %v8247_v1 = vld [vmem:[#allocation11 + $0xf8] sm:$0xf0] }
 0x1a9   :  { %2078 = vmatpush.bf16.msra.mxu3 %v8330_v29  ;;  %1990 = vmatpush.bf16.msrb.mxu0 %v8142_v49  ;;  %v1530_v29 = vadd.f32 %v12206_v34, %v337_v20  ;;  %v10933_v49 = vld [vmem:[#allocation11 + $0xf4] sm:$0xf0]  ;;  %v8293_v62 = vld [vmem:[#allocation11 + $0x148] sm:$0xf]  ;;  %v10943_v16 = vld [vmem:[#allocation11 + $0x14c] sm:$0xf] }
 0x1aa   :  { %v11579_v21 = vpop.eup %11578  ;;  %11580 = vpow2.f32 %v7990_v32  ;;  %v8125_v32 = vld [vmem:[#allocation11] sm:$0xf]  ;;  %v10945_v34 = vld [vmem:[#allocation11 + $0x154] sm:$0xf0] }
 0x1ab   :  { %v12209_v55 = vadd.f32 1.0, %v11579_v21  ;;  %v1144_v59 = vpop.f32.mrf.mxu2  ;;  %2016 = vmatpush.bf16.msrb.mxu2 %v8146_v5  ;;  %v8126_v24 = vor.u32 %v10904_v45, %v8125_v32  ;;  %2053 = vmatpush.bf16.msrb.mxu1 %v8310_v7  ;;  %v12226_v5 = vperm.slane %v12193_v33, 2  ;;  %v8295_v7 = vld [vmem:[#allocation11 + $0x158] sm:$0xf0]  ;;  %v10929_v20 = vld [vmem:[#allocation11 + $0xd4] sm:$0xf0] }
 0x1ac   :  { %v1525_v48 = vpop.f32.mrf.mxu3  ;;  %v8245_v59 = vld [vmem:[#allocation11 + $0xe8] sm:$0xf]  ;;  %v8298_v33 = vor.u32 %v10943_v16, %v8295_v7  ;;  %v8278_v16 = vor.u32 %v10941_v52, %v8277_v17 }
 0x1ad   :  { %11582 = vrcp.f32 %v12209_v55  ;;  %v1168_v12 = vpop.f32.mrf.mxu0  ;;  %2079 = vmatpush.bf16.msra.mxu3 %v8314_v6  ;;  %1991 = vmatpush.bf16.msrb.mxu0 %v8126_v24  ;;  %v8122_v6 = vmul.f32 -1.442695, %v1530_v29  ;;  %v8246_v45 = vor.u32 %v10933_v49, %v8245_v59  ;;  %v10939_v29 = vld [vmem:[#allocation11 + $0x12c] sm:$0xf]  ;;  %v1225_v59 = vand.u32 2147483647, %v12209_v55 }
 0x1ae   :  { %11584 = vpow2.f32 %v8121_v31  ;;  %v8130_v31 = vor.u32 %v10902_v25, %v8127_v30  ;;  %v8250_v30 = vor.u32 %v10931_v63, %v8247_v1  ;;  %v8234_v49 = vor.u32 %v10927_v36, %v8231_v40  ;;  %v8279_v63 = vld [vmem:[#allocation11 + $0x138] sm:$0xf0]  ;;  %v10925_v1 = vld [vmem:[#allocation11 + $0xb4] sm:$0xf0] }
 0x1af   :  { %v8282_v7 = vor.u32 %v10939_v29, %v8279_v63  ;;  %v10937_v40 = vld [vmem:[#allocation11 + $0x114] sm:$0xf0]  ;;  %v250_v36 = vadd.f32 %v12051_v37, %v12040_v23  ;;  %vm1221_vm0 = vweird.f32 %v12209_v55  ;;  %vm1226_vm4 = vcmp.eq.f32.partialorder %v1225_v59, 8.507059e+37 }
 0x1b0   :  { %v11581_v19 = vpop.eup %11580  ;;  %2017 = vmatpush.bf16.msrb.mxu2 %v8130_v31  ;;  %v8294_v31 = vor.u32 %v10945_v34, %v8293_v62  ;;  %v10923_v62 = vld [vmem:[#allocation11 + $0xac] sm:$0xf] }
 0x1b1   :  { %v12214_v21 = vadd.f32 1.0, %v11581_v19  ;;  %v8229_v19 = vld [vmem:[#allocation11 + $0xc8] sm:$0xf]  ;;  %2036 = vmatpush.bf16.msra.mxu0 %v8246_v45  ;;  %2080 = vmatpush.bf16.msra.mxu3 %v8298_v33 }
 0x1b2   :  { %2054 = vmatpush.bf16.msrb.mxu1 %v8294_v31  ;;  %v8261_v45 = vld [vmem:[#allocation11 + $0x108] sm:$0xf] }
 0x1b3   :  { %v12220_v42 = vpop.eup %11582  ;;  %11586 = vrcp.f32 %v12214_v21  ;;  %v1194_v51 = vpop.f32.mrf.mxu2  ;;  %v1244_v52 = vand.u32 2147483647, %v12214_v21  ;;  %v8197_v33 = vld [vmem:[#allocation11 + $0x88] sm:$0xf]  ;;  %vm1240_vm15 = vweird.f32 %v12214_v21 }
 0x1b4   :  { %v11585_v0 = vpop.eup %11584  ;;  %v1217_v48 = vmul.f32 %v12220_v42, %v12209_v55  ;;  %v1195_v32 = vadd.f32 %v1194_v51, %v12218_v35  ;;  %v1169_v51 = vadd.f32 %v1168_v12, %v12226_v5  ;;  %2062 = vmatpush.bf16.msra.mxu2 %v8250_v30  ;;  %11588 = vpow2.f32 %v8122_v6  ;;  %v8263_v6 = vld [vmem:[#allocation11 + $0x118] sm:$0xf0] }
 0x1b5   :  { %v1170_v61 = vpop.f32.mrf.mxu0  ;;  %v12229_v25 = vadd.f32 1.0, %v11585_v0  ;;  %v8213_v0 = vld [vmem:[#allocation11 + $0xa8] sm:$0xf]  ;;  %vm1222_vm13 = vweird.f32 %v12220_v42  ;;  %2081 = vmatpush.bf16.msra.mxu3 %v8282_v7  ;;  %vm1245_vm3 = vcmp.eq.f32.partialorder %v1244_v52, 8.507059e+37  ;;  %v10913_v52 = vld [vmem:[#allocation11 + $0x54] sm:$0xf0] }
 0x1b6   :  { %v1218_v24 = vsub.f32 1.0, %v1217_v48  ;;  %v1208_v41 = vadd.f32 %v12191_v57, %v1195_v32  ;;  %v8230_v61 = vor.u32 %v10929_v20, %v8229_v19  ;;  %v8215_v32 = vld [vmem:[#allocation11 + $0xb8] sm:$0xf0]  ;;  %v1246_v20 = vand.u32 2147483648, %v12214_v21  ;;  %2055 = vmatpush.bf16.msrb.mxu1 %v8278_v16  ;;  %vm12263_vm2 = vmor %vm1221_vm0, %vm1222_vm13 }
 0x1b7   :  { %11590 = vrcp.f32 %v12229_v25  ;;  %v1182_v30 = vadd.f32 %v12189_v43, %v1169_v51  ;;  %v8218_v31 = vor.u32 %v10923_v62, %v8215_v32  ;;  %v8262_v43 = vor.u32 %v10937_v40, %v8261_v45  ;;  %v10917_v32 = vld [vmem:[#allocation11 + $0x74] sm:$0xf0] }
 0x1b8   :  { %v7991_v48 = vmul.f32 -1.442695, %v1208_v41  ;;  %v1219_v34 = vmul.f32 %v12220_v42, %v1218_v24  ;;  %2037 = vmatpush.bf16.msra.mxu0 %v8230_v61  ;;  %v10935_v41 = vld [vmem:[#allocation11 + $0x10c] sm:$0xf]  ;;  %2063 = vmatpush.bf16.msra.mxu2 %v8234_v49  ;;  %v8214_v24 = vor.u32 %v10925_v1, %v8213_v0  ;;  %v10921_v61 = vld [vmem:[#allocation11 + $0x94] sm:$0xf0]  ;;  %vm1560_vm8 = vweird.f32 %v12229_v25 }
 0x1b9   :  { %v12232_v26 = vpop.eup %11586  ;;  %v8266_v51 = vor.u32 %v10935_v41, %v8263_v6  ;;  %v1227_v49 = vand.u32 2147483648, %v12209_v55  ;;  %v8198_v7 = vor.u32 %v10921_v61, %v8197_v33  ;;  %v1247_v40 = vor.u32 1.1754944e-38, %v1246_v20  ;;  %v10915_v41 = vld [vmem:[#allocation11 + $0x6c] sm:$0xf]  ;;  %v8183_v6 = vld [vmem:[#allocation11 + $0x78] sm:$0xf0] }
 0x1ba   :  { %v1236_v57 = vmul.f32 %v12232_v26, %v12214_v21  ;;  %11592 = vpow2.f32 %v7991_v48  ;;  %vm1241_vm14 = vweird.f32 %v12232_v26  ;;  %v1220_v29 = vadd.f32 %v12220_v42, %v1219_v34  ;;  %v8199_v48 = vld [vmem:[#allocation11 + $0x98] sm:$0xf0]  ;;  %2056 = vmatpush.bf16.msrb.mxu1 %v8262_v43  ;;  %v8181_v34 = vld [vmem:[#allocation11 + $0x68] sm:$0xf]  ;;  %v10911_v43 = vld [vmem:[#allocation11 + $0x4c] sm:$0xf] }
 0x1bb   :  { %v1196_v12 = vpop.f32.mrf.mxu2  ;;  %vm12257_vm1 = vmor %vm1240_vm15, %vm1241_vm14  ;;  %11594 = vtanh.f32 %v1182_v30  ;;  %2082 = vmatpush.bf16.msra.mxu3 %v8266_v51  ;;  %v8182_v61 = vor.u32 %v10917_v32, %v8181_v34  ;;  %v8165_v30 = vld [vmem:[#allocation11 + $0x48] sm:$0xf]  ;;  %v8167_v51 = vld [vmem:[#allocation11 + $0x58] sm:$0xf0] }
 0x1bc   :  { %v1237_v19 = vsub.f32 1.0, %v1236_v57  ;;  %v10919_v57 = vld [vmem:[#allocation11 + $0x8c] sm:$0xf]  ;;  %v11589_v12 = vpop.eup %11588  ;;  %2038 = vmatpush.bf16.msra.mxu0 %v8214_v24  ;;  %2064 = vmatpush.bf16.msra.mxu2 %v8218_v31  ;;  %v1228_v24 = vor.u32 1.1754944e-38, %v1227_v49  ;;  %v8170_v59 = vor.u32 %v10911_v43, %v8167_v51  ;;  %v10909_v1 = vld [vmem:[#allocation11 + $0x34] sm:$0xf0] }
 0x1bd   :  { %v12252_v0 = vpop.eup %11590  ;;  %v8202_v21 = vor.u32 %v10919_v57, %v8199_v48  ;;  %v8151_v34 = vld [vmem:[#allocation11 + $0x38] sm:$0xf0] }
 0x1be   :  { %v1238_v17 = vmul.f32 %v12232_v26, %v1237_v19  ;;  %v1484_v37 = vpop.f32.mrf.mxu0  ;;  %vm1561_vm6 = vweird.f32 %v12252_v0 }
 0x1bf   :  { %v1527_v63 = vadd.f32 %v1484_v37, %v250_v36  ;;  %v12275_v37 = vadd.f32 1.0, %v11589_v12  ;;  %v8166_v12 = vor.u32 %v10913_v52, %v8165_v30  ;;  %v308_v30 = vadd.f32 %v12055_v50, %v12065_v2  ;;  %vm12313_vm10 = vmor %vm1560_vm8, %vm1561_vm6 }
 0x1c0   :  { %v1239_v16 = vadd.f32 %v12232_v26, %v1238_v17  ;;  %v11593_v45 = vpop.eup %11592  ;;  %v1224_v17 = vsel %vm12263_vm2, %v12220_v42, %v1220_v29  ;;  %2039 = vmatpush.bf16.msra.mxu0 %v8198_v7  ;;  %2065 = vmatpush.bf16.msra.mxu2 %v8202_v21  ;;  %v8186_v42 = vor.u32 %v10915_v41, %v8183_v6  ;;  %v8149_v7 = vld [vmem:[#allocation11 + $0x28] sm:$0xf]  ;;  %v10907_v21 = vld [vmem:[#allocation11 + $0x2c] sm:$0xf]  ;;  %v1566_v52 = vand.u32 2147483648, %v12229_v25 }
 0x1c1   :  { %v8120_v62 = vmul.f32 -1.442695, %v1527_v63  ;;  %v12273_v20 = vadd.f32 1.0, %v11593_v45  ;;  %v1229_v29 = vsel %vm1226_vm4, %v1228_v24, %v1224_v17  ;;  %v11595_v48 = vpop.eup %11594  ;;  %v8154_v6 = vor.u32 %v10907_v21, %v8151_v34  ;;  %v8133_v17 = vld [vmem:[#allocation11 + $0x8] sm:$0xf] }
 0x1c2   :  { %v1243_v19 = vsel %vm12257_vm1, %v12232_v26, %v1239_v16  ;;  %v1556_v26 = vmul.f32 %v12252_v0, %v12229_v25  ;;  %v1271_v55 = vmul.f32 %v11595_v48, %v1229_v29  ;;  %v10905_v24 = vld [vmem:[#allocation11 + $0x14] sm:$0xf0]  ;;  %v10994_v21 = vld [vmem:[#allocation9 + $0xe4] sm:$0xf]  ;;  %v8498_v34 = vld [vmem:[#allocation9 + $0xf0] sm:$0xf0]  ;;  %vm1580_vm2 = vweird.f32 %v12275_v37 }
 0x1c3   :  { %11596 = vpow2.f32 %v8120_v62  ;;  %v1248_v31 = vsel %vm1245_vm3, %v1247_v40, %v1243_v19  ;;  %v8150_v19 = vor.u32 %v10909_v1, %v8149_v7  ;;  %v1266_v29 = vand.u32 2147483648, %v12273_v20  ;;  %v10986_v7 = vld [vmem:[#allocation9 + $0xa4] sm:$0xf] }
 0x1c4   :  { %v1510_v33 = vpop.f32.mrf.mxu2  ;;  %11598 = vrcp.f32 %v12273_v20  ;;  %v1270_v57 = vmul.f32 0.0, %v1248_v31  ;;  %2040 = vmatpush.bf16.msra.mxu0 %v8182_v61  ;;  %v1557_v16 = vsub.f32 1.0, %v1556_v26  ;;  %2066 = vmatpush.bf16.msra.mxu2 %v8186_v42  ;;  %v10903_v26 = vld [vmem:[#allocation11 + $0xc] sm:$0xf]  ;;  %v8135_v42 = vld [vmem:[#allocation11 + $0x18] sm:$0xf0]  ;;  %v8134_v51 = vor.u32 %v10905_v24, %v8133_v17 }
 0x1c5   :  { %11600 = vrcp.f32 %v12275_v37  ;;  %v1264_v43 = vand.u32 2147483647, %v12273_v20  ;;  %v8138_v50 = vor.u32 %v10903_v26, %v8135_v42  ;;  %vm1260_vm7 = vweird.f32 %v12273_v20 }
 0x1c6   :  { %v1486_v63 = vpop.f32.mrf.mxu0  ;;  %v12285_v45 = vadd.f32 %v1271_v55, %v1270_v57  ;;  %v1558_v41 = vmul.f32 %v12252_v0, %v1557_v16  ;;  %v1564_v16 = vand.u32 2147483647, %v12229_v25  ;;  %v1267_v1 = vor.u32 1.1754944e-38, %v1266_v29  ;;  %v10990_v29 = vld [vmem:[#allocation9 + $0xc4] sm:$0xf] }
 0x1c7   :  { %vm1265_vm11 = vcmp.eq.f32.partialorder %v1264_v43, 8.507059e+37  ;;  %v8501_v42 = vor.u32 %v10994_v21, %v8498_v34  ;;  %v8482_v43 = vld [vmem:[#allocation9 + $0xd0] sm:$0xf0] }
 0x1c8   :  { %2041 = vmatpush.bf16.msra.mxu0 %v8166_v12  ;;  %2067 = vmatpush.bf16.msra.mxu2 %v8170_v59  ;;  %v1559_v48 = vadd.f32 %v12252_v0, %v1558_v41  ;;  %vm1565_vm14 = vcmp.eq.f32.partialorder %v1564_v16, 8.507059e+37  ;;  %v10987_v16 = vld [vmem:[#allocation9 + $0xac] sm:$0xf] }
 0x1c9   :  { %v11597_v49 = vpop.eup %11596 }
 0x1ca   :  { %v12283_v62 = vadd.f32 1.0, %v11597_v49  ;;  %v11599_v32 = vpop.eup %11598  ;;  %v1529_v49 = vadd.f32 %v1510_v33, %v308_v30  ;;  %v1563_v17 = vsel %vm12313_vm10, %v12252_v0, %v1559_v48  ;;  %v8474_v33 = vld [vmem:[#allocation9 + $0xb8] sm:$0xf0] }
 0x1cb   :  { %v1256_v40 = vmul.f32 %v11599_v32, %v12273_v20  ;;  %v12290_v31 = vpop.eup %11600  ;;  %vm1261_vm5 = vweird.f32 %v11599_v32  ;;  %v10995_v20 = vld [vmem:[#allocation9 + $0xec] sm:$0xf] }
 0x1cc   :  { %11602 = vrcp.f32 %v12283_v62  ;;  %v1512_v36 = vpop.f32.mrf.mxu2  ;;  %2042 = vmatpush.bf16.msra.mxu0 %v8150_v19  ;;  %v1576_v57 = vmul.f32 %v12290_v31, %v12275_v37  ;;  %2068 = vmatpush.bf16.msra.mxu2 %v8154_v6  ;;  %vm12307_vm9 = vmor %vm1260_vm7, %vm1261_vm5  ;;  %vm1541_vm13 = vweird.f32 %v12283_v62  ;;  %vm1581_vm1 = vweird.f32 %v12290_v31 }
 0x1cd   :  { %v1257_v61 = vsub.f32 1.0, %v1256_v40  ;;  %11604 = vtanh.f32 %v12285_v45  ;;  %v1567_v40 = vor.u32 1.1754944e-38, %v1566_v52  ;;  %v8506_v36 = vld [vmem:[#allocation9 + $0xf8] sm:$0xf0]  ;;  %vm12339_vm3 = vmor %vm1580_vm2, %vm1581_vm1 }
 0x1ce   :  { %v1577_v41 = vsub.f32 1.0, %v1576_v57  ;;  %11606 = vtanh.f32 %v1529_v49  ;;  %v8509_v52 = vor.u32 %v10995_v20, %v8506_v36  ;;  %v8490_v57 = vld [vmem:[#allocation9 + $0xd8] sm:$0xf0]  ;;  %v8485_v49 = vor.u32 %v10990_v29, %v8482_v43  ;;  %v8434_v29 = vld [vmem:[#allocation9 + $0x70] sm:$0xf0] }
 0x1cf   :  { %v1258_v63 = vmul.f32 %v11599_v32, %v1257_v61  ;;  %v1547_v61 = vand.u32 2147483648, %v12283_v62  ;;  %v1568_v48 = vsel %vm1565_vm14, %v1567_v40, %v1563_v17  ;;  %v8477_v36 = vor.u32 %v10987_v16, %v8474_v33  ;;  %v8450_v17 = vld [vmem:[#allocation9 + $0x90] sm:$0xf0]  ;;  %v10979_v43 = vld [vmem:[#allocation9 + $0x6c] sm:$0xf] }
 0x1d0   :  { %2043 = vmatpush.bf16.msra.mxu0 %v8134_v51  ;;  %2069 = vmatpush.bf16.msra.mxu2 %v8138_v50  ;;  %v10991_v51 = vld [vmem:[#allocation9 + $0xcc] sm:$0xf]  ;;  %v1578_v21 = vmul.f32 %v12290_v31, %v1577_v41  ;;  %v1590_v40 = vmul.f32 %v1568_v48, %v12172_v47  ;;  %v10997_v48 = vld [vmem:[#allocation9 + $0xf4] sm:$0xf0] }
 0x1d1   :  { %v1259_v55 = vadd.f32 %v11599_v32, %v1258_v63  ;;  %v1548_v0 = vor.u32 1.1754944e-38, %v1547_v61  ;;  %v10983_v41 = vld [vmem:[#allocation9 + $0x8c] sm:$0xf]  ;;  %v1584_v61 = vand.u32 2147483647, %v12275_v37 }
 0x1d2   :  { %v11603_v12 = vpop.eup %11602 }
 0x1d3   :  { %v1537_v59 = vmul.f32 %v11603_v12, %v12283_v62  ;;  %v1263_v25 = vsel %vm12307_vm9, %v11599_v32, %v1259_v55  ;;  %v11605_v19 = vpop.eup %11604  ;;  %vm1542_vm12 = vweird.f32 %v11603_v12  ;;  %v1545_v32 = vand.u32 2147483647, %v12283_v62  ;;  %v8466_v62 = vld [vmem:[#allocation9 + $0xb0] sm:$0xf0] }
 0x1d4   :  { %v1268_v24 = vsel %vm1265_vm11, %v1267_v1, %v1263_v25  ;;  %vm1543_vm15 = vmor %vm1541_vm13, %vm1542_vm12  ;;  %v11607_v1 = vpop.eup %11606  ;;  %vm1585_vm4 = vcmp.eq.f32.partialorder %v1584_v61, 8.507059e+37  ;;  %v10971_v61 = vld [vmem:[#allocation9 + $0x2c] sm:$0xf] }
 0x1d5   :  { %v1538_v6 = vsub.f32 1.0, %v1537_v59  ;;  %v1274_v26 = vmul.f32 %v11605_v19, %v1268_v24  ;;  %vm1546_vm0 = vcmp.eq.f32.partialorder %v1545_v32, 8.507059e+37  ;;  %v8493_v59 = vor.u32 %v10991_v51, %v8490_v57  ;;  %v10982_v19 = vld [vmem:[#allocation9 + $0x84] sm:$0xf]  ;;  %v8458_v24 = vld [vmem:[#allocation9 + $0x98] sm:$0xf0] }
 0x1d6   :  { %v10978_v32 = vld [vmem:[#allocation9 + $0x64] sm:$0xf]  ;;  %v8442_v51 = vld [vmem:[#allocation9 + $0x78] sm:$0xf0] }
 0x1d7   :  { %v1539_v30 = vmul.f32 %v11603_v12, %v1538_v6  ;;  %v12324_v63 = vpack.c.bf16 %v1274_v26, %v1274_v26  ;;  %v1579_v6 = vadd.f32 %v12290_v31, %v1578_v21  ;;  %v1586_v26 = vand.u32 2147483648, %v12275_v37  ;;  %v10996_v37 = vld [vmem:[#allocation9 + $0xec] sm:$0xf0] }
 0x1d9   :  { %v1540_v55 = vadd.f32 %v11603_v12, %v1539_v30  ;;  %2005 = vmatmul.bf16.vlgmr.msra.gmra.mxu1 %v12324_v63  ;;  %2031 = vmatmul.bf16.vlgmr.msrb.gmra.mxu3 %v12324_v63  ;;  %v8461_v30 = vor.u32 %v10983_v41, %v8458_v24  ;;  %v1587_v57 = vor.u32 1.1754944e-38, %v1586_v26  ;;  %v10970_v41 = vld [vmem:[#allocation9 + $0x24] sm:$0xf]  ;;  %v8402_v24 = vld [vmem:[#allocation9 + $0x30] sm:$0xf0] }
 0x1da   :  { %2365 = vmatpush.bf16.msra.mxu1 %v8501_v42  ;;  %2391 = vmatpush.bf16.msrb.mxu3 %v8509_v52  ;;  %v8453_v42 = vor.u32 %v10982_v19, %v8450_v17  ;;  %v1583_v52 = vsel %vm12339_vm3, %v12290_v31, %v1579_v6  ;;  %v8426_v31 = vld [vmem:[#allocation9 + $0x58] sm:$0xf0]  ;;  %v10993_v19 = vld [vmem:[#allocation9 + $0xd4] sm:$0xf0] }
 0x1db   :  { %v1544_v50 = vsel %vm1543_vm15, %v11603_v12, %v1540_v55  ;;  %v8469_v12 = vor.u32 %v10986_v7, %v8466_v62  ;;  %v8496_v55 = vld [vmem:[#allocation9 + $0xe0] sm:$0xf]  ;;  %v8445_v7 = vor.u32 %v10979_v43, %v8442_v51  ;;  %v10975_v62 = vld [vmem:[#allocation9 + $0x4c] sm:$0xf]  ;;  %v8410_v26 = vld [vmem:[#allocation9 + $0x38] sm:$0xf0] }
 0x1dc   :  { %v1549_v34 = vsel %vm1546_vm0, %v1548_v0, %v1544_v50  ;;  %v8504_v0 = vld [vmem:[#allocation9 + $0xe8] sm:$0xf]  ;;  %v8497_v16 = vor.u32 %v10996_v37, %v8496_v55  ;;  %v8429_v17 = vor.u32 %v10975_v62, %v8426_v31  ;;  %v8413_v43 = vor.u32 %v10971_v61, %v8410_v26  ;;  %v10966_v51 = vld [vmem:[#allocation9 + $0x4] sm:$0xf]  ;;  %v10967_v55 = vld [vmem:[#allocation9 + $0xc] sm:$0xf] }
 0x1dd   :  { %v1591_v25 = vmul.f32 %v11607_v1, %v1549_v34  ;;  %v10974_v1 = vld [vmem:[#allocation9 + $0x44] sm:$0xf]  ;;  %v8418_v34 = vld [vmem:[#allocation9 + $0x50] sm:$0xf0]  ;;  %v8505_v33 = vor.u32 %v10997_v48, %v8504_v0  ;;  %v8394_v37 = vld [vmem:[#allocation9 + $0x18] sm:$0xf0] }
 0x1de   :  { %2366 = vmatpush.bf16.msra.mxu1 %v8485_v49  ;;  %2392 = vmatpush.bf16.msrb.mxu3 %v8493_v59  ;;  %v1588_v49 = vsel %vm1585_vm4, %v1587_v57, %v1583_v52  ;;  %v8437_v59 = vor.u32 %v10978_v32, %v8434_v29  ;;  %v8421_v6 = vor.u32 %v10974_v1, %v8418_v34  ;;  %v8472_v32 = vld [vmem:[#allocation9 + $0xa8] sm:$0xf]  ;;  %v10989_v52 = vld [vmem:[#allocation9 + $0xb4] sm:$0xf0]  ;;  %v8386_v57 = vld [vmem:[#allocation9 + $0x10] sm:$0xf0] }
 0x1df   :  { %v12331_v20 = vadd.f32 %v1591_v25, %v1590_v40  ;;  %v8480_v40 = vld [vmem:[#allocation9 + $0xc0] sm:$0xf]  ;;  %v8405_v29 = vor.u32 %v10970_v41, %v8402_v24  ;;  %v8473_v48 = vor.u32 %v10989_v52, %v8472_v32  ;;  %v8389_v1 = vor.u32 %v10966_v51, %v8386_v57  ;;  %v10977_v41 = vld [vmem:[#allocation9 + $0x54] sm:$0xf0] }
 0x1e0   :  { %v8432_v31 = vld [vmem:[#allocation9 + $0x60] sm:$0xf]  ;;  %v10969_v51 = vld [vmem:[#allocation9 + $0x14] sm:$0xf0] }
 0x1e1   :  { %11608 = vtanh.f32 %v12331_v20  ;;  %v8400_v26 = vld [vmem:[#allocation9 + $0x20] sm:$0xf] }
 0x1e2   :  { %2367 = vmatpush.bf16.msra.mxu1 %v8469_v12  ;;  %2393 = vmatpush.bf16.msrb.mxu3 %v8477_v36  ;;  %v10992_v12 = vld [vmem:[#allocation9 + $0xcc] sm:$0xf0]  ;;  %v8488_v36 = vld [vmem:[#allocation9 + $0xc8] sm:$0xf]  ;;  %v8384_v52 = vld [vmem:[#allocation9] sm:$0xf] }
 0x1e3   :  { %v8481_v47 = vor.u32 %v10992_v12, %v8480_v40  ;;  %v10981_v40 = vld [vmem:[#allocation9 + $0x74] sm:$0xf0] }
 0x1e6   :  { %2368 = vmatpush.bf16.msra.mxu1 %v8453_v42  ;;  %2394 = vmatpush.bf16.msrb.mxu3 %v8461_v30  ;;  %v8489_v42 = vor.u32 %v10993_v19, %v8488_v36  ;;  %v10988_v30 = vld [vmem:[#allocation9 + $0xac] sm:$0xf0]  ;;  %v8416_v19 = vld [vmem:[#allocation9 + $0x40] sm:$0xf] }
 0x1e7   :  { %v11609_v50 = vpop.eup %11608 }
 0x1e8   :  { %v1594_v21 = vmul.f32 %v11609_v50, %v1588_v49  ;;  %v8448_v50 = vld [vmem:[#allocation9 + $0x80] sm:$0xf]  ;;  %v10984_v49 = vld [vmem:[#allocation9 + $0x8c] sm:$0xf0] }
 0x1e9   :  { %2057 = vmatmul.bf16.vlgmr.msrb.gmra.mxu1 %v12324_v63  ;;  %2083 = vmatmul.bf16.vlgmr.msra.gmra.mxu3 %v12324_v63  ;;  %v8464_v63 = vld [vmem:[#allocation9 + $0xa0] sm:$0xf]  ;;  %v8449_v34 = vor.u32 %v10984_v49, %v8448_v50  ;;  %v8757_v49 = vld [vmem:[#allocation11 + $0x1f0] sm:$0xf0] }
 0x1ea   :  { %v12346_v25 = vpack.c.bf16 %v1594_v21, %v1594_v21  ;;  %2369 = vmatpush.bf16.msra.mxu1 %v8437_v59  ;;  %2395 = vmatpush.bf16.msrb.mxu3 %v8445_v7  ;;  %v8465_v0 = vor.u32 %v10988_v30, %v8464_v63  ;;  %v8456_v59 = vld [vmem:[#allocation9 + $0x88] sm:$0xf]  ;;  %v10985_v7 = vld [vmem:[#allocation9 + $0x94] sm:$0xf0]  ;;  %v8397_v21 = vor.u32 %v10967_v55, %v8394_v37  ;;  %v8755_v37 = vld [vmem:[#allocation11 + $0x1e0] sm:$0xf] }
 0x1eb   :  { %v8457_v62 = vor.u32 %v10985_v7, %v8456_v59  ;;  %v10973_v63 = vld [vmem:[#allocation9 + $0x34] sm:$0xf0]  ;;  %v8739_v7 = vld [vmem:[#allocation11 + $0x1c0] sm:$0xf] }
 0x1ec   :  { %1992 = vmatmul.bf16.vlgmr.msrb.gmra.mxu0 %v12346_v25  ;;  %2018 = vmatmul.bf16.vlgmr.msrb.gmra.mxu2 %v12346_v25 }
 0x1ed   :  { %2352 = vmatpush.bf16.msrb.mxu0 %v8497_v16  ;;  %2378 = vmatpush.bf16.msrb.mxu2 %v8505_v33  ;;  %v10980_v16 = vld [vmem:[#allocation9 + $0x6c] sm:$0xf0]  ;;  %v8440_v33 = vld [vmem:[#allocation9 + $0x68] sm:$0xf] }
 0x1ee   :  { %2370 = vmatpush.bf16.msra.mxu1 %v8421_v6  ;;  %2396 = vmatpush.bf16.msrb.mxu3 %v8429_v17  ;;  %v8433_v12 = vor.u32 %v10980_v16, %v8432_v31  ;;  %v8441_v36 = vor.u32 %v10981_v40, %v8440_v33  ;;  %v10976_v6 = vld [vmem:[#allocation9 + $0x4c] sm:$0xf0]  ;;  %v8424_v17 = vld [vmem:[#allocation9 + $0x48] sm:$0xf]  ;;  %v8723_v16 = vld [vmem:[#allocation11 + $0x1a0] sm:$0xf] }
 0x1ef   :  { %v8417_v24 = vor.u32 %v10976_v6, %v8416_v19  ;;  %v8425_v61 = vor.u32 %v10977_v41, %v8424_v17  ;;  %v11052_v33 = vld [vmem:[#allocation11 + $0x1ac] sm:$0xf0]  ;;  %v11050_v40 = vld [vmem:[#allocation11 + $0x1a4] sm:$0xf]  ;;  %v8707_v19 = vld [vmem:[#allocation11 + $0x180] sm:$0xf] }
 0x1f0   :  { %v11048_v6 = vld [vmem:[#allocation11 + $0x18c] sm:$0xf0]  ;;  %v11046_v17 = vld [vmem:[#allocation11 + $0x184] sm:$0xf] }
 0x1f1   :  { %2353 = vmatpush.bf16.msrb.mxu0 %v8481_v47  ;;  %2379 = vmatpush.bf16.msrb.mxu2 %v8489_v42  ;;  %v10972_v47 = vld [vmem:[#allocation9 + $0x2c] sm:$0xf0]  ;;  %v8408_v42 = vld [vmem:[#allocation9 + $0x28] sm:$0xf] }
 0x1f2   :  { %2371 = vmatpush.bf16.msra.mxu1 %v8405_v29  ;;  %2397 = vmatpush.bf16.msrb.mxu3 %v8413_v43  ;;  %v8401_v30 = vor.u32 %v10972_v47, %v8400_v26  ;;  %v8409_v32 = vor.u32 %v10973_v63, %v8408_v42  ;;  %v10968_v29 = vld [vmem:[#allocation9 + $0xc] sm:$0xf0]  ;;  %v8392_v43 = vld [vmem:[#allocation9 + $0x8] sm:$0xf]  ;;  %v8691_v47 = vld [vmem:[#allocation11 + $0x160] sm:$0xf] }
 0x1f3   :  { %v8385_v57 = vor.u32 %v10968_v29, %v8384_v52  ;;  %v8393_v55 = vor.u32 %v10969_v51, %v8392_v43  ;;  %v11044_v42 = vld [vmem:[#allocation11 + $0x16c] sm:$0xf0]  ;;  %v11042_v63 = vld [vmem:[#allocation11 + $0x164] sm:$0xf]  ;;  %v8627_v43 = vld [vmem:[#allocation11 + $0xe0] sm:$0xf] }
 0x1f4   :  { %v11028_v51 = vld [vmem:[#allocation11 + $0xec] sm:$0xf0] }
 0x1f5   :  { %2354 = vmatpush.bf16.msrb.mxu0 %v8465_v0  ;;  %2380 = vmatpush.bf16.msrb.mxu2 %v8473_v48  ;;  %v11060_v0 = vld [vmem:[#allocation11 + $0x1ec] sm:$0xf0]  ;;  %v11058_v48 = vld [vmem:[#allocation11 + $0x1e4] sm:$0xf] }
 0x1f6   :  { %2372 = vmatpush.bf16.msra.mxu1 %v8389_v1  ;;  %2398 = vmatpush.bf16.msrb.mxu3 %v8397_v21  ;;  %v8756_v50 = vor.u32 %v11060_v0, %v8755_v37  ;;  %v8760_v59 = vor.u32 %v11058_v48, %v8757_v49  ;;  %v11056_v1 = vld [vmem:[#allocation11 + $0x1cc] sm:$0xf0]  ;;  %v11054_v21 = vld [vmem:[#allocation11 + $0x1c4] sm:$0xf]  ;;  %v8629_v37 = vld [vmem:[#allocation11 + $0xf0] sm:$0xf0] }
 0x1f7   :  { %v8675_v0 = vld [vmem:[#allocation11 + $0x140] sm:$0xf]  ;;  %v11040_v48 = vld [vmem:[#allocation11 + $0x14c] sm:$0xf0] }
 0x1f9   :  { %2355 = vmatpush.bf16.msrb.mxu0 %v8449_v34  ;;  %2381 = vmatpush.bf16.msrb.mxu2 %v8457_v62  ;;  %v8740_v34 = vor.u32 %v11056_v1, %v8739_v7  ;;  %v8741_v62 = vld [vmem:[#allocation11 + $0x1d0] sm:$0xf0]  ;;  %v11038_v7 = vld [vmem:[#allocation11 + $0x144] sm:$0xf] }
 0x1fa   :  { %2373 = vmatmul.bf16.vlgmr.msra.gmra.mxu1 %v12346_v25  ;;  %2399 = vmatmul.bf16.vlgmr.msrb.gmra.mxu3 %v12346_v25  ;;  %v8744_v31 = vor.u32 %v11054_v21, %v8741_v62  ;;  %v8677_v1 = vld [vmem:[#allocation11 + $0x150] sm:$0xf0]  ;;  %v11024_v62 = vld [vmem:[#allocation11 + $0xcc] sm:$0xf0] }
 0x1fb   :  { %2874 = vmatpush.bf16.msrb.mxu1 %v8756_v50  ;;  %2900 = vmatpush.bf16.msra.mxu3 %v8760_v59  ;;  %v8676_v59 = vor.u32 %v11040_v48, %v8675_v0  ;;  %v8680_v21 = vor.u32 %v11038_v7, %v8677_v1  ;;  %v11061_v48 = vld [vmem:[#allocation11 + $0x1f4] sm:$0xf0] }
 0x1fc   :  { %2044 = vmatmul.bf16.vlgmr.msra.gmra.mxu0 %v12346_v25  ;;  %2070 = vmatmul.bf16.vlgmr.msra.gmra.mxu2 %v12346_v25 }
 0x1fd   :  { %2356 = vmatpush.bf16.msrb.mxu0 %v8433_v12  ;;  %2382 = vmatpush.bf16.msrb.mxu2 %v8441_v36  ;;  %v8725_v12 = vld [vmem:[#allocation11 + $0x1b0] sm:$0xf0] }
 0x1fe   :  { %v8728_v36 = vor.u32 %v11050_v40, %v8725_v12  ;;  %v8659_v40 = vld [vmem:[#allocation11 + $0x120] sm:$0xf] }
 0x1ff   :  { %2875 = vmatpush.bf16.msrb.mxu1 %v8740_v34  ;;  %2901 = vmatpush.bf16.msra.mxu3 %v8744_v31  ;;  %v8611_v34 = vld [vmem:[#allocation11 + $0xc0] sm:$0xf]  ;;  %v11022_v31 = vld [vmem:[#allocation11 + $0xc4] sm:$0xf] }
 0x201   :  { %2357 = vmatpush.bf16.msrb.mxu0 %v8417_v24  ;;  %2383 = vmatpush.bf16.msrb.mxu2 %v8425_v61  ;;  %v8708_v24 = vor.u32 %v11048_v6, %v8707_v19  ;;  %v8709_v61 = vld [vmem:[#allocation11 + $0x190] sm:$0xf0]  ;;  %v11034_v19 = vld [vmem:[#allocation11 + $0x124] sm:$0xf] }
 0x202   :  { %v8712_v26 = vor.u32 %v11046_v17, %v8709_v61  ;;  %v8661_v6 = vld [vmem:[#allocation11 + $0x130] sm:$0xf0]  ;;  %v8595_v61 = vld [vmem:[#allocation11 + $0xa0] sm:$0xf] }
 0x203   :  { %2902 = vmatpush.bf16.msra.mxu3 %v8728_v36  ;;  %v8664_v17 = vor.u32 %v11034_v19, %v8661_v6 }
 0x205   :  { %2358 = vmatpush.bf16.msrb.mxu0 %v8401_v30  ;;  %2384 = vmatpush.bf16.msrb.mxu2 %v8409_v32  ;;  %v8692_v30 = vor.u32 %v11044_v42, %v8691_v47  ;;  %v8693_v32 = vld [vmem:[#allocation11 + $0x170] sm:$0xf0]  ;;  %v11018_v47 = vld [vmem:[#allocation11 + $0xa4] sm:$0xf] }
 0x206   :  { %v8696_v52 = vor.u32 %v11042_v63, %v8693_v32  ;;  %v8597_v63 = vld [vmem:[#allocation11 + $0xb0] sm:$0xf0]  ;;  %v11032_v32 = vld [vmem:[#allocation11 + $0x10c] sm:$0xf0] }
 0x207   :  { %2903 = vmatpush.bf16.msra.mxu3 %v8712_v26  ;;  %v11020_v26 = vld [vmem:[#allocation11 + $0xac] sm:$0xf0] }
 0x208   :  { %v8596_v42 = vor.u32 %v11020_v26, %v8595_v61  ;;  %v8563_v26 = vld [vmem:[#allocation11 + $0x60] sm:$0xf] }
 0x209   :  { %2359 = vmatpush.bf16.msrb.mxu0 %v8385_v57  ;;  %2385 = vmatpush.bf16.msrb.mxu2 %v8393_v55  ;;  %v11026_v57 = vld [vmem:[#allocation11 + $0xe4] sm:$0xf]  ;;  %v8628_v55 = vor.u32 %v11028_v51, %v8627_v43  ;;  %v8600_v43 = vor.u32 %v11018_v47, %v8597_v63  ;;  %v11012_v47 = vld [vmem:[#allocation11 + $0x6c] sm:$0xf0] }
 0x20a   :  { %v8632_v49 = vor.u32 %v11026_v57, %v8629_v37  ;;  %v11030_v57 = vld [vmem:[#allocation11 + $0x104] sm:$0xf]  ;;  %v8763_v37 = vld [vmem:[#allocation11 + $0x1e8] sm:$0xf] }
 0x20b   :  { %2904 = vmatpush.bf16.msra.mxu3 %v8696_v52  ;;  %v8764_v7 = vor.u32 %v11061_v48, %v8763_v37  ;;  %v11051_v37 = vld [vmem:[#allocation11 + $0x1ac] sm:$0xf] }
 0x20c   :  { %2360 = vmatmul.bf16.vlgmr.msrb.gmra.mxu0 %v12346_v25  ;;  %2386 = vmatmul.bf16.vlgmr.msrb.gmra.mxu2 %v12346_v25  ;;  %v8724_v25 = vor.u32 %v11052_v33, %v8723_v16  ;;  %v8612_v16 = vor.u32 %v11024_v62, %v8611_v34  ;;  %v8613_v33 = vld [vmem:[#allocation11 + $0xd0] sm:$0xf0]  ;;  %v11016_v34 = vld [vmem:[#allocation11 + $0x8c] sm:$0xf0]  ;;  %v11014_v62 = vld [vmem:[#allocation11 + $0x84] sm:$0xf] }
 0x20d   :  { %2861 = vmatpush.bf16.msra.mxu0 %v8628_v55  ;;  %2887 = vmatpush.bf16.msra.mxu2 %v8632_v49  ;;  %v8616_v12 = vor.u32 %v11022_v31, %v8613_v33  ;;  %v8645_v55 = vld [vmem:[#allocation11 + $0x110] sm:$0xf0]  ;;  %v8765_v49 = vld [vmem:[#allocation11 + $0x1f8] sm:$0xf0] }
 0x20e   :  { %2876 = vmatpush.bf16.msrb.mxu1 %v8724_v25  ;;  %v11036_v25 = vld [vmem:[#allocation11 + $0x12c] sm:$0xf0]  ;;  %v8648_v0 = vor.u32 %v11030_v57, %v8645_v55  ;;  %v8581_v33 = vld [vmem:[#allocation11 + $0x90] sm:$0xf0]  ;;  %v8731_v55 = vld [vmem:[#allocation11 + $0x1a8] sm:$0xf] }
 0x20f   :  { %2905 = vmatpush.bf16.msra.mxu3 %v8680_v21  ;;  %v8660_v36 = vor.u32 %v11036_v25, %v8659_v40  ;;  %v8579_v21 = vld [vmem:[#allocation11 + $0x80] sm:$0xf]  ;;  %v8584_v40 = vor.u32 %v11014_v62, %v8581_v33  ;;  %v8747_v25 = vld [vmem:[#allocation11 + $0x1c8] sm:$0xf] }
 0x210   :  { %v8715_v33 = vld [vmem:[#allocation11 + $0x188] sm:$0xf] }
 0x211   :  { %2862 = vmatpush.bf16.msra.mxu0 %v8612_v16  ;;  %2888 = vmatpush.bf16.msra.mxu2 %v8616_v12  ;;  %v8580_v16 = vor.u32 %v11016_v34, %v8579_v21  ;;  %v11057_v12 = vld [vmem:[#allocation11 + $0x1d4] sm:$0xf0]  ;;  %v11006_v21 = vld [vmem:[#allocation11 + $0x44] sm:$0xf] }
 0x212   :  { %2877 = vmatpush.bf16.msrb.mxu1 %v8708_v24  ;;  %v8748_v6 = vor.u32 %v11057_v12, %v8747_v25  ;;  %v11047_v25 = vld [vmem:[#allocation11 + $0x18c] sm:$0xf] }
 0x213   :  { %2906 = vmatpush.bf16.msra.mxu3 %v8664_v17  ;;  %v8749_v17 = vld [vmem:[#allocation11 + $0x1d8] sm:$0xf0] }
 0x215   :  { %2863 = vmatpush.bf16.msra.mxu0 %v8596_v42  ;;  %2889 = vmatpush.bf16.msra.mxu2 %v8600_v43  ;;  %v11010_v42 = vld [vmem:[#allocation11 + $0x64] sm:$0xf] }
 0x216   :  { %2878 = vmatpush.bf16.msrb.mxu1 %v8692_v30  ;;  %v8643_v30 = vld [vmem:[#allocation11 + $0x100] sm:$0xf] }
 0x217   :  { %v8644_v51 = vor.u32 %v11032_v32, %v8643_v30  ;;  %2907 = vmatpush.bf16.msra.mxu3 %v8648_v0  ;;  %v8564_v30 = vor.u32 %v11012_v47, %v8563_v26  ;;  %v8565_v32 = vld [vmem:[#allocation11 + $0x70] sm:$0xf0]  ;;  %v11004_v26 = vld [vmem:[#allocation11 + $0x2c] sm:$0xf0]  ;;  %v11002_v47 = vld [vmem:[#allocation11 + $0x24] sm:$0xf] }
 0x218   :  { %v8568_v57 = vor.u32 %v11010_v42, %v8565_v32 }
 0x219   :  { %2864 = vmatpush.bf16.msra.mxu0 %v8580_v16  ;;  %2890 = vmatpush.bf16.msra.mxu2 %v8584_v40  ;;  %v11049_v40 = vld [vmem:[#allocation11 + $0x194] sm:$0xf0] }
 0x21a   :  { %2879 = vmatpush.bf16.msrb.mxu1 %v8676_v59 }
 0x21d   :  { %2865 = vmatpush.bf16.msra.mxu0 %v8564_v30  ;;  %2891 = vmatpush.bf16.msra.mxu2 %v8568_v57  ;;  %v8699_v57 = vld [vmem:[#allocation11 + $0x168] sm:$0xf] }
 0x21e   :  { %2880 = vmatpush.bf16.msrb.mxu1 %v8660_v36  ;;  %v11055_v36 = vld [vmem:[#allocation11 + $0x1cc] sm:$0xf] }
 0x21f   :  { %v8752_v61 = vor.u32 %v11055_v36, %v8749_v17  ;;  %v8716_v36 = vor.u32 %v11049_v40, %v8715_v33  ;;  %v11029_v33 = vld [vmem:[#allocation11 + $0xf4] sm:$0xf0]  ;;  %v11027_v40 = vld [vmem:[#allocation11 + $0xec] sm:$0xf] }
 0x222   :  { %2881 = vmatpush.bf16.msrb.mxu1 %v8644_v51 }
 0x226   :  { %2926 = vmatpush.bf16.msra.mxu1 %v8764_v7  ;;  %v8547_v7 = vld [vmem:[#allocation11 + $0x40] sm:$0xf] }
 0x22a   :  { %2927 = vmatpush.bf16.msra.mxu1 %v8748_v6 }
 0x256   :  { %v12358_v41 = vpop.f32.mrf.mxu1 }
 0x25c   :  { %v12360_v29 = vpop.f32.mrf.mxu3 }
 0x25e   :  { %v2008_v50 = vpop.f32.mrf.mxu1 }
 0x25f   :  { %v11059_v50 = vld [vmem:[#allocation11 + $0x1ec] sm:$0xf] }
 0x260   :  { %v8768_v1 = vor.u32 %v11059_v50, %v8765_v49  ;;  %v8733_v50 = vld [vmem:[#allocation11 + $0x1b8] sm:$0xf0] }
 0x262   :  { %2952 = vmatpush.bf16.msrb.mxu3 %v8768_v1  ;;  %v11008_v1 = vld [vmem:[#allocation11 + $0x4c] sm:$0xf0] }
 0x263   :  { %v8548_v62 = vor.u32 %v11008_v1, %v8547_v7  ;;  %v11000_v1 = vld [vmem:[#allocation11 + $0xc] sm:$0xf0] }
 0x264   :  { %v2034_v24 = vpop.f32.mrf.mxu3 }
 0x265   :  { %2866 = vmatpush.bf16.msra.mxu0 %v8548_v62  ;;  %v8517_v62 = vld [vmem:[#allocation11 + $0x10] sm:$0xf0] }
 0x266   :  { %v12362_v52 = vpop.f32.mrf.mxu1  ;;  %2953 = vmatpush.bf16.msrb.mxu3 %v8752_v61  ;;  %v8531_v61 = vld [vmem:[#allocation11 + $0x20] sm:$0xf] }
 0x269   :  { %v1993_v59 = vpop.f32.mrf.mxu0 }
 0x26a   :  { %v1994_v31 = vadd.f32 %v1993_v59, %v12196_v46  ;;  %v8736_v59 = vor.u32 %v11051_v37, %v8733_v50 }
 0x26c   :  { %v2007_v19 = vadd.f32 %v12358_v41, %v1994_v31  ;;  %v12366_v24 = vpop.f32.mrf.mxu3  ;;  %v11053_v41 = vld [vmem:[#allocation11 + $0x1b4] sm:$0xf0]  ;;  %v8549_v31 = vld [vmem:[#allocation11 + $0x50] sm:$0xf0]  ;;  %2954 = vmatpush.bf16.msrb.mxu3 %v8736_v59 }
 0x26d   :  { %v8732_v48 = vor.u32 %v11053_v41, %v8731_v55  ;;  %v8552_v16 = vor.u32 %v11006_v21, %v8549_v31  ;;  %v11045_v55 = vld [vmem:[#allocation11 + $0x174] sm:$0xf0]  ;;  %v10998_v21 = vld [vmem:[#allocation11 + $0x4] sm:$0xf]  ;;  %v8635_v31 = vld [vmem:[#allocation11 + $0xe8] sm:$0xf] }
 0x26e   :  { %v8379_v63 = vmul.f32 -1.442695, %v2007_v19  ;;  %v2060_v43 = vpop.f32.mrf.mxu1  ;;  %v8717_v19 = vld [vmem:[#allocation11 + $0x198] sm:$0xf0]  ;;  %v8700_v37 = vor.u32 %v11045_v55, %v8699_v57  ;;  %v11025_v57 = vld [vmem:[#allocation11 + $0xd4] sm:$0xf0] }
 0x26f   :  { %v2019_v51 = vpop.f32.mrf.mxu2  ;;  %2928 = vmatpush.bf16.msra.mxu1 %v8732_v48  ;;  %2892 = vmatpush.bf16.msra.mxu2 %v8552_v16  ;;  %v8720_v17 = vor.u32 %v11047_v25, %v8717_v19  ;;  %v8701_v48 = vld [vmem:[#allocation11 + $0x178] sm:$0xf0]  ;;  %v8636_v19 = vor.u32 %v11029_v33, %v8635_v31 }
 0x270   :  { %11610 = vpow2.f32 %v8379_v63  ;;  %v2020_v0 = vadd.f32 %v2019_v51, %v12200_v18  ;;  %v8533_v63 = vld [vmem:[#allocation11 + $0x30] sm:$0xf0]  ;;  %v8637_v25 = vld [vmem:[#allocation11 + $0xf8] sm:$0xf0] }
 0x271   :  { %v1995_v49 = vpop.f32.mrf.mxu0  ;;  %2955 = vmatpush.bf16.msrb.mxu3 %v8720_v17  ;;  %v8536_v51 = vor.u32 %v11002_v47, %v8533_v63  ;;  %v8683_v17 = vld [vmem:[#allocation11 + $0x148] sm:$0xf] }
 0x272   :  { %v2033_v34 = vadd.f32 %v12360_v29, %v2020_v0  ;;  %v8532_v29 = vor.u32 %v11004_v26, %v8531_v61  ;;  %v11043_v0 = vld [vmem:[#allocation11 + $0x16c] sm:$0xf]  ;;  %v8515_v49 = vld [vmem:[#allocation11] sm:$0xf]  ;;  %v11041_v61 = vld [vmem:[#allocation11 + $0x154] sm:$0xf0] }
 0x273   :  { %2929 = vmatpush.bf16.msra.mxu1 %v8716_v36  ;;  %2893 = vmatpush.bf16.msra.mxu2 %v8536_v51  ;;  %v8704_v7 = vor.u32 %v11043_v0, %v8701_v48  ;;  %v8684_v47 = vor.u32 %v11041_v61, %v8683_v17  ;;  %v8619_v63 = vld [vmem:[#allocation11 + $0xc8] sm:$0xf] }
 0x274   :  { %v8380_v12 = vmul.f32 -1.442695, %v2033_v34  ;;  %v2086_v6 = vpop.f32.mrf.mxu3  ;;  %2867 = vmatpush.bf16.msra.mxu0 %v8532_v29  ;;  %v8516_v34 = vor.u32 %v11000_v1, %v8515_v49  ;;  %v8685_v29 = vld [vmem:[#allocation11 + $0x158] sm:$0xf0]  ;;  %v11037_v1 = vld [vmem:[#allocation11 + $0x134] sm:$0xf0] }
 0x275   :  { %2956 = vmatpush.bf16.msrb.mxu3 %v8704_v7  ;;  %v8640_v6 = vor.u32 %v11027_v40, %v8637_v25  ;;  %v8667_v7 = vld [vmem:[#allocation11 + $0x128] sm:$0xf] }
 0x276   :  { %v11611_v42 = vpop.eup %11610  ;;  %11612 = vpow2.f32 %v8380_v12  ;;  %v8668_v25 = vor.u32 %v11037_v1, %v8667_v7 }
 0x277   :  { %v12370_v30 = vadd.f32 1.0, %v11611_v42  ;;  %v2374_v32 = vpop.f32.mrf.mxu1  ;;  %v2021_v43 = vpop.f32.mrf.mxu2  ;;  %2930 = vmatpush.bf16.msra.mxu1 %v8700_v37  ;;  %v11039_v42 = vld [vmem:[#allocation11 + $0x14c] sm:$0xf]  ;;  %v8621_v37 = vld [vmem:[#allocation11 + $0xd8] sm:$0xf0] }
 0x278   :  { %v2405_v41 = vadd.f32 %v2374_v32, %v12091_v22  ;;  %v8520_v22 = vor.u32 %v10998_v21, %v8517_v62  ;;  %2868 = vmatpush.bf16.msra.mxu0 %v8516_v34  ;;  %v8688_v49 = vor.u32 %v11039_v42, %v8685_v29 }
 0x279   :  { %11614 = vrcp.f32 %v12370_v30  ;;  %v2045_v50 = vpop.f32.mrf.mxu0  ;;  %v2104_v29 = vand.u32 2147483648, %v12370_v30  ;;  %vm2098_vm7 = vweird.f32 %v12370_v30 }
 0x27a   :  { %v8511_v59 = vmul.f32 -1.442695, %v2405_v41  ;;  %2894 = vmatpush.bf16.msra.mxu2 %v8520_v22  ;;  %v8669_v22 = vld [vmem:[#allocation11 + $0x138] sm:$0xf0]  ;;  %v2046_v40 = vadd.f32 %v2045_v50, %v12226_v5  ;;  %2957 = vmatpush.bf16.msrb.mxu3 %v8688_v49  ;;  %v8651_v50 = vld [vmem:[#allocation11 + $0x108] sm:$0xf] }
 0x27b   :  { %2931 = vmatpush.bf16.msra.mxu1 %v8684_v47  ;;  %v8605_v47 = vld [vmem:[#allocation11 + $0xb8] sm:$0xf0] }
 0x27c   :  { %v11613_v16 = vpop.eup %11612  ;;  %11616 = vpow2.f32 %v8511_v59  ;;  %2913 = vmatpush.bf16.msrb.mxu0 %v8636_v19  ;;  %v8620_v59 = vor.u32 %v11025_v57, %v8619_v63  ;;  %v8603_v19 = vld [vmem:[#allocation11 + $0xa8] sm:$0xf]  ;;  %v11031_v57 = vld [vmem:[#allocation11 + $0x10c] sm:$0xf] }
 0x27d   :  { %v12374_v12 = vadd.f32 1.0, %v11613_v16  ;;  %v2400_v36 = vpop.f32.mrf.mxu3  ;;  %v11035_v16 = vld [vmem:[#allocation11 + $0x12c] sm:$0xf] }
 0x27e   :  { %v2407_v26 = vadd.f32 %v2400_v36, %v12074_v10  ;;  %2939 = vmatpush.bf16.msrb.mxu2 %v8640_v6  ;;  %v11023_v10 = vld [vmem:[#allocation11 + $0xcc] sm:$0xf]  ;;  %v8672_v36 = vor.u32 %v11035_v16, %v8669_v22  ;;  %v11021_v6 = vld [vmem:[#allocation11 + $0xb4] sm:$0xf0] }
 0x27f   :  { %v12377_v32 = vpop.eup %11614  ;;  %11618 = vrcp.f32 %v12374_v12  ;;  %v2376_v43 = vpop.f32.mrf.mxu1  ;;  %v8624_v31 = vor.u32 %v11023_v10, %v8621_v37  ;;  %v8604_v61 = vor.u32 %v11021_v6, %v8603_v19  ;;  %2932 = vmatpush.bf16.msra.mxu1 %v8668_v25  ;;  %v11015_v22 = vld [vmem:[#allocation11 + $0x8c] sm:$0xf]  ;;  %v2102_v25 = vand.u32 2147483647, %v12370_v30 }
 0x280   :  { %v2071_v51 = vpop.f32.mrf.mxu2  ;;  %v2094_v55 = vmul.f32 %v12377_v32, %v12370_v30  ;;  %v8512_v0 = vmul.f32 -1.442695, %v2407_v26  ;;  %2914 = vmatpush.bf16.msrb.mxu0 %v8620_v59  ;;  %v11019_v26 = vld [vmem:[#allocation11 + $0xac] sm:$0xf]  ;;  %2958 = vmatpush.bf16.msrb.mxu3 %v8672_v36  ;;  %v2123_v59 = vand.u32 2147483648, %v12374_v12  ;;  %vm2099_vm5 = vweird.f32 %v12377_v32 }
 0x281   :  { %v2072_v41 = vadd.f32 %v2071_v51, %v12218_v35  ;;  %v2047_v48 = vpop.f32.mrf.mxu0  ;;  %v11033_v51 = vld [vmem:[#allocation11 + $0x114] sm:$0xf0]  ;;  %v8608_v37 = vor.u32 %v11019_v26, %v8605_v47  ;;  %v2105_v36 = vor.u32 1.1754944e-38, %v2104_v29  ;;  %vm2117_vm8 = vweird.f32 %v12374_v12  ;;  %vm12407_vm9 = vmor %vm2098_vm7, %vm2099_vm5 }
 0x282   :  { %v11617_v21 = vpop.eup %11616  ;;  %v2095_v34 = vsub.f32 1.0, %v2094_v55  ;;  %2940 = vmatpush.bf16.msrb.mxu2 %v8624_v31  ;;  %v8653_v55 = vld [vmem:[#allocation11 + $0x118] sm:$0xf0]  ;;  %v8652_v48 = vor.u32 %v11033_v51, %v8651_v50  ;;  %v2124_v6 = vor.u32 1.1754944e-38, %v2123_v59  ;;  %v11013_v50 = vld [vmem:[#allocation11 + $0x74] sm:$0xf0] }
 0x283   :  { %v2085_v62 = vadd.f32 %v12366_v24, %v2072_v41  ;;  %v12384_v33 = vadd.f32 1.0, %v11617_v21  ;;  %v2059_v41 = vadd.f32 %v12362_v52, %v2046_v40  ;;  %v8656_v7 = vor.u32 %v11031_v57, %v8653_v55  ;;  %v8587_v52 = vld [vmem:[#allocation11 + $0x88] sm:$0xf]  ;;  %v8589_v40 = vld [vmem:[#allocation11 + $0x98] sm:$0xf0] }
 0x284   :  { %v2096_v24 = vmul.f32 %v12377_v32, %v2095_v34  ;;  %2915 = vmatpush.bf16.msrb.mxu0 %v8604_v61  ;;  %v2121_v21 = vand.u32 2147483647, %v12374_v12  ;;  %2933 = vmatpush.bf16.msra.mxu1 %v8652_v48  ;;  %v8592_v47 = vor.u32 %v11015_v22, %v8589_v40  ;;  %vm2103_vm12 = vcmp.eq.f32.partialorder %v2102_v25, 8.507059e+37  ;;  %v8573_v55 = vld [vmem:[#allocation11 + $0x78] sm:$0xf0] }
 0x285   :  { %v8381_v17 = vmul.f32 -1.442695, %v2085_v62  ;;  %v12387_v42 = vpop.eup %11618  ;;  %v2402_v63 = vpop.f32.mrf.mxu3  ;;  %2959 = vmatpush.bf16.msrb.mxu3 %v8656_v7  ;;  %v8555_v7 = vld [vmem:[#allocation11 + $0x48] sm:$0xf]  ;;  %vm2437_vm2 = vweird.f32 %v12384_v33 }
 0x286   :  { %v2113_v43 = vmul.f32 %v12387_v42, %v12374_v12  ;;  %v2097_v1 = vadd.f32 %v12377_v32, %v2096_v24  ;;  %2941 = vmatpush.bf16.msrb.mxu2 %v8608_v37  ;;  %vm2118_vm6 = vweird.f32 %v12387_v42  ;;  %vm2122_vm11 = vcmp.eq.f32.partialorder %v2121_v21, 8.507059e+37  ;;  %v8571_v63 = vld [vmem:[#allocation11 + $0x68] sm:$0xf]  ;;  %v11007_v21 = vld [vmem:[#allocation11 + $0x4c] sm:$0xf] }
 0x287   :  { %11620 = vpow2.f32 %v8381_v17  ;;  %vm2119_vm10 = vmor %vm2117_vm8, %vm2118_vm6  ;;  %v8541_v17 = vld [vmem:[#allocation11 + $0x38] sm:$0xf0] }
 0x288   :  { %11622 = vpow2.f32 %v8512_v0  ;;  %v2073_v10 = vpop.f32.mrf.mxu2  ;;  %v2114_v49 = vsub.f32 1.0, %v2113_v43  ;;  %v11017_v0 = vld [vmem:[#allocation11 + $0x94] sm:$0xf0]  ;;  %v2101_v30 = vsel %vm12407_vm9, %v12377_v32, %v2097_v1  ;;  %v11011_v43 = vld [vmem:[#allocation11 + $0x6c] sm:$0xf] }
 0x289   :  { %11624 = vrcp.f32 %v12384_v33  ;;  %v2361_v34 = vpop.f32.mrf.mxu0  ;;  %v8588_v16 = vor.u32 %v11017_v0, %v8587_v52  ;;  %v2106_v32 = vsel %vm2103_vm12, %v2105_v36, %v2101_v30  ;;  %v8576_v59 = vor.u32 %v11011_v43, %v8573_v55  ;;  %v11009_v1 = vld [vmem:[#allocation11 + $0x54] sm:$0xf0]  ;;  %v10999_v55 = vld [vmem:[#allocation11 + $0xc] sm:$0xf] }
 0x28a   :  { %v2115_v62 = vmul.f32 %v12387_v42, %v2114_v49  ;;  %v2404_v31 = vadd.f32 %v2361_v34, %v12062_v58  ;;  %11626 = vtanh.f32 %v2059_v41  ;;  %2942 = vmatpush.bf16.msrb.mxu2 %v8592_v47  ;;  %v8572_v49 = vor.u32 %v11013_v50, %v8571_v63  ;;  %v8557_v34 = vld [vmem:[#allocation11 + $0x58] sm:$0xf0]  ;;  %v11005_v36 = vld [vmem:[#allocation11 + $0x34] sm:$0xf0]  ;;  %v8523_v63 = vld [vmem:[#allocation11 + $0x8] sm:$0xf] }
 0x28b   :  { %2916 = vmatpush.bf16.msrb.mxu0 %v8588_v16  ;;  %v8560_v25 = vor.u32 %v11007_v21, %v8557_v34  ;;  %v11001_v50 = vld [vmem:[#allocation11 + $0x14] sm:$0xf0]  ;;  %v11090_v21 = vld [vmem:[#allocation9 + $0xe4] sm:$0xf]  ;;  %v8888_v34 = vld [vmem:[#allocation9 + $0xf0] sm:$0xf0] }
 0x28c   :  { %v2116_v58 = vadd.f32 %v12387_v42, %v2115_v62  ;;  %v8510_v61 = vmul.f32 -1.442695, %v2404_v31  ;;  %v8556_v62 = vor.u32 %v11009_v1, %v8555_v7 }
 0x28d   :  { %v11621_v19 = vpop.eup %11620 }
 0x28e   :  { %v11623_v26 = vpop.eup %11622  ;;  %v12417_v12 = vadd.f32 1.0, %v11621_v19  ;;  %v2120_v29 = vsel %vm2119_vm10, %v12387_v42, %v2116_v58  ;;  %11628 = vpow2.f32 %v8510_v61  ;;  %2943 = vmatpush.bf16.msrb.mxu2 %v8576_v59 }
 0x28f   :  { %v12419_v24 = vpop.eup %11624  ;;  %v2125_v51 = vsel %vm2122_vm11, %v2124_v6, %v2120_v29  ;;  %v12423_v41 = vadd.f32 1.0, %v11623_v26  ;;  %2917 = vmatpush.bf16.msrb.mxu0 %v8572_v49  ;;  %v11003_v6 = vld [vmem:[#allocation11 + $0x2c] sm:$0xf] }
 0x290   :  { %11630 = vrcp.f32 %v12417_v12  ;;  %v2387_v57 = vpop.f32.mrf.mxu2  ;;  %v11627_v10 = vpop.eup %11626  ;;  %v2433_v37 = vmul.f32 %v12419_v24, %v12384_v33  ;;  %v2147_v42 = vmul.f32 %v2125_v51, %v12285_v45  ;;  %v8539_v45 = vld [vmem:[#allocation11 + $0x28] sm:$0xf]  ;;  %v2143_v47 = vand.u32 2147483648, %v12417_v12 }
 0x291   :  { %v2363_v48 = vpop.f32.mrf.mxu0  ;;  %v2148_v52 = vmul.f32 %v11627_v10, %v2106_v32  ;;  %11632 = vrcp.f32 %v12423_v41  ;;  %v8540_v26 = vor.u32 %v11005_v36, %v8539_v45  ;;  %v8544_v29 = vor.u32 %v11003_v6, %v8541_v17  ;;  %v8525_v32 = vld [vmem:[#allocation11 + $0x18] sm:$0xf0]  ;;  %v11079_v45 = vld [vmem:[#allocation9 + $0x8c] sm:$0xf] }
 0x292   :  { %v2434_v16 = vsub.f32 1.0, %v2433_v37  ;;  %2944 = vmatpush.bf16.msrb.mxu2 %v8560_v25  ;;  %v2141_v51 = vand.u32 2147483647, %v12417_v12  ;;  %v8524_v10 = vor.u32 %v11001_v50, %v8523_v63  ;;  %v8528_v37 = vor.u32 %v10999_v55, %v8525_v32  ;;  %v11087_v50 = vld [vmem:[#allocation9 + $0xcc] sm:$0xf] }
 0x293   :  { %v12428_v22 = vadd.f32 %v2148_v52, %v2147_v42  ;;  %2918 = vmatpush.bf16.msrb.mxu0 %v8556_v62  ;;  %vm2137_vm14 = vweird.f32 %v12417_v12  ;;  %vm2438_vm15 = vweird.f32 %v12419_v24  ;;  %v2406_v59 = vadd.f32 %v2387_v57, %v12071_v9  ;;  %v11091_v62 = vld [vmem:[#allocation9 + $0xec] sm:$0xf] }
 0x294   :  { %v11629_v0 = vpop.eup %11628  ;;  %v2435_v30 = vmul.f32 %v12419_v24, %v2434_v16  ;;  %v2144_v1 = vor.u32 1.1754944e-38, %v2143_v47  ;;  %vm2142_vm1 = vcmp.eq.f32.partialorder %v2141_v51, 8.507059e+37  ;;  %v8896_v16 = vld [vmem:[#allocation9 + $0xf8] sm:$0xf0]  ;;  %v2443_v25 = vand.u32 2147483648, %v12384_v33  ;;  %vm12453_vm3 = vmor %vm2437_vm2, %vm2438_vm15 }
 0x295   :  { %v12430_v40 = vadd.f32 1.0, %v11629_v0  ;;  %v2441_v36 = vand.u32 2147483647, %v12384_v33  ;;  %v8891_v6 = vor.u32 %v11090_v21, %v8888_v34  ;;  %v8880_v33 = vld [vmem:[#allocation9 + $0xd8] sm:$0xf0]  ;;  %vm2457_vm10 = vweird.f32 %v12423_v41 }
 0x296   :  { %v11631_v31 = vpop.eup %11630  ;;  %2945 = vmatpush.bf16.msrb.mxu2 %v8544_v29  ;;  %v2436_v7 = vadd.f32 %v12419_v24, %v2435_v30  ;;  %v8872_v30 = vld [vmem:[#allocation9 + $0xd0] sm:$0xf0]  ;;  %v8864_v21 = vld [vmem:[#allocation9 + $0xb8] sm:$0xf0] }
 0x297   :  { %v2133_v19 = vmul.f32 %v11631_v31, %v12417_v12  ;;  %11634 = vrcp.f32 %v12430_v40  ;;  %vm2138_vm13 = vweird.f32 %v11631_v31  ;;  %2919 = vmatpush.bf16.msrb.mxu0 %v8540_v26  ;;  %v12439_v42 = vpop.eup %11632  ;;  %v2424_v17 = vand.u32 2147483648, %v12430_v40  ;;  %v11086_v26 = vld [vmem:[#allocation9 + $0xc4] sm:$0xf] }
 0x298   :  { %v2389_v58 = vpop.f32.mrf.mxu2  ;;  %11636 = vtanh.f32 %v12428_v22  ;;  %vm2139_vm0 = vmor %vm2137_vm14, %vm2138_vm13  ;;  %v2453_v9 = vmul.f32 %v12439_v42, %v12423_v41  ;;  %v2422_v29 = vand.u32 2147483647, %v12430_v40  ;;  %vm2418_vm5 = vweird.f32 %v12430_v40 }
 0x299   :  { %v2134_v61 = vsub.f32 1.0, %v2133_v19  ;;  %v2440_v58 = vsel %vm12453_vm3, %v12419_v24, %v2436_v7  ;;  %11638 = vtanh.f32 %v2406_v59  ;;  %vm2442_vm6 = vcmp.eq.f32.partialorder %v2441_v36, 8.507059e+37  ;;  %v11082_v59 = vld [vmem:[#allocation9 + $0xa4] sm:$0xf]  ;;  %v8856_v7 = vld [vmem:[#allocation9 + $0xb0] sm:$0xf0] }
 0x29a   :  { %2946 = vmatpush.bf16.msrb.mxu2 %v8528_v37  ;;  %v2454_v51 = vsub.f32 1.0, %v2453_v9  ;;  %v2425_v32 = vor.u32 1.1754944e-38, %v2424_v17  ;;  %v8875_v37 = vor.u32 %v11086_v26, %v8872_v30  ;;  %vm2423_vm8 = vcmp.eq.f32.partialorder %v2422_v29, 8.507059e+37  ;;  %v11078_v9 = vld [vmem:[#allocation9 + $0x84] sm:$0xf] }
 0x29b   :  { %v2135_v43 = vmul.f32 %v11631_v31, %v2134_v61  ;;  %2920 = vmatpush.bf16.msrb.mxu0 %v8524_v10  ;;  %v8899_v61 = vor.u32 %v11091_v62, %v8896_v16  ;;  %vm2458_vm9 = vweird.f32 %v12439_v42  ;;  %v8824_v26 = vld [vmem:[#allocation9 + $0x70] sm:$0xf0]  ;;  %v11075_v30 = vld [vmem:[#allocation9 + $0x6c] sm:$0xf]  ;;  %v11093_v24 = vld [vmem:[#allocation9 + $0xf4] sm:$0xf0] }
 0x29c   :  { %vm12484_vm11 = vmor %vm2457_vm10, %vm2458_vm9 }
 0x29d   :  { %v2136_v48 = vadd.f32 %v11631_v31, %v2135_v43  ;;  %v11635_v49 = vpop.eup %11634  ;;  %v2444_v43 = vor.u32 1.1754944e-38, %v2443_v25 }
 0x29e   :  { %v2414_v52 = vmul.f32 %v11635_v49, %v12430_v40  ;;  %v11637_v12 = vpop.eup %11636  ;;  %vm2419_vm4 = vweird.f32 %v11635_v49 }
 0x29f   :  { %v2140_v0 = vsel %vm2139_vm0, %v11631_v31, %v2136_v48  ;;  %vm12468_vm7 = vmor %vm2418_vm5, %vm2419_vm4  ;;  %v2445_v10 = vsel %vm2442_vm6, %v2444_v43, %v2440_v58  ;;  %v8883_v48 = vor.u32 %v11087_v50, %v8880_v33  ;;  %v11639_v34 = vpop.eup %11638  ;;  %v8886_v50 = vld [vmem:[#allocation9 + $0xe0] sm:$0xf]  ;;  %v11092_v33 = vld [vmem:[#allocation9 + $0xec] sm:$0xf0] }
 0x2a0   :  { %v2145_v57 = vsel %vm2142_vm1, %v2144_v1, %v2140_v0  ;;  %v2415_v31 = vsub.f32 1.0, %v2414_v52  ;;  %v11083_v1 = vld [vmem:[#allocation9 + $0xac] sm:$0xf]  ;;  %v2455_v52 = vmul.f32 %v12439_v42, %v2454_v51  ;;  %v2467_v62 = vmul.f32 %v2445_v10, %v12331_v20 }
 0x2a1   :  { %v2151_v19 = vmul.f32 %v11637_v12, %v2145_v57  ;;  %v8859_v12 = vor.u32 %v11082_v59, %v8856_v7  ;;  %v8867_v25 = vor.u32 %v11083_v1, %v8864_v21  ;;  %v2463_v20 = vand.u32 2147483648, %v12423_v41  ;;  %v11071_v59 = vld [vmem:[#allocation9 + $0x4c] sm:$0xf]  ;;  %v8816_v7 = vld [vmem:[#allocation9 + $0x58] sm:$0xf0] }
 0x2a2   :  { %v2416_v47 = vmul.f32 %v11635_v49, %v2415_v31  ;;  %v8848_v31 = vld [vmem:[#allocation9 + $0x98] sm:$0xf0]  ;;  %v2456_v36 = vadd.f32 %v12439_v42, %v2455_v52  ;;  %v8870_v21 = vld [vmem:[#allocation9 + $0xc0] sm:$0xf] }
 0x2a3   :  { %v12463_v63 = vpack.c.bf16 %v2151_v19, %v2151_v19  ;;  %v2461_v19 = vand.u32 2147483647, %v12423_v41  ;;  %v8851_v58 = vor.u32 %v11079_v45, %v8848_v31  ;;  %v2464_v41 = vor.u32 1.1754944e-38, %v2463_v20  ;;  %v8800_v45 = vld [vmem:[#allocation9 + $0x38] sm:$0xf0] }
 0x2a4   :  { %v2417_v55 = vadd.f32 %v11635_v49, %v2416_v47  ;;  %v8832_v47 = vld [vmem:[#allocation9 + $0x78] sm:$0xf0]  ;;  %v2460_v29 = vsel %vm12484_vm11, %v12439_v42, %v2456_v36  ;;  %v8887_v42 = vor.u32 %v11092_v33, %v8886_v50  ;;  %v8854_v36 = vld [vmem:[#allocation9 + $0xa0] sm:$0xf] }
 0x2a5   :  { %2882 = vmatmul.bf16.vlgmr.msrb.gmra.mxu1 %v12463_v63  ;;  %2908 = vmatmul.bf16.vlgmr.msra.gmra.mxu3 %v12463_v63  ;;  %vm2462_vm12 = vcmp.eq.f32.partialorder %v2461_v19, 8.507059e+37  ;;  %v8835_v51 = vor.u32 %v11075_v30, %v8832_v47  ;;  %v11084_v19 = vld [vmem:[#allocation9 + $0xac] sm:$0xf0]  ;;  %v11063_v30 = vld [vmem:[#allocation9 + $0xc] sm:$0xf] }
 0x2a6   :  { %3242 = vmatpush.bf16.msrb.mxu1 %v8891_v6  ;;  %3268 = vmatpush.bf16.msra.mxu3 %v8899_v61  ;;  %v2421_v40 = vsel %vm12468_vm7, %v11635_v49, %v2417_v55  ;;  %v8840_v49 = vld [vmem:[#allocation9 + $0x90] sm:$0xf0]  ;;  %v11074_v61 = vld [vmem:[#allocation9 + $0x64] sm:$0xf]  ;;  %v8894_v55 = vld [vmem:[#allocation9 + $0xe8] sm:$0xf] }
 0x2a7   :  { %v2426_v0 = vsel %vm2423_vm8, %v2425_v32, %v2421_v40  ;;  %v8843_v17 = vor.u32 %v11078_v9, %v8840_v49  ;;  %v8827_v43 = vor.u32 %v11074_v61, %v8824_v26  ;;  %v11070_v32 = vld [vmem:[#allocation9 + $0x44] sm:$0xf]  ;;  %v8895_v1 = vor.u32 %v11093_v24, %v8894_v55  ;;  %v8792_v9 = vld [vmem:[#allocation9 + $0x30] sm:$0xf0]  ;;  %v11067_v49 = vld [vmem:[#allocation9 + $0x2c] sm:$0xf] }
 0x2a8   :  { %v2468_v16 = vmul.f32 %v11639_v34, %v2426_v0  ;;  %v11088_v34 = vld [vmem:[#allocation9 + $0xcc] sm:$0xf0]  ;;  %v8803_v6 = vor.u32 %v11067_v49, %v8800_v45  ;;  %v11062_v61 = vld [vmem:[#allocation9 + $0x4] sm:$0xf]  ;;  %v8776_v26 = vld [vmem:[#allocation9 + $0x10] sm:$0xf0] }
 0x2a9   :  { %v8784_v47 = vld [vmem:[#allocation9 + $0x18] sm:$0xf0]  ;;  %v8779_v50 = vor.u32 %v11062_v61, %v8776_v26  ;;  %v8846_v55 = vld [vmem:[#allocation9 + $0x88] sm:$0xf]  ;;  %v11081_v24 = vld [vmem:[#allocation9 + $0x94] sm:$0xf0] }
 0x2aa   :  { %3243 = vmatpush.bf16.msrb.mxu1 %v8875_v37  ;;  %3269 = vmatpush.bf16.msra.mxu3 %v8883_v48  ;;  %v12477_v57 = vadd.f32 %v2468_v16, %v2467_v62  ;;  %v2465_v37 = vsel %vm2462_vm12, %v2464_v41, %v2460_v29  ;;  %v8808_v48 = vld [vmem:[#allocation9 + $0x50] sm:$0xf0]  ;;  %v8819_v62 = vor.u32 %v11071_v59, %v8816_v7  ;;  %v8878_v16 = vld [vmem:[#allocation9 + $0xc8] sm:$0xf]  ;;  %v11077_v7 = vld [vmem:[#allocation9 + $0x74] sm:$0xf0] }
 0x2ab   :  { %v8811_v0 = vor.u32 %v11070_v32, %v8808_v48  ;;  %v8855_v29 = vor.u32 %v11084_v19, %v8854_v36  ;;  %v8787_v33 = vor.u32 %v11063_v30, %v8784_v47  ;;  %v11076_v48 = vld [vmem:[#allocation9 + $0x6c] sm:$0xf0]  ;;  %v8830_v59 = vld [vmem:[#allocation9 + $0x68] sm:$0xf]  ;;  %v11069_v49 = vld [vmem:[#allocation9 + $0x34] sm:$0xf0] }
 0x2ac   :  { %11640 = vtanh.f32 %v12477_v57  ;;  %v11064_v36 = vld [vmem:[#allocation9 + $0xc] sm:$0xf0]  ;;  %v8782_v19 = vld [vmem:[#allocation9 + $0x8] sm:$0xf]  ;;  %v11154_v26 = vld [vmem:[#allocation11 + $0x1e4] sm:$0xf] }
 0x2ad   :  { %v11156_v61 = vld [vmem:[#allocation11 + $0x1ec] sm:$0xf0]  ;;  %v9147_v47 = vld [vmem:[#allocation11 + $0x1f0] sm:$0xf0] }
 0x2ae   :  { %3244 = vmatpush.bf16.msrb.mxu1 %v8859_v12  ;;  %3270 = vmatpush.bf16.msra.mxu3 %v8867_v25  ;;  %v11089_v12 = vld [vmem:[#allocation9 + $0xd4] sm:$0xf0]  ;;  %v11066_v25 = vld [vmem:[#allocation9 + $0x24] sm:$0xf] }
 0x2af   :  { %v8879_v31 = vor.u32 %v11089_v12, %v8878_v16  ;;  %v8795_v20 = vor.u32 %v11066_v25, %v8792_v9  ;;  %v8790_v12 = vld [vmem:[#allocation9 + $0x20] sm:$0xf]  ;;  %v11068_v25 = vld [vmem:[#allocation9 + $0x2c] sm:$0xf0]  ;;  %v8798_v9 = vld [vmem:[#allocation9 + $0x28] sm:$0xf] }
 0x2b0   :  { %v8791_v45 = vor.u32 %v11068_v25, %v8790_v12  ;;  %v9083_v25 = vld [vmem:[#allocation11 + $0x170] sm:$0xf0] }
 0x2b2   :  { %3245 = vmatpush.bf16.msrb.mxu1 %v8843_v17  ;;  %3271 = vmatpush.bf16.msra.mxu3 %v8851_v58  ;;  %v11641_v10 = vpop.eup %11640  ;;  %v8862_v17 = vld [vmem:[#allocation9 + $0xa8] sm:$0xf]  ;;  %v11085_v58 = vld [vmem:[#allocation9 + $0xb4] sm:$0xf0] }
 0x2b3   :  { %v2471_v40 = vmul.f32 %v11641_v10, %v2465_v37  ;;  %v8863_v41 = vor.u32 %v11085_v58, %v8862_v17  ;;  %v8847_v10 = vor.u32 %v11081_v24, %v8846_v55  ;;  %v8822_v37 = vld [vmem:[#allocation9 + $0x60] sm:$0xf] }
 0x2b4   :  { %v9145_v58 = vld [vmem:[#allocation11 + $0x1e0] sm:$0xf] }
 0x2b5   :  { %2934 = vmatmul.bf16.vlgmr.msra.gmra.mxu1 %v12463_v63  ;;  %2960 = vmatmul.bf16.vlgmr.msrb.gmra.mxu3 %v12463_v63  ;;  %v12493_v52 = vpack.c.bf16 %v2471_v40, %v2471_v40  ;;  %v8871_v63 = vor.u32 %v11088_v34, %v8870_v21  ;;  %v8823_v40 = vor.u32 %v11076_v48, %v8822_v37  ;;  %v11072_v21 = vld [vmem:[#allocation9 + $0x4c] sm:$0xf0]  ;;  %v8814_v34 = vld [vmem:[#allocation9 + $0x48] sm:$0xf]  ;;  %v9113_v24 = vld [vmem:[#allocation11 + $0x1a0] sm:$0xf] }
 0x2b6   :  { %3246 = vmatpush.bf16.msrb.mxu1 %v8827_v43  ;;  %3272 = vmatpush.bf16.msra.mxu3 %v8835_v51  ;;  %v8838_v43 = vld [vmem:[#allocation9 + $0x80] sm:$0xf]  ;;  %v11080_v51 = vld [vmem:[#allocation9 + $0x8c] sm:$0xf0]  ;;  %v9146_v30 = vor.u32 %v11156_v61, %v9145_v58  ;;  %v9115_v37 = vld [vmem:[#allocation11 + $0x1b0] sm:$0xf0] }
 0x2b7   :  { %2869 = vmatmul.bf16.vlgmr.msra.gmra.mxu0 %v12493_v52  ;;  %2895 = vmatmul.bf16.vlgmr.msra.gmra.mxu2 %v12493_v52  ;;  %v8839_v32 = vor.u32 %v11080_v51, %v8838_v43  ;;  %v9131_v51 = vld [vmem:[#allocation11 + $0x1d0] sm:$0xf0] }
 0x2b8   :  { %3229 = vmatpush.bf16.msra.mxu0 %v8887_v42  ;;  %3255 = vmatpush.bf16.msra.mxu2 %v8895_v1  ;;  %v8831_v42 = vor.u32 %v11077_v7, %v8830_v59  ;;  %v8806_v1 = vld [vmem:[#allocation9 + $0x40] sm:$0xf] }
 0x2b9   :  { %v9097_v7 = vld [vmem:[#allocation11 + $0x180] sm:$0xf] }
 0x2ba   :  { %3247 = vmatpush.bf16.msrb.mxu1 %v8811_v0  ;;  %3273 = vmatpush.bf16.msra.mxu3 %v8819_v62  ;;  %v11073_v0 = vld [vmem:[#allocation9 + $0x54] sm:$0xf0]  ;;  %v8807_v62 = vor.u32 %v11072_v21, %v8806_v1  ;;  %v9099_v21 = vld [vmem:[#allocation11 + $0x190] sm:$0xf0] }
 0x2bb   :  { %v8815_v16 = vor.u32 %v11073_v0, %v8814_v34  ;;  %v9081_v0 = vld [vmem:[#allocation11 + $0x160] sm:$0xf] }
 0x2bc   :  { %3230 = vmatpush.bf16.msra.mxu0 %v8871_v63  ;;  %3256 = vmatpush.bf16.msra.mxu2 %v8879_v31  ;;  %v8799_v63 = vor.u32 %v11069_v49, %v8798_v9  ;;  %v8774_v31 = vld [vmem:[#allocation9] sm:$0xf] }
 0x2be   :  { %3248 = vmatpush.bf16.msrb.mxu1 %v8795_v20  ;;  %3274 = vmatpush.bf16.msra.mxu3 %v8803_v6  ;;  %v11065_v20 = vld [vmem:[#allocation9 + $0x14] sm:$0xf0]  ;;  %v8775_v6 = vor.u32 %v11064_v36, %v8774_v31  ;;  %v11122_v31 = vld [vmem:[#allocation11 + $0xe4] sm:$0xf] }
 0x2bf   :  { %v8783_v17 = vor.u32 %v11065_v20, %v8782_v19  ;;  %v9019_v20 = vld [vmem:[#allocation11 + $0xf0] sm:$0xf0] }
 0x2c0   :  { %3231 = vmatpush.bf16.msra.mxu0 %v8855_v29  ;;  %3257 = vmatpush.bf16.msra.mxu2 %v8863_v41  ;;  %v9150_v29 = vor.u32 %v11154_v26, %v9147_v47  ;;  %v9129_v41 = vld [vmem:[#allocation11 + $0x1c0] sm:$0xf]  ;;  %v9022_v58 = vor.u32 %v11122_v31, %v9019_v20  ;;  %v11134_v26 = vld [vmem:[#allocation11 + $0x144] sm:$0xf]  ;;  %v11157_v31 = vld [vmem:[#allocation11 + $0x1f4] sm:$0xf0] }
 0x2c2   :  { %3249 = vmatpush.bf16.msrb.mxu1 %v8779_v50  ;;  %3275 = vmatpush.bf16.msra.mxu3 %v8787_v33  ;;  %v11152_v50 = vld [vmem:[#allocation11 + $0x1cc] sm:$0xf0]  ;;  %v11150_v33 = vld [vmem:[#allocation11 + $0x1c4] sm:$0xf] }
 0x2c3   :  { %v9130_v43 = vor.u32 %v11152_v50, %v9129_v41  ;;  %v9134_v55 = vor.u32 %v11150_v33, %v9131_v51  ;;  %v11120_v41 = vld [vmem:[#allocation11 + $0xcc] sm:$0xf0]  ;;  %v11118_v50 = vld [vmem:[#allocation11 + $0xc4] sm:$0xf]  ;;  %v9049_v51 = vld [vmem:[#allocation11 + $0x120] sm:$0xf] }
 0x2c4   :  { %3232 = vmatpush.bf16.msra.mxu0 %v8839_v32  ;;  %3258 = vmatpush.bf16.msra.mxu2 %v8847_v10  ;;  %v11148_v32 = vld [vmem:[#allocation11 + $0x1ac] sm:$0xf0]  ;;  %v11146_v10 = vld [vmem:[#allocation11 + $0x1a4] sm:$0xf] }
 0x2c5   :  { %3250 = vmatmul.bf16.vlgmr.msrb.gmra.mxu1 %v12493_v52  ;;  %3276 = vmatmul.bf16.vlgmr.msra.gmra.mxu3 %v12493_v52  ;;  %v9118_v48 = vor.u32 %v11146_v10, %v9115_v37  ;;  %v11130_v10 = vld [vmem:[#allocation11 + $0x124] sm:$0xf] }
 0x2c6   :  { %3751 = vmatpush.bf16.msra.mxu1 %v9146_v30  ;;  %3777 = vmatpush.bf16.msrb.mxu3 %v9150_v29  ;;  %v9067_v30 = vld [vmem:[#allocation11 + $0x150] sm:$0xf0]  ;;  %v9001_v29 = vld [vmem:[#allocation11 + $0xc0] sm:$0xf] }
 0x2c7   :  { %2921 = vmatmul.bf16.vlgmr.msrb.gmra.mxu0 %v12493_v52  ;;  %2947 = vmatmul.bf16.vlgmr.msrb.gmra.mxu2 %v12493_v52  ;;  %v9070_v47 = vor.u32 %v11134_v26, %v9067_v30  ;;  %v9002_v33 = vor.u32 %v11120_v41, %v9001_v29  ;;  %v11110_v26 = vld [vmem:[#allocation11 + $0x84] sm:$0xf]  ;;  %v8971_v29 = vld [vmem:[#allocation11 + $0x90] sm:$0xf0] }
 0x2c8   :  { %3233 = vmatpush.bf16.msra.mxu0 %v8823_v40  ;;  %3259 = vmatpush.bf16.msra.mxu2 %v8831_v42  ;;  %v11144_v40 = vld [vmem:[#allocation11 + $0x18c] sm:$0xf0]  ;;  %v11142_v42 = vld [vmem:[#allocation11 + $0x184] sm:$0xf]  ;;  %v8974_v41 = vor.u32 %v11110_v26, %v8971_v29  ;;  %v11145_v26 = vld [vmem:[#allocation11 + $0x194] sm:$0xf0] }
 0x2c9   :  { %v9098_v1 = vor.u32 %v11144_v40, %v9097_v7  ;;  %v9102_v34 = vor.u32 %v11142_v42, %v9099_v21  ;;  %v8985_v7 = vld [vmem:[#allocation11 + $0xa0] sm:$0xf]  ;;  %v11116_v40 = vld [vmem:[#allocation11 + $0xac] sm:$0xf0]  ;;  %v11114_v42 = vld [vmem:[#allocation11 + $0xa4] sm:$0xf] }
 0x2ca   :  { %3752 = vmatpush.bf16.msra.mxu1 %v9130_v43  ;;  %3778 = vmatpush.bf16.msrb.mxu3 %v9134_v55  ;;  %v9003_v43 = vld [vmem:[#allocation11 + $0xd0] sm:$0xf0]  ;;  %v11132_v55 = vld [vmem:[#allocation11 + $0x12c] sm:$0xf0]  ;;  %v8986_v21 = vor.u32 %v11116_v40, %v8985_v7 }
 0x2cc   :  { %3234 = vmatpush.bf16.msra.mxu0 %v8807_v62  ;;  %3260 = vmatpush.bf16.msra.mxu2 %v8815_v16  ;;  %v11140_v62 = vld [vmem:[#allocation11 + $0x16c] sm:$0xf0]  ;;  %v11138_v16 = vld [vmem:[#allocation11 + $0x164] sm:$0xf] }
 0x2cd   :  { %v9082_v12 = vor.u32 %v11140_v62, %v9081_v0  ;;  %v9086_v49 = vor.u32 %v11138_v16, %v9083_v25  ;;  %v9033_v0 = vld [vmem:[#allocation11 + $0x100] sm:$0xf]  ;;  %v11128_v62 = vld [vmem:[#allocation11 + $0x10c] sm:$0xf0]  ;;  %v11126_v25 = vld [vmem:[#allocation11 + $0x104] sm:$0xf] }
 0x2ce   :  { %3779 = vmatpush.bf16.msrb.mxu3 %v9118_v48 }
 0x2d0   :  { %3235 = vmatpush.bf16.msra.mxu0 %v8791_v45  ;;  %3261 = vmatpush.bf16.msra.mxu2 %v8799_v63  ;;  %v9017_v45 = vld [vmem:[#allocation11 + $0xe0] sm:$0xf]  ;;  %v11124_v63 = vld [vmem:[#allocation11 + $0xec] sm:$0xf0] }
 0x2d1   :  { %v9018_v19 = vor.u32 %v11124_v63, %v9017_v45  ;;  %v9153_v45 = vld [vmem:[#allocation11 + $0x1e8] sm:$0xf] }
 0x2d2   :  { %3780 = vmatpush.bf16.msrb.mxu3 %v9102_v34  ;;  %v8987_v34 = vld [vmem:[#allocation11 + $0xb0] sm:$0xf0] }
 0x2d3   :  { %v8990_v16 = vor.u32 %v11114_v42, %v8987_v34 }
 0x2d4   :  { %3236 = vmatpush.bf16.msra.mxu0 %v8775_v6  ;;  %3262 = vmatpush.bf16.msra.mxu2 %v8783_v17  ;;  %v9065_v6 = vld [vmem:[#allocation11 + $0x140] sm:$0xf]  ;;  %v11136_v17 = vld [vmem:[#allocation11 + $0x14c] sm:$0xf0] }
 0x2d5   :  { %v9066_v61 = vor.u32 %v11136_v17, %v9065_v6  ;;  %v9154_v6 = vor.u32 %v11157_v31, %v9153_v45  ;;  %v8937_v31 = vld [vmem:[#allocation11 + $0x40] sm:$0xf] }
 0x2d6   :  { %3781 = vmatpush.bf16.msrb.mxu3 %v9086_v49  ;;  %v9035_v49 = vld [vmem:[#allocation11 + $0x110] sm:$0xf0] }
 0x2d7   :  { %3237 = vmatmul.bf16.vlgmr.msra.gmra.mxu0 %v12493_v52  ;;  %3263 = vmatmul.bf16.vlgmr.msra.gmra.mxu2 %v12493_v52  ;;  %v9114_v52 = vor.u32 %v11148_v32, %v9113_v24  ;;  %v9006_v24 = vor.u32 %v11118_v50, %v9003_v43  ;;  %v9050_v32 = vor.u32 %v11132_v55, %v9049_v51  ;;  %v9137_v50 = vld [vmem:[#allocation11 + $0x1c8] sm:$0xf]  ;;  %v11151_v43 = vld [vmem:[#allocation11 + $0x1cc] sm:$0xf] }
 0x2d8   :  { %3738 = vmatpush.bf16.msrb.mxu0 %v9018_v19  ;;  %3764 = vmatpush.bf16.msrb.mxu2 %v9022_v58  ;;  %v9038_v63 = vor.u32 %v11126_v25, %v9035_v49  ;;  %v9155_v19 = vld [vmem:[#allocation11 + $0x1f8] sm:$0xf0]  ;;  %v8969_v58 = vld [vmem:[#allocation11 + $0x80] sm:$0xf] }
 0x2d9   :  { %3753 = vmatpush.bf16.msra.mxu1 %v9114_v52  ;;  %v9051_v52 = vld [vmem:[#allocation11 + $0x130] sm:$0xf0]  ;;  %v9123_v49 = vld [vmem:[#allocation11 + $0x1b8] sm:$0xf0] }
 0x2da   :  { %3782 = vmatpush.bf16.msrb.mxu3 %v9070_v47  ;;  %v9054_v48 = vor.u32 %v11130_v10, %v9051_v52  ;;  %v8953_v52 = vld [vmem:[#allocation11 + $0x60] sm:$0xf] }
 0x2dc   :  { %3739 = vmatpush.bf16.msrb.mxu0 %v9002_v33  ;;  %3765 = vmatpush.bf16.msrb.mxu2 %v9006_v24  ;;  %v11153_v33 = vld [vmem:[#allocation11 + $0x1d4] sm:$0xf0] }
 0x2dd   :  { %3754 = vmatpush.bf16.msra.mxu1 %v9098_v1  ;;  %v9138_v24 = vor.u32 %v11153_v33, %v9137_v50  ;;  %v9107_v50 = vld [vmem:[#allocation11 + $0x198] sm:$0xf0]  ;;  %v284_v33 = vadd.f32 %v12103_v15, %v12081_v39 }
 0x2de   :  { %3783 = vmatpush.bf16.msrb.mxu3 %v9054_v48  ;;  %v11106_v48 = vld [vmem:[#allocation11 + $0x64] sm:$0xf] }
 0x2e0   :  { %3740 = vmatpush.bf16.msrb.mxu0 %v8986_v21  ;;  %3766 = vmatpush.bf16.msrb.mxu2 %v8990_v16  ;;  %v8955_v21 = vld [vmem:[#allocation11 + $0x70] sm:$0xf0]  ;;  %v11147_v16 = vld [vmem:[#allocation11 + $0x1ac] sm:$0xf] }
 0x2e1   :  { %3755 = vmatpush.bf16.msra.mxu1 %v9082_v12  ;;  %v9034_v12 = vor.u32 %v11128_v62, %v9033_v0  ;;  %v8958_v0 = vor.u32 %v11106_v48, %v8955_v21  ;;  %v9121_v62 = vld [vmem:[#allocation11 + $0x1a8] sm:$0xf] }
 0x2e2   :  { %3784 = vmatpush.bf16.msrb.mxu3 %v9038_v63  ;;  %v9126_v63 = vor.u32 %v11147_v16, %v9123_v49  ;;  %v9089_v21 = vld [vmem:[#allocation11 + $0x168] sm:$0xf]  ;;  %v11096_v49 = vld [vmem:[#allocation11 + $0xc] sm:$0xf0] }
 0x2e4   :  { %3767 = vmatpush.bf16.msrb.mxu2 %v8974_v41 }
 0x2e5   :  { %3756 = vmatpush.bf16.msra.mxu1 %v9066_v61  ;;  %v11112_v61 = vld [vmem:[#allocation11 + $0x8c] sm:$0xf0] }
 0x2e6   :  { %v8970_v47 = vor.u32 %v11112_v61, %v8969_v58  ;;  %v9105_v61 = vld [vmem:[#allocation11 + $0x188] sm:$0xf] }
 0x2e7   :  { %v9106_v41 = vor.u32 %v11145_v26, %v9105_v61 }
 0x2e8   :  { %3741 = vmatpush.bf16.msrb.mxu0 %v8970_v47  ;;  %3768 = vmatpush.bf16.msrb.mxu2 %v8958_v0  ;;  %v11139_v0 = vld [vmem:[#allocation11 + $0x16c] sm:$0xf] }
 0x2e9   :  { %3757 = vmatpush.bf16.msra.mxu1 %v9050_v32  ;;  %v9139_v32 = vld [vmem:[#allocation11 + $0x1d8] sm:$0xf0] }
 0x2ea   :  { %v9142_v10 = vor.u32 %v11151_v43, %v9139_v32 }
 0x2ed   :  { %3758 = vmatpush.bf16.msra.mxu1 %v9034_v12 }
 0x2f1   :  { %3803 = vmatpush.bf16.msrb.mxu1 %v9154_v6 }
 0x2f5   :  { %3804 = vmatpush.bf16.msrb.mxu1 %v9138_v24  ;;  %v11098_v24 = vld [vmem:[#allocation11 + $0x24] sm:$0xf] }
 0x322   :  { %v12503_v59 = vpop.f32.mrf.mxu1 }
 0x328   :  { %v12505_v9 = vpop.f32.mrf.mxu3 }
 0x32a   :  { %v2885_v36 = vpop.f32.mrf.mxu1 }
 0x32b   :  { %v11155_v36 = vld [vmem:[#allocation11 + $0x1ec] sm:$0xf] }
 0x32c   :  { %v9158_v17 = vor.u32 %v11155_v36, %v9155_v19  ;;  %v11104_v36 = vld [vmem:[#allocation11 + $0x4c] sm:$0xf0]  ;;  %v11102_v19 = vld [vmem:[#allocation11 + $0x44] sm:$0xf] }
 0x32d   :  { %v8938_v6 = vor.u32 %v11104_v36, %v8937_v31  ;;  %v8907_v31 = vld [vmem:[#allocation11 + $0x10] sm:$0xf0]  ;;  %v9025_v36 = vld [vmem:[#allocation11 + $0xe8] sm:$0xf] }
 0x32e   :  { %3829 = vmatpush.bf16.msra.mxu3 %v9158_v17  ;;  %v8939_v17 = vld [vmem:[#allocation11 + $0x50] sm:$0xf0] }
 0x32f   :  { %v8942_v58 = vor.u32 %v11102_v19, %v8939_v17  ;;  %v11123_v17 = vld [vmem:[#allocation11 + $0xec] sm:$0xf] }
 0x330   :  { %v2911_v37 = vpop.f32.mrf.mxu3 }
 0x331   :  { %v11108_v37 = vld [vmem:[#allocation11 + $0x6c] sm:$0xf0]  ;;  %3769 = vmatpush.bf16.msrb.mxu2 %v8942_v58 }
 0x332   :  { %v12507_v1 = vpop.f32.mrf.mxu1  ;;  %v8954_v42 = vor.u32 %v11108_v37, %v8953_v52  ;;  %3830 = vmatpush.bf16.msra.mxu3 %v9142_v10  ;;  %v8923_v37 = vld [vmem:[#allocation11 + $0x30] sm:$0xf0] }
 0x334   :  { %v2870_v20 = vpop.f32.mrf.mxu0  ;;  %3742 = vmatpush.bf16.msrb.mxu0 %v8954_v42  ;;  %v8926_v42 = vor.u32 %v11098_v24, %v8923_v37  ;;  %v11121_v37 = vld [vmem:[#allocation11 + $0xd4] sm:$0xf0] }
 0x335   :  { %v2871_v30 = vadd.f32 %v2870_v20, %v12196_v46 }
 0x336   :  { %3831 = vmatpush.bf16.msra.mxu3 %v9126_v63  ;;  %3770 = vmatpush.bf16.msrb.mxu2 %v8926_v42 }
 0x337   :  { %v2884_v51 = vadd.f32 %v12503_v59, %v2871_v30  ;;  %v11149_v59 = vld [vmem:[#allocation11 + $0x1b4] sm:$0xf0]  ;;  %v11143_v30 = vld [vmem:[#allocation11 + $0x18c] sm:$0xf] }
 0x338   :  { %v12511_v55 = vpop.f32.mrf.mxu3  ;;  %v9122_v25 = vor.u32 %v11149_v59, %v9121_v62  ;;  %3743 = vmatpush.bf16.msrb.mxu0 %v8938_v6  ;;  %v9110_v43 = vor.u32 %v11143_v30, %v9107_v50  ;;  %v9091_v62 = vld [vmem:[#allocation11 + $0x178] sm:$0xf0]  ;;  %v11125_v6 = vld [vmem:[#allocation11 + $0xf4] sm:$0xf0] }
 0x339   :  { %v8769_v7 = vmul.f32 -1.442695, %v2884_v51  ;;  %v8921_v51 = vld [vmem:[#allocation11 + $0x20] sm:$0xf]  ;;  %v9026_v26 = vor.u32 %v11125_v6, %v9025_v36  ;;  %v9027_v30 = vld [vmem:[#allocation11 + $0xf8] sm:$0xf0] }
 0x33a   :  { %v2937_v40 = vpop.f32.mrf.mxu1  ;;  %v2896_v34 = vpop.f32.mrf.mxu2  ;;  %3805 = vmatpush.bf16.msrb.mxu1 %v9122_v25  ;;  %3832 = vmatpush.bf16.msra.mxu3 %v9110_v43  ;;  %v9094_v25 = vor.u32 %v11139_v0, %v9091_v62  ;;  %v9030_v50 = vor.u32 %v11123_v17, %v9027_v30  ;;  %v11135_v43 = vld [vmem:[#allocation11 + $0x14c] sm:$0xf]  ;;  %v8993_v36 = vld [vmem:[#allocation11 + $0xa8] sm:$0xf] }
 0x33b   :  { %11642 = vpow2.f32 %v8769_v7  ;;  %v2897_v12 = vadd.f32 %v2896_v34, %v12200_v18  ;;  %v11141_v34 = vld [vmem:[#allocation11 + $0x174] sm:$0xf0]  ;;  %v11115_v17 = vld [vmem:[#allocation11 + $0xac] sm:$0xf] }
 0x33c   :  { %v2872_v45 = vpop.f32.mrf.mxu0  ;;  %v9090_v15 = vor.u32 %v11141_v34, %v9089_v21  ;;  %v9011_v34 = vld [vmem:[#allocation11 + $0xd8] sm:$0xf0] }
 0x33d   :  { %v2910_v20 = vadd.f32 %v12505_v9, %v2897_v12  ;;  %v11100_v9 = vld [vmem:[#allocation11 + $0x2c] sm:$0xf0]  ;;  %v8905_v12 = vld [vmem:[#allocation11] sm:$0xf]  ;;  %v11094_v45 = vld [vmem:[#allocation11 + $0x4] sm:$0xf] }
 0x33e   :  { %v8922_v52 = vor.u32 %v11100_v9, %v8921_v51  ;;  %3806 = vmatpush.bf16.msrb.mxu1 %v9106_v41  ;;  %v8906_v63 = vor.u32 %v11096_v49, %v8905_v12  ;;  %3833 = vmatpush.bf16.msra.mxu3 %v9094_v25  ;;  %v9075_v51 = vld [vmem:[#allocation11 + $0x158] sm:$0xf0]  ;;  %v11133_v12 = vld [vmem:[#allocation11 + $0x134] sm:$0xf0]  ;;  %v11131_v25 = vld [vmem:[#allocation11 + $0x12c] sm:$0xf] }
 0x33f   :  { %v8770_v47 = vmul.f32 -1.442695, %v2910_v20  ;;  %v8910_v20 = vor.u32 %v11094_v45, %v8907_v31  ;;  %v9078_v21 = vor.u32 %v11135_v43, %v9075_v51  ;;  %v9059_v31 = vld [vmem:[#allocation11 + $0x138] sm:$0xf0]  ;;  %v11127_v51 = vld [vmem:[#allocation11 + $0x10c] sm:$0xf] }
 0x340   :  { %v2963_v29 = vpop.f32.mrf.mxu3  ;;  %3744 = vmatpush.bf16.msrb.mxu0 %v8922_v52 }
 0x341   :  { %v11643_v32 = vpop.eup %11642  ;;  %11644 = vpow2.f32 %v8770_v47  ;;  %v9073_v47 = vld [vmem:[#allocation11 + $0x148] sm:$0xf]  ;;  %v342_v29 = vadd.f32 %v12085_v28, %v12068_v3  ;;  %3771 = vmatpush.bf16.msrb.mxu2 %v8910_v20 }
 0x342   :  { %v3251_v10 = vpop.f32.mrf.mxu1  ;;  %v12517_v48 = vadd.f32 1.0, %v11643_v32  ;;  %v2898_v40 = vpop.f32.mrf.mxu2  ;;  %3807 = vmatpush.bf16.msrb.mxu1 %v9090_v15  ;;  %v9009_v28 = vld [vmem:[#allocation11 + $0xc8] sm:$0xf]  ;;  %3834 = vmatpush.bf16.msra.mxu3 %v9078_v21 }
 0x343   :  { %v3282_v7 = vadd.f32 %v3251_v10, %v284_v33  ;;  %v11137_v33 = vld [vmem:[#allocation11 + $0x154] sm:$0xf0]  ;;  %v9057_v15 = vld [vmem:[#allocation11 + $0x128] sm:$0xf]  ;;  %v9010_v49 = vor.u32 %v11121_v37, %v9009_v28  ;;  %v9043_v28 = vld [vmem:[#allocation11 + $0x118] sm:$0xf0] }
 0x344   :  { %11646 = vrcp.f32 %v12517_v48  ;;  %v2922_v16 = vpop.f32.mrf.mxu0  ;;  %3745 = vmatpush.bf16.msrb.mxu0 %v8906_v63  ;;  %v9074_v42 = vor.u32 %v11137_v33, %v9073_v47  ;;  %v9058_v63 = vor.u32 %v11133_v12, %v9057_v15  ;;  %v8979_v12 = vld [vmem:[#allocation11 + $0x98] sm:$0xf0]  ;;  %vm2975_vm15 = vweird.f32 %v12517_v48 }
 0x345   :  { %v8901_v59 = vmul.f32 -1.442695, %v3282_v7  ;;  %3816 = vmatpush.bf16.msra.mxu2 %v9030_v50  ;;  %v11119_v7 = vld [vmem:[#allocation11 + $0xcc] sm:$0xf]  ;;  %v2923_v20 = vadd.f32 %v2922_v16, %v12226_v5  ;;  %v9041_v50 = vld [vmem:[#allocation11 + $0x108] sm:$0xf] }
 0x346   :  { %3808 = vmatpush.bf16.msrb.mxu1 %v9074_v42  ;;  %v9014_v45 = vor.u32 %v11119_v7, %v9011_v34  ;;  %v11129_v16 = vld [vmem:[#allocation11 + $0x114] sm:$0xf0]  ;;  %v8977_v34 = vld [vmem:[#allocation11 + $0x88] sm:$0xf] }
 0x347   :  { %v11645_v19 = vpop.eup %11644  ;;  %11648 = vpow2.f32 %v8901_v59  ;;  %v2936_v7 = vadd.f32 %v12507_v1, %v2923_v20 }
 0x348   :  { %v12520_v58 = vadd.f32 1.0, %v11645_v19  ;;  %v3277_v61 = vpop.f32.mrf.mxu3  ;;  %3790 = vmatpush.bf16.msra.mxu0 %v9026_v26  ;;  %v11117_v19 = vld [vmem:[#allocation11 + $0xb4] sm:$0xf0] }
 0x349   :  { %v3284_v10 = vadd.f32 %v3277_v61, %v342_v29  ;;  %v8995_v61 = vld [vmem:[#allocation11 + $0xb8] sm:$0xf0]  ;;  %3817 = vmatpush.bf16.msra.mxu2 %v9014_v45  ;;  %v9062_v29 = vor.u32 %v11131_v25, %v9059_v31  ;;  %v2981_v25 = vand.u32 2147483648, %v12517_v48  ;;  %v2979_v45 = vand.u32 2147483647, %v12517_v48 }
 0x34a   :  { %v3253_v41 = vpop.f32.mrf.mxu1  ;;  %v12524_v9 = vpop.eup %11646  ;;  %11650 = vrcp.f32 %v12520_v58  ;;  %3809 = vmatpush.bf16.msrb.mxu1 %v9058_v63  ;;  %v3000_v42 = vand.u32 2147483648, %v12520_v58  ;;  %vm2994_vm0 = vweird.f32 %v12520_v58 }
 0x34b   :  { %v2948_v24 = vpop.f32.mrf.mxu2  ;;  %v2971_v32 = vmul.f32 %v12524_v9, %v12517_v48  ;;  %v8902_v6 = vmul.f32 -1.442695, %v3284_v10  ;;  %v8994_v41 = vor.u32 %v11117_v19, %v8993_v36  ;;  %3835 = vmatpush.bf16.msra.mxu3 %v9062_v29  ;;  %v8998_v10 = vor.u32 %v11115_v17, %v8995_v61 }
 0x34c   :  { %v2949_v52 = vadd.f32 %v2948_v24, %v12218_v35  ;;  %v2924_v40 = vpop.f32.mrf.mxu0  ;;  %3791 = vmatpush.bf16.msra.mxu0 %v9010_v49  ;;  %v255_v24 = vadd.f32 %v12076_v11, %v12040_v23  ;;  %vm2976_vm13 = vweird.f32 %v12524_v9  ;;  %v2998_v11 = vand.u32 2147483647, %v12520_v58  ;;  %v8931_v49 = vld [vmem:[#allocation11 + $0x38] sm:$0xf0] }
 0x34d   :  { %v11649_v0 = vpop.eup %11648  ;;  %v2972_v62 = vsub.f32 1.0, %v2971_v32  ;;  %v9046_v40 = vor.u32 %v11127_v51, %v9043_v28  ;;  %3818 = vmatpush.bf16.msra.mxu2 %v8998_v10  ;;  %vm12554_vm1 = vmor %vm2975_vm15, %vm2976_vm13  ;;  %v3001_v19 = vor.u32 1.1754944e-38, %v3000_v42  ;;  %vm2980_vm4 = vcmp.eq.f32.partialorder %v2979_v45, 8.507059e+37  ;;  %v8945_v10 = vld [vmem:[#allocation11 + $0x48] sm:$0xf] }
 0x34e   :  { %v2962_v59 = vadd.f32 %v12511_v55, %v2949_v52  ;;  %v12534_v30 = vadd.f32 1.0, %v11649_v0  ;;  %v9042_v52 = vor.u32 %v11129_v16, %v9041_v50  ;;  %vm2999_vm3 = vcmp.eq.f32.partialorder %v2998_v11, 8.507059e+37  ;;  %v11103_v28 = vld [vmem:[#allocation11 + $0x4c] sm:$0xf]  ;;  %v8947_v42 = vld [vmem:[#allocation11 + $0x58] sm:$0xf0] }
 0x34f   :  { %v2973_v43 = vmul.f32 %v12524_v9, %v2972_v62  ;;  %v11113_v62 = vld [vmem:[#allocation11 + $0x94] sm:$0xf0]  ;;  %3836 = vmatpush.bf16.msra.mxu3 %v9046_v40 }
 0x350   :  { %v12532_v26 = vpop.eup %11650  ;;  %v8771_v55 = vmul.f32 -1.442695, %v2962_v59  ;;  %v3279_v47 = vpop.f32.mrf.mxu3  ;;  %3792 = vmatpush.bf16.msra.mxu0 %v8994_v41  ;;  %v11111_v59 = vld [vmem:[#allocation11 + $0x8c] sm:$0xf]  ;;  %3810 = vmatpush.bf16.msrb.mxu1 %v9042_v52  ;;  %v8978_v20 = vor.u32 %v11113_v62, %v8977_v34  ;;  %v2982_v41 = vor.u32 1.1754944e-38, %v2981_v25  ;;  %vm3314_vm10 = vweird.f32 %v12534_v30 }
 0x351   :  { %v2990_v33 = vmul.f32 %v12532_v26, %v12520_v58  ;;  %vm2995_vm14 = vweird.f32 %v12532_v26  ;;  %v2974_v1 = vadd.f32 %v12524_v9, %v2973_v43  ;;  %v11109_v47 = vld [vmem:[#allocation11 + $0x74] sm:$0xf0]  ;;  %v11107_v43 = vld [vmem:[#allocation11 + $0x6c] sm:$0xf] }
 0x352   :  { %11652 = vpow2.f32 %v8771_v55  ;;  %vm2996_vm2 = vmor %vm2994_vm0, %vm2995_vm14  ;;  %v8961_v55 = vld [vmem:[#allocation11 + $0x68] sm:$0xf]  ;;  %v11105_v52 = vld [vmem:[#allocation11 + $0x54] sm:$0xf0] }
 0x353   :  { %v2950_v32 = vpop.f32.mrf.mxu2  ;;  %v2991_v37 = vsub.f32 1.0, %v2990_v33  ;;  %11654 = vpow2.f32 %v8902_v6  ;;  %v8982_v6 = vor.u32 %v11111_v59, %v8979_v12  ;;  %v2978_v17 = vsel %vm12554_vm1, %v12524_v9, %v2974_v1  ;;  %v8963_v9 = vld [vmem:[#allocation11 + $0x78] sm:$0xf0]  ;;  %v8929_v1 = vld [vmem:[#allocation11 + $0x28] sm:$0xf] }
 0x354   :  { %11656 = vrcp.f32 %v12534_v30  ;;  %v3238_v21 = vpop.f32.mrf.mxu0  ;;  %3793 = vmatpush.bf16.msra.mxu0 %v8978_v20  ;;  %v2983_v16 = vsel %vm2980_vm4, %v2982_v41, %v2978_v17  ;;  %v8962_v51 = vor.u32 %v11109_v47, %v8961_v55  ;;  %v8966_v40 = vor.u32 %v11107_v43, %v8963_v9  ;;  %v11099_v25 = vld [vmem:[#allocation11 + $0x2c] sm:$0xf]  ;;  %v8915_v55 = vld [vmem:[#allocation11 + $0x18] sm:$0xf0] }
 0x355   :  { %v2992_v15 = vmul.f32 %v12532_v26, %v2991_v37  ;;  %v3281_v0 = vadd.f32 %v3238_v21, %v255_v24  ;;  %11658 = vtanh.f32 %v2936_v7  ;;  %3819 = vmatpush.bf16.msra.mxu2 %v8982_v6  ;;  %v8946_v34 = vor.u32 %v11105_v52, %v8945_v10  ;;  %v11097_v6 = vld [vmem:[#allocation11 + $0x14] sm:$0xf0]  ;;  %v11186_v52 = vld [vmem:[#allocation9 + $0xe4] sm:$0xf] }
 0x356   :  { %v8934_v20 = vor.u32 %v11099_v25, %v8931_v49  ;;  %v313_v43 = vadd.f32 %v12083_v27, %v12065_v2 }
 0x357   :  { %v2993_v63 = vadd.f32 %v12532_v26, %v2992_v15  ;;  %v8900_v31 = vmul.f32 -1.442695, %v3281_v0  ;;  %v8950_v15 = vor.u32 %v11103_v28, %v8947_v42  ;;  %v11101_v0 = vld [vmem:[#allocation11 + $0x34] sm:$0xf0]  ;;  %v9278_v28 = vld [vmem:[#allocation9 + $0xf0] sm:$0xf0] }
 0x358   :  { %v11653_v36 = vpop.eup %11652  ;;  %3794 = vmatpush.bf16.msra.mxu0 %v8962_v51  ;;  %v9286_v42 = vld [vmem:[#allocation9 + $0xf8] sm:$0xf0] }
 0x359   :  { %v11655_v58 = vpop.eup %11654  ;;  %v2997_v61 = vsel %vm2996_vm2, %v12532_v26, %v2993_v63  ;;  %v12566_v48 = vadd.f32 1.0, %v11653_v36  ;;  %11660 = vpow2.f32 %v8900_v31  ;;  %3820 = vmatpush.bf16.msra.mxu2 %v8966_v40  ;;  %v8930_v63 = vor.u32 %v11101_v0, %v8929_v1  ;;  %v8913_v36 = vld [vmem:[#allocation11 + $0x8] sm:$0xf]  ;;  %v11187_v40 = vld [vmem:[#allocation9 + $0xec] sm:$0xf] }
 0x35a   :  { %v12568_v29 = vpop.eup %11656  ;;  %v3002_v50 = vsel %vm2999_vm3, %v3001_v19, %v2997_v61  ;;  %v12574_v7 = vadd.f32 1.0, %v11655_v58  ;;  %v11095_v61 = vld [vmem:[#allocation11 + $0xc] sm:$0xf]  ;;  %v3318_v1 = vand.u32 2147483647, %v12534_v30  ;;  %v9289_v49 = vor.u32 %v11187_v40, %v9286_v42 }
 0x35b   :  { %11662 = vrcp.f32 %v12566_v48  ;;  %v3264_v33 = vpop.f32.mrf.mxu2  ;;  %v3310_v24 = vmul.f32 %v12568_v29, %v12534_v30  ;;  %v3024_v32 = vmul.f32 %v3002_v50, %v12428_v22  ;;  %v11659_v37 = vpop.eup %11658  ;;  %v3020_v17 = vand.u32 2147483648, %v12566_v48  ;;  %v11174_v40 = vld [vmem:[#allocation9 + $0x84] sm:$0xf] }
 0x35c   :  { %v3240_v26 = vpop.f32.mrf.mxu0  ;;  %v3025_v11 = vmul.f32 %v11659_v37, %v2983_v16  ;;  %11664 = vrcp.f32 %v12574_v7  ;;  %3795 = vmatpush.bf16.msra.mxu0 %v8946_v34  ;;  %v3018_v41 = vand.u32 2147483647, %v12566_v48  ;;  %v8914_v50 = vor.u32 %v11097_v6, %v8913_v36  ;;  %v9166_v34 = vld [vmem:[#allocation9 + $0x10] sm:$0xf0] }
 0x35d   :  { %v3311_v59 = vsub.f32 1.0, %v3310_v24  ;;  %3821 = vmatpush.bf16.msra.mxu2 %v8950_v15  ;;  %vm3014_vm6 = vweird.f32 %v12566_v48  ;;  %v8918_v26 = vor.u32 %v11095_v61, %v8915_v55  ;;  %vm3315_vm7 = vweird.f32 %v12568_v29 }
 0x35e   :  { %v12576_v12 = vadd.f32 %v3025_v11, %v3024_v32  ;;  %v3283_v24 = vadd.f32 %v3264_v33, %v313_v43  ;;  %v3021_v10 = vor.u32 1.1754944e-38, %v3020_v17  ;;  %vm3019_vm9 = vcmp.eq.f32.partialorder %v3018_v41, 8.507059e+37  ;;  %vm12601_vm11 = vmor %vm3314_vm10, %vm3315_vm7  ;;  %v9246_v43 = vld [vmem:[#allocation9 + $0xb0] sm:$0xf0] }
 0x35f   :  { %v11661_v21 = vpop.eup %11660  ;;  %v3312_v58 = vmul.f32 %v12568_v29, %v3311_v59  ;;  %v3320_v11 = vand.u32 2147483648, %v12534_v30  ;;  %v11183_v30 = vld [vmem:[#allocation9 + $0xcc] sm:$0xf]  ;;  %vm3319_vm14 = vcmp.eq.f32.partialorder %v3318_v1, 8.507059e+37  ;;  %vm3334_vm2 = vweird.f32 %v12574_v7 }
 0x360   :  { %v12578_v22 = vadd.f32 1.0, %v11661_v21  ;;  %3796 = vmatpush.bf16.msra.mxu0 %v8930_v63  ;;  %v9262_v63 = vld [vmem:[#allocation9 + $0xd0] sm:$0xf0] }
 0x361   :  { %v11663_v62 = vpop.eup %11662  ;;  %3822 = vmatpush.bf16.msra.mxu2 %v8934_v20  ;;  %v3313_v32 = vadd.f32 %v12568_v29, %v3312_v58  ;;  %v9270_v20 = vld [vmem:[#allocation9 + $0xd8] sm:$0xf0]  ;;  %v3321_v6 = vor.u32 1.1754944e-38, %v3320_v11 }
 0x362   :  { %v3010_v45 = vmul.f32 %v11663_v62, %v12566_v48  ;;  %11666 = vrcp.f32 %v12578_v22  ;;  %vm3015_vm5 = vweird.f32 %v11663_v62  ;;  %v12589_v9 = vpop.eup %11664  ;;  %v3301_v59 = vand.u32 2147483648, %v12578_v22  ;;  %v9238_v11 = vld [vmem:[#allocation9 + $0x98] sm:$0xf0] }
 0x363   :  { %v3266_v31 = vpop.f32.mrf.mxu2  ;;  %11668 = vtanh.f32 %v12576_v12  ;;  %vm3016_vm8 = vmor %vm3014_vm6, %vm3015_vm5  ;;  %v3330_v33 = vmul.f32 %v12589_v9, %v12574_v7  ;;  %v3317_v25 = vsel %vm12601_vm11, %v12568_v29, %v3313_v32  ;;  %v3299_v36 = vand.u32 2147483647, %v12578_v22  ;;  %v9198_v29 = vld [vmem:[#allocation9 + $0x50] sm:$0xf0] }
 0x364   :  { %v3011_v19 = vsub.f32 1.0, %v3010_v45  ;;  %3797 = vmatpush.bf16.msra.mxu0 %v8914_v50  ;;  %11670 = vtanh.f32 %v3283_v24  ;;  %v11182_v45 = vld [vmem:[#allocation9 + $0xc4] sm:$0xf]  ;;  %vm3295_vm13 = vweird.f32 %v12578_v22  ;;  %v3302_v61 = vor.u32 1.1754944e-38, %v3301_v59  ;;  %v11171_v59 = vld [vmem:[#allocation9 + $0x6c] sm:$0xf] }
 0x365   :  { %3823 = vmatpush.bf16.msra.mxu2 %v8918_v26  ;;  %v3331_v58 = vsub.f32 1.0, %v3330_v33  ;;  %v3322_v55 = vsel %vm3319_vm14, %v3321_v6, %v3317_v25  ;;  %v9273_v41 = vor.u32 %v11183_v30, %v9270_v20  ;;  %v11178_v50 = vld [vmem:[#allocation9 + $0xa4] sm:$0xf]  ;;  %vm3300_vm0 = vcmp.eq.f32.partialorder %v3299_v36, 8.507059e+37  ;;  %v9254_v26 = vld [vmem:[#allocation9 + $0xb8] sm:$0xf0] }
 0x366   :  { %v3012_v47 = vmul.f32 %v11663_v62, %v3011_v19  ;;  %vm3335_vm1 = vweird.f32 %v12589_v9  ;;  %v9222_v25 = vld [vmem:[#allocation9 + $0x78] sm:$0xf0]  ;;  %v9284_v30 = vld [vmem:[#allocation9 + $0xe8] sm:$0xf]  ;;  %v11189_v20 = vld [vmem:[#allocation9 + $0xf4] sm:$0xf0] }
 0x367   :  { %v3332_v32 = vmul.f32 %v12589_v9, %v3331_v58  ;;  %vm12632_vm3 = vmor %vm3334_vm2, %vm3335_vm1  ;;  %v9225_v36 = vor.u32 %v11171_v59, %v9222_v25  ;;  %v11166_v6 = vld [vmem:[#allocation9 + $0x44] sm:$0xf] }
 0x368   :  { %v3013_v16 = vadd.f32 %v11663_v62, %v3012_v47  ;;  %v11667_v51 = vpop.eup %11666  ;;  %v9265_v47 = vor.u32 %v11182_v45, %v9262_v63  ;;  %v9276_v45 = vld [vmem:[#allocation9 + $0xe0] sm:$0xf]  ;;  %v11188_v63 = vld [vmem:[#allocation9 + $0xec] sm:$0xf0] }
 0x369   :  { %v3291_v37 = vmul.f32 %v11667_v51, %v12578_v22  ;;  %v11669_v48 = vpop.eup %11668  ;;  %vm3296_vm12 = vweird.f32 %v11667_v51  ;;  %v3333_v33 = vadd.f32 %v12589_v9, %v3332_v32  ;;  %v11185_v32 = vld [vmem:[#allocation9 + $0xd4] sm:$0xf0] }
 0x36a   :  { %v3017_v27 = vsel %vm3016_vm8, %v11663_v62, %v3013_v16  ;;  %v9281_v62 = vor.u32 %v11186_v52, %v9278_v28  ;;  %vm12616_vm15 = vmor %vm3295_vm13, %vm3296_vm12  ;;  %v11179_v16 = vld [vmem:[#allocation9 + $0xac] sm:$0xf]  ;;  %v11671_v24 = vpop.eup %11670  ;;  %v3344_v52 = vmul.f32 %v3322_v55, %v12477_v57  ;;  %v3340_v57 = vand.u32 2147483648, %v12574_v7  ;;  %v9206_v55 = vld [vmem:[#allocation9 + $0x58] sm:$0xf0] }
 0x36b   :  { %v3022_v21 = vsel %vm3019_vm9, %v3021_v10, %v3017_v27  ;;  %v3292_v15 = vsub.f32 1.0, %v3291_v37  ;;  %v9249_v37 = vor.u32 %v11178_v50, %v9246_v43  ;;  %v9257_v27 = vor.u32 %v11179_v16, %v9254_v26  ;;  %v9260_v50 = vld [vmem:[#allocation9 + $0xc0] sm:$0xf]  ;;  %v11184_v43 = vld [vmem:[#allocation9 + $0xcc] sm:$0xf0] }
 0x36c   :  { %v3028_v0 = vmul.f32 %v11669_v48, %v3022_v21  ;;  %v11175_v48 = vld [vmem:[#allocation9 + $0x8c] sm:$0xf]  ;;  %v3338_v21 = vand.u32 2147483647, %v12574_v7  ;;  %v3341_v7 = vor.u32 1.1754944e-38, %v3340_v57  ;;  %v9201_v16 = vor.u32 %v11166_v6, %v9198_v29 }
 0x36d   :  { %v3293_v31 = vmul.f32 %v11667_v51, %v3292_v15  ;;  %v9241_v1 = vor.u32 %v11175_v48, %v9238_v11  ;;  %v11158_v57 = vld [vmem:[#allocation9 + $0x4] sm:$0xf]  ;;  %v9220_v6 = vld [vmem:[#allocation9 + $0x68] sm:$0xf] }
 0x36e   :  { %v12611_v19 = vpack.c.bf16 %v3028_v0, %v3028_v0  ;;  %v11170_v0 = vld [vmem:[#allocation9 + $0x64] sm:$0xf]  ;;  %vm3339_vm4 = vcmp.eq.f32.partialorder %v3338_v21, 8.507059e+37  ;;  %v11181_v21 = vld [vmem:[#allocation9 + $0xb4] sm:$0xf0]  ;;  %v9169_v59 = vor.u32 %v11158_v57, %v9166_v34 }
 0x36f   :  { %v3294_v17 = vadd.f32 %v11667_v51, %v3293_v31  ;;  %v9519_v34 = vld [vmem:[#allocation11 + $0x1c0] sm:$0xf] }
 0x370   :  { %3759 = vmatmul.bf16.vlgmr.msra.gmra.mxu1 %v12611_v19  ;;  %3785 = vmatmul.bf16.vlgmr.msrb.gmra.mxu3 %v12611_v19 }
 0x371   :  { %4119 = vmatpush.bf16.msra.mxu1 %v9281_v62  ;;  %4145 = vmatpush.bf16.msrb.mxu3 %v9289_v49  ;;  %v3298_v22 = vsel %vm12616_vm15, %v11667_v51, %v3294_v17  ;;  %v9230_v51 = vld [vmem:[#allocation9 + $0x90] sm:$0xf0]  ;;  %v3337_v49 = vsel %vm12632_vm3, %v12589_v9, %v3333_v33  ;;  %v9277_v9 = vor.u32 %v11188_v63, %v9276_v45  ;;  %v9252_v33 = vld [vmem:[#allocation9 + $0xa8] sm:$0xf]  ;;  %v11177_v63 = vld [vmem:[#allocation9 + $0x94] sm:$0xf0] }
 0x372   :  { %v3303_v10 = vsel %vm3300_vm0, %v3302_v61, %v3298_v22  ;;  %v9233_v15 = vor.u32 %v11174_v40, %v9230_v51  ;;  %v9214_v62 = vld [vmem:[#allocation9 + $0x70] sm:$0xf0]  ;;  %v3342_v17 = vsel %vm3339_vm4, %v3341_v7, %v3337_v49  ;;  %v11167_v61 = vld [vmem:[#allocation9 + $0x4c] sm:$0xf]  ;;  %v9244_v40 = vld [vmem:[#allocation9 + $0xa0] sm:$0xf] }
 0x373   :  { %v3345_v28 = vmul.f32 %v11671_v24, %v3303_v10  ;;  %v9217_v31 = vor.u32 %v11170_v0, %v9214_v62  ;;  %v9209_v26 = vor.u32 %v11167_v61, %v9206_v55  ;;  %v9268_v24 = vld [vmem:[#allocation9 + $0xc8] sm:$0xf]  ;;  %v11162_v10 = vld [vmem:[#allocation9 + $0x24] sm:$0xf]  ;;  %v11180_v51 = vld [vmem:[#allocation9 + $0xac] sm:$0xf0]  ;;  %v9253_v62 = vor.u32 %v11181_v21, %v9252_v33 }
 0x374   :  { %v9245_v0 = vor.u32 %v11180_v51, %v9244_v40  ;;  %v9228_v49 = vld [vmem:[#allocation9 + $0x80] sm:$0xf]  ;;  %v11176_v7 = vld [vmem:[#allocation9 + $0x8c] sm:$0xf0]  ;;  %v9236_v45 = vld [vmem:[#allocation9 + $0x88] sm:$0xf] }
 0x375   :  { %4120 = vmatpush.bf16.msra.mxu1 %v9265_v47  ;;  %4146 = vmatpush.bf16.msrb.mxu3 %v9273_v41  ;;  %v12625_v42 = vadd.f32 %v3345_v28, %v3344_v52  ;;  %v9285_v41 = vor.u32 %v11189_v20, %v9284_v30  ;;  %v9182_v52 = vld [vmem:[#allocation9 + $0x30] sm:$0xf0]  ;;  %v11163_v28 = vld [vmem:[#allocation9 + $0x2c] sm:$0xf]  ;;  %v9212_v30 = vld [vmem:[#allocation9 + $0x60] sm:$0xf] }
 0x376   :  { %v9185_v48 = vor.u32 %v11162_v10, %v9182_v52  ;;  %v11172_v20 = vld [vmem:[#allocation9 + $0x6c] sm:$0xf0]  ;;  %v9196_v61 = vld [vmem:[#allocation9 + $0x40] sm:$0xf]  ;;  %v9537_v21 = vld [vmem:[#allocation11 + $0x1f0] sm:$0xf0] }
 0x377   :  { %11672 = vtanh.f32 %v12625_v42  ;;  %v11168_v55 = vld [vmem:[#allocation9 + $0x4c] sm:$0xf0]  ;;  %v9164_v52 = vld [vmem:[#allocation9] sm:$0xf] }
 0x378   :  { %v9535_v51 = vld [vmem:[#allocation11 + $0x1e0] sm:$0xf] }
 0x379   :  { %4121 = vmatpush.bf16.msra.mxu1 %v9249_v37  ;;  %4147 = vmatpush.bf16.msrb.mxu3 %v9257_v27  ;;  %v9190_v37 = vld [vmem:[#allocation9 + $0x38] sm:$0xf0]  ;;  %v9269_v27 = vor.u32 %v11185_v32, %v9268_v24  ;;  %v11165_v24 = vld [vmem:[#allocation9 + $0x34] sm:$0xf0] }
 0x37a   :  { %v9193_v11 = vor.u32 %v11163_v28, %v9190_v37  ;;  %v11160_v28 = vld [vmem:[#allocation9 + $0xc] sm:$0xf0]  ;;  %v9172_v37 = vld [vmem:[#allocation9 + $0x8] sm:$0xf] }
 0x37d   :  { %4122 = vmatpush.bf16.msra.mxu1 %v9233_v15  ;;  %4148 = vmatpush.bf16.msrb.mxu3 %v9241_v1  ;;  %v11673_v58 = vpop.eup %11672  ;;  %v11159_v15 = vld [vmem:[#allocation9 + $0xc] sm:$0xf]  ;;  %v9174_v1 = vld [vmem:[#allocation9 + $0x18] sm:$0xf0] }
 0x37e   :  { %v3348_v47 = vmul.f32 %v11673_v58, %v3342_v17  ;;  %v9177_v25 = vor.u32 %v11159_v15, %v9174_v1  ;;  %v11173_v58 = vld [vmem:[#allocation9 + $0x74] sm:$0xf0]  ;;  %v9213_v17 = vor.u32 %v11172_v20, %v9212_v30  ;;  %v11248_v15 = vld [vmem:[#allocation11 + $0x1cc] sm:$0xf0]  ;;  %v11246_v1 = vld [vmem:[#allocation11 + $0x1c4] sm:$0xf] }
 0x37f   :  { %v9221_v29 = vor.u32 %v11173_v58, %v9220_v6  ;;  %v11238_v30 = vld [vmem:[#allocation11 + $0x184] sm:$0xf]  ;;  %v9489_v58 = vld [vmem:[#allocation11 + $0x190] sm:$0xf0] }
 0x380   :  { %3811 = vmatmul.bf16.vlgmr.msrb.gmra.mxu1 %v12611_v19  ;;  %3837 = vmatmul.bf16.vlgmr.msra.gmra.mxu3 %v12611_v19  ;;  %v12641_v22 = vpack.c.bf16 %v3348_v47, %v3348_v47  ;;  %v9261_v19 = vor.u32 %v11184_v43, %v9260_v50  ;;  %v9204_v47 = vld [vmem:[#allocation9 + $0x48] sm:$0xf]  ;;  %v9180_v43 = vld [vmem:[#allocation9 + $0x20] sm:$0xf] }
 0x381   :  { %4123 = vmatpush.bf16.msra.mxu1 %v9217_v31  ;;  %4149 = vmatpush.bf16.msrb.mxu3 %v9225_v36  ;;  %v9229_v31 = vor.u32 %v11176_v7, %v9228_v49  ;;  %v9237_v36 = vor.u32 %v11177_v63, %v9236_v45  ;;  %v11244_v49 = vld [vmem:[#allocation11 + $0x1ac] sm:$0xf0]  ;;  %v11242_v7 = vld [vmem:[#allocation11 + $0x1a4] sm:$0xf]  ;;  %v9505_v45 = vld [vmem:[#allocation11 + $0x1b0] sm:$0xf0] }
 0x382   :  { %3746 = vmatmul.bf16.vlgmr.msrb.gmra.mxu0 %v12641_v22  ;;  %3772 = vmatmul.bf16.vlgmr.msrb.gmra.mxu2 %v12641_v22  ;;  %v9508_v63 = vor.u32 %v11242_v7, %v9505_v45  ;;  %v9375_v7 = vld [vmem:[#allocation11 + $0xa0] sm:$0xf]  ;;  %v11210_v45 = vld [vmem:[#allocation11 + $0xa4] sm:$0xf] }
 0x383   :  { %4106 = vmatpush.bf16.msrb.mxu0 %v9277_v9  ;;  %4132 = vmatpush.bf16.msrb.mxu2 %v9285_v41  ;;  %v11169_v9 = vld [vmem:[#allocation9 + $0x54] sm:$0xf0]  ;;  %v9197_v41 = vor.u32 %v11168_v55, %v9196_v61  ;;  %v11236_v61 = vld [vmem:[#allocation11 + $0x16c] sm:$0xf0]  ;;  %v11234_v55 = vld [vmem:[#allocation11 + $0x164] sm:$0xf] }
 0x384   :  { %v9205_v50 = vor.u32 %v11169_v9, %v9204_v47  ;;  %v9473_v9 = vld [vmem:[#allocation11 + $0x170] sm:$0xf0] }
 0x385   :  { %4124 = vmatpush.bf16.msra.mxu1 %v9201_v16  ;;  %4150 = vmatpush.bf16.msrb.mxu3 %v9209_v26  ;;  %v11164_v16 = vld [vmem:[#allocation9 + $0x2c] sm:$0xf0]  ;;  %v9188_v26 = vld [vmem:[#allocation9 + $0x28] sm:$0xf] }
 0x386   :  { %v9181_v32 = vor.u32 %v11164_v16, %v9180_v43  ;;  %v9189_v10 = vor.u32 %v11165_v24, %v9188_v26  ;;  %v9407_v43 = vld [vmem:[#allocation11 + $0xe0] sm:$0xf]  ;;  %v11220_v16 = vld [vmem:[#allocation11 + $0xec] sm:$0xf0]  ;;  %v11218_v26 = vld [vmem:[#allocation11 + $0xe4] sm:$0xf] }
 0x387   :  { %4107 = vmatpush.bf16.msrb.mxu0 %v9261_v19  ;;  %4133 = vmatpush.bf16.msrb.mxu2 %v9269_v27  ;;  %v11161_v19 = vld [vmem:[#allocation9 + $0x14] sm:$0xf0]  ;;  %v9165_v27 = vor.u32 %v11160_v28, %v9164_v52  ;;  %v9455_v52 = vld [vmem:[#allocation11 + $0x140] sm:$0xf]  ;;  %v11232_v28 = vld [vmem:[#allocation11 + $0x14c] sm:$0xf0] }
 0x388   :  { %v9173_v40 = vor.u32 %v11161_v19, %v9172_v37  ;;  %v9456_v19 = vor.u32 %v11232_v28, %v9455_v52  ;;  %v11206_v52 = vld [vmem:[#allocation11 + $0x84] sm:$0xf] }
 0x389   :  { %4125 = vmatpush.bf16.msra.mxu1 %v9185_v48  ;;  %4151 = vmatpush.bf16.msrb.mxu3 %v9193_v11  ;;  %v11252_v48 = vld [vmem:[#allocation11 + $0x1ec] sm:$0xf0]  ;;  %v11250_v11 = vld [vmem:[#allocation11 + $0x1e4] sm:$0xf] }
 0x38a   :  { %v9536_v33 = vor.u32 %v11252_v48, %v9535_v51  ;;  %v9540_v57 = vor.u32 %v11250_v11, %v9537_v21  ;;  %v9391_v48 = vld [vmem:[#allocation11 + $0xc0] sm:$0xf]  ;;  %v11216_v11 = vld [vmem:[#allocation11 + $0xcc] sm:$0xf0] }
 0x38b   :  { %4108 = vmatpush.bf16.msrb.mxu0 %v9245_v0  ;;  %4134 = vmatpush.bf16.msrb.mxu2 %v9253_v62  ;;  %v9520_v0 = vor.u32 %v11248_v15, %v9519_v34  ;;  %v9521_v62 = vld [vmem:[#allocation11 + $0x1d0] sm:$0xf0]  ;;  %v9392_v21 = vor.u32 %v11216_v11, %v9391_v48  ;;  %v9439_v34 = vld [vmem:[#allocation11 + $0x120] sm:$0xf]  ;;  %v11228_v15 = vld [vmem:[#allocation11 + $0x12c] sm:$0xf0] }
 0x38c   :  { %v11247_v48 = vld [vmem:[#allocation11 + $0x1cc] sm:$0xf] }
 0x38d   :  { %4126 = vmatpush.bf16.msra.mxu1 %v9169_v59  ;;  %4152 = vmatpush.bf16.msrb.mxu3 %v9177_v25  ;;  %v9524_v59 = vor.u32 %v11246_v1, %v9521_v62  ;;  %v9503_v25 = vld [vmem:[#allocation11 + $0x1a0] sm:$0xf]  ;;  %v11226_v62 = vld [vmem:[#allocation11 + $0x124] sm:$0xf] }
 0x38f   :  { %4109 = vmatpush.bf16.msrb.mxu0 %v9229_v31  ;;  %4135 = vmatpush.bf16.msrb.mxu2 %v9237_v36  ;;  %v9487_v31 = vld [vmem:[#allocation11 + $0x180] sm:$0xf]  ;;  %v11240_v36 = vld [vmem:[#allocation11 + $0x18c] sm:$0xf0] }
 0x390   :  { %4127 = vmatmul.bf16.vlgmr.msra.gmra.mxu1 %v12641_v22  ;;  %4153 = vmatmul.bf16.vlgmr.msrb.gmra.mxu3 %v12641_v22  ;;  %v9488_v6 = vor.u32 %v11240_v36, %v9487_v31  ;;  %v9377_v36 = vld [vmem:[#allocation11 + $0xb0] sm:$0xf0] }
 0x391   :  { %4628 = vmatpush.bf16.msrb.mxu1 %v9536_v33  ;;  %4654 = vmatpush.bf16.msra.mxu3 %v9540_v57  ;;  %v11214_v33 = vld [vmem:[#allocation11 + $0xc4] sm:$0xf]  ;;  %v9393_v57 = vld [vmem:[#allocation11 + $0xd0] sm:$0xf0] }
 0x392   :  { %3798 = vmatmul.bf16.vlgmr.msra.gmra.mxu0 %v12641_v22  ;;  %3824 = vmatmul.bf16.vlgmr.msra.gmra.mxu2 %v12641_v22  ;;  %v9396_v1 = vor.u32 %v11214_v33, %v9393_v57  ;;  %v9529_v57 = vld [vmem:[#allocation11 + $0x1d8] sm:$0xf0] }
 0x393   :  { %4110 = vmatpush.bf16.msrb.mxu0 %v9213_v17  ;;  %4136 = vmatpush.bf16.msrb.mxu2 %v9221_v29  ;;  %v9492_v17 = vor.u32 %v11238_v30, %v9489_v58  ;;  %v9471_v29 = vld [vmem:[#allocation11 + $0x160] sm:$0xf]  ;;  %v9380_v58 = vor.u32 %v11210_v45, %v9377_v36  ;;  %v9511_v45 = vld [vmem:[#allocation11 + $0x1a8] sm:$0xf] }
 0x394   :  { %v9472_v47 = vor.u32 %v11236_v61, %v9471_v29  ;;  %v9423_v30 = vld [vmem:[#allocation11 + $0x100] sm:$0xf]  ;;  %v11222_v29 = vld [vmem:[#allocation11 + $0x104] sm:$0xf]  ;;  %v9425_v61 = vld [vmem:[#allocation11 + $0x110] sm:$0xf0] }
 0x395   :  { %4629 = vmatpush.bf16.msrb.mxu1 %v9520_v0  ;;  %4655 = vmatpush.bf16.msra.mxu3 %v9524_v59  ;;  %v9440_v0 = vor.u32 %v11228_v15, %v9439_v34  ;;  %v9441_v59 = vld [vmem:[#allocation11 + $0x130] sm:$0xf0]  ;;  %v9532_v34 = vor.u32 %v11247_v48, %v9529_v57  ;;  %v9343_v15 = vld [vmem:[#allocation11 + $0x60] sm:$0xf] }
 0x397   :  { %4111 = vmatpush.bf16.msrb.mxu0 %v9197_v41  ;;  %4137 = vmatpush.bf16.msrb.mxu2 %v9205_v50  ;;  %v9476_v41 = vor.u32 %v11234_v55, %v9473_v9  ;;  %v9543_v55 = vld [vmem:[#allocation11 + $0x1e8] sm:$0xf]  ;;  %v11253_v9 = vld [vmem:[#allocation11 + $0x1f4] sm:$0xf0] }
 0x399   :  { %4656 = vmatpush.bf16.msra.mxu3 %v9508_v63 }
 0x39b   :  { %4112 = vmatpush.bf16.msrb.mxu0 %v9181_v32  ;;  %4138 = vmatpush.bf16.msrb.mxu2 %v9189_v10  ;;  %v9408_v32 = vor.u32 %v11220_v16, %v9407_v43  ;;  %v9409_v10 = vld [vmem:[#allocation11 + $0xf0] sm:$0xf0]  ;;  %v9545_v43 = vld [vmem:[#allocation11 + $0x1f8] sm:$0xf0] }
 0x39c   :  { %v9412_v37 = vor.u32 %v11218_v26, %v9409_v10  ;;  %v9544_v26 = vor.u32 %v11253_v9, %v9543_v55  ;;  %v11208_v10 = vld [vmem:[#allocation11 + $0x8c] sm:$0xf0]  ;;  %v11198_v55 = vld [vmem:[#allocation11 + $0x44] sm:$0xf] }
 0x39d   :  { %4657 = vmatpush.bf16.msra.mxu3 %v9492_v17 }
 0x39f   :  { %4113 = vmatpush.bf16.msrb.mxu0 %v9165_v27  ;;  %4139 = vmatpush.bf16.msrb.mxu2 %v9173_v40  ;;  %v11230_v27 = vld [vmem:[#allocation11 + $0x144] sm:$0xf]  ;;  %v9457_v40 = vld [vmem:[#allocation11 + $0x150] sm:$0xf0] }
 0x3a0   :  { %v9460_v51 = vor.u32 %v11230_v27, %v9457_v40  ;;  %v9527_v40 = vld [vmem:[#allocation11 + $0x1c8] sm:$0xf] }
 0x3a1   :  { %4658 = vmatpush.bf16.msra.mxu3 %v9476_v41  ;;  %v11251_v41 = vld [vmem:[#allocation11 + $0x1ec] sm:$0xf] }
 0x3a2   :  { %4114 = vmatmul.bf16.vlgmr.msrb.gmra.mxu0 %v12641_v22  ;;  %4140 = vmatmul.bf16.vlgmr.msrb.gmra.mxu2 %v12641_v22  ;;  %v9504_v22 = vor.u32 %v11244_v49, %v9503_v25  ;;  %v9444_v49 = vor.u32 %v11226_v62, %v9441_v59 }
 0x3a3   :  { %4615 = vmatpush.bf16.msra.mxu0 %v9408_v32  ;;  %4641 = vmatpush.bf16.msra.mxu2 %v9412_v37  ;;  %v9359_v32 = vld [vmem:[#allocation11 + $0x80] sm:$0xf] }
 0x3a4   :  { %4630 = vmatpush.bf16.msrb.mxu1 %v9504_v22  ;;  %v11212_v22 = vld [vmem:[#allocation11 + $0xac] sm:$0xf0]  ;;  %v9360_v37 = vor.u32 %v11208_v10, %v9359_v32 }
 0x3a5   :  { %4659 = vmatpush.bf16.msra.mxu3 %v9460_v51  ;;  %v9376_v31 = vor.u32 %v11212_v22, %v9375_v7  ;;  %v11249_v51 = vld [vmem:[#allocation11 + $0x1d4] sm:$0xf0] }
 0x3a7   :  { %4616 = vmatpush.bf16.msra.mxu0 %v9392_v21  ;;  %4642 = vmatpush.bf16.msra.mxu2 %v9396_v1  ;;  %v9528_v21 = vor.u32 %v11249_v51, %v9527_v40  ;;  %v11204_v1 = vld [vmem:[#allocation11 + $0x6c] sm:$0xf0]  ;;  %v11194_v40 = vld [vmem:[#allocation11 + $0x24] sm:$0xf] }
 0x3a8   :  { %4631 = vmatpush.bf16.msrb.mxu1 %v9488_v6  ;;  %v11224_v6 = vld [vmem:[#allocation11 + $0x10c] sm:$0xf0] }
 0x3a9   :  { %4660 = vmatpush.bf16.msra.mxu3 %v9444_v49  ;;  %v9424_v17 = vor.u32 %v11224_v6, %v9423_v30  ;;  %v9345_v49 = vld [vmem:[#allocation11 + $0x70] sm:$0xf0]  ;;  %v9513_v6 = vld [vmem:[#allocation11 + $0x1b8] sm:$0xf0] }
 0x3ab   :  { %4617 = vmatpush.bf16.msra.mxu0 %v9376_v31  ;;  %4643 = vmatpush.bf16.msra.mxu2 %v9380_v58  ;;  %v11243_v31 = vld [vmem:[#allocation11 + $0x1ac] sm:$0xf] }
 0x3ac   :  { %4632 = vmatpush.bf16.msrb.mxu1 %v9472_v47  ;;  %v9428_v47 = vor.u32 %v11222_v29, %v9425_v61  ;;  %v9327_v29 = vld [vmem:[#allocation11 + $0x40] sm:$0xf]  ;;  %v11200_v61 = vld [vmem:[#allocation11 + $0x4c] sm:$0xf0] }
 0x3ad   :  { %v9328_v9 = vor.u32 %v11200_v61, %v9327_v29  ;;  %v11219_v29 = vld [vmem:[#allocation11 + $0xec] sm:$0xf] }
 0x3ae   :  { %4661 = vmatpush.bf16.msra.mxu3 %v9428_v47 }
 0x3af   :  { %4618 = vmatpush.bf16.msra.mxu0 %v9360_v37 }
 0x3b0   :  { %4633 = vmatpush.bf16.msrb.mxu1 %v9456_v19  ;;  %v9361_v19 = vld [vmem:[#allocation11 + $0x90] sm:$0xf0] }
 0x3b1   :  { %v9364_v27 = vor.u32 %v11206_v52, %v9361_v19  ;;  %v9311_v19 = vld [vmem:[#allocation11 + $0x20] sm:$0xf] }
 0x3b3   :  { %4644 = vmatpush.bf16.msra.mxu2 %v9364_v27  ;;  %v11196_v27 = vld [vmem:[#allocation11 + $0x2c] sm:$0xf0] }
 0x3b4   :  { %4634 = vmatpush.bf16.msrb.mxu1 %v9440_v0  ;;  %v11202_v0 = vld [vmem:[#allocation11 + $0x64] sm:$0xf]  ;;  %v9312_v48 = vor.u32 %v11196_v27, %v9311_v19  ;;  %v9399_v27 = vld [vmem:[#allocation11 + $0xc8] sm:$0xf] }
 0x3b5   :  { %v9348_v22 = vor.u32 %v11202_v0, %v9345_v49  ;;  %v11237_v0 = vld [vmem:[#allocation11 + $0x174] sm:$0xf0] }
 0x3b7   :  { %4645 = vmatpush.bf16.msra.mxu2 %v9348_v22  ;;  %v9295_v22 = vld [vmem:[#allocation11] sm:$0xf] }
 0x3b8   :  { %4635 = vmatpush.bf16.msrb.mxu1 %v9424_v17  ;;  %v9516_v17 = vor.u32 %v11243_v31, %v9513_v6  ;;  %v11190_v31 = vld [vmem:[#allocation11 + $0x4] sm:$0xf] }
 0x3bc   :  { %4680 = vmatpush.bf16.msra.mxu1 %v9544_v26  ;;  %v11241_v26 = vld [vmem:[#allocation11 + $0x194] sm:$0xf0] }
 0x3c0   :  { %4681 = vmatpush.bf16.msra.mxu1 %v9528_v21 }
 0x3ed   :  { %v12651_v20 = vpop.f32.mrf.mxu1 }
 0x3f3   :  { %v12653_v50 = vpop.f32.mrf.mxu3 }
 0x3f5   :  { %v3762_v24 = vpop.f32.mrf.mxu1 }
 0x3f6   :  { %v9548_v24 = vor.u32 %v11251_v41, %v9545_v43  ;;  %v9329_v41 = vld [vmem:[#allocation11 + $0x50] sm:$0xf0] }
 0x3f7   :  { %v9332_v43 = vor.u32 %v11198_v55, %v9329_v41  ;;  %v9463_v41 = vld [vmem:[#allocation11 + $0x148] sm:$0xf] }
 0x3f8   :  { %4706 = vmatpush.bf16.msrb.mxu3 %v9548_v24  ;;  %v11239_v24 = vld [vmem:[#allocation11 + $0x18c] sm:$0xf] }
 0x3f9   :  { %4646 = vmatpush.bf16.msra.mxu2 %v9332_v43 }
 0x3fb   :  { %v3788_v25 = vpop.f32.mrf.mxu3 }
 0x3fc   :  { %v9344_v25 = vor.u32 %v11204_v1, %v9343_v15  ;;  %4707 = vmatpush.bf16.msrb.mxu3 %v9532_v34  ;;  %v9479_v1 = vld [vmem:[#allocation11 + $0x168] sm:$0xf] }
 0x3fd   :  { %v12655_v63 = vpop.f32.mrf.mxu1 }
 0x3fe   :  { %4619 = vmatpush.bf16.msra.mxu0 %v9344_v25  ;;  %v9481_v25 = vld [vmem:[#allocation11 + $0x178] sm:$0xf0] }
 0x3ff   :  { %v3747_v16 = vpop.f32.mrf.mxu0 }
 0x400   :  { %v3748_v28 = vadd.f32 %v3747_v16, %v12196_v46  ;;  %4708 = vmatpush.bf16.msrb.mxu3 %v9516_v17  ;;  %v9495_v16 = vld [vmem:[#allocation11 + $0x188] sm:$0xf]  ;;  %v11221_v17 = vld [vmem:[#allocation11 + $0xf4] sm:$0xf0] }
 0x401   :  { %v9496_v52 = vor.u32 %v11241_v26, %v9495_v16  ;;  %v11233_v26 = vld [vmem:[#allocation11 + $0x154] sm:$0xf0] }
 0x402   :  { %v3761_v11 = vadd.f32 %v12651_v20, %v3748_v28  ;;  %v11245_v20 = vld [vmem:[#allocation11 + $0x1b4] sm:$0xf0]  ;;  %4620 = vmatpush.bf16.msra.mxu0 %v9328_v9  ;;  %v9497_v28 = vld [vmem:[#allocation11 + $0x198] sm:$0xf0] }
 0x403   :  { %v12659_v33 = vpop.f32.mrf.mxu3  ;;  %v9512_v30 = vor.u32 %v11245_v20, %v9511_v45  ;;  %v9500_v37 = vor.u32 %v11239_v24, %v9497_v28  ;;  %v11192_v20 = vld [vmem:[#allocation11 + $0xc] sm:$0xf0]  ;;  %v9417_v9 = vld [vmem:[#allocation11 + $0xf8] sm:$0xf0]  ;;  %v11231_v24 = vld [vmem:[#allocation11 + $0x14c] sm:$0xf] }
 0x404   :  { %v9159_v62 = vmul.f32 -1.442695, %v3761_v11  ;;  %v9313_v11 = vld [vmem:[#allocation11 + $0x30] sm:$0xf0]  ;;  %v9420_v16 = vor.u32 %v11219_v29, %v9417_v9 }
 0x405   :  { %v3814_v59 = vpop.f32.mrf.mxu1  ;;  %v3773_v7 = vpop.f32.mrf.mxu2  ;;  %4682 = vmatpush.bf16.msra.mxu1 %v9512_v30  ;;  %4709 = vmatpush.bf16.msrb.mxu3 %v9500_v37  ;;  %v9316_v15 = vor.u32 %v11194_v40, %v9313_v11  ;;  %v9415_v30 = vld [vmem:[#allocation11 + $0xe8] sm:$0xf]  ;;  %v11217_v40 = vld [vmem:[#allocation11 + $0xd4] sm:$0xf0] }
 0x406   :  { %11674 = vpow2.f32 %v9159_v62  ;;  %v3774_v36 = vadd.f32 %v3773_v7, %v12200_v18  ;;  %4621 = vmatpush.bf16.msra.mxu0 %v9312_v48  ;;  %v9480_v62 = vor.u32 %v11237_v0, %v9479_v1  ;;  %v11235_v59 = vld [vmem:[#allocation11 + $0x16c] sm:$0xf]  ;;  %v9464_v48 = vor.u32 %v11233_v26, %v9463_v41 }
 0x407   :  { %v3749_v58 = vpop.f32.mrf.mxu0  ;;  %4647 = vmatpush.bf16.msra.mxu2 %v9316_v15  ;;  %v9484_v45 = vor.u32 %v11235_v59, %v9481_v25  ;;  %v11227_v59 = vld [vmem:[#allocation11 + $0x12c] sm:$0xf] }
 0x408   :  { %v3787_v47 = vadd.f32 %v12653_v50, %v3774_v36  ;;  %v9297_v36 = vld [vmem:[#allocation11 + $0x10] sm:$0xf0] }
 0x409   :  { %4683 = vmatpush.bf16.msra.mxu1 %v9496_v52  ;;  %4710 = vmatpush.bf16.msrb.mxu3 %v9484_v45  ;;  %v9300_v58 = vor.u32 %v11190_v31, %v9297_v36  ;;  %v9383_v45 = vld [vmem:[#allocation11 + $0xa8] sm:$0xf]  ;;  %v11211_v36 = vld [vmem:[#allocation11 + $0xac] sm:$0xf] }
 0x40a   :  { %v9160_v32 = vmul.f32 -1.442695, %v3787_v47  ;;  %v9416_v47 = vor.u32 %v11221_v17, %v9415_v30  ;;  %v9385_v30 = vld [vmem:[#allocation11 + $0xb8] sm:$0xf0] }
 0x40b   :  { %v3840_v10 = vpop.f32.mrf.mxu3  ;;  %4648 = vmatpush.bf16.msra.mxu2 %v9300_v58  ;;  %v9388_v26 = vor.u32 %v11211_v36, %v9385_v30 }
 0x40c   :  { %v11675_v51 = vpop.eup %11674  ;;  %11676 = vpow2.f32 %v9160_v32  ;;  %v9465_v32 = vld [vmem:[#allocation11 + $0x158] sm:$0xf0] }
 0x40d   :  { %v4128_v50 = vpop.f32.mrf.mxu1  ;;  %v12663_v21 = vadd.f32 1.0, %v11675_v51  ;;  %v3775_v34 = vpop.f32.mrf.mxu2  ;;  %4684 = vmatpush.bf16.msra.mxu1 %v9480_v62  ;;  %v11215_v51 = vld [vmem:[#allocation11 + $0xcc] sm:$0xf]  ;;  %v9468_v11 = vor.u32 %v11231_v24, %v9465_v32  ;;  %v11229_v62 = vld [vmem:[#allocation11 + $0x134] sm:$0xf0] }
 0x40e   :  { %v4159_v57 = vadd.f32 %v4128_v50, %v12112_v4  ;;  %v9296_v4 = vor.u32 %v11192_v20, %v9295_v22  ;;  %v9447_v34 = vld [vmem:[#allocation11 + $0x128] sm:$0xf]  ;;  %v9449_v22 = vld [vmem:[#allocation11 + $0x138] sm:$0xf0]  ;;  %v11213_v20 = vld [vmem:[#allocation11 + $0xb4] sm:$0xf0] }
 0x40f   :  { %11678 = vrcp.f32 %v12663_v21  ;;  %v3799_v7 = vpop.f32.mrf.mxu0  ;;  %4693 = vmatpush.bf16.msrb.mxu2 %v9420_v16  ;;  %4711 = vmatpush.bf16.msrb.mxu3 %v9468_v11  ;;  %v9452_v29 = vor.u32 %v11227_v59, %v9449_v22  ;;  %v9433_v32 = vld [vmem:[#allocation11 + $0x118] sm:$0xf0]  ;;  %v11209_v11 = vld [vmem:[#allocation11 + $0x94] sm:$0xf0]  ;;  %vm3852_vm7 = vweird.f32 %v12663_v21 }
 0x410   :  { %v9291_v49 = vmul.f32 -1.442695, %v4159_v57  ;;  %4622 = vmatpush.bf16.msra.mxu0 %v9296_v4  ;;  %v9401_v57 = vld [vmem:[#allocation11 + $0xd8] sm:$0xf0]  ;;  %v3800_v31 = vadd.f32 %v3799_v7, %v12226_v5  ;;  %v11225_v7 = vld [vmem:[#allocation11 + $0x114] sm:$0xf0] }
 0x411   :  { %4685 = vmatpush.bf16.msra.mxu1 %v9464_v48  ;;  %v9404_v25 = vor.u32 %v11215_v51, %v9401_v57  ;;  %v9367_v51 = vld [vmem:[#allocation11 + $0x88] sm:$0xf]  ;;  %v11207_v57 = vld [vmem:[#allocation11 + $0x8c] sm:$0xf] }
 0x412   :  { %v11677_v6 = vpop.eup %11676  ;;  %11680 = vpow2.f32 %v9291_v49  ;;  %v9448_v49 = vor.u32 %v11229_v62, %v9447_v34  ;;  %v9369_v34 = vld [vmem:[#allocation11 + $0x98] sm:$0xf0] }
 0x413   :  { %v12667_v61 = vadd.f32 1.0, %v11677_v6  ;;  %v4154_v55 = vpop.f32.mrf.mxu3  ;;  %4694 = vmatpush.bf16.msrb.mxu2 %v9404_v25  ;;  %4712 = vmatpush.bf16.msrb.mxu3 %v9452_v29  ;;  %v9368_v25 = vor.u32 %v11209_v11, %v9367_v51  ;;  %v9321_v11 = vld [vmem:[#allocation11 + $0x38] sm:$0xf0] }
 0x414   :  { %4667 = vmatpush.bf16.msrb.mxu0 %v9416_v47  ;;  %v4161_v37 = vadd.f32 %v4154_v55, %v12099_v13  ;;  %v9400_v13 = vor.u32 %v11217_v40, %v9399_v27  ;;  %v9384_v55 = vor.u32 %v11213_v20, %v9383_v45  ;;  %v9431_v47 = vld [vmem:[#allocation11 + $0x108] sm:$0xf] }
 0x415   :  { %v4130_v43 = vpop.f32.mrf.mxu1  ;;  %v12669_v10 = vpop.eup %11678  ;;  %11682 = vrcp.f32 %v12667_v61  ;;  %4686 = vmatpush.bf16.msra.mxu1 %v9448_v49  ;;  %v9432_v24 = vor.u32 %v11225_v7, %v9431_v47  ;;  %v3875_v27 = vand.u32 2147483647, %v12667_v61  ;;  %vm3871_vm8 = vweird.f32 %v12667_v61  ;;  %v9351_v20 = vld [vmem:[#allocation11 + $0x68] sm:$0xf]  ;;  %v11201_v7 = vld [vmem:[#allocation11 + $0x54] sm:$0xf0] }
 0x416   :  { %v3825_v52 = vpop.f32.mrf.mxu2  ;;  %v3848_v28 = vmul.f32 %v12669_v10, %v12663_v21  ;;  %v9292_v4 = vmul.f32 -1.442695, %v4161_v37  ;;  %v11223_v43 = vld [vmem:[#allocation11 + $0x10c] sm:$0xf]  ;;  %vm3853_vm5 = vweird.f32 %v12669_v10  ;;  %v9372_v49 = vor.u32 %v11207_v57, %v9369_v34 }
 0x417   :  { %v3826_v19 = vadd.f32 %v3825_v52, %v12218_v35  ;;  %v3801_v50 = vpop.f32.mrf.mxu0  ;;  %v9436_v37 = vor.u32 %v11223_v43, %v9433_v32  ;;  %4695 = vmatpush.bf16.msrb.mxu2 %v9388_v26  ;;  %vm12699_vm9 = vmor %vm3852_vm7, %vm3853_vm5  ;;  %vm3876_vm11 = vcmp.eq.f32.partialorder %v3875_v27, 8.507059e+37  ;;  %v11199_v43 = vld [vmem:[#allocation11 + $0x4c] sm:$0xf]  ;;  %v9337_v32 = vld [vmem:[#allocation11 + $0x58] sm:$0xf0] }
 0x418   :  { %v11681_v15 = vpop.eup %11680  ;;  %v3849_v1 = vsub.f32 1.0, %v3848_v28  ;;  %4668 = vmatpush.bf16.msrb.mxu0 %v9400_v13  ;;  %v3813_v28 = vadd.f32 %v12655_v63, %v3800_v31  ;;  %v11205_v31 = vld [vmem:[#allocation11 + $0x74] sm:$0xf0]  ;;  %v9319_v27 = vld [vmem:[#allocation11 + $0x28] sm:$0xf] }
 0x419   :  { %v3839_v0 = vadd.f32 %v12659_v33, %v3826_v19  ;;  %v12680_v58 = vadd.f32 1.0, %v11681_v15  ;;  %v3877_v19 = vand.u32 2147483648, %v12667_v61  ;;  %v3858_v15 = vand.u32 2147483648, %v12663_v21  ;;  %4687 = vmatpush.bf16.msra.mxu1 %v9432_v24  ;;  %4713 = vmatpush.bf16.msrb.mxu3 %v9436_v37 }
 0x41a   :  { %v3850_v41 = vmul.f32 %v12669_v10, %v3849_v1  ;;  %v9303_v1 = vld [vmem:[#allocation11 + $0x8] sm:$0xf] }
 0x41b   :  { %v12678_v6 = vpop.eup %11682  ;;  %v9161_v33 = vmul.f32 -1.442695, %v3839_v0  ;;  %v4156_v17 = vpop.f32.mrf.mxu3  ;;  %v3856_v0 = vand.u32 2147483647, %v12663_v21  ;;  %v3878_v13 = vor.u32 1.1754944e-38, %v3877_v19  ;;  %v3859_v36 = vor.u32 1.1754944e-38, %v3858_v15  ;;  %4696 = vmatpush.bf16.msrb.mxu2 %v9372_v49 }
 0x41c   :  { %v3867_v9 = vmul.f32 %v12678_v6, %v12667_v61  ;;  %4669 = vmatpush.bf16.msrb.mxu0 %v9384_v55  ;;  %vm3872_vm6 = vweird.f32 %v12678_v6  ;;  %v3851_v63 = vadd.f32 %v12669_v10, %v3850_v41  ;;  %v11203_v17 = vld [vmem:[#allocation11 + $0x6c] sm:$0xf]  ;;  %v9352_v55 = vor.u32 %v11205_v31, %v9351_v20  ;;  %v9335_v41 = vld [vmem:[#allocation11 + $0x48] sm:$0xf]  ;;  %v9305_v49 = vld [vmem:[#allocation11 + $0x18] sm:$0xf0] }
 0x41d   :  { %11684 = vpow2.f32 %v9161_v33  ;;  %vm3873_vm10 = vmor %vm3871_vm8, %vm3872_vm6  ;;  %vm3857_vm12 = vcmp.eq.f32.partialorder %v3856_v0, 8.507059e+37  ;;  %v9336_v37 = vor.u32 %v11201_v7, %v9335_v41  ;;  %v9340_v19 = vor.u32 %v11199_v43, %v9337_v32  ;;  %v11283_v41 = vld [vmem:[#allocation9 + $0xec] sm:$0xf] }
 0x41e   :  { %v3827_v16 = vpop.f32.mrf.mxu2  ;;  %v3868_v52 = vsub.f32 1.0, %v3867_v9  ;;  %11686 = vpow2.f32 %v9292_v4  ;;  %v3855_v22 = vsel %vm12699_vm9, %v12669_v10, %v3851_v63  ;;  %v9353_v10 = vld [vmem:[#allocation11 + $0x78] sm:$0xf0]  ;;  %vm4191_vm2 = vweird.f32 %v12680_v58 }
 0x41f   :  { %11688 = vrcp.f32 %v12680_v58  ;;  %v4115_v40 = vpop.f32.mrf.mxu0  ;;  %v3860_v29 = vsel %vm3857_vm12, %v3859_v36, %v3855_v22  ;;  %v9356_v24 = vor.u32 %v11203_v17, %v9353_v10  ;;  %v4197_v43 = vand.u32 2147483648, %v12680_v58 }
 0x420   :  { %v3869_v50 = vmul.f32 %v12678_v6, %v3868_v52  ;;  %v4158_v48 = vadd.f32 %v4115_v40, %v12088_v44  ;;  %11690 = vtanh.f32 %v3813_v28  ;;  %4670 = vmatpush.bf16.msrb.mxu0 %v9368_v25  ;;  %v11197_v40 = vld [vmem:[#allocation11 + $0x34] sm:$0xf0]  ;;  %v11191_v25 = vld [vmem:[#allocation11 + $0xc] sm:$0xf]  ;;  %v4195_v32 = vand.u32 2147483647, %v12680_v58 }
 0x421   :  { %4697 = vmatpush.bf16.msrb.mxu2 %v9356_v24  ;;  %v9320_v34 = vor.u32 %v11197_v40, %v9319_v27  ;;  %v9308_v36 = vor.u32 %v11191_v25, %v9305_v49  ;;  %v11278_v40 = vld [vmem:[#allocation9 + $0xc4] sm:$0xf]  ;;  %v9636_v25 = vld [vmem:[#allocation9 + $0xb0] sm:$0xf0]  ;;  %v11275_v49 = vld [vmem:[#allocation9 + $0xac] sm:$0xf] }
 0x422   :  { %v3870_v44 = vadd.f32 %v12678_v6, %v3869_v50  ;;  %v9290_v62 = vmul.f32 -1.442695, %v4158_v48  ;;  %v11195_v48 = vld [vmem:[#allocation11 + $0x2c] sm:$0xf]  ;;  %vm4196_vm6 = vcmp.eq.f32.partialorder %v4195_v32, 8.507059e+37 }
 0x423   :  { %v11685_v59 = vpop.eup %11684  ;;  %v9612_v32 = vld [vmem:[#allocation9 + $0x78] sm:$0xf0] }
 0x424   :  { %v11687_v61 = vpop.eup %11686  ;;  %v3874_v45 = vsel %vm3873_vm10, %v12678_v6, %v3870_v44  ;;  %v12711_v21 = vadd.f32 1.0, %v11685_v59  ;;  %11692 = vpow2.f32 %v9290_v62  ;;  %4671 = vmatpush.bf16.msrb.mxu0 %v9352_v55  ;;  %v9324_v44 = vor.u32 %v11195_v48, %v9321_v11  ;;  %v11193_v62 = vld [vmem:[#allocation11 + $0x14] sm:$0xf0]  ;;  %v9668_v55 = vld [vmem:[#allocation9 + $0xf0] sm:$0xf0] }
 0x425   :  { %v12713_v4 = vpop.eup %11688  ;;  %v3879_v30 = vsel %vm3876_vm11, %v3878_v13, %v3874_v45  ;;  %v12719_v26 = vadd.f32 1.0, %v11687_v61  ;;  %4698 = vmatpush.bf16.msrb.mxu2 %v9340_v19  ;;  %v9304_v45 = vor.u32 %v11193_v62, %v9303_v1 }
 0x426   :  { %11694 = vrcp.f32 %v12711_v21  ;;  %v4141_v33 = vpop.f32.mrf.mxu2  ;;  %v4187_v47 = vmul.f32 %v12713_v4, %v12680_v58  ;;  %v3901_v9 = vmul.f32 %v3879_v30, %v12576_v12  ;;  %v11691_v16 = vpop.eup %11690  ;;  %v3897_v13 = vand.u32 2147483648, %v12711_v21  ;;  %v11279_v58 = vld [vmem:[#allocation9 + $0xcc] sm:$0xf] }
 0x427   :  { %v4117_v6 = vpop.f32.mrf.mxu0  ;;  %v3902_v52 = vmul.f32 %v11691_v16, %v3860_v29  ;;  %11696 = vrcp.f32 %v12719_v26  ;;  %v3895_v22 = vand.u32 2147483647, %v12711_v21  ;;  %vm3891_vm14 = vweird.f32 %v12711_v21  ;;  %v9604_v16 = vld [vmem:[#allocation9 + $0x70] sm:$0xf0] }
 0x428   :  { %v4188_v50 = vsub.f32 1.0, %v4187_v47  ;;  %4672 = vmatpush.bf16.msrb.mxu0 %v9336_v37  ;;  %vm4192_vm15 = vweird.f32 %v12713_v4  ;;  %v4160_v17 = vadd.f32 %v4141_v33, %v12096_v8  ;;  %v3898_v29 = vor.u32 1.1754944e-38, %v3897_v13  ;;  %v11282_v6 = vld [vmem:[#allocation9 + $0xe4] sm:$0xf] }
 0x429   :  { %v12721_v63 = vadd.f32 %v3902_v52, %v3901_v9  ;;  %4699 = vmatpush.bf16.msrb.mxu2 %v9324_v44  ;;  %vm3896_vm1 = vcmp.eq.f32.partialorder %v3895_v22, 8.507059e+37  ;;  %vm12745_vm3 = vmor %vm4191_vm2, %vm4192_vm15  ;;  %v11274_v13 = vld [vmem:[#allocation9 + $0xa4] sm:$0xf]  ;;  %vm4211_vm10 = vweird.f32 %v12719_v26 }
 0x42a   :  { %v11693_v28 = vpop.eup %11692  ;;  %v4189_v59 = vmul.f32 %v12713_v4, %v4188_v50 }
 0x42b   :  { %v12723_v12 = vadd.f32 1.0, %v11693_v28  ;;  %v9671_v28 = vor.u32 %v11282_v6, %v9668_v55  ;;  %v11270_v6 = vld [vmem:[#allocation9 + $0x84] sm:$0xf] }
 0x42c   :  { %v11695_v51 = vpop.eup %11694  ;;  %4673 = vmatpush.bf16.msrb.mxu0 %v9320_v34  ;;  %v4190_v10 = vadd.f32 %v12713_v4, %v4189_v59  ;;  %v4198_v34 = vor.u32 1.1754944e-38, %v4197_v43 }
 0x42d   :  { %v3887_v57 = vmul.f32 %v11695_v51, %v12711_v21  ;;  %11698 = vrcp.f32 %v12723_v12  ;;  %vm3892_vm13 = vweird.f32 %v11695_v51  ;;  %v12732_v20 = vpop.eup %11696  ;;  %v9676_v21 = vld [vmem:[#allocation9 + $0xf8] sm:$0xf0]  ;;  %4700 = vmatpush.bf16.msrb.mxu2 %v9308_v36  ;;  %v4178_v37 = vand.u32 2147483648, %v12723_v12 }
 0x42e   :  { %v4143_v15 = vpop.f32.mrf.mxu2  ;;  %11700 = vtanh.f32 %v12721_v63  ;;  %vm3893_vm0 = vmor %vm3891_vm14, %vm3892_vm13  ;;  %v4207_v8 = vmul.f32 %v12732_v20, %v12719_v26  ;;  %v4194_v19 = vsel %vm12745_vm3, %v12713_v4, %v4190_v10  ;;  %v9679_v27 = vor.u32 %v11283_v41, %v9676_v21 }
 0x42f   :  { %v3888_v0 = vsub.f32 1.0, %v3887_v57  ;;  %11702 = vtanh.f32 %v4160_v17  ;;  %v4176_v48 = vand.u32 2147483647, %v12723_v12  ;;  %v9660_v57 = vld [vmem:[#allocation9 + $0xd8] sm:$0xf0]  ;;  %vm4172_vm5 = vweird.f32 %v12723_v12 }
 0x430   :  { %4674 = vmatpush.bf16.msrb.mxu0 %v9304_v45  ;;  %v4208_v15 = vsub.f32 1.0, %v4207_v8  ;;  %v4199_v44 = vsel %vm4196_vm6, %v4198_v34, %v4194_v19  ;;  %v9663_v59 = vor.u32 %v11279_v58, %v9660_v57  ;;  %v9639_v10 = vor.u32 %v11274_v13, %v9636_v25  ;;  %v9588_v57 = vld [vmem:[#allocation9 + $0x50] sm:$0xf0]  ;;  %v11263_v34 = vld [vmem:[#allocation9 + $0x4c] sm:$0xf] }
 0x431   :  { %v3889_v61 = vmul.f32 %v11695_v51, %v3888_v0  ;;  %v4179_v0 = vor.u32 1.1754944e-38, %v4178_v37  ;;  %vm4177_vm8 = vcmp.eq.f32.partialorder %v4176_v48, 8.507059e+37  ;;  %v4221_v36 = vmul.f32 %v4199_v44, %v12625_v42  ;;  %v11284_v37 = vld [vmem:[#allocation9 + $0xec] sm:$0xf0]  ;;  %v9658_v25 = vld [vmem:[#allocation9 + $0xc8] sm:$0xf] }
 0x432   :  { %v4209_v45 = vmul.f32 %v12732_v20, %v4208_v15  ;;  %vm4212_vm9 = vweird.f32 %v12732_v20  ;;  %v4215_v21 = vand.u32 2147483647, %v12719_v26  ;;  %v4217_v42 = vand.u32 2147483648, %v12719_v26  ;;  %v9596_v15 = vld [vmem:[#allocation9 + $0x58] sm:$0xf0] }
 0x433   :  { %v3890_v31 = vadd.f32 %v11695_v51, %v3889_v61  ;;  %v11699_v30 = vpop.eup %11698  ;;  %v9644_v61 = vld [vmem:[#allocation9 + $0xb8] sm:$0xf0]  ;;  %vm12776_vm11 = vmor %vm4211_vm10, %vm4212_vm9  ;;  %v11280_v44 = vld [vmem:[#allocation9 + $0xcc] sm:$0xf0]  ;;  %v9599_v13 = vor.u32 %v11263_v34, %v9596_v15 }
 0x434   :  { %v4168_v47 = vmul.f32 %v11699_v30, %v12723_v12  ;;  %v11701_v7 = vpop.eup %11700  ;;  %vm4173_vm4 = vweird.f32 %v11699_v30  ;;  %v4210_v41 = vadd.f32 %v12732_v20, %v4209_v45  ;;  %vm4216_vm12 = vcmp.eq.f32.partialorder %v4215_v21, 8.507059e+37  ;;  %v9580_v45 = vld [vmem:[#allocation9 + $0x38] sm:$0xf0] }
 0x435   :  { %v3894_v9 = vsel %vm3893_vm0, %v11695_v51, %v3890_v31  ;;  %v9652_v51 = vld [vmem:[#allocation9 + $0xd0] sm:$0xf0]  ;;  %vm12760_vm7 = vmor %vm4172_vm5, %vm4173_vm4  ;;  %v11703_v22 = vpop.eup %11702  ;;  %v4218_v26 = vor.u32 1.1754944e-38, %v4217_v42  ;;  %v9564_v21 = vld [vmem:[#allocation9 + $0x18] sm:$0xf0] }
 0x436   :  { %v3899_v33 = vsel %vm3896_vm1, %v3898_v29, %v3894_v9  ;;  %v4169_v24 = vsub.f32 1.0, %v4168_v47  ;;  %v9655_v62 = vor.u32 %v11278_v40, %v9652_v51  ;;  %v9647_v29 = vor.u32 %v11275_v49, %v9644_v61  ;;  %v11271_v47 = vld [vmem:[#allocation9 + $0x8c] sm:$0xf]  ;;  %v9628_v9 = vld [vmem:[#allocation9 + $0x98] sm:$0xf0] }
 0x437   :  { %v3905_v52 = vmul.f32 %v11701_v7, %v3899_v33  ;;  %v9631_v8 = vor.u32 %v11271_v47, %v9628_v9  ;;  %v11266_v33 = vld [vmem:[#allocation9 + $0x64] sm:$0xf]  ;;  %v9674_v40 = vld [vmem:[#allocation9 + $0xe8] sm:$0xf]  ;;  %v11285_v51 = vld [vmem:[#allocation9 + $0xf4] sm:$0xf0] }
 0x438   :  { %v4170_v50 = vmul.f32 %v11699_v30, %v4169_v24  ;;  %v11267_v24 = vld [vmem:[#allocation9 + $0x6c] sm:$0xf]  ;;  %v9607_v19 = vor.u32 %v11266_v33, %v9604_v16  ;;  %v9675_v4 = vor.u32 %v11285_v51, %v9674_v40  ;;  %v11258_v49 = vld [vmem:[#allocation9 + $0x24] sm:$0xf]  ;;  %v9572_v61 = vld [vmem:[#allocation9 + $0x30] sm:$0xf0] }
 0x439   :  { %v12755_v11 = vpack.c.bf16 %v3905_v52, %v3905_v52  ;;  %v4214_v52 = vsel %vm12776_vm11, %v12732_v20, %v4210_v41  ;;  %v11254_v47 = vld [vmem:[#allocation9 + $0x4] sm:$0xf]  ;;  %v9556_v9 = vld [vmem:[#allocation9 + $0x10] sm:$0xf0]  ;;  %v11255_v41 = vld [vmem:[#allocation9 + $0xc] sm:$0xf] }
 0x43a   :  { %v4171_v1 = vadd.f32 %v11699_v30, %v4170_v50  ;;  %v11262_v50 = vld [vmem:[#allocation9 + $0x44] sm:$0xf]  ;;  %v4219_v58 = vsel %vm4216_vm12, %v4218_v26, %v4214_v52  ;;  %v9618_v33 = vld [vmem:[#allocation9 + $0x80] sm:$0xf]  ;;  %v11272_v16 = vld [vmem:[#allocation9 + $0x8c] sm:$0xf0] }
 0x43b   :  { %4636 = vmatmul.bf16.vlgmr.msrb.gmra.mxu1 %v12755_v11  ;;  %4662 = vmatmul.bf16.vlgmr.msra.gmra.mxu3 %v12755_v11  ;;  %v9619_v52 = vor.u32 %v11272_v16, %v9618_v33  ;;  %v9877_v33 = vld [vmem:[#allocation11 + $0x180] sm:$0xf]  ;;  %v11336_v16 = vld [vmem:[#allocation11 + $0x18c] sm:$0xf0] }
 0x43c   :  { %4996 = vmatpush.bf16.msrb.mxu1 %v9671_v28  ;;  %5022 = vmatpush.bf16.msra.mxu3 %v9679_v27  ;;  %v4175_v12 = vsel %vm12760_vm7, %v11699_v30, %v4171_v1  ;;  %v9620_v30 = vld [vmem:[#allocation9 + $0x90] sm:$0xf0]  ;;  %v9666_v28 = vld [vmem:[#allocation9 + $0xe0] sm:$0xf]  ;;  %v9615_v27 = vor.u32 %v11267_v24, %v9612_v32  ;;  %v9626_v24 = vld [vmem:[#allocation9 + $0x88] sm:$0xf] }
 0x43d   :  { %v4180_v31 = vsel %vm4177_vm8, %v4179_v0, %v4175_v12  ;;  %v9623_v43 = vor.u32 %v11270_v6, %v9620_v30  ;;  %v9667_v20 = vor.u32 %v11284_v37, %v9666_v28  ;;  %v9650_v0 = vld [vmem:[#allocation9 + $0xc0] sm:$0xf]  ;;  %v11281_v12 = vld [vmem:[#allocation9 + $0xd4] sm:$0xf0]  ;;  %v9642_v6 = vld [vmem:[#allocation9 + $0xa8] sm:$0xf] }
 0x43e   :  { %v4222_v17 = vmul.f32 %v11703_v22, %v4180_v31  ;;  %v11259_v22 = vld [vmem:[#allocation9 + $0x2c] sm:$0xf]  ;;  %v9659_v31 = vor.u32 %v11281_v12, %v9658_v25  ;;  %v11277_v30 = vld [vmem:[#allocation9 + $0xb4] sm:$0xf0]  ;;  %v9602_v28 = vld [vmem:[#allocation9 + $0x60] sm:$0xf] }
 0x43f   :  { %v9643_v7 = vor.u32 %v11277_v30, %v9642_v6  ;;  %v11273_v32 = vld [vmem:[#allocation9 + $0x94] sm:$0xf0]  ;;  %v11268_v37 = vld [vmem:[#allocation9 + $0x6c] sm:$0xf0]  ;;  %v9562_v12 = vld [vmem:[#allocation9 + $0x8] sm:$0xf] }
 0x440   :  { %4997 = vmatpush.bf16.msrb.mxu1 %v9655_v62  ;;  %5023 = vmatpush.bf16.msra.mxu3 %v9663_v59  ;;  %v12769_v55 = vadd.f32 %v4222_v17, %v4221_v36  ;;  %v9591_v59 = vor.u32 %v11262_v50, %v9588_v57  ;;  %v9634_v36 = vld [vmem:[#allocation9 + $0xa0] sm:$0xf]  ;;  %v11276_v17 = vld [vmem:[#allocation9 + $0xac] sm:$0xf0]  ;;  %v9627_v26 = vor.u32 %v11273_v32, %v9626_v24  ;;  %v11265_v57 = vld [vmem:[#allocation9 + $0x54] sm:$0xf0] }
 0x441   :  { %v9635_v42 = vor.u32 %v11276_v17, %v9634_v36  ;;  %v9603_v40 = vor.u32 %v11268_v37, %v9602_v28  ;;  %v9586_v50 = vld [vmem:[#allocation9 + $0x40] sm:$0xf]  ;;  %v11256_v25 = vld [vmem:[#allocation9 + $0xc] sm:$0xf0]  ;;  %v9927_v17 = vld [vmem:[#allocation11 + $0x1f0] sm:$0xf0] }
 0x442   :  { %11704 = vtanh.f32 %v12769_v55  ;;  %v11344_v6 = vld [vmem:[#allocation11 + $0x1cc] sm:$0xf0]  ;;  %v11342_v30 = vld [vmem:[#allocation11 + $0x1c4] sm:$0xf]  ;;  %v9861_v37 = vld [vmem:[#allocation11 + $0x160] sm:$0xf] }
 0x443   :  { %v11334_v24 = vld [vmem:[#allocation11 + $0x184] sm:$0xf] }
 0x444   :  { %4998 = vmatpush.bf16.msrb.mxu1 %v9639_v10  ;;  %5024 = vmatpush.bf16.msra.mxu3 %v9647_v29  ;;  %v9575_v10 = vor.u32 %v11258_v49, %v9572_v61  ;;  %v9583_v29 = vor.u32 %v11259_v22, %v9580_v45  ;;  %v11257_v49 = vld [vmem:[#allocation9 + $0x14] sm:$0xf0]  ;;  %v9925_v45 = vld [vmem:[#allocation11 + $0x1e0] sm:$0xf] }
 0x445   :  { %v9563_v22 = vor.u32 %v11257_v49, %v9562_v12  ;;  %v9781_v49 = vld [vmem:[#allocation11 + $0xc0] sm:$0xf] }
 0x448   :  { %4999 = vmatpush.bf16.msrb.mxu1 %v9623_v43  ;;  %5025 = vmatpush.bf16.msra.mxu3 %v9631_v8  ;;  %v11705_v48 = vpop.eup %11704  ;;  %v9559_v43 = vor.u32 %v11254_v47, %v9556_v9  ;;  %v9567_v8 = vor.u32 %v11255_v41, %v9564_v21  ;;  %v9911_v9 = vld [vmem:[#allocation11 + $0x1d0] sm:$0xf0]  ;;  %v9893_v21 = vld [vmem:[#allocation11 + $0x1a0] sm:$0xf] }
 0x449   :  { %v4225_v1 = vmul.f32 %v11705_v48, %v4219_v58  ;;  %v11264_v48 = vld [vmem:[#allocation9 + $0x4c] sm:$0xf0]  ;;  %v9594_v58 = vld [vmem:[#allocation9 + $0x48] sm:$0xf]  ;;  %v9914_v41 = vor.u32 %v11342_v30, %v9911_v9  ;;  %v9765_v9 = vld [vmem:[#allocation11 + $0xa0] sm:$0xf] }
 0x44a   :  { %v9587_v34 = vor.u32 %v11264_v48, %v9586_v50  ;;  %v9595_v15 = vor.u32 %v11265_v57, %v9594_v58  ;;  %v9797_v58 = vld [vmem:[#allocation11 + $0xe0] sm:$0xf]  ;;  %v11316_v57 = vld [vmem:[#allocation11 + $0xec] sm:$0xf0] }
 0x44b   :  { %4688 = vmatmul.bf16.vlgmr.msra.gmra.mxu1 %v12755_v11  ;;  %4714 = vmatmul.bf16.vlgmr.msrb.gmra.mxu3 %v12755_v11  ;;  %v12785_v62 = vpack.c.bf16 %v4225_v1, %v4225_v1  ;;  %v9651_v11 = vor.u32 %v11280_v44, %v9650_v0  ;;  %v9570_v1 = vld [vmem:[#allocation9 + $0x20] sm:$0xf]  ;;  %v11261_v0 = vld [vmem:[#allocation9 + $0x34] sm:$0xf0] }
 0x44c   :  { %5000 = vmatpush.bf16.msrb.mxu1 %v9607_v19  ;;  %5026 = vmatpush.bf16.msra.mxu3 %v9615_v27  ;;  %v9610_v19 = vld [vmem:[#allocation9 + $0x68] sm:$0xf]  ;;  %v11269_v27 = vld [vmem:[#allocation9 + $0x74] sm:$0xf0] }
 0x44d   :  { %4623 = vmatmul.bf16.vlgmr.msra.gmra.mxu0 %v12785_v62  ;;  %4649 = vmatmul.bf16.vlgmr.msra.gmra.mxu2 %v12785_v62  ;;  %v9611_v51 = vor.u32 %v11269_v27, %v9610_v19  ;;  %v11332_v19 = vld [vmem:[#allocation11 + $0x16c] sm:$0xf0]  ;;  %v11330_v27 = vld [vmem:[#allocation11 + $0x164] sm:$0xf] }
 0x44e   :  { %4983 = vmatpush.bf16.msra.mxu0 %v9667_v20  ;;  %5009 = vmatpush.bf16.msra.mxu2 %v9675_v4  ;;  %v11260_v20 = vld [vmem:[#allocation9 + $0x2c] sm:$0xf0]  ;;  %v9578_v4 = vld [vmem:[#allocation9 + $0x28] sm:$0xf] }
 0x44f   :  { %v9571_v44 = vor.u32 %v11260_v20, %v9570_v1  ;;  %v9798_v1 = vor.u32 %v11316_v57, %v9797_v58  ;;  %v9799_v20 = vld [vmem:[#allocation11 + $0xf0] sm:$0xf0]  ;;  %v9749_v58 = vld [vmem:[#allocation11 + $0x80] sm:$0xf]  ;;  %v11304_v57 = vld [vmem:[#allocation11 + $0x8c] sm:$0xf0] }
 0x450   :  { %5001 = vmatpush.bf16.msrb.mxu1 %v9591_v59  ;;  %5027 = vmatpush.bf16.msra.mxu3 %v9599_v13  ;;  %v9579_v59 = vor.u32 %v11261_v0, %v9578_v4  ;;  %v9554_v13 = vld [vmem:[#allocation9] sm:$0xf]  ;;  %v11328_v0 = vld [vmem:[#allocation11 + $0x14c] sm:$0xf0] }
 0x451   :  { %v9555_v61 = vor.u32 %v11256_v25, %v9554_v13  ;;  %v9845_v4 = vld [vmem:[#allocation11 + $0x140] sm:$0xf]  ;;  %v11326_v13 = vld [vmem:[#allocation11 + $0x144] sm:$0xf]  ;;  %v9847_v25 = vld [vmem:[#allocation11 + $0x150] sm:$0xf0] }
 0x452   :  { %4984 = vmatpush.bf16.msra.mxu0 %v9651_v11  ;;  %5010 = vmatpush.bf16.msra.mxu2 %v9659_v31  ;;  %v11348_v11 = vld [vmem:[#allocation11 + $0x1ec] sm:$0xf0]  ;;  %v11346_v31 = vld [vmem:[#allocation11 + $0x1e4] sm:$0xf]  ;;  %v9850_v12 = vor.u32 %v11326_v13, %v9847_v25 }
 0x453   :  { %v9926_v36 = vor.u32 %v11348_v11, %v9925_v45  ;;  %v9783_v11 = vld [vmem:[#allocation11 + $0xd0] sm:$0xf0] }
 0x454   :  { %5002 = vmatpush.bf16.msrb.mxu1 %v9575_v10  ;;  %5028 = vmatpush.bf16.msra.mxu3 %v9583_v29  ;;  %v9930_v10 = vor.u32 %v11346_v31, %v9927_v17  ;;  %v9909_v29 = vld [vmem:[#allocation11 + $0x1c0] sm:$0xf] }
 0x455   :  { %v9910_v47 = vor.u32 %v11344_v6, %v9909_v29  ;;  %v9829_v31 = vld [vmem:[#allocation11 + $0x120] sm:$0xf]  ;;  %v11322_v29 = vld [vmem:[#allocation11 + $0x124] sm:$0xf]  ;;  %v9831_v6 = vld [vmem:[#allocation11 + $0x130] sm:$0xf0] }
 0x456   :  { %4985 = vmatpush.bf16.msra.mxu0 %v9635_v42  ;;  %5011 = vmatpush.bf16.msra.mxu2 %v9643_v7  ;;  %v11340_v42 = vld [vmem:[#allocation11 + $0x1ac] sm:$0xf0]  ;;  %v11338_v7 = vld [vmem:[#allocation11 + $0x1a4] sm:$0xf] }
 0x458   :  { %5003 = vmatpush.bf16.msrb.mxu1 %v9559_v43  ;;  %5029 = vmatpush.bf16.msra.mxu3 %v9567_v8  ;;  %v9895_v43 = vld [vmem:[#allocation11 + $0x1b0] sm:$0xf0] }
 0x459   :  { %v9898_v8 = vor.u32 %v11338_v7, %v9895_v43  ;;  %v9813_v43 = vld [vmem:[#allocation11 + $0x100] sm:$0xf] }
 0x45a   :  { %4986 = vmatpush.bf16.msra.mxu0 %v9619_v52  ;;  %5012 = vmatpush.bf16.msra.mxu2 %v9627_v26  ;;  %v9878_v52 = vor.u32 %v11336_v16, %v9877_v33  ;;  %v9879_v26 = vld [vmem:[#allocation11 + $0x190] sm:$0xf0] }
 0x45b   :  { %5004 = vmatmul.bf16.vlgmr.msrb.gmra.mxu1 %v12785_v62  ;;  %5030 = vmatmul.bf16.vlgmr.msra.gmra.mxu3 %v12785_v62  ;;  %v9882_v28 = vor.u32 %v11334_v24, %v9879_v26  ;;  %v11318_v24 = vld [vmem:[#allocation11 + $0x104] sm:$0xf]  ;;  %v9933_v26 = vld [vmem:[#allocation11 + $0x1e8] sm:$0xf] }
 0x45c   :  { %5505 = vmatpush.bf16.msra.mxu1 %v9926_v36  ;;  %5531 = vmatpush.bf16.msrb.mxu3 %v9930_v10  ;;  %v11324_v36 = vld [vmem:[#allocation11 + $0x12c] sm:$0xf0] }
 0x45d   :  { %4675 = vmatmul.bf16.vlgmr.msrb.gmra.mxu0 %v12785_v62  ;;  %4701 = vmatmul.bf16.vlgmr.msrb.gmra.mxu2 %v12785_v62  ;;  %v9830_v10 = vor.u32 %v11324_v36, %v9829_v31 }
 0x45e   :  { %4987 = vmatpush.bf16.msra.mxu0 %v9603_v40  ;;  %5013 = vmatpush.bf16.msra.mxu2 %v9611_v51  ;;  %v9862_v40 = vor.u32 %v11332_v19, %v9861_v37  ;;  %v9863_v51 = vld [vmem:[#allocation11 + $0x170] sm:$0xf0]  ;;  %v11349_v37 = vld [vmem:[#allocation11 + $0x1f4] sm:$0xf0]  ;;  %v11347_v19 = vld [vmem:[#allocation11 + $0x1ec] sm:$0xf] }
 0x45f   :  { %v9866_v50 = vor.u32 %v11330_v27, %v9863_v51  ;;  %v9935_v27 = vld [vmem:[#allocation11 + $0x1f8] sm:$0xf0]  ;;  %v9934_v51 = vor.u32 %v11349_v37, %v9933_v26  ;;  %v11337_v37 = vld [vmem:[#allocation11 + $0x194] sm:$0xf0] }
 0x460   :  { %5506 = vmatpush.bf16.msra.mxu1 %v9910_v47  ;;  %5532 = vmatpush.bf16.msrb.mxu3 %v9914_v41  ;;  %v9834_v47 = vor.u32 %v11322_v29, %v9831_v6  ;;  %v11308_v41 = vld [vmem:[#allocation11 + $0xac] sm:$0xf0] }
 0x461   :  { %v9766_v7 = vor.u32 %v11308_v41, %v9765_v9 }
 0x462   :  { %4988 = vmatpush.bf16.msra.mxu0 %v9587_v34  ;;  %5014 = vmatpush.bf16.msra.mxu2 %v9595_v15  ;;  %v11314_v34 = vld [vmem:[#allocation11 + $0xe4] sm:$0xf] }
 0x464   :  { %5533 = vmatpush.bf16.msrb.mxu3 %v9898_v8  ;;  %v11320_v8 = vld [vmem:[#allocation11 + $0x10c] sm:$0xf0] }
 0x465   :  { %v9814_v16 = vor.u32 %v11320_v8, %v9813_v43  ;;  %v9717_v43 = vld [vmem:[#allocation11 + $0x40] sm:$0xf]  ;;  %v11296_v8 = vld [vmem:[#allocation11 + $0x4c] sm:$0xf0] }
 0x466   :  { %4989 = vmatpush.bf16.msra.mxu0 %v9571_v44  ;;  %5015 = vmatpush.bf16.msra.mxu2 %v9579_v59  ;;  %v9802_v44 = vor.u32 %v11314_v34, %v9799_v20  ;;  %v9846_v59 = vor.u32 %v11328_v0, %v9845_v4  ;;  %v11302_v34 = vld [vmem:[#allocation11 + $0x84] sm:$0xf]  ;;  %v9751_v20 = vld [vmem:[#allocation11 + $0x90] sm:$0xf0]  ;;  %v9917_v0 = vld [vmem:[#allocation11 + $0x1c8] sm:$0xf] }
 0x467   :  { %v9754_v4 = vor.u32 %v11302_v34, %v9751_v20  ;;  %v9701_v34 = vld [vmem:[#allocation11 + $0x20] sm:$0xf] }
 0x468   :  { %5534 = vmatpush.bf16.msrb.mxu3 %v9882_v28 }
 0x46a   :  { %4990 = vmatpush.bf16.msra.mxu0 %v9555_v61  ;;  %5016 = vmatpush.bf16.msra.mxu2 %v9563_v22  ;;  %v11312_v61 = vld [vmem:[#allocation11 + $0xcc] sm:$0xf0]  ;;  %v11310_v22 = vld [vmem:[#allocation11 + $0xc4] sm:$0xf] }
 0x46b   :  { %v9782_v45 = vor.u32 %v11312_v61, %v9781_v49  ;;  %v9786_v17 = vor.u32 %v11310_v22, %v9783_v11  ;;  %v9919_v49 = vld [vmem:[#allocation11 + $0x1d8] sm:$0xf0]  ;;  %v9733_v22 = vld [vmem:[#allocation11 + $0x60] sm:$0xf]  ;;  %v11298_v11 = vld [vmem:[#allocation11 + $0x64] sm:$0xf] }
 0x46c   :  { %5535 = vmatpush.bf16.msrb.mxu3 %v9866_v50  ;;  %v9938_v50 = vor.u32 %v11347_v19, %v9935_v27  ;;  %v11335_v19 = vld [vmem:[#allocation11 + $0x18c] sm:$0xf] }
 0x46d   :  { %4991 = vmatmul.bf16.vlgmr.msra.gmra.mxu0 %v12785_v62  ;;  %5017 = vmatmul.bf16.vlgmr.msra.gmra.mxu2 %v12785_v62  ;;  %v9894_v62 = vor.u32 %v11340_v42, %v9893_v21  ;;  %v11306_v21 = vld [vmem:[#allocation11 + $0xa4] sm:$0xf] }
 0x46e   :  { %5492 = vmatpush.bf16.msrb.mxu0 %v9798_v1  ;;  %5518 = vmatpush.bf16.msrb.mxu2 %v9802_v44  ;;  %v9750_v1 = vor.u32 %v11304_v57, %v9749_v58  ;;  %v11345_v44 = vld [vmem:[#allocation11 + $0x1d4] sm:$0xf0]  ;;  %v289_v58 = vadd.f32 %v12120_v56, %v12081_v39 }
 0x46f   :  { %5507 = vmatpush.bf16.msra.mxu1 %v9894_v62  ;;  %v9767_v62 = vld [vmem:[#allocation11 + $0xb0] sm:$0xf0] }
 0x470   :  { %5536 = vmatpush.bf16.msrb.mxu3 %v9850_v12  ;;  %v9770_v33 = vor.u32 %v11306_v21, %v9767_v62  ;;  %v9918_v12 = vor.u32 %v11345_v44, %v9917_v0  ;;  %v9903_v21 = vld [vmem:[#allocation11 + $0x1b8] sm:$0xf0]  ;;  %v9703_v0 = vld [vmem:[#allocation11 + $0x30] sm:$0xf0] }
 0x472   :  { %5493 = vmatpush.bf16.msrb.mxu0 %v9782_v45  ;;  %5519 = vmatpush.bf16.msrb.mxu2 %v9786_v17  ;;  %v11300_v45 = vld [vmem:[#allocation11 + $0x6c] sm:$0xf0] }
 0x473   :  { %5508 = vmatpush.bf16.msra.mxu1 %v9878_v52  ;;  %v9815_v52 = vld [vmem:[#allocation11 + $0x110] sm:$0xf0]  ;;  %v9734_v17 = vor.u32 %v11300_v45, %v9733_v22  ;;  %v11331_v22 = vld [vmem:[#allocation11 + $0x16c] sm:$0xf]  ;;  %v9871_v45 = vld [vmem:[#allocation11 + $0x178] sm:$0xf0] }
 0x474   :  { %5537 = vmatpush.bf16.msrb.mxu3 %v9834_v47  ;;  %v9818_v28 = vor.u32 %v11318_v24, %v9815_v52  ;;  %v11339_v47 = vld [vmem:[#allocation11 + $0x1ac] sm:$0xf]  ;;  %v9718_v24 = vor.u32 %v11296_v8, %v9717_v43  ;;  %v9719_v52 = vld [vmem:[#allocation11 + $0x50] sm:$0xf0]  ;;  %v9807_v8 = vld [vmem:[#allocation11 + $0xf8] sm:$0xf0] }
 0x475   :  { %v9906_v62 = vor.u32 %v11339_v47, %v9903_v21  ;;  %v11315_v21 = vld [vmem:[#allocation11 + $0xec] sm:$0xf] }
 0x476   :  { %5494 = vmatpush.bf16.msrb.mxu0 %v9766_v7  ;;  %5520 = vmatpush.bf16.msrb.mxu2 %v9770_v33  ;;  %v11294_v33 = vld [vmem:[#allocation11 + $0x44] sm:$0xf] }
 0x477   :  { %5509 = vmatpush.bf16.msra.mxu1 %v9862_v40  ;;  %v9722_v26 = vor.u32 %v11294_v33, %v9719_v52  ;;  %v9853_v33 = vld [vmem:[#allocation11 + $0x148] sm:$0xf]  ;;  %v9810_v52 = vor.u32 %v11315_v21, %v9807_v8  ;;  %v260_v8 = vadd.f32 %v12101_v14, %v12040_v23 }
 0x478   :  { %5538 = vmatpush.bf16.msrb.mxu3 %v9818_v28  ;;  %v9885_v28 = vld [vmem:[#allocation11 + $0x188] sm:$0xf] }
 0x47a   :  { %5495 = vmatpush.bf16.msrb.mxu0 %v9750_v1  ;;  %5521 = vmatpush.bf16.msrb.mxu2 %v9754_v4 }
 0x47b   :  { %5510 = vmatpush.bf16.msra.mxu1 %v9846_v59  ;;  %v11343_v59 = vld [vmem:[#allocation11 + $0x1cc] sm:$0xf] }
 0x47c   :  { %5583 = vmatpush.bf16.msra.mxu3 %v9938_v50  ;;  %v9922_v61 = vor.u32 %v11343_v59, %v9919_v49  ;;  %v9887_v50 = vld [vmem:[#allocation11 + $0x198] sm:$0xf0]  ;;  %v9869_v49 = vld [vmem:[#allocation11 + $0x168] sm:$0xf] }
 0x47d   :  { %v9890_v57 = vor.u32 %v11335_v19, %v9887_v50 }
 0x47e   :  { %5496 = vmatpush.bf16.msrb.mxu0 %v9734_v17  ;;  %v9874_v17 = vor.u32 %v11331_v22, %v9871_v45  ;;  %v9839_v22 = vld [vmem:[#allocation11 + $0x138] sm:$0xf0]  ;;  %v9773_v45 = vld [vmem:[#allocation11 + $0xa8] sm:$0xf] }
 0x47f   :  { %5511 = vmatpush.bf16.msra.mxu1 %v9830_v10  ;;  %v9735_v10 = vld [vmem:[#allocation11 + $0x70] sm:$0xf0] }
 0x480   :  { %5584 = vmatpush.bf16.msra.mxu3 %v9922_v61  ;;  %v9738_v6 = vor.u32 %v11298_v11, %v9735_v10  ;;  %v11333_v61 = vld [vmem:[#allocation11 + $0x174] sm:$0xf0]  ;;  %v11288_v10 = vld [vmem:[#allocation11 + $0xc] sm:$0xf0] }
 0x481   :  { %v9870_v56 = vor.u32 %v11333_v61, %v9869_v49 }
 0x482   :  { %5522 = vmatpush.bf16.msrb.mxu2 %v9738_v6  ;;  %5497 = vmatpush.bf16.msrb.mxu0 %v9718_v24 }
 0x483   :  { %5512 = vmatpush.bf16.msra.mxu1 %v9814_v16 }
 0x484   :  { %5585 = vmatpush.bf16.msra.mxu3 %v9906_v62 }
 0x486   :  { %5523 = vmatpush.bf16.msrb.mxu2 %v9722_v26  ;;  %v11329_v26 = vld [vmem:[#allocation11 + $0x154] sm:$0xf0] }
 0x487   :  { %5557 = vmatpush.bf16.msrb.mxu1 %v9934_v51  ;;  %v9886_v51 = vor.u32 %v11337_v37, %v9885_v28  ;;  %v11327_v28 = vld [vmem:[#allocation11 + $0x14c] sm:$0xf]  ;;  %v9855_v37 = vld [vmem:[#allocation11 + $0x158] sm:$0xf0] }
 0x488   :  { %5586 = vmatpush.bf16.msra.mxu3 %v9890_v57  ;;  %v11311_v57 = vld [vmem:[#allocation11 + $0xcc] sm:$0xf] }
 0x48b   :  { %5558 = vmatpush.bf16.msrb.mxu1 %v9918_v12 }
 0x48c   :  { %5587 = vmatpush.bf16.msra.mxu3 %v9874_v17 }
 0x4b8   :  { %v12795_v32 = vpop.f32.mrf.mxu1 }
 0x4be   :  { %v12797_v48 = vpop.f32.mrf.mxu3 }
 0x4c0   :  { %v4639_v15 = vpop.f32.mrf.mxu1 }
 0x4c6   :  { %v4665_v30 = vpop.f32.mrf.mxu3 }
 0x4c7   :  { %v9901_v30 = vld [vmem:[#allocation11 + $0x1a8] sm:$0xf] }
 0x4c8   :  { %v12799_v42 = vpop.f32.mrf.mxu1 }
 0x4ca   :  { %v4624_v40 = vpop.f32.mrf.mxu0 }
 0x4cb   :  { %v4625_v15 = vadd.f32 %v4624_v40, %v12196_v46 }
 0x4cd   :  { %v4638_v13 = vadd.f32 %v12795_v32, %v4625_v15  ;;  %v11341_v32 = vld [vmem:[#allocation11 + $0x1b4] sm:$0xf0]  ;;  %v11290_v15 = vld [vmem:[#allocation11 + $0x24] sm:$0xf] }
 0x4ce   :  { %v12803_v25 = vpop.f32.mrf.mxu3  ;;  %v9902_v41 = vor.u32 %v11341_v32, %v9901_v30  ;;  %v9706_v12 = vor.u32 %v11290_v15, %v9703_v0  ;;  %v9687_v30 = vld [vmem:[#allocation11 + $0x10] sm:$0xf0]  ;;  %v9805_v32 = vld [vmem:[#allocation11 + $0xe8] sm:$0xf]  ;;  %v9858_v15 = vor.u32 %v11327_v28, %v9855_v37 }
 0x4cf   :  { %v9549_v31 = vmul.f32 -1.442695, %v4638_v13 }
 0x4d0   :  { %v4691_v36 = vpop.f32.mrf.mxu1  ;;  %v4650_v29 = vpop.f32.mrf.mxu2  ;;  %5559 = vmatpush.bf16.msrb.mxu1 %v9902_v41  ;;  %5524 = vmatpush.bf16.msrb.mxu2 %v9706_v12  ;;  %v11317_v41 = vld [vmem:[#allocation11 + $0xf4] sm:$0xf0]  ;;  %v11323_v12 = vld [vmem:[#allocation11 + $0x12c] sm:$0xf] }
 0x4d1   :  { %11706 = vpow2.f32 %v9549_v31  ;;  %v4651_v9 = vadd.f32 %v4650_v29, %v12200_v18  ;;  %v9685_v36 = vld [vmem:[#allocation11] sm:$0xf]  ;;  %v11286_v29 = vld [vmem:[#allocation11 + $0x4] sm:$0xf]  ;;  %v9806_v43 = vor.u32 %v11317_v41, %v9805_v32  ;;  %5588 = vmatpush.bf16.msra.mxu3 %v9858_v15  ;;  %v9821_v41 = vld [vmem:[#allocation11 + $0x108] sm:$0xf] }
 0x4d2   :  { %v4626_v7 = vpop.f32.mrf.mxu0  ;;  %v9686_v6 = vor.u32 %v11288_v10, %v9685_v36  ;;  %v11307_v10 = vld [vmem:[#allocation11 + $0xac] sm:$0xf] }
 0x4d3   :  { %v4664_v16 = vadd.f32 %v12797_v48, %v4651_v9  ;;  %v11292_v48 = vld [vmem:[#allocation11 + $0x2c] sm:$0xf0]  ;;  %v9690_v9 = vor.u32 %v11286_v29, %v9687_v30  ;;  %v9775_v29 = vld [vmem:[#allocation11 + $0xb8] sm:$0xf0] }
 0x4d4   :  { %v9702_v4 = vor.u32 %v11292_v48, %v9701_v34  ;;  %5560 = vmatpush.bf16.msrb.mxu1 %v9886_v51  ;;  %v9854_v48 = vor.u32 %v11329_v26, %v9853_v33 }
 0x4d5   :  { %v9550_v27 = vmul.f32 -1.442695, %v4664_v16  ;;  %v347_v16 = vadd.f32 %v12109_v54, %v12068_v3  ;;  %5525 = vmatpush.bf16.msrb.mxu2 %v9690_v9  ;;  %v9789_v54 = vld [vmem:[#allocation11 + $0xc8] sm:$0xf] }
 0x4d6   :  { %v4717_v40 = vpop.f32.mrf.mxu3  ;;  %5498 = vmatpush.bf16.msrb.mxu0 %v9702_v4 }
 0x4d7   :  { %v11707_v1 = vpop.eup %11706  ;;  %11708 = vpow2.f32 %v9550_v27 }
 0x4d8   :  { %v5005_v20 = vpop.f32.mrf.mxu1  ;;  %v12809_v44 = vadd.f32 1.0, %v11707_v1  ;;  %v4652_v13 = vpop.f32.mrf.mxu2  ;;  %5561 = vmatpush.bf16.msrb.mxu1 %v9870_v56  ;;  %v9791_v1 = vld [vmem:[#allocation11 + $0xd8] sm:$0xf0] }
 0x4d9   :  { %v5036_v59 = vadd.f32 %v5005_v20, %v289_v58  ;;  %5570 = vmatpush.bf16.msra.mxu2 %v9810_v52  ;;  %v11313_v58 = vld [vmem:[#allocation11 + $0xd4] sm:$0xf0]  ;;  %v9837_v20 = vld [vmem:[#allocation11 + $0x128] sm:$0xf]  ;;  %v9794_v61 = vor.u32 %v11311_v57, %v9791_v1  ;;  %v9823_v52 = vld [vmem:[#allocation11 + $0x118] sm:$0xf0] }
 0x4da   :  { %11710 = vrcp.f32 %v12809_v44  ;;  %v4676_v31 = vpop.f32.mrf.mxu0  ;;  %5499 = vmatpush.bf16.msrb.mxu0 %v9686_v6  ;;  %v11325_v13 = vld [vmem:[#allocation11 + $0x134] sm:$0xf0]  ;;  %v9790_v49 = vor.u32 %v11313_v58, %v9789_v54  ;;  %v11303_v57 = vld [vmem:[#allocation11 + $0x8c] sm:$0xf]  ;;  %vm4729_vm15 = vweird.f32 %v12809_v44  ;;  %v4733_v1 = vand.u32 2147483647, %v12809_v44 }
 0x4db   :  { %v9681_v11 = vmul.f32 -1.442695, %v5036_v59  ;;  %v9838_v56 = vor.u32 %v11325_v13, %v9837_v20  ;;  %v4677_v36 = vadd.f32 %v4676_v31, %v12226_v5  ;;  %v11321_v31 = vld [vmem:[#allocation11 + $0x114] sm:$0xf0] }
 0x4dc   :  { %5562 = vmatpush.bf16.msrb.mxu1 %v9854_v48  ;;  %v11305_v58 = vld [vmem:[#allocation11 + $0x94] sm:$0xf0]  ;;  %v4735_v48 = vand.u32 2147483648, %v12809_v44  ;;  %vm4734_vm4 = vcmp.eq.f32.partialorder %v4733_v1, 8.507059e+37 }
 0x4dd   :  { %v11709_v47 = vpop.eup %11708  ;;  %11712 = vpow2.f32 %v9681_v11  ;;  %v11309_v11 = vld [vmem:[#allocation11 + $0xb4] sm:$0xf0]  ;;  %5571 = vmatpush.bf16.msra.mxu2 %v9794_v61  ;;  %v4690_v28 = vadd.f32 %v12799_v42, %v4677_v36 }
 0x4de   :  { %v12812_v7 = vadd.f32 1.0, %v11709_v47  ;;  %v5031_v62 = vpop.f32.mrf.mxu3  ;;  %5544 = vmatpush.bf16.msra.mxu0 %v9806_v43  ;;  %v9842_v47 = vor.u32 %v11323_v12, %v9839_v22  ;;  %v9774_v9 = vor.u32 %v11309_v11, %v9773_v45  ;;  %v11319_v43 = vld [vmem:[#allocation11 + $0x10c] sm:$0xf]  ;;  %v11301_v22 = vld [vmem:[#allocation11 + $0x74] sm:$0xf0]  ;;  %v4736_v11 = vor.u32 1.1754944e-38, %v4735_v48 }
 0x4df   :  { %v5038_v51 = vadd.f32 %v5031_v62, %v347_v16  ;;  %v9778_v16 = vor.u32 %v11307_v10, %v9775_v29  ;;  %v9826_v37 = vor.u32 %v11319_v43, %v9823_v52  ;;  %v11299_v10 = vld [vmem:[#allocation11 + $0x6c] sm:$0xf]  ;;  %v11289_v48 = vld [vmem:[#allocation11 + $0x14] sm:$0xf0] }
 0x4e0   :  { %v5007_v24 = vpop.f32.mrf.mxu1  ;;  %v12816_v19 = vpop.eup %11710  ;;  %11714 = vrcp.f32 %v12812_v7  ;;  %5563 = vmatpush.bf16.msrb.mxu1 %v9838_v56  ;;  %5589 = vmatpush.bf16.msra.mxu3 %v9842_v47  ;;  %v4752_v14 = vand.u32 2147483647, %v12812_v7  ;;  %vm4748_vm0 = vweird.f32 %v12812_v7  ;;  %v9741_v56 = vld [vmem:[#allocation11 + $0x68] sm:$0xf] }
 0x4e1   :  { %v4702_v27 = vpop.f32.mrf.mxu2  ;;  %v4725_v40 = vmul.f32 %v12816_v19, %v12809_v44  ;;  %v9682_v17 = vmul.f32 -1.442695, %v5038_v51  ;;  %v9822_v24 = vor.u32 %v11321_v31, %v9821_v41  ;;  %vm4730_vm13 = vweird.f32 %v12816_v19  ;;  %5572 = vmatpush.bf16.msra.mxu2 %v9778_v16  ;;  %v9757_v51 = vld [vmem:[#allocation11 + $0x88] sm:$0xf]  ;;  %v11297_v41 = vld [vmem:[#allocation11 + $0x54] sm:$0xf0] }
 0x4e2   :  { %v4703_v50 = vadd.f32 %v4702_v27, %v12218_v35  ;;  %v4678_v34 = vpop.f32.mrf.mxu0  ;;  %5545 = vmatpush.bf16.msra.mxu0 %v9790_v49  ;;  %v4754_v27 = vand.u32 2147483648, %v12812_v7  ;;  %vm12846_vm1 = vmor %vm4729_vm15, %vm4730_vm13  ;;  %v9758_v13 = vor.u32 %v11305_v58, %v9757_v51  ;;  %vm4753_vm3 = vcmp.eq.f32.partialorder %v4752_v14, 8.507059e+37  ;;  %v9711_v51 = vld [vmem:[#allocation11 + $0x38] sm:$0xf0]  ;;  %v9693_v58 = vld [vmem:[#allocation11 + $0x8] sm:$0xf] }
 0x4e3   :  { %v11713_v4 = vpop.eup %11712  ;;  %v4726_v0 = vsub.f32 1.0, %v4725_v40  ;;  %v9759_v34 = vld [vmem:[#allocation11 + $0x98] sm:$0xf0] }
 0x4e4   :  { %v4716_v59 = vadd.f32 %v12803_v25, %v4703_v50  ;;  %v12826_v30 = vadd.f32 1.0, %v11713_v4  ;;  %5564 = vmatpush.bf16.msrb.mxu1 %v9822_v24  ;;  %5590 = vmatpush.bf16.msra.mxu3 %v9826_v37  ;;  %v9762_v12 = vor.u32 %v11303_v57, %v9759_v34 }
 0x4e5   :  { %v4727_v62 = vmul.f32 %v12816_v19, %v4726_v0 }
 0x4e6   :  { %v12824_v6 = vpop.eup %11714  ;;  %v9551_v25 = vmul.f32 -1.442695, %v4716_v59  ;;  %v5033_v32 = vpop.f32.mrf.mxu3  ;;  %5546 = vmatpush.bf16.msra.mxu0 %v9774_v9  ;;  %v4755_v59 = vor.u32 1.1754944e-38, %v4754_v27  ;;  %5573 = vmatpush.bf16.msra.mxu2 %v9762_v12  ;;  %v9725_v9 = vld [vmem:[#allocation11 + $0x48] sm:$0xf]  ;;  %v318_v12 = vadd.f32 %v12107_v53, %v12065_v2  ;;  %vm5068_vm10 = vweird.f32 %v12826_v30 }
 0x4e7   :  { %v4744_v21 = vmul.f32 %v12824_v6, %v12812_v7  ;;  %vm4749_vm14 = vweird.f32 %v12824_v6  ;;  %v4728_v42 = vadd.f32 %v12816_v19, %v4727_v62  ;;  %v9726_v24 = vor.u32 %v11297_v41, %v9725_v9  ;;  %v10056_v9 = vld [vmem:[#allocation9 + $0xe0] sm:$0xf] }
 0x4e8   :  { %11716 = vpow2.f32 %v9551_v25  ;;  %vm4750_vm2 = vmor %vm4748_vm0, %vm4749_vm14  ;;  %v9742_v25 = vor.u32 %v11301_v22, %v9741_v56 }
 0x4e9   :  { %v4704_v33 = vpop.f32.mrf.mxu2  ;;  %v4745_v26 = vsub.f32 1.0, %v4744_v21  ;;  %11718 = vpow2.f32 %v9682_v17  ;;  %v4732_v49 = vsel %vm12846_vm1, %v12816_v19, %v4728_v42  ;;  %v9743_v19 = vld [vmem:[#allocation11 + $0x78] sm:$0xf0]  ;;  %v11295_v21 = vld [vmem:[#allocation11 + $0x4c] sm:$0xf] }
 0x4ea   :  { %11720 = vrcp.f32 %v12826_v30  ;;  %v4992_v40 = vpop.f32.mrf.mxu0  ;;  %5547 = vmatpush.bf16.msra.mxu0 %v9758_v13  ;;  %v4737_v29 = vsel %vm4734_vm4, %v4736_v11, %v4732_v49  ;;  %v9746_v43 = vor.u32 %v11299_v10, %v9743_v19  ;;  %v9694_v13 = vor.u32 %v11289_v48, %v9693_v58  ;;  %v11378_v10 = vld [vmem:[#allocation9 + $0xe4] sm:$0xf]  ;;  %v10058_v19 = vld [vmem:[#allocation9 + $0xf0] sm:$0xf0] }
 0x4eb   :  { %v4746_v50 = vmul.f32 %v12824_v6, %v4745_v26  ;;  %v5035_v54 = vadd.f32 %v4992_v40, %v260_v8  ;;  %11722 = vtanh.f32 %v4690_v28  ;;  %v9727_v8 = vld [vmem:[#allocation11 + $0x58] sm:$0xf0]  ;;  %v9709_v26 = vld [vmem:[#allocation11 + $0x28] sm:$0xf]  ;;  %v11293_v28 = vld [vmem:[#allocation11 + $0x34] sm:$0xf0] }
 0x4ec   :  { %5574 = vmatpush.bf16.msra.mxu2 %v9746_v43  ;;  %v9730_v52 = vor.u32 %v11295_v21, %v9727_v8  ;;  %v11291_v40 = vld [vmem:[#allocation11 + $0x2c] sm:$0xf]  ;;  %v9710_v42 = vor.u32 %v11293_v28, %v9709_v26  ;;  %v5072_v21 = vand.u32 2147483647, %v12826_v30  ;;  %v10061_v43 = vor.u32 %v11378_v10, %v10058_v19  ;;  %v10026_v48 = vld [vmem:[#allocation9 + $0xb0] sm:$0xf0] }
 0x4ed   :  { %v4747_v20 = vadd.f32 %v12824_v6, %v4746_v50  ;;  %v9680_v4 = vmul.f32 -1.442695, %v5035_v54  ;;  %v9714_v34 = vor.u32 %v11291_v40, %v9711_v51 }
 0x4ee   :  { %v11717_v0 = vpop.eup %11716  ;;  %5548 = vmatpush.bf16.msra.mxu0 %v9742_v25  ;;  %v10066_v25 = vld [vmem:[#allocation9 + $0xf8] sm:$0xf0]  ;;  %vm5073_vm14 = vcmp.eq.f32.partialorder %v5072_v21, 8.507059e+37 }
 0x4ef   :  { %v11719_v7 = vpop.eup %11718  ;;  %v4751_v61 = vsel %vm4750_vm2, %v12824_v6, %v4747_v20  ;;  %v12858_v44 = vadd.f32 1.0, %v11717_v0  ;;  %11724 = vpow2.f32 %v9680_v4  ;;  %v11287_v20 = vld [vmem:[#allocation11 + $0xc] sm:$0xf]  ;;  %v9695_v4 = vld [vmem:[#allocation11 + $0x18] sm:$0xf0] }
 0x4f0   :  { %v12860_v45 = vpop.eup %11720  ;;  %v4756_v36 = vsel %vm4753_vm3, %v4755_v59, %v4751_v61  ;;  %v12866_v31 = vadd.f32 1.0, %v11719_v7  ;;  %5575 = vmatpush.bf16.msra.mxu2 %v9730_v52  ;;  %v9698_v61 = vor.u32 %v11287_v20, %v9695_v4  ;;  %v10042_v52 = vld [vmem:[#allocation9 + $0xd0] sm:$0xf0] }
 0x4f1   :  { %11726 = vrcp.f32 %v12858_v44  ;;  %v5018_v17 = vpop.f32.mrf.mxu2  ;;  %v5064_v32 = vmul.f32 %v12860_v45, %v12826_v30  ;;  %v4778_v47 = vmul.f32 %v4756_v36, %v12721_v63  ;;  %v11723_v62 = vpop.eup %11722  ;;  %v4774_v1 = vand.u32 2147483648, %v12858_v44 }
 0x4f2   :  { %v4994_v6 = vpop.f32.mrf.mxu0  ;;  %v4779_v33 = vmul.f32 %v11723_v62, %v4737_v29  ;;  %11728 = vrcp.f32 %v12866_v31  ;;  %5549 = vmatpush.bf16.msra.mxu0 %v9726_v24  ;;  %v4772_v59 = vand.u32 2147483647, %v12858_v44  ;;  %vm4768_vm6 = vweird.f32 %v12858_v44  ;;  %v11374_v24 = vld [vmem:[#allocation9 + $0xc4] sm:$0xf] }
 0x4f3   :  { %v5065_v27 = vsub.f32 1.0, %v5064_v32  ;;  %vm5069_vm7 = vweird.f32 %v12860_v45  ;;  %v5037_v22 = vadd.f32 %v5018_v17, %v318_v12  ;;  %v4775_v36 = vor.u32 1.1754944e-38, %v4774_v1  ;;  %v11379_v6 = vld [vmem:[#allocation9 + $0xec] sm:$0xf]  ;;  %v10034_v1 = vld [vmem:[#allocation9 + $0xb8] sm:$0xf0] }
 0x4f4   :  { %v12868_v14 = vadd.f32 %v4779_v33, %v4778_v47  ;;  %5576 = vmatpush.bf16.msra.mxu2 %v9714_v34  ;;  %vm4773_vm9 = vcmp.eq.f32.partialorder %v4772_v59, 8.507059e+37  ;;  %v5074_v32 = vand.u32 2147483648, %v12826_v30  ;;  %vm12893_vm11 = vmor %vm5068_vm10, %vm5069_vm7  ;;  %v11375_v30 = vld [vmem:[#allocation9 + $0xcc] sm:$0xf]  ;;  %v10045_v58 = vor.u32 %v11374_v24, %v10042_v52  ;;  %v11370_v34 = vld [vmem:[#allocation9 + $0xa4] sm:$0xf] }
 0x4f5   :  { %v11725_v16 = vpop.eup %11724  ;;  %v5066_v15 = vmul.f32 %v12860_v45, %v5065_v27  ;;  %v10050_v27 = vld [vmem:[#allocation9 + $0xd8] sm:$0xf0]  ;;  %v10029_v12 = vor.u32 %v11370_v34, %v10026_v48  ;;  %vm5088_vm2 = vweird.f32 %v12866_v31  ;;  %v5092_v19 = vand.u32 2147483647, %v12866_v31  ;;  %v9978_v52 = vld [vmem:[#allocation9 + $0x50] sm:$0xf0] }
 0x4f6   :  { %v12870_v63 = vadd.f32 1.0, %v11725_v16  ;;  %5550 = vmatpush.bf16.msra.mxu0 %v9710_v42  ;;  %v10069_v16 = vor.u32 %v11379_v6, %v10066_v25  ;;  %v5075_v40 = vor.u32 1.1754944e-38, %v5074_v32  ;;  %v11362_v25 = vld [vmem:[#allocation9 + $0x64] sm:$0xf]  ;;  %v11363_v32 = vld [vmem:[#allocation9 + $0x6c] sm:$0xf] }
 0x4f7   :  { %v11727_v37 = vpop.eup %11726  ;;  %v5067_v11 = vadd.f32 %v12860_v45, %v5066_v15  ;;  %v11371_v15 = vld [vmem:[#allocation9 + $0xac] sm:$0xf]  ;;  %vm5093_vm4 = vcmp.eq.f32.partialorder %v5092_v19, 8.507059e+37  ;;  %v9962_v34 = vld [vmem:[#allocation9 + $0x30] sm:$0xf0] }
 0x4f8   :  { %v4764_v50 = vmul.f32 %v11727_v37, %v12858_v44  ;;  %11730 = vrcp.f32 %v12870_v63  ;;  %vm4769_vm5 = vweird.f32 %v11727_v37  ;;  %v12881_v7 = vpop.eup %11728  ;;  %5577 = vmatpush.bf16.msra.mxu2 %v9698_v61  ;;  %v5055_v8 = vand.u32 2147483648, %v12870_v63  ;;  %v11366_v61 = vld [vmem:[#allocation9 + $0x84] sm:$0xf]  ;;  %v11355_v48 = vld [vmem:[#allocation9 + $0x2c] sm:$0xf] }
 0x4f9   :  { %v5020_v54 = vpop.f32.mrf.mxu2  ;;  %11732 = vtanh.f32 %v12868_v14  ;;  %vm4770_vm8 = vmor %vm4768_vm6, %vm4769_vm5  ;;  %v5084_v17 = vmul.f32 %v12881_v7, %v12866_v31  ;;  %v5071_v33 = vsel %vm12893_vm11, %v12860_v45, %v5067_v11  ;;  %v5053_v28 = vand.u32 2147483647, %v12870_v63  ;;  %v11367_v11 = vld [vmem:[#allocation9 + $0x8c] sm:$0xf] }
 0x4fa   :  { %v4765_v57 = vsub.f32 1.0, %v4764_v50  ;;  %5551 = vmatpush.bf16.msra.mxu0 %v9694_v13  ;;  %11734 = vtanh.f32 %v5037_v22  ;;  %vm5049_vm13 = vweird.f32 %v12870_v63  ;;  %v5056_v42 = vor.u32 1.1754944e-38, %v5055_v8  ;;  %v11381_v8 = vld [vmem:[#allocation9 + $0xf4] sm:$0xf0] }
 0x4fb   :  { %v5085_v51 = vsub.f32 1.0, %v5084_v17  ;;  %v5076_v54 = vsel %vm5073_vm14, %v5075_v40, %v5071_v33  ;;  %vm5054_vm0 = vcmp.eq.f32.partialorder %v5053_v28, 8.507059e+37  ;;  %vm5089_vm1 = vweird.f32 %v12881_v7  ;;  %v10002_v17 = vld [vmem:[#allocation9 + $0x78] sm:$0xf0]  ;;  %v11358_v33 = vld [vmem:[#allocation9 + $0x44] sm:$0xf] }
 0x4fc   :  { %v4766_v0 = vmul.f32 %v11727_v37, %v4765_v57  ;;  %v10053_v57 = vor.u32 %v11375_v30, %v10050_v27  ;;  %v5098_v59 = vmul.f32 %v5076_v54, %v12769_v55  ;;  %v5094_v55 = vand.u32 2147483648, %v12866_v31  ;;  %vm12924_vm3 = vmor %vm5088_vm2, %vm5089_vm1  ;;  %v9986_v28 = vld [vmem:[#allocation9 + $0x58] sm:$0xf0]  ;;  %v10040_v40 = vld [vmem:[#allocation9 + $0xc0] sm:$0xf] }
 0x4fd   :  { %v5086_v4 = vmul.f32 %v12881_v7, %v5085_v51  ;;  %v11376_v51 = vld [vmem:[#allocation9 + $0xcc] sm:$0xf0]  ;;  %v9981_v45 = vor.u32 %v11358_v33, %v9978_v52  ;;  %v10048_v54 = vld [vmem:[#allocation9 + $0xc8] sm:$0xf] }
 0x4fe   :  { %v4767_v49 = vadd.f32 %v11727_v37, %v4766_v0  ;;  %v11731_v56 = vpop.eup %11730  ;;  %v5095_v31 = vor.u32 1.1754944e-38, %v5094_v55  ;;  %v10008_v55 = vld [vmem:[#allocation9 + $0x80] sm:$0xf]  ;;  %v11356_v52 = vld [vmem:[#allocation9 + $0x2c] sm:$0xf0] }
 0x4ff   :  { %v5045_v29 = vmul.f32 %v11731_v56, %v12870_v63  ;;  %v11733_v44 = vpop.eup %11732  ;;  %vm5050_vm12 = vweird.f32 %v11731_v56  ;;  %v5087_v10 = vadd.f32 %v12881_v7, %v5086_v4 }
 0x500   :  { %v4771_v53 = vsel %vm4770_vm8, %v11727_v37, %v4767_v49  ;;  %vm12908_vm15 = vmor %vm5049_vm13, %vm5050_vm12  ;;  %v11735_v20 = vpop.eup %11734  ;;  %v10037_v49 = vor.u32 %v11371_v15, %v10034_v1  ;;  %v10024_v1 = vld [vmem:[#allocation9 + $0xa0] sm:$0xf] }
 0x501   :  { %v4776_v47 = vsel %vm4773_vm9, %v4775_v36, %v4771_v53  ;;  %v5046_v41 = vsub.f32 1.0, %v5045_v29  ;;  %v10018_v36 = vld [vmem:[#allocation9 + $0x98] sm:$0xf0]  ;;  %v11368_v29 = vld [vmem:[#allocation9 + $0x8c] sm:$0xf0] }
 0x502   :  { %v4782_v62 = vmul.f32 %v11733_v44, %v4776_v47  ;;  %v10021_v6 = vor.u32 %v11367_v11, %v10018_v36  ;;  %v9994_v44 = vld [vmem:[#allocation9 + $0x70] sm:$0xf0]  ;;  %v5091_v47 = vsel %vm12924_vm3, %v12881_v7, %v5087_v10 }
 0x503   :  { %v5047_v26 = vmul.f32 %v11731_v56, %v5046_v41  ;;  %v11380_v41 = vld [vmem:[#allocation9 + $0xec] sm:$0xf0]  ;;  %v9997_v21 = vor.u32 %v11362_v25, %v9994_v44  ;;  %v5096_v24 = vsel %vm5093_vm4, %v5095_v31, %v5091_v47  ;;  %v10009_v25 = vor.u32 %v11368_v29, %v10008_v55  ;;  %v10000_v47 = vld [vmem:[#allocation9 + $0x68] sm:$0xf]  ;;  %v11365_v31 = vld [vmem:[#allocation9 + $0x74] sm:$0xf0] }
 0x504   :  { %v12903_v37 = vpack.c.bf16 %v4782_v62, %v4782_v62  ;;  %v10005_v62 = vor.u32 %v11363_v32, %v10002_v17  ;;  %v10057_v7 = vor.u32 %v11380_v41, %v10056_v9  ;;  %v9992_v32 = vld [vmem:[#allocation9 + $0x60] sm:$0xf]  ;;  %v11364_v17 = vld [vmem:[#allocation9 + $0x6c] sm:$0xf0]  ;;  %v10001_v41 = vor.u32 %v11365_v31, %v10000_v47  ;;  %v10269_v29 = vld [vmem:[#allocation11 + $0x190] sm:$0xf0] }
 0x505   :  { %v5048_v50 = vadd.f32 %v11731_v56, %v5047_v26  ;;  %v11359_v26 = vld [vmem:[#allocation9 + $0x4c] sm:$0xf]  ;;  %v9993_v9 = vor.u32 %v11364_v17, %v9992_v32  ;;  %v10253_v17 = vld [vmem:[#allocation11 + $0x170] sm:$0xf0] }
 0x506   :  { %5513 = vmatmul.bf16.vlgmr.msra.gmra.mxu1 %v12903_v37  ;;  %5539 = vmatmul.bf16.vlgmr.msrb.gmra.mxu3 %v12903_v37 }
 0x507   :  { %5873 = vmatpush.bf16.msra.mxu1 %v10061_v43  ;;  %5899 = vmatpush.bf16.msrb.mxu3 %v10069_v16  ;;  %v5052_v63 = vsel %vm12908_vm15, %v11731_v56, %v5048_v50  ;;  %v10010_v56 = vld [vmem:[#allocation9 + $0x90] sm:$0xf0]  ;;  %v10064_v43 = vld [vmem:[#allocation9 + $0xe8] sm:$0xf] }
 0x508   :  { %v5057_v0 = vsel %vm5054_vm0, %v5056_v42, %v5052_v63  ;;  %v10013_v53 = vor.u32 %v11366_v61, %v10010_v56  ;;  %v10065_v27 = vor.u32 %v11381_v8, %v10064_v43  ;;  %v9989_v42 = vor.u32 %v11359_v26, %v9986_v28  ;;  %v9970_v63 = vld [vmem:[#allocation9 + $0x38] sm:$0xf0]  ;;  %v11351_v61 = vld [vmem:[#allocation9 + $0xc] sm:$0xf]  ;;  %v9984_v43 = vld [vmem:[#allocation9 + $0x48] sm:$0xf] }
 0x509   :  { %v5099_v13 = vmul.f32 %v11735_v20, %v5057_v0  ;;  %v11372_v20 = vld [vmem:[#allocation9 + $0xac] sm:$0xf0]  ;;  %v9973_v0 = vor.u32 %v11355_v48, %v9970_v63  ;;  %v9954_v56 = vld [vmem:[#allocation9 + $0x18] sm:$0xf0]  ;;  %v11361_v8 = vld [vmem:[#allocation9 + $0x54] sm:$0xf0] }
 0x50a   :  { %v10025_v11 = vor.u32 %v11372_v20, %v10024_v1  ;;  %v9957_v19 = vor.u32 %v11351_v61, %v9954_v56  ;;  %v9968_v26 = vld [vmem:[#allocation9 + $0x28] sm:$0xf]  ;;  %v11357_v28 = vld [vmem:[#allocation9 + $0x34] sm:$0xf0]  ;;  %v10317_v63 = vld [vmem:[#allocation11 + $0x1f0] sm:$0xf0] }
 0x50b   :  { %5874 = vmatpush.bf16.msra.mxu1 %v10045_v58  ;;  %5900 = vmatpush.bf16.msrb.mxu3 %v10053_v57  ;;  %v12917_v22 = vadd.f32 %v5099_v13, %v5098_v59  ;;  %v11377_v58 = vld [vmem:[#allocation9 + $0xd4] sm:$0xf0]  ;;  %v11354_v57 = vld [vmem:[#allocation9 + $0x24] sm:$0xf]  ;;  %v10032_v59 = vld [vmem:[#allocation9 + $0xa8] sm:$0xf] }
 0x50c   :  { %v10049_v15 = vor.u32 %v11377_v58, %v10048_v54  ;;  %v9965_v4 = vor.u32 %v11354_v57, %v9962_v34  ;;  %v11373_v13 = vld [vmem:[#allocation9 + $0xb4] sm:$0xf0]  ;;  %v10315_v58 = vld [vmem:[#allocation11 + $0x1e0] sm:$0xf]  ;;  %v11444_v57 = vld [vmem:[#allocation11 + $0x1ec] sm:$0xf0] }
 0x50d   :  { %11736 = vtanh.f32 %v12917_v22  ;;  %v10033_v36 = vor.u32 %v11373_v13, %v10032_v59  ;;  %v11442_v34 = vld [vmem:[#allocation11 + $0x1e4] sm:$0xf]  ;;  %v10316_v48 = vor.u32 %v11444_v57, %v10315_v58  ;;  %v11440_v1 = vld [vmem:[#allocation11 + $0x1cc] sm:$0xf0]  ;;  %v10283_v13 = vld [vmem:[#allocation11 + $0x1a0] sm:$0xf] }
 0x50e   :  { %v11438_v20 = vld [vmem:[#allocation11 + $0x1c4] sm:$0xf]  ;;  %v10285_v61 = vld [vmem:[#allocation11 + $0x1b0] sm:$0xf0] }
 0x50f   :  { %5875 = vmatpush.bf16.msra.mxu1 %v10029_v12  ;;  %5901 = vmatpush.bf16.msrb.mxu3 %v10037_v49  ;;  %v11350_v12 = vld [vmem:[#allocation9 + $0x4] sm:$0xf]  ;;  %v9946_v49 = vld [vmem:[#allocation9 + $0x10] sm:$0xf0] }
 0x510   :  { %v9949_v10 = vor.u32 %v11350_v12, %v9946_v49  ;;  %v11436_v12 = vld [vmem:[#allocation11 + $0x1ac] sm:$0xf0]  ;;  %v11434_v49 = vld [vmem:[#allocation11 + $0x1a4] sm:$0xf] }
 0x511   :  { %v10288_v56 = vor.u32 %v11434_v49, %v10285_v61  ;;  %v11414_v61 = vld [vmem:[#allocation11 + $0x104] sm:$0xf] }
 0x513   :  { %5876 = vmatpush.bf16.msra.mxu1 %v10013_v53  ;;  %5902 = vmatpush.bf16.msrb.mxu3 %v10021_v6  ;;  %v11737_v16 = vpop.eup %11736  ;;  %v10016_v53 = vld [vmem:[#allocation9 + $0x88] sm:$0xf]  ;;  %v11369_v6 = vld [vmem:[#allocation9 + $0x94] sm:$0xf0] }
 0x514   :  { %v5102_v30 = vmul.f32 %v11737_v16, %v5096_v24  ;;  %v10017_v44 = vor.u32 %v11369_v6, %v10016_v53  ;;  %v9985_v16 = vor.u32 %v11361_v8, %v9984_v43  ;;  %v9960_v24 = vld [vmem:[#allocation9 + $0x20] sm:$0xf]  ;;  %v10189_v8 = vld [vmem:[#allocation11 + $0xf0] sm:$0xf0] }
 0x515   :  { %v10251_v6 = vld [vmem:[#allocation11 + $0x160] sm:$0xf] }
 0x516   :  { %5565 = vmatmul.bf16.vlgmr.msrb.gmra.mxu1 %v12903_v37  ;;  %5591 = vmatmul.bf16.vlgmr.msra.gmra.mxu3 %v12903_v37  ;;  %v12933_v50 = vpack.c.bf16 %v5102_v30, %v5102_v30  ;;  %v10041_v37 = vor.u32 %v11376_v51, %v10040_v40  ;;  %v9961_v30 = vor.u32 %v11356_v52, %v9960_v24  ;;  %v11352_v40 = vld [vmem:[#allocation9 + $0xc] sm:$0xf0]  ;;  %v9952_v51 = vld [vmem:[#allocation9 + $0x8] sm:$0xf] }
 0x517   :  { %5877 = vmatpush.bf16.msra.mxu1 %v9997_v21  ;;  %5903 = vmatpush.bf16.msrb.mxu3 %v10005_v62  ;;  %v9976_v21 = vld [vmem:[#allocation9 + $0x40] sm:$0xf]  ;;  %v11360_v62 = vld [vmem:[#allocation9 + $0x4c] sm:$0xf0] }
 0x518   :  { %5500 = vmatmul.bf16.vlgmr.msrb.gmra.mxu0 %v12933_v50  ;;  %5526 = vmatmul.bf16.vlgmr.msrb.gmra.mxu2 %v12933_v50  ;;  %v9977_v33 = vor.u32 %v11360_v62, %v9976_v21  ;;  %v11410_v21 = vld [vmem:[#allocation11 + $0xe4] sm:$0xf] }
 0x519   :  { %5860 = vmatpush.bf16.msrb.mxu0 %v10057_v7  ;;  %5886 = vmatpush.bf16.msrb.mxu2 %v10065_v27  ;;  %v9969_v7 = vor.u32 %v11357_v28, %v9968_v26  ;;  %v9944_v27 = vld [vmem:[#allocation9] sm:$0xf]  ;;  %v10192_v24 = vor.u32 %v11410_v21, %v10189_v8  ;;  %v11422_v26 = vld [vmem:[#allocation11 + $0x144] sm:$0xf]  ;;  %v10237_v28 = vld [vmem:[#allocation11 + $0x150] sm:$0xf0] }
 0x51a   :  { %v11439_v8 = vld [vmem:[#allocation11 + $0x1cc] sm:$0xf] }
 0x51b   :  { %5878 = vmatpush.bf16.msra.mxu1 %v9981_v45  ;;  %5904 = vmatpush.bf16.msrb.mxu3 %v9989_v42  ;;  %v11353_v45 = vld [vmem:[#allocation9 + $0x14] sm:$0xf0]  ;;  %v9945_v42 = vor.u32 %v11352_v40, %v9944_v27  ;;  %v11408_v27 = vld [vmem:[#allocation11 + $0xcc] sm:$0xf0]  ;;  %v11406_v40 = vld [vmem:[#allocation11 + $0xc4] sm:$0xf] }
 0x51c   :  { %v9953_v54 = vor.u32 %v11353_v45, %v9952_v51  ;;  %v10173_v45 = vld [vmem:[#allocation11 + $0xd0] sm:$0xf0] }
 0x51d   :  { %5861 = vmatpush.bf16.msrb.mxu0 %v10041_v37  ;;  %5887 = vmatpush.bf16.msrb.mxu2 %v10049_v15  ;;  %v10320_v37 = vor.u32 %v11442_v34, %v10317_v63  ;;  %v10299_v15 = vld [vmem:[#allocation11 + $0x1c0] sm:$0xf]  ;;  %v10176_v58 = vor.u32 %v11406_v40, %v10173_v45  ;;  %v11418_v34 = vld [vmem:[#allocation11 + $0x124] sm:$0xf]  ;;  %v10125_v45 = vld [vmem:[#allocation11 + $0x70] sm:$0xf0] }
 0x51f   :  { %5879 = vmatpush.bf16.msra.mxu1 %v9965_v4  ;;  %5905 = vmatpush.bf16.msrb.mxu3 %v9973_v0  ;;  %v10300_v4 = vor.u32 %v11440_v1, %v10299_v15  ;;  %v10301_v0 = vld [vmem:[#allocation11 + $0x1d0] sm:$0xf0]  ;;  %v10155_v15 = vld [vmem:[#allocation11 + $0xa0] sm:$0xf]  ;;  %v11404_v1 = vld [vmem:[#allocation11 + $0xac] sm:$0xf0] }
 0x520   :  { %v10304_v59 = vor.u32 %v11438_v20, %v10301_v0  ;;  %v11402_v20 = vld [vmem:[#allocation11 + $0xa4] sm:$0xf]  ;;  %v10156_v0 = vor.u32 %v11404_v1, %v10155_v15  ;;  %v10107_v1 = vld [vmem:[#allocation11 + $0x40] sm:$0xf] }
 0x521   :  { %5862 = vmatpush.bf16.msrb.mxu0 %v10025_v11  ;;  %5888 = vmatpush.bf16.msrb.mxu2 %v10033_v36  ;;  %v10267_v11 = vld [vmem:[#allocation11 + $0x180] sm:$0xf]  ;;  %v11432_v36 = vld [vmem:[#allocation11 + $0x18c] sm:$0xf0] }
 0x522   :  { %v10268_v55 = vor.u32 %v11432_v36, %v10267_v11  ;;  %v10323_v11 = vld [vmem:[#allocation11 + $0x1e8] sm:$0xf] }
 0x523   :  { %5880 = vmatpush.bf16.msra.mxu1 %v9949_v10  ;;  %5906 = vmatpush.bf16.msrb.mxu3 %v9957_v19  ;;  %v11430_v10 = vld [vmem:[#allocation11 + $0x184] sm:$0xf] }
 0x524   :  { %v10272_v53 = vor.u32 %v11430_v10, %v10269_v29  ;;  %v11445_v10 = vld [vmem:[#allocation11 + $0x1f4] sm:$0xf0]  ;;  %v10325_v29 = vld [vmem:[#allocation11 + $0x1f8] sm:$0xf0] }
 0x525   :  { %5863 = vmatpush.bf16.msrb.mxu0 %v10009_v25  ;;  %5889 = vmatpush.bf16.msrb.mxu2 %v10017_v44  ;;  %v11428_v25 = vld [vmem:[#allocation11 + $0x16c] sm:$0xf0]  ;;  %v11426_v44 = vld [vmem:[#allocation11 + $0x164] sm:$0xf] }
 0x526   :  { %5881 = vmatmul.bf16.vlgmr.msra.gmra.mxu1 %v12933_v50  ;;  %5907 = vmatmul.bf16.vlgmr.msrb.gmra.mxu3 %v12933_v50  ;;  %v10252_v32 = vor.u32 %v11428_v25, %v10251_v6  ;;  %v10256_v47 = vor.u32 %v11426_v44, %v10253_v17  ;;  %v10324_v6 = vor.u32 %v11445_v10, %v10323_v11  ;;  %v10139_v44 = vld [vmem:[#allocation11 + $0x80] sm:$0xf]  ;;  %v11398_v17 = vld [vmem:[#allocation11 + $0x84] sm:$0xf] }
 0x527   :  { %6382 = vmatpush.bf16.msrb.mxu1 %v10316_v48  ;;  %6408 = vmatpush.bf16.msra.mxu3 %v10320_v37  ;;  %v10221_v48 = vld [vmem:[#allocation11 + $0x130] sm:$0xf0] }
 0x528   :  { %5552 = vmatmul.bf16.vlgmr.msra.gmra.mxu0 %v12933_v50  ;;  %5578 = vmatmul.bf16.vlgmr.msra.gmra.mxu2 %v12933_v50  ;;  %v10224_v37 = vor.u32 %v11418_v34, %v10221_v48 }
 0x529   :  { %5864 = vmatpush.bf16.msrb.mxu0 %v9993_v9  ;;  %5890 = vmatpush.bf16.msrb.mxu2 %v10001_v41  ;;  %v10187_v9 = vld [vmem:[#allocation11 + $0xe0] sm:$0xf]  ;;  %v11412_v41 = vld [vmem:[#allocation11 + $0xec] sm:$0xf0] }
 0x52a   :  { %v10188_v43 = vor.u32 %v11412_v41, %v10187_v9  ;;  %v10141_v41 = vld [vmem:[#allocation11 + $0x90] sm:$0xf0] }
 0x52b   :  { %6383 = vmatpush.bf16.msrb.mxu1 %v10300_v4  ;;  %6409 = vmatpush.bf16.msra.mxu3 %v10304_v59  ;;  %v10157_v59 = vld [vmem:[#allocation11 + $0xb0] sm:$0xf0]  ;;  %v10144_v21 = vor.u32 %v11398_v17, %v10141_v41 }
 0x52c   :  { %v10160_v49 = vor.u32 %v11402_v20, %v10157_v59  ;;  %v11392_v20 = vld [vmem:[#allocation11 + $0x4c] sm:$0xf0]  ;;  %v10093_v17 = vld [vmem:[#allocation11 + $0x30] sm:$0xf0] }
 0x52d   :  { %5865 = vmatpush.bf16.msrb.mxu0 %v9977_v33  ;;  %5891 = vmatpush.bf16.msrb.mxu2 %v9985_v16  ;;  %v10235_v33 = vld [vmem:[#allocation11 + $0x140] sm:$0xf]  ;;  %v11424_v16 = vld [vmem:[#allocation11 + $0x14c] sm:$0xf0] }
 0x52e   :  { %v10236_v52 = vor.u32 %v11424_v16, %v10235_v33 }
 0x52f   :  { %6410 = vmatpush.bf16.msra.mxu3 %v10288_v56  ;;  %v10205_v56 = vld [vmem:[#allocation11 + $0x110] sm:$0xf0] }
 0x530   :  { %v10208_v36 = vor.u32 %v11414_v61, %v10205_v56  ;;  %v11433_v61 = vld [vmem:[#allocation11 + $0x194] sm:$0xf0]  ;;  %v11431_v56 = vld [vmem:[#allocation11 + $0x18c] sm:$0xf] }
 0x531   :  { %5866 = vmatpush.bf16.msrb.mxu0 %v9961_v30  ;;  %5892 = vmatpush.bf16.msrb.mxu2 %v9969_v7  ;;  %v10240_v30 = vor.u32 %v11422_v26, %v10237_v28  ;;  %v10171_v7 = vld [vmem:[#allocation11 + $0xc0] sm:$0xf] }
 0x532   :  { %v10172_v51 = vor.u32 %v11408_v27, %v10171_v7  ;;  %v10123_v28 = vld [vmem:[#allocation11 + $0x60] sm:$0xf]  ;;  %v11394_v7 = vld [vmem:[#allocation11 + $0x64] sm:$0xf] }
 0x533   :  { %6411 = vmatpush.bf16.msra.mxu3 %v10272_v53 }
 0x535   :  { %5867 = vmatpush.bf16.msrb.mxu0 %v9945_v42  ;;  %5893 = vmatpush.bf16.msrb.mxu2 %v9953_v54  ;;  %v10219_v42 = vld [vmem:[#allocation11 + $0x120] sm:$0xf]  ;;  %v11420_v54 = vld [vmem:[#allocation11 + $0x12c] sm:$0xf0] }
 0x536   :  { %v10220_v57 = vor.u32 %v11420_v54, %v10219_v42  ;;  %v10128_v54 = vor.u32 %v11394_v7, %v10125_v45  ;;  %v11384_v7 = vld [vmem:[#allocation11 + $0xc] sm:$0xf0] }
 0x537   :  { %6412 = vmatpush.bf16.msra.mxu3 %v10256_v47 }
 0x538   :  { %5868 = vmatmul.bf16.vlgmr.msrb.gmra.mxu0 %v12933_v50  ;;  %5894 = vmatmul.bf16.vlgmr.msrb.gmra.mxu2 %v12933_v50  ;;  %v10284_v50 = vor.u32 %v11436_v12, %v10283_v13  ;;  %v10203_v13 = vld [vmem:[#allocation11 + $0x100] sm:$0xf]  ;;  %v11416_v12 = vld [vmem:[#allocation11 + $0x10c] sm:$0xf0] }
 0x539   :  { %6369 = vmatpush.bf16.msra.mxu0 %v10188_v43  ;;  %6395 = vmatpush.bf16.msra.mxu2 %v10192_v24  ;;  %v11441_v43 = vld [vmem:[#allocation11 + $0x1d4] sm:$0xf0] }
 0x53a   :  { %6384 = vmatpush.bf16.msrb.mxu1 %v10284_v50  ;;  %v10204_v50 = vor.u32 %v11416_v12, %v10203_v13  ;;  %v10108_v13 = vor.u32 %v11392_v20, %v10107_v1  ;;  %v10109_v12 = vld [vmem:[#allocation11 + $0x50] sm:$0xf0]  ;;  %v11425_v1 = vld [vmem:[#allocation11 + $0x154] sm:$0xf0]  ;;  %v11423_v20 = vld [vmem:[#allocation11 + $0x14c] sm:$0xf] }
 0x53b   :  { %6413 = vmatpush.bf16.msra.mxu3 %v10240_v30  ;;  %v11396_v30 = vld [vmem:[#allocation11 + $0x6c] sm:$0xf0] }
 0x53d   :  { %6370 = vmatpush.bf16.msra.mxu0 %v10172_v51  ;;  %6396 = vmatpush.bf16.msra.mxu2 %v10176_v58  ;;  %v10124_v51 = vor.u32 %v11396_v30, %v10123_v28  ;;  %v10291_v58 = vld [vmem:[#allocation11 + $0x1a8] sm:$0xf]  ;;  %v10075_v28 = vld [vmem:[#allocation11] sm:$0xf] }
 0x53e   :  { %6385 = vmatpush.bf16.msrb.mxu1 %v10268_v55  ;;  %v11443_v55 = vld [vmem:[#allocation11 + $0x1ec] sm:$0xf] }
 0x53f   :  { %6414 = vmatpush.bf16.msra.mxu3 %v10224_v37  ;;  %v10328_v25 = vor.u32 %v11443_v55, %v10325_v29  ;;  %v10277_v55 = vld [vmem:[#allocation11 + $0x198] sm:$0xf0] }
 0x540   :  { %v10280_v29 = vor.u32 %v11431_v56, %v10277_v55  ;;  %v11409_v56 = vld [vmem:[#allocation11 + $0xd4] sm:$0xf0] }
 0x541   :  { %6371 = vmatpush.bf16.msra.mxu0 %v10156_v0  ;;  %6397 = vmatpush.bf16.msra.mxu2 %v10160_v49  ;;  %v11390_v0 = vld [vmem:[#allocation11 + $0x44] sm:$0xf] }
 0x542   :  { %6386 = vmatpush.bf16.msrb.mxu1 %v10252_v32  ;;  %v11400_v32 = vld [vmem:[#allocation11 + $0x8c] sm:$0xf0]  ;;  %v10112_v49 = vor.u32 %v11390_v0, %v10109_v12  ;;  %v10245_v0 = vld [vmem:[#allocation11 + $0x158] sm:$0xf0] }
 0x543   :  { %6415 = vmatpush.bf16.msra.mxu3 %v10208_v36  ;;  %v10140_v9 = vor.u32 %v11400_v32, %v10139_v44  ;;  %v10248_v55 = vor.u32 %v11423_v20, %v10245_v0  ;;  %v10147_v20 = vld [vmem:[#allocation11 + $0x88] sm:$0xf] }
 0x545   :  { %6372 = vmatpush.bf16.msra.mxu0 %v10140_v9  ;;  %6398 = vmatpush.bf16.msra.mxu2 %v10144_v21 }
 0x546   :  { %6387 = vmatpush.bf16.msrb.mxu1 %v10236_v52  ;;  %v10309_v52 = vld [vmem:[#allocation11 + $0x1d8] sm:$0xf0] }
 0x547   :  { %6460 = vmatpush.bf16.msrb.mxu3 %v10328_v25  ;;  %v10312_v26 = vor.u32 %v11439_v8, %v10309_v52  ;;  %v11386_v25 = vld [vmem:[#allocation11 + $0x24] sm:$0xf] }
 0x548   :  { %v10096_v21 = vor.u32 %v11386_v25, %v10093_v17 }
 0x549   :  { %6373 = vmatpush.bf16.msra.mxu0 %v10124_v51  ;;  %6399 = vmatpush.bf16.msra.mxu2 %v10128_v54  ;;  %v10195_v51 = vld [vmem:[#allocation11 + $0xe8] sm:$0xf]  ;;  %v11413_v54 = vld [vmem:[#allocation11 + $0xf4] sm:$0xf0] }
 0x54a   :  { %6388 = vmatpush.bf16.msrb.mxu1 %v10220_v57  ;;  %v11435_v57 = vld [vmem:[#allocation11 + $0x1ac] sm:$0xf] }
 0x54b   :  { %6461 = vmatpush.bf16.msrb.mxu3 %v10312_v26 }
 0x54d   :  { %6374 = vmatpush.bf16.msra.mxu0 %v10108_v13  ;;  %6400 = vmatpush.bf16.msra.mxu2 %v10112_v49 }
 0x54e   :  { %6389 = vmatpush.bf16.msrb.mxu1 %v10204_v50  ;;  %v10275_v50 = vld [vmem:[#allocation11 + $0x188] sm:$0xf] }
 0x54f   :  { %v10276_v10 = vor.u32 %v11433_v61, %v10275_v50  ;;  %v10179_v61 = vld [vmem:[#allocation11 + $0xc8] sm:$0xf] }
 0x551   :  { %6401 = vmatpush.bf16.msra.mxu2 %v10096_v21  ;;  %v10163_v21 = vld [vmem:[#allocation11 + $0xa8] sm:$0xf] }
 0x552   :  { %6434 = vmatpush.bf16.msra.mxu1 %v10324_v6  ;;  %v11388_v6 = vld [vmem:[#allocation11 + $0x2c] sm:$0xf0] }
 0x583   :  { %v12943_v19 = vpop.f32.mrf.mxu1 }
 0x589   :  { %v12945_v31 = vpop.f32.mrf.mxu3 }
 0x58b   :  { %v5516_v62 = vpop.f32.mrf.mxu1 }
 0x58c   :  { %v10307_v62 = vld [vmem:[#allocation11 + $0x1c8] sm:$0xf] }
 0x58d   :  { %v10308_v24 = vor.u32 %v11441_v43, %v10307_v62  ;;  %v10259_v62 = vld [vmem:[#allocation11 + $0x168] sm:$0xf]  ;;  %v11429_v43 = vld [vmem:[#allocation11 + $0x174] sm:$0xf0] }
 0x58e   :  { %v10260_v8 = vor.u32 %v11429_v43, %v10259_v62  ;;  %v11405_v62 = vld [vmem:[#allocation11 + $0xb4] sm:$0xf0] }
 0x58f   :  { %6435 = vmatpush.bf16.msra.mxu1 %v10308_v24  ;;  %v10261_v24 = vld [vmem:[#allocation11 + $0x178] sm:$0xf0] }
 0x591   :  { %v5542_v63 = vpop.f32.mrf.mxu3 }
 0x592   :  { %v10293_v63 = vld [vmem:[#allocation11 + $0x1b8] sm:$0xf0] }
 0x593   :  { %v12947_v4 = vpop.f32.mrf.mxu1  ;;  %v10296_v15 = vor.u32 %v11435_v57, %v10293_v63  ;;  %v10243_v63 = vld [vmem:[#allocation11 + $0x148] sm:$0xf] }
 0x595   :  { %v5501_v53 = vpop.f32.mrf.mxu0  ;;  %6462 = vmatpush.bf16.msrb.mxu3 %v10296_v15 }
 0x596   :  { %v5502_v47 = vadd.f32 %v5501_v53, %v12196_v46  ;;  %v10091_v53 = vld [vmem:[#allocation11 + $0x20] sm:$0xf] }
 0x597   :  { %v10092_v32 = vor.u32 %v11388_v6, %v10091_v53  ;;  %v10227_v53 = vld [vmem:[#allocation11 + $0x128] sm:$0xf] }
 0x598   :  { %v5515_v33 = vadd.f32 %v12943_v19, %v5502_v47  ;;  %v11437_v19 = vld [vmem:[#allocation11 + $0x1b4] sm:$0xf0] }
 0x599   :  { %v12951_v16 = vpop.f32.mrf.mxu3  ;;  %v10292_v48 = vor.u32 %v11437_v19, %v10291_v58  ;;  %6463 = vmatpush.bf16.msrb.mxu3 %v10280_v29  ;;  %6375 = vmatpush.bf16.msra.mxu0 %v10092_v32  ;;  %v11411_v58 = vld [vmem:[#allocation11 + $0xec] sm:$0xf]  ;;  %v10181_v29 = vld [vmem:[#allocation11 + $0xd8] sm:$0xf0] }
 0x59a   :  { %v9939_v27 = vmul.f32 -1.442695, %v5515_v33  ;;  %v11427_v33 = vld [vmem:[#allocation11 + $0x16c] sm:$0xf] }
 0x59b   :  { %v5568_v40 = vpop.f32.mrf.mxu1  ;;  %v5527_v42 = vpop.f32.mrf.mxu2  ;;  %6436 = vmatpush.bf16.msra.mxu1 %v10292_v48  ;;  %v10264_v30 = vor.u32 %v11427_v33, %v10261_v24  ;;  %v10197_v48 = vld [vmem:[#allocation11 + $0xf8] sm:$0xf0]  ;;  %v11419_v32 = vld [vmem:[#allocation11 + $0x12c] sm:$0xf] }
 0x59c   :  { %11738 = vpow2.f32 %v9939_v27  ;;  %v5528_v34 = vadd.f32 %v5527_v42, %v12200_v18  ;;  %v11382_v27 = vld [vmem:[#allocation11 + $0x4] sm:$0xf]  ;;  %v10077_v40 = vld [vmem:[#allocation11 + $0x10] sm:$0xf0]  ;;  %v10200_v15 = vor.u32 %v11411_v58, %v10197_v48  ;;  %v11403_v33 = vld [vmem:[#allocation11 + $0xac] sm:$0xf] }
 0x59d   :  { %v5503_v37 = vpop.f32.mrf.mxu0  ;;  %6464 = vmatpush.bf16.msrb.mxu3 %v10264_v30  ;;  %v10080_v42 = vor.u32 %v11382_v27, %v10077_v40  ;;  %v10165_v24 = vld [vmem:[#allocation11 + $0xb8] sm:$0xf0]  ;;  %v10164_v27 = vor.u32 %v11405_v62, %v10163_v21  ;;  %v11395_v62 = vld [vmem:[#allocation11 + $0x6c] sm:$0xf] }
 0x59e   :  { %v5541_v59 = vadd.f32 %v12945_v31, %v5528_v34  ;;  %v10196_v34 = vor.u32 %v11413_v54, %v10195_v51  ;;  %v10168_v54 = vor.u32 %v11403_v33, %v10165_v24 }
 0x59f   :  { %6437 = vmatpush.bf16.msra.mxu1 %v10276_v10  ;;  %6402 = vmatpush.bf16.msra.mxu2 %v10080_v42  ;;  %v10244_v10 = vor.u32 %v11425_v1, %v10243_v63 }
 0x5a0   :  { %v9940_v11 = vmul.f32 -1.442695, %v5541_v59 }
 0x5a1   :  { %v5594_v36 = vpop.f32.mrf.mxu3  ;;  %6465 = vmatpush.bf16.msrb.mxu3 %v10248_v55 }
 0x5a2   :  { %v11739_v44 = vpop.eup %11738  ;;  %11740 = vpow2.f32 %v9940_v11  ;;  %v11407_v11 = vld [vmem:[#allocation11 + $0xcc] sm:$0xf] }
 0x5a3   :  { %v5882_v31 = vpop.f32.mrf.mxu1  ;;  %v12955_v47 = vadd.f32 1.0, %v11739_v44  ;;  %v5529_v41 = vpop.f32.mrf.mxu2  ;;  %6438 = vmatpush.bf16.msra.mxu1 %v10260_v8  ;;  %6447 = vmatpush.bf16.msrb.mxu2 %v10200_v15  ;;  %v10184_v17 = vor.u32 %v11407_v11, %v10181_v29  ;;  %v10085_v11 = vld [vmem:[#allocation11 + $0x18] sm:$0xf0] }
 0x5a4   :  { %v5913_v9 = vadd.f32 %v5882_v31, %v12131_v60  ;;  %v10076_v60 = vor.u32 %v11384_v7, %v10075_v28  ;;  %v11421_v31 = vld [vmem:[#allocation11 + $0x134] sm:$0xf0]  ;;  %v10229_v41 = vld [vmem:[#allocation11 + $0x138] sm:$0xf0] }
 0x5a5   :  { %11742 = vrcp.f32 %v12955_v47  ;;  %v5553_v26 = vpop.f32.mrf.mxu0  ;;  %v10232_v7 = vor.u32 %v11419_v32, %v10229_v41  ;;  %vm5606_vm7 = vweird.f32 %v12955_v47  ;;  %v10131_v32 = vld [vmem:[#allocation11 + $0x68] sm:$0xf] }
 0x5a6   :  { %v10071_v52 = vmul.f32 -1.442695, %v5913_v9  ;;  %6376 = vmatpush.bf16.msra.mxu0 %v10076_v60  ;;  %v10228_v9 = vor.u32 %v11421_v31, %v10227_v53  ;;  %v5554_v43 = vadd.f32 %v5553_v26, %v12226_v5  ;;  %v10211_v60 = vld [vmem:[#allocation11 + $0x108] sm:$0xf]  ;;  %v11417_v26 = vld [vmem:[#allocation11 + $0x114] sm:$0xf0] }
 0x5a7   :  { %6439 = vmatpush.bf16.msra.mxu1 %v10244_v10  ;;  %6448 = vmatpush.bf16.msrb.mxu2 %v10184_v17  ;;  %v10212_v58 = vor.u32 %v11417_v26, %v10211_v60 }
 0x5a8   :  { %v11741_v45 = vpop.eup %11740  ;;  %11744 = vpow2.f32 %v10071_v52  ;;  %6466 = vmatpush.bf16.msrb.mxu3 %v10232_v7  ;;  %v5567_v48 = vadd.f32 %v12947_v4, %v5554_v43  ;;  %v11391_v7 = vld [vmem:[#allocation11 + $0x4c] sm:$0xf] }
 0x5a9   :  { %v12959_v19 = vadd.f32 1.0, %v11741_v45  ;;  %v5908_v57 = vpop.f32.mrf.mxu3  ;;  %v11415_v45 = vld [vmem:[#allocation11 + $0x10c] sm:$0xf] }
 0x5aa   :  { %6421 = vmatpush.bf16.msrb.mxu0 %v10196_v34  ;;  %v5915_v49 = vadd.f32 %v5908_v57, %v12118_v38  ;;  %v10180_v38 = vor.u32 %v11409_v56, %v10179_v61  ;;  %v10213_v57 = vld [vmem:[#allocation11 + $0x118] sm:$0xf0]  ;;  %v5612_v56 = vand.u32 2147483648, %v12955_v47 }
 0x5ab   :  { %v5884_v37 = vpop.f32.mrf.mxu1  ;;  %v12961_v59 = vpop.eup %11742  ;;  %11746 = vrcp.f32 %v12959_v19  ;;  %6440 = vmatpush.bf16.msra.mxu1 %v10228_v9  ;;  %v10216_v63 = vor.u32 %v11415_v45, %v10213_v57  ;;  %v5629_v15 = vand.u32 2147483647, %v12959_v19  ;;  %6449 = vmatpush.bf16.msrb.mxu2 %v10168_v54  ;;  %v10149_v61 = vld [vmem:[#allocation11 + $0x98] sm:$0xf0]  ;;  %vm5625_vm8 = vweird.f32 %v12959_v19  ;;  %v11389_v57 = vld [vmem:[#allocation11 + $0x34] sm:$0xf0] }
 0x5ac   :  { %v5579_v13 = vpop.f32.mrf.mxu2  ;;  %v5602_v12 = vmul.f32 %v12961_v59, %v12955_v47  ;;  %v10072_v8 = vmul.f32 -1.442695, %v5915_v49  ;;  %v5631_v37 = vand.u32 2147483648, %v12959_v19  ;;  %vm5607_vm5 = vweird.f32 %v12961_v59  ;;  %v11401_v49 = vld [vmem:[#allocation11 + $0x94] sm:$0xf0] }
 0x5ad   :  { %v5580_v50 = vadd.f32 %v5579_v13, %v12218_v35  ;;  %v5555_v36 = vpop.f32.mrf.mxu0  ;;  %v13309_v13 = vld [vmem:[#allocation17_spill] sm:$0xff]  ;;  %6467 = vmatpush.bf16.msrb.mxu3 %v10216_v63  ;;  %vm12991_vm9 = vmor %vm5606_vm7, %vm5607_vm5  ;;  %vm5630_vm11 = vcmp.eq.f32.partialorder %v5629_v15, 8.507059e+37  ;;  %v5613_v9 = vor.u32 1.1754944e-38, %v5612_v56  ;;  %v10101_v15 = vld [vmem:[#allocation11 + $0x38] sm:$0xf0] }
 0x5ae   :  { %v11745_v6 = vpop.eup %11744  ;;  %v5603_v25 = vsub.f32 1.0, %v5602_v12  ;;  %6422 = vmatpush.bf16.msrb.mxu0 %v10180_v38  ;;  %v5610_v36 = vand.u32 2147483647, %v12955_v47  ;;  %v5632_v53 = vor.u32 1.1754944e-38, %v5631_v37  ;;  %v11397_v38 = vld [vmem:[#allocation11 + $0x74] sm:$0xf0] }
 0x5af   :  { %v5593_v44 = vadd.f32 %v12951_v16, %v5580_v50  ;;  %v12972_v28 = vadd.f32 1.0, %v11745_v6  ;;  %v11399_v50 = vld [vmem:[#allocation11 + $0x8c] sm:$0xf]  ;;  %6441 = vmatpush.bf16.msra.mxu1 %v10212_v58  ;;  %v10148_v6 = vor.u32 %v11401_v49, %v10147_v20  ;;  %v10132_v33 = vor.u32 %v11397_v38, %v10131_v32  ;;  %v10099_v58 = vld [vmem:[#allocation11 + $0x28] sm:$0xf] }
 0x5b0   :  { %v5604_v51 = vmul.f32 %v12961_v59, %v5603_v25  ;;  %v10152_v25 = vor.u32 %v11399_v50, %v10149_v61  ;;  %vm5611_vm12 = vcmp.eq.f32.partialorder %v5610_v36, 8.507059e+37  ;;  %v11387_v37 = vld [vmem:[#allocation11 + $0x2c] sm:$0xf]  ;;  %v10100_v20 = vor.u32 %v11389_v57, %v10099_v58  ;;  %v11385_v49 = vld [vmem:[#allocation11 + $0x14] sm:$0xf0] }
 0x5b1   :  { %v12970_v52 = vpop.eup %11746  ;;  %v9941_v16 = vmul.f32 -1.442695, %v5593_v44  ;;  %v5910_v30 = vpop.f32.mrf.mxu3  ;;  %v11383_v56 = vld [vmem:[#allocation11 + $0xc] sm:$0xf]  ;;  %v11474_v38 = vld [vmem:[#allocation9 + $0xe4] sm:$0xf]  ;;  %vm5945_vm2 = vweird.f32 %v12972_v28 }
 0x5b2   :  { %v5621_v40 = vmul.f32 %v12970_v52, %v12959_v19  ;;  %6423 = vmatpush.bf16.msrb.mxu0 %v10164_v27  ;;  %vm5626_vm6 = vweird.f32 %v12970_v52  ;;  %v5605_v4 = vadd.f32 %v12961_v59, %v5604_v51  ;;  %6450 = vmatpush.bf16.msrb.mxu2 %v10152_v25  ;;  %v11393_v30 = vld [vmem:[#allocation11 + $0x54] sm:$0xf0]  ;;  %v10117_v51 = vld [vmem:[#allocation11 + $0x58] sm:$0xf0] }
 0x5b3   :  { %11748 = vpow2.f32 %v9941_v16  ;;  %vm5627_vm10 = vmor %vm5625_vm8, %vm5626_vm6  ;;  %v10115_v16 = vld [vmem:[#allocation11 + $0x48] sm:$0xf]  ;;  %v10120_v54 = vor.u32 %v11391_v7, %v10117_v51  ;;  %v10440_v57 = vld [vmem:[#allocation9 + $0xd8] sm:$0xf0] }
 0x5b4   :  { %v5581_v42 = vpop.f32.mrf.mxu2  ;;  %v5622_v34 = vsub.f32 1.0, %v5621_v40  ;;  %11750 = vpow2.f32 %v10072_v8  ;;  %v5609_v44 = vsel %vm12991_vm9, %v12961_v59, %v5605_v4  ;;  %v10133_v59 = vld [vmem:[#allocation11 + $0x78] sm:$0xf0]  ;;  %v10083_v4 = vld [vmem:[#allocation11 + $0x8] sm:$0xf] }
 0x5b5   :  { %11752 = vrcp.f32 %v12972_v28  ;;  %v5869_v1 = vpop.f32.mrf.mxu0  ;;  %v5614_v43 = vsel %vm5611_vm12, %v5613_v9, %v5609_v44  ;;  %v10136_v40 = vor.u32 %v11395_v62, %v10133_v59  ;;  %v10116_v42 = vor.u32 %v11393_v30, %v10115_v16  ;;  %v10448_v9 = vld [vmem:[#allocation9 + $0xf0] sm:$0xf0]  ;;  %v11475_v59 = vld [vmem:[#allocation9 + $0xec] sm:$0xf] }
 0x5b6   :  { %v5623_v0 = vmul.f32 %v12970_v52, %v5622_v34  ;;  %v5912_v12 = vadd.f32 %v5869_v1, %v13309_v13  ;;  %11754 = vtanh.f32 %v5567_v48  ;;  %6424 = vmatpush.bf16.msrb.mxu0 %v10148_v6  ;;  %v10088_v6 = vor.u32 %v11383_v56, %v10085_v11 }
 0x5b7   :  { %6451 = vmatpush.bf16.msrb.mxu2 %v10136_v40  ;;  %v5949_v16 = vand.u32 2147483647, %v12972_v28  ;;  %v10451_v7 = vor.u32 %v11474_v38, %v10448_v9  ;;  %v11465_v38 = vld [vmem:[#allocation9 + $0x94] sm:$0xf0] }
 0x5b8   :  { %v5624_v10 = vadd.f32 %v12970_v52, %v5623_v0  ;;  %v10070_v55 = vmul.f32 -1.442695, %v5912_v12  ;;  %v10104_v12 = vor.u32 %v11387_v37, %v10101_v15 }
 0x5b9   :  { %v11749_v29 = vpop.eup %11748  ;;  %vm5950_vm6 = vcmp.eq.f32.partialorder %v5949_v16, 8.507059e+37  ;;  %v10454_v16 = vld [vmem:[#allocation9 + $0xe8] sm:$0xf] }
 0x5ba   :  { %v11751_v19 = vpop.eup %11750  ;;  %v5628_v31 = vsel %vm5627_vm10, %v12970_v52, %v5624_v10  ;;  %v13003_v47 = vadd.f32 1.0, %v11749_v29  ;;  %11756 = vpow2.f32 %v10070_v55  ;;  %6425 = vmatpush.bf16.msrb.mxu0 %v10132_v33  ;;  %v10084_v55 = vor.u32 %v11385_v49, %v10083_v4  ;;  %v11466_v4 = vld [vmem:[#allocation9 + $0xa4] sm:$0xf]  ;;  %v10424_v49 = vld [vmem:[#allocation9 + $0xb8] sm:$0xf0] }
 0x5bb   :  { %v13005_v17 = vpop.eup %11752  ;;  %v5633_v41 = vsel %vm5630_vm11, %v5632_v53, %v5628_v31  ;;  %v13011_v60 = vadd.f32 1.0, %v11751_v19  ;;  %6452 = vmatpush.bf16.msrb.mxu2 %v10120_v54  ;;  %v13312_v19 = vld [vmem:[#allocation19_spill] sm:$0xff] }
 0x5bc   :  { %11758 = vrcp.f32 %v13003_v47  ;;  %v5895_v21 = vpop.f32.mrf.mxu2  ;;  %v5941_v24 = vmul.f32 %v13005_v17, %v12972_v28  ;;  %v5655_v52 = vmul.f32 %v5633_v41, %v12868_v14  ;;  %v11755_v27 = vpop.eup %11754  ;;  %v5651_v61 = vand.u32 2147483648, %v13003_v47 }
 0x5bd   :  { %v5871_v8 = vpop.f32.mrf.mxu0  ;;  %v5656_v26 = vmul.f32 %v11755_v27, %v5614_v43  ;;  %11760 = vrcp.f32 %v13011_v60  ;;  %v5649_v10 = vand.u32 2147483647, %v13003_v47  ;;  %vm5645_vm14 = vweird.f32 %v13003_v47 }
 0x5be   :  { %v5942_v48 = vsub.f32 1.0, %v5941_v24  ;;  %6426 = vmatpush.bf16.msrb.mxu0 %v10116_v42  ;;  %vm5946_vm15 = vweird.f32 %v13005_v17  ;;  %v5914_v44 = vadd.f32 %v5895_v21, %v13312_v19  ;;  %v5652_v32 = vor.u32 1.1754944e-38, %v5651_v61  ;;  %v11463_v19 = vld [vmem:[#allocation9 + $0x8c] sm:$0xf] }
 0x5bf   :  { %v13013_v63 = vadd.f32 %v5656_v26, %v5655_v52  ;;  %6453 = vmatpush.bf16.msrb.mxu2 %v10104_v12  ;;  %vm5650_vm1 = vcmp.eq.f32.partialorder %v5649_v10, 8.507059e+37  ;;  %v5951_v8 = vand.u32 2147483648, %v12972_v28  ;;  %vm13037_vm3 = vmor %vm5945_vm2, %vm5946_vm15  ;;  %v11470_v26 = vld [vmem:[#allocation9 + $0xc4] sm:$0xf]  ;;  %v11471_v28 = vld [vmem:[#allocation9 + $0xcc] sm:$0xf]  ;;  %vm5965_vm10 = vweird.f32 %v13011_v60 }
 0x5c0   :  { %v11757_v45 = vpop.eup %11756  ;;  %v5943_v50 = vmul.f32 %v13005_v17, %v5942_v48  ;;  %v11467_v12 = vld [vmem:[#allocation9 + $0xac] sm:$0xf] }
 0x5c1   :  { %v13015_v14 = vadd.f32 1.0, %v11757_v45  ;;  %v10432_v45 = vld [vmem:[#allocation9 + $0xd0] sm:$0xf0] }
 0x5c2   :  { %v11759_v34 = vpop.eup %11758  ;;  %6427 = vmatpush.bf16.msrb.mxu0 %v10100_v20  ;;  %v5944_v31 = vadd.f32 %v13005_v17, %v5943_v50  ;;  %v10435_v20 = vor.u32 %v11470_v26, %v10432_v45  ;;  %v11455_v26 = vld [vmem:[#allocation9 + $0x4c] sm:$0xf]  ;;  %v10376_v45 = vld [vmem:[#allocation9 + $0x58] sm:$0xf0] }
 0x5c3   :  { %v5641_v1 = vmul.f32 %v11759_v34, %v13003_v47  ;;  %11762 = vrcp.f32 %v13015_v14  ;;  %vm5646_vm13 = vweird.f32 %v11759_v34  ;;  %v13024_v29 = vpop.eup %11760  ;;  %v10456_v47 = vld [vmem:[#allocation9 + $0xf8] sm:$0xf0]  ;;  %6454 = vmatpush.bf16.msrb.mxu2 %v10088_v6  ;;  %v5932_v27 = vand.u32 2147483648, %v13015_v14 }
 0x5c4   :  { %v5897_v0 = vpop.f32.mrf.mxu2  ;;  %11764 = vtanh.f32 %v13013_v63  ;;  %vm5647_vm0 = vmor %vm5645_vm14, %vm5646_vm13  ;;  %v5961_v21 = vmul.f32 %v13024_v29, %v13011_v60  ;;  %v5948_v40 = vsel %vm13037_vm3, %v13005_v17, %v5944_v31  ;;  %v10459_v51 = vor.u32 %v11475_v59, %v10456_v47  ;;  %v10384_v59 = vld [vmem:[#allocation9 + $0x70] sm:$0xf0]  ;;  %v11459_v47 = vld [vmem:[#allocation9 + $0x6c] sm:$0xf] }
 0x5c5   :  { %v5642_v13 = vsub.f32 1.0, %v5641_v1  ;;  %11766 = vtanh.f32 %v5914_v44  ;;  %v5930_v54 = vand.u32 2147483647, %v13015_v14  ;;  %vm5926_vm5 = vweird.f32 %v13015_v14  ;;  %v10408_v44 = vld [vmem:[#allocation9 + $0x98] sm:$0xf0] }
 0x5c6   :  { %6428 = vmatpush.bf16.msrb.mxu0 %v10084_v55  ;;  %v5962_v48 = vsub.f32 1.0, %v5961_v21  ;;  %v5933_v15 = vor.u32 1.1754944e-38, %v5932_v27  ;;  %v10443_v0 = vor.u32 %v11471_v28, %v10440_v57  ;;  %v10427_v55 = vor.u32 %v11467_v12, %v10424_v49  ;;  %v10446_v21 = vld [vmem:[#allocation9 + $0xe0] sm:$0xf]  ;;  %v11472_v57 = vld [vmem:[#allocation9 + $0xcc] sm:$0xf0] }
 0x5c7   :  { %v5643_v36 = vmul.f32 %v11759_v34, %v5642_v13  ;;  %v10416_v13 = vld [vmem:[#allocation9 + $0xb0] sm:$0xf0]  ;;  %vm5931_vm8 = vcmp.eq.f32.partialorder %v5930_v54, 8.507059e+37  ;;  %vm5966_vm9 = vweird.f32 %v13024_v29  ;;  %v10430_v28 = vld [vmem:[#allocation9 + $0xc0] sm:$0xf] }
 0x5c8   :  { %v5963_v61 = vmul.f32 %v13024_v29, %v5962_v48  ;;  %v10419_v10 = vor.u32 %v11466_v4, %v10416_v13  ;;  %vm13068_vm11 = vmor %vm5965_vm10, %vm5966_vm9  ;;  %v10438_v17 = vld [vmem:[#allocation9 + $0xc8] sm:$0xf]  ;;  %v10360_v4 = vld [vmem:[#allocation9 + $0x38] sm:$0xf0] }
 0x5c9   :  { %v5644_v53 = vadd.f32 %v11759_v34, %v5643_v36  ;;  %v11763_v25 = vpop.eup %11762  ;;  %v11468_v12 = vld [vmem:[#allocation9 + $0xac] sm:$0xf0] }
 0x5ca   :  { %v5922_v41 = vmul.f32 %v11763_v25, %v13015_v14  ;;  %v11765_v43 = vpop.eup %11764  ;;  %vm5927_vm4 = vweird.f32 %v11763_v25  ;;  %v5964_v31 = vadd.f32 %v13024_v29, %v5963_v61  ;;  %v10422_v61 = vld [vmem:[#allocation9 + $0xa8] sm:$0xf] }
 0x5cb   :  { %v5648_v62 = vsel %vm5647_vm0, %v11759_v34, %v5644_v53  ;;  %v5952_v34 = vor.u32 1.1754944e-38, %v5951_v8  ;;  %vm13052_vm7 = vmor %vm5926_vm5, %vm5927_vm4  ;;  %v11767_v50 = vpop.eup %11766  ;;  %v11462_v53 = vld [vmem:[#allocation9 + $0x84] sm:$0xf] }
 0x5cc   :  { %v5653_v33 = vsel %vm5650_vm1, %v5652_v32, %v5648_v62  ;;  %v5923_v52 = vsub.f32 1.0, %v5922_v41  ;;  %v5969_v32 = vand.u32 2147483647, %v13011_v60  ;;  %v10411_v41 = vor.u32 %v11463_v19, %v10408_v44  ;;  %v11458_v62 = vld [vmem:[#allocation9 + $0x64] sm:$0xf] }
 0x5cd   :  { %v5659_v30 = vmul.f32 %v11765_v43, %v5653_v33  ;;  %v5953_v1 = vsel %vm5950_vm6, %v5952_v34, %v5948_v40  ;;  %v10392_v43 = vld [vmem:[#allocation9 + $0x78] sm:$0xf0]  ;;  %v5968_v8 = vsel %vm13068_vm11, %v13024_v29, %v5964_v31  ;;  %v11476_v33 = vld [vmem:[#allocation9 + $0xec] sm:$0xf0]  ;;  %v10387_v24 = vor.u32 %v11458_v62, %v10384_v59  ;;  %v10398_v31 = vld [vmem:[#allocation9 + $0x80] sm:$0xf] }
 0x5ce   :  { %v5924_v42 = vmul.f32 %v11763_v25, %v5923_v52  ;;  %v5975_v11 = vmul.f32 %v5953_v1, %v12917_v22  ;;  %v5971_v22 = vand.u32 2147483648, %v13011_v60  ;;  %vm5970_vm12 = vcmp.eq.f32.partialorder %v5969_v32, 8.507059e+37  ;;  %v11450_v1 = vld [vmem:[#allocation9 + $0x24] sm:$0xf]  ;;  %v11464_v32 = vld [vmem:[#allocation9 + $0x8c] sm:$0xf0] }
 0x5cf   :  { %v13047_v58 = vpack.c.bf16 %v5659_v30, %v5659_v30  ;;  %v10395_v52 = vor.u32 %v11459_v47, %v10392_v43  ;;  %v11477_v30 = vld [vmem:[#allocation9 + $0xf4] sm:$0xf0]  ;;  %v10447_v29 = vor.u32 %v11476_v33, %v10446_v21  ;;  %v10382_v62 = vld [vmem:[#allocation9 + $0x60] sm:$0xf]  ;;  %v11460_v59 = vld [vmem:[#allocation9 + $0x6c] sm:$0xf0] }
 0x5d0   :  { %v5925_v37 = vadd.f32 %v11763_v25, %v5924_v42  ;;  %v5972_v60 = vor.u32 1.1754944e-38, %v5971_v22  ;;  %v10455_v54 = vor.u32 %v11477_v30, %v10454_v16  ;;  %v10406_v22 = vld [vmem:[#allocation9 + $0x88] sm:$0xf]  ;;  %v11461_v43 = vld [vmem:[#allocation9 + $0x74] sm:$0xf0] }
 0x5d1   :  { %6390 = vmatmul.bf16.vlgmr.msrb.gmra.mxu1 %v13047_v58  ;;  %6416 = vmatmul.bf16.vlgmr.msra.gmra.mxu3 %v13047_v58  ;;  %v10390_v47 = vld [vmem:[#allocation9 + $0x68] sm:$0xf]  ;;  %v10366_v21 = vld [vmem:[#allocation9 + $0x40] sm:$0xf]  ;;  %v11456_v33 = vld [vmem:[#allocation9 + $0x4c] sm:$0xf0] }
 0x5d2   :  { %6750 = vmatpush.bf16.msrb.mxu1 %v10451_v7  ;;  %6776 = vmatpush.bf16.msra.mxu3 %v10459_v51  ;;  %v5929_v14 = vsel %vm13052_vm7, %v11763_v25, %v5925_v37  ;;  %v10400_v25 = vld [vmem:[#allocation9 + $0x90] sm:$0xf0]  ;;  %v11454_v7 = vld [vmem:[#allocation9 + $0x44] sm:$0xf]  ;;  %v5973_v40 = vsel %vm5970_vm12, %v5972_v60, %v5968_v8  ;;  %v10379_v37 = vor.u32 %v11455_v26, %v10376_v45 }
 0x5d3   :  { %v5934_v56 = vsel %vm5931_vm8, %v5933_v15, %v5929_v14  ;;  %v10403_v9 = vor.u32 %v11462_v53, %v10400_v25  ;;  %v10368_v51 = vld [vmem:[#allocation9 + $0x50] sm:$0xf0]  ;;  %v11473_v15 = vld [vmem:[#allocation9 + $0xd4] sm:$0xf0]  ;;  %v10414_v14 = vld [vmem:[#allocation9 + $0xa0] sm:$0xf]  ;;  %v10383_v8 = vor.u32 %v11460_v59, %v10382_v62  ;;  %v10391_v60 = vor.u32 %v11461_v43, %v10390_v47 }
 0x5d4   :  { %v5976_v36 = vmul.f32 %v11767_v50, %v5934_v56  ;;  %v10371_v48 = vor.u32 %v11454_v7, %v10368_v51  ;;  %v10439_v13 = vor.u32 %v11473_v15, %v10438_v17  ;;  %v11469_v56 = vld [vmem:[#allocation9 + $0xb4] sm:$0xf0]  ;;  %v10415_v53 = vor.u32 %v11468_v12, %v10414_v14  ;;  %v10350_v7 = vld [vmem:[#allocation9 + $0x20] sm:$0xf]  ;;  %v11540_v15 = vld [vmem:[#allocation11 + $0x1ec] sm:$0xf0] }
 0x5d5   :  { %v10423_v25 = vor.u32 %v11469_v56, %v10422_v61  ;;  %v10367_v16 = vor.u32 %v11456_v33, %v10366_v21  ;;  %v11453_v51 = vld [vmem:[#allocation9 + $0x34] sm:$0xf0]  ;;  %v10705_v17 = vld [vmem:[#allocation11 + $0x1e0] sm:$0xf]  ;;  %v11534_v14 = vld [vmem:[#allocation11 + $0x1c4] sm:$0xf] }
 0x5d6   :  { %6751 = vmatpush.bf16.msrb.mxu1 %v10435_v20  ;;  %6777 = vmatpush.bf16.msra.mxu3 %v10443_v0  ;;  %v13061_v6 = vadd.f32 %v5976_v36, %v5975_v11  ;;  %v10352_v20 = vld [vmem:[#allocation9 + $0x30] sm:$0xf0]  ;;  %v11451_v0 = vld [vmem:[#allocation9 + $0x2c] sm:$0xf]  ;;  %v11446_v11 = vld [vmem:[#allocation9 + $0x4] sm:$0xf] }
 0x5d7   :  { %v10355_v49 = vor.u32 %v11450_v1, %v10352_v20  ;;  %v10363_v50 = vor.u32 %v11451_v0, %v10360_v4  ;;  %v10336_v36 = vld [vmem:[#allocation9 + $0x10] sm:$0xf0]  ;;  %v11538_v1 = vld [vmem:[#allocation11 + $0x1e4] sm:$0xf]  ;;  %v10706_v20 = vor.u32 %v11540_v15, %v10705_v17  ;;  %v11524_v62 = vld [vmem:[#allocation11 + $0x16c] sm:$0xf0] }
 0x5d8   :  { %11768 = vtanh.f32 %v13061_v6  ;;  %v10339_v19 = vor.u32 %v11446_v11, %v10336_v36  ;;  %v10707_v0 = vld [vmem:[#allocation11 + $0x1f0] sm:$0xf0]  ;;  %v11532_v11 = vld [vmem:[#allocation11 + $0x1ac] sm:$0xf0]  ;;  %v11530_v36 = vld [vmem:[#allocation11 + $0x1a4] sm:$0xf] }
 0x5d9   :  { %v10710_v4 = vor.u32 %v11538_v1, %v10707_v0  ;;  %v11522_v59 = vld [vmem:[#allocation11 + $0x164] sm:$0xf]  ;;  %v10643_v43 = vld [vmem:[#allocation11 + $0x170] sm:$0xf0]  ;;  %v10577_v33 = vld [vmem:[#allocation11 + $0xe0] sm:$0xf] }
 0x5da   :  { %6752 = vmatpush.bf16.msrb.mxu1 %v10419_v10  ;;  %6778 = vmatpush.bf16.msra.mxu3 %v10427_v55  ;;  %v11447_v10 = vld [vmem:[#allocation9 + $0xc] sm:$0xf]  ;;  %v10344_v55 = vld [vmem:[#allocation9 + $0x18] sm:$0xf0]  ;;  %v11504_v17 = vld [vmem:[#allocation11 + $0xcc] sm:$0xf0] }
 0x5db   :  { %v10347_v44 = vor.u32 %v11447_v10, %v10344_v55  ;;  %v10675_v55 = vld [vmem:[#allocation11 + $0x1b0] sm:$0xf0] }
 0x5dc   :  { %v10563_v0 = vld [vmem:[#allocation11 + $0xd0] sm:$0xf0] }
 0x5de   :  { %6753 = vmatpush.bf16.msrb.mxu1 %v10403_v9  ;;  %6779 = vmatpush.bf16.msra.mxu3 %v10411_v41  ;;  %v11769_v27 = vpop.eup %11768  ;;  %v10399_v9 = vor.u32 %v11464_v32, %v10398_v31  ;;  %v10407_v41 = vor.u32 %v11465_v38, %v10406_v22  ;;  %v10659_v22 = vld [vmem:[#allocation11 + $0x190] sm:$0xf0] }
 0x5df   :  { %v5979_v42 = vmul.f32 %v11769_v27, %v5973_v40  ;;  %v11452_v27 = vld [vmem:[#allocation9 + $0x2c] sm:$0xf0]  ;;  %v10358_v40 = vld [vmem:[#allocation9 + $0x28] sm:$0xf] }
 0x5e0   :  { %v10351_v26 = vor.u32 %v11452_v27, %v10350_v7  ;;  %v10359_v45 = vor.u32 %v11453_v51, %v10358_v40  ;;  %v10625_v7 = vld [vmem:[#allocation11 + $0x140] sm:$0xf]  ;;  %v11520_v27 = vld [vmem:[#allocation11 + $0x14c] sm:$0xf0] }
 0x5e1   :  { %6442 = vmatmul.bf16.vlgmr.msra.gmra.mxu1 %v13047_v58  ;;  %6468 = vmatmul.bf16.vlgmr.msrb.gmra.mxu3 %v13047_v58  ;;  %v13077_v34 = vpack.c.bf16 %v5979_v42, %v5979_v42  ;;  %v10431_v58 = vor.u32 %v11472_v57, %v10430_v28  ;;  %v10334_v42 = vld [vmem:[#allocation9] sm:$0xf]  ;;  %v11449_v28 = vld [vmem:[#allocation9 + $0x14] sm:$0xf0] }
 0x5e2   :  { %6754 = vmatpush.bf16.msrb.mxu1 %v10387_v24  ;;  %6780 = vmatpush.bf16.msra.mxu3 %v10395_v52  ;;  %v10374_v24 = vld [vmem:[#allocation9 + $0x48] sm:$0xf]  ;;  %v11457_v52 = vld [vmem:[#allocation9 + $0x54] sm:$0xf0] }
 0x5e3   :  { %6377 = vmatmul.bf16.vlgmr.msra.gmra.mxu0 %v13077_v34  ;;  %6403 = vmatmul.bf16.vlgmr.msra.gmra.mxu2 %v13077_v34  ;;  %v10375_v30 = vor.u32 %v11457_v52, %v10374_v24  ;;  %v11508_v24 = vld [vmem:[#allocation11 + $0xec] sm:$0xf0]  ;;  %v11506_v52 = vld [vmem:[#allocation11 + $0xe4] sm:$0xf] }
 0x5e4   :  { %6737 = vmatpush.bf16.msra.mxu0 %v10447_v29  ;;  %6763 = vmatpush.bf16.msra.mxu2 %v10455_v54  ;;  %v11448_v29 = vld [vmem:[#allocation9 + $0xc] sm:$0xf0]  ;;  %v10342_v54 = vld [vmem:[#allocation9 + $0x8] sm:$0xf] }
 0x5e5   :  { %v10335_v57 = vor.u32 %v11448_v29, %v10334_v42  ;;  %v11518_v42 = vld [vmem:[#allocation11 + $0x144] sm:$0xf]  ;;  %v10627_v29 = vld [vmem:[#allocation11 + $0x150] sm:$0xf0] }
 0x5e6   :  { %6755 = vmatpush.bf16.msrb.mxu1 %v10371_v48  ;;  %6781 = vmatpush.bf16.msra.mxu3 %v10379_v37  ;;  %v10343_v48 = vor.u32 %v11449_v28, %v10342_v54  ;;  %v10630_v54 = vor.u32 %v11518_v42, %v10627_v29  ;;  %v10697_v29 = vld [vmem:[#allocation11 + $0x1c8] sm:$0xf] }
 0x5e8   :  { %6738 = vmatpush.bf16.msra.mxu0 %v10431_v58  ;;  %6764 = vmatpush.bf16.msra.mxu2 %v10439_v13  ;;  %v10689_v58 = vld [vmem:[#allocation11 + $0x1c0] sm:$0xf]  ;;  %v11536_v13 = vld [vmem:[#allocation11 + $0x1cc] sm:$0xf0] }
 0x5ea   :  { %6756 = vmatpush.bf16.msrb.mxu1 %v10355_v49  ;;  %6782 = vmatpush.bf16.msra.mxu3 %v10363_v50  ;;  %v10690_v49 = vor.u32 %v11536_v13, %v10689_v58  ;;  %v10691_v50 = vld [vmem:[#allocation11 + $0x1d0] sm:$0xf0]  ;;  %v11516_v13 = vld [vmem:[#allocation11 + $0x12c] sm:$0xf0] }
 0x5eb   :  { %v10694_v61 = vor.u32 %v11534_v14, %v10691_v50  ;;  %v11514_v14 = vld [vmem:[#allocation11 + $0x124] sm:$0xf] }
 0x5ec   :  { %6739 = vmatpush.bf16.msra.mxu0 %v10415_v53  ;;  %6765 = vmatpush.bf16.msra.mxu2 %v10423_v25  ;;  %v10678_v53 = vor.u32 %v11530_v36, %v10675_v55  ;;  %v10657_v25 = vld [vmem:[#allocation11 + $0x180] sm:$0xf]  ;;  %v11500_v36 = vld [vmem:[#allocation11 + $0xac] sm:$0xf0] }
 0x5ee   :  { %6757 = vmatpush.bf16.msrb.mxu1 %v10339_v19  ;;  %6783 = vmatpush.bf16.msra.mxu3 %v10347_v44  ;;  %v11528_v19 = vld [vmem:[#allocation11 + $0x18c] sm:$0xf0]  ;;  %v11526_v44 = vld [vmem:[#allocation11 + $0x184] sm:$0xf] }
 0x5ef   :  { %v10658_v32 = vor.u32 %v11528_v19, %v10657_v25  ;;  %v10662_v38 = vor.u32 %v11526_v44, %v10659_v22  ;;  %v10593_v25 = vld [vmem:[#allocation11 + $0x100] sm:$0xf]  ;;  %v11512_v19 = vld [vmem:[#allocation11 + $0x10c] sm:$0xf0] }
 0x5f0   :  { %6740 = vmatpush.bf16.msra.mxu0 %v10399_v9  ;;  %6766 = vmatpush.bf16.msra.mxu2 %v10407_v41  ;;  %v10641_v41 = vld [vmem:[#allocation11 + $0x160] sm:$0xf]  ;;  %v10594_v22 = vor.u32 %v11512_v19, %v10593_v25 }
 0x5f1   :  { %6758 = vmatmul.bf16.vlgmr.msrb.gmra.mxu1 %v13077_v34  ;;  %6784 = vmatmul.bf16.vlgmr.msra.gmra.mxu3 %v13077_v34  ;;  %v10642_v47 = vor.u32 %v11524_v62, %v10641_v41  ;;  %v10595_v41 = vld [vmem:[#allocation11 + $0x110] sm:$0xf0]  ;;  %v13319_v62 = vld [vmem:[#allocation22_spill] sm:$0xff] }
 0x5f2   :  { %7259 = vmatpush.bf16.msra.mxu1 %v10706_v20  ;;  %7285 = vmatpush.bf16.msrb.mxu3 %v10710_v4  ;;  %v11502_v20 = vld [vmem:[#allocation11 + $0xc4] sm:$0xf] }
 0x5f3   :  { %6429 = vmatmul.bf16.vlgmr.msrb.gmra.mxu0 %v13077_v34  ;;  %6455 = vmatmul.bf16.vlgmr.msrb.gmra.mxu2 %v13077_v34  ;;  %v10566_v58 = vor.u32 %v11502_v20, %v10563_v0  ;;  %v10513_v20 = vld [vmem:[#allocation11 + $0x60] sm:$0xf]  ;;  %v11492_v0 = vld [vmem:[#allocation11 + $0x6c] sm:$0xf0] }
 0x5f4   :  { %6741 = vmatpush.bf16.msra.mxu0 %v10383_v8  ;;  %6767 = vmatpush.bf16.msra.mxu2 %v10391_v60  ;;  %v10646_v60 = vor.u32 %v11522_v59, %v10643_v43  ;;  %v294_v59 = vadd.f32 %v13319_v62, %v12081_v39  ;;  %v11541_v43 = vld [vmem:[#allocation11 + $0x1f4] sm:$0xf0] }
 0x5f6   :  { %7260 = vmatpush.bf16.msra.mxu1 %v10690_v49  ;;  %7286 = vmatpush.bf16.msrb.mxu3 %v10694_v61  ;;  %v10611_v49 = vld [vmem:[#allocation11 + $0x130] sm:$0xf0] }
 0x5f8   :  { %6742 = vmatpush.bf16.msra.mxu0 %v10367_v16  ;;  %6768 = vmatpush.bf16.msra.mxu2 %v10375_v30  ;;  %v10578_v16 = vor.u32 %v11508_v24, %v10577_v33  ;;  %v10579_v30 = vld [vmem:[#allocation11 + $0xf0] sm:$0xf0]  ;;  %v10715_v24 = vld [vmem:[#allocation11 + $0x1f8] sm:$0xf0] }
 0x5fa   :  { %7287 = vmatpush.bf16.msrb.mxu3 %v10678_v53  ;;  %v10547_v53 = vld [vmem:[#allocation11 + $0xb0] sm:$0xf0] }
 0x5fc   :  { %6743 = vmatpush.bf16.msra.mxu0 %v10351_v26  ;;  %6769 = vmatpush.bf16.msra.mxu2 %v10359_v45  ;;  %v10582_v26 = vor.u32 %v11506_v52, %v10579_v30  ;;  %v10626_v45 = vor.u32 %v11520_v27, %v10625_v7  ;;  %v10529_v52 = vld [vmem:[#allocation11 + $0x80] sm:$0xf] }
 0x5fe   :  { %7288 = vmatpush.bf16.msrb.mxu3 %v10662_v38  ;;  %v11510_v38 = vld [vmem:[#allocation11 + $0x104] sm:$0xf] }
 0x600   :  { %6744 = vmatpush.bf16.msra.mxu0 %v10335_v57  ;;  %6770 = vmatpush.bf16.msra.mxu2 %v10343_v48  ;;  %v10561_v48 = vld [vmem:[#allocation11 + $0xc0] sm:$0xf] }
 0x601   :  { %v10562_v1 = vor.u32 %v11504_v17, %v10561_v48  ;;  %v10699_v17 = vld [vmem:[#allocation11 + $0x1d8] sm:$0xf0] }
 0x602   :  { %7289 = vmatpush.bf16.msrb.mxu3 %v10646_v60 }
 0x603   :  { %6745 = vmatmul.bf16.vlgmr.msra.gmra.mxu0 %v13077_v34  ;;  %6771 = vmatmul.bf16.vlgmr.msra.gmra.mxu2 %v13077_v34  ;;  %v10673_v34 = vld [vmem:[#allocation11 + $0x1a0] sm:$0xf] }
 0x604   :  { %v10674_v10 = vor.u32 %v11532_v11, %v10673_v34  ;;  %7246 = vmatpush.bf16.msrb.mxu0 %v10578_v16  ;;  %7272 = vmatpush.bf16.msrb.mxu2 %v10582_v26  ;;  %v10545_v11 = vld [vmem:[#allocation11 + $0xa0] sm:$0xf]  ;;  %v11496_v16 = vld [vmem:[#allocation11 + $0x8c] sm:$0xf0]  ;;  %v11494_v26 = vld [vmem:[#allocation11 + $0x84] sm:$0xf] }
 0x605   :  { %v10546_v55 = vor.u32 %v11500_v36, %v10545_v11 }
 0x606   :  { %7261 = vmatpush.bf16.msra.mxu1 %v10674_v10  ;;  %7290 = vmatpush.bf16.msrb.mxu3 %v10630_v54  ;;  %v11498_v10 = vld [vmem:[#allocation11 + $0xa4] sm:$0xf]  ;;  %v11537_v54 = vld [vmem:[#allocation11 + $0x1d4] sm:$0xf0] }
 0x608   :  { %7247 = vmatpush.bf16.msrb.mxu0 %v10562_v1  ;;  %7273 = vmatpush.bf16.msrb.mxu2 %v10566_v58  ;;  %v10515_v58 = vld [vmem:[#allocation11 + $0x70] sm:$0xf0] }
 0x60a   :  { %7262 = vmatpush.bf16.msra.mxu1 %v10658_v32  ;;  %v10550_v32 = vor.u32 %v11498_v10, %v10547_v53  ;;  %v11531_v10 = vld [vmem:[#allocation11 + $0x1ac] sm:$0xf] }
 0x60c   :  { %7248 = vmatpush.bf16.msrb.mxu0 %v10546_v55  ;;  %7274 = vmatpush.bf16.msrb.mxu2 %v10550_v32  ;;  %v10683_v55 = vld [vmem:[#allocation11 + $0x1b8] sm:$0xf0]  ;;  %v11486_v32 = vld [vmem:[#allocation11 + $0x44] sm:$0xf] }
 0x60d   :  { %v10686_v19 = vor.u32 %v11531_v10, %v10683_v55 }
 0x60e   :  { %7263 = vmatpush.bf16.msra.mxu1 %v10642_v47  ;;  %v10713_v47 = vld [vmem:[#allocation11 + $0x1e8] sm:$0xf] }
 0x60f   :  { %v10714_v33 = vor.u32 %v11541_v43, %v10713_v47 }
 0x612   :  { %7264 = vmatpush.bf16.msra.mxu1 %v10626_v45  ;;  %v10531_v45 = vld [vmem:[#allocation11 + $0x90] sm:$0xf0] }
 0x613   :  { %v10534_v42 = vor.u32 %v11494_v26, %v10531_v45 }
 0x615   :  { %7275 = vmatpush.bf16.msrb.mxu2 %v10534_v42  ;;  %v11482_v42 = vld [vmem:[#allocation11 + $0x24] sm:$0xf] }
 0x64e   :  { %v6391_v37 = vpop.f32.mrf.mxu1 }
 0x654   :  { %v13087_v12 = vpop.f32.mrf.mxu3 }
 0x656   :  { %v6393_v56 = vpop.f32.mrf.mxu1 }
 0x657   :  { %v10614_v56 = vor.u32 %v11514_v14, %v10611_v49  ;;  %v13320_v14 = vld [vmem:[#allocation21_spill] sm:$0xff] }
 0x658   :  { %v352_v49 = vadd.f32 %v13320_v14, %v12068_v3  ;;  %v10465_v14 = vld [vmem:[#allocation11] sm:$0xf] }
 0x659   :  { %7291 = vmatpush.bf16.msrb.mxu3 %v10614_v56  ;;  %v11533_v56 = vld [vmem:[#allocation11 + $0x1b4] sm:$0xf0] }
 0x65c   :  { %v6419_v31 = vpop.f32.mrf.mxu3 }
 0x65e   :  { %v13089_v9 = vpop.f32.mrf.mxu1 }
 0x660   :  { %v6378_v8 = vpop.f32.mrf.mxu0 }
 0x661   :  { %v6379_v21 = vadd.f32 %v6378_v8, %v12196_v46  ;;  %v11539_v8 = vld [vmem:[#allocation11 + $0x1ec] sm:$0xf] }
 0x662   :  { %v10718_v39 = vor.u32 %v11539_v8, %v10715_v24  ;;  %v10667_v24 = vld [vmem:[#allocation11 + $0x198] sm:$0xf0] }
 0x663   :  { %v6392_v40 = vadd.f32 %v6391_v37, %v6379_v21  ;;  %v10609_v37 = vld [vmem:[#allocation11 + $0x120] sm:$0xf] }
 0x664   :  { %v13092_v51 = vpop.f32.mrf.mxu3  ;;  %v10610_v61 = vor.u32 %v11516_v13, %v10609_v37  ;;  %v10514_v37 = vor.u32 %v11492_v0, %v10513_v20  ;;  %v11523_v20 = vld [vmem:[#allocation11 + $0x16c] sm:$0xf] }
 0x665   :  { %v10329_v28 = vmul.f32 -1.442695, %v6392_v40  ;;  %v10530_v40 = vor.u32 %v11496_v16, %v10529_v52  ;;  %v13321_v0 = vld [vmem:[#allocation18_spill] sm:$0xff] }
 0x666   :  { %v6445_v57 = vpop.f32.mrf.mxu1  ;;  %v6404_v15 = vpop.f32.mrf.mxu2  ;;  %7265 = vmatpush.bf16.msra.mxu1 %v10610_v61  ;;  %v10681_v61 = vld [vmem:[#allocation11 + $0x1a8] sm:$0xf] }
 0x667   :  { %11770 = vpow2.f32 %v10329_v28  ;;  %v6405_v4 = vadd.f32 %v6404_v15, %v12200_v18  ;;  %v11535_v28 = vld [vmem:[#allocation11 + $0x1cc] sm:$0xf]  ;;  %7249 = vmatpush.bf16.msrb.mxu0 %v10530_v40  ;;  %v10698_v15 = vor.u32 %v11537_v54, %v10697_v29  ;;  %v10682_v36 = vor.u32 %v11533_v56, %v10681_v61  ;;  %v10483_v29 = vld [vmem:[#allocation11 + $0x30] sm:$0xf0] }
 0x668   :  { %v6380_v50 = vpop.f32.mrf.mxu0  ;;  %v10702_v1 = vor.u32 %v11535_v28, %v10699_v17  ;;  %v10649_v28 = vld [vmem:[#allocation11 + $0x168] sm:$0xf] }
 0x669   :  { %v6418_v34 = vadd.f32 %v13087_v12, %v6405_v4  ;;  %v10598_v12 = vor.u32 %v11510_v38, %v10595_v41  ;;  %v11490_v4 = vld [vmem:[#allocation11 + $0x64] sm:$0xf]  ;;  %v10499_v38 = vld [vmem:[#allocation11 + $0x50] sm:$0xf0] }
 0x66a   :  { %7266 = vmatpush.bf16.msra.mxu1 %v10594_v22  ;;  %v10518_v50 = vor.u32 %v11490_v4, %v10515_v58 }
 0x66b   :  { %v10330_v44 = vmul.f32 -1.442695, %v6418_v34  ;;  %7292 = vmatpush.bf16.msrb.mxu3 %v10598_v12  ;;  %7250 = vmatpush.bf16.msrb.mxu0 %v10514_v37  ;;  %v11529_v12 = vld [vmem:[#allocation11 + $0x194] sm:$0xf0]  ;;  %v265_v37 = vadd.f32 %v13321_v0, %v12040_v23 }
 0x66c   :  { %v6471_v31 = vpop.f32.mrf.mxu3  ;;  %7276 = vmatpush.bf16.msrb.mxu2 %v10518_v50 }
 0x66d   :  { %v11771_v60 = vpop.eup %11770  ;;  %11772 = vpow2.f32 %v10330_v44  ;;  %v10497_v44 = vld [vmem:[#allocation11 + $0x40] sm:$0xf]  ;;  %v11488_v31 = vld [vmem:[#allocation11 + $0x4c] sm:$0xf0] }
 0x66e   :  { %v6759_v21 = vpop.f32.mrf.mxu1  ;;  %v13098_v30 = vadd.f32 1.0, %v11771_v60  ;;  %v6406_v27 = vpop.f32.mrf.mxu2  ;;  %7311 = vmatpush.bf16.msrb.mxu1 %v10714_v33  ;;  %v10498_v60 = vor.u32 %v11488_v31, %v10497_v44  ;;  %v11527_v33 = vld [vmem:[#allocation11 + $0x18c] sm:$0xf]  ;;  %v11509_v31 = vld [vmem:[#allocation11 + $0xf4] sm:$0xf0] }
 0x66f   :  { %v6790_v7 = vadd.f32 %v6759_v21, %v294_v59  ;;  %7337 = vmatpush.bf16.msra.mxu3 %v10718_v39  ;;  %v10665_v59 = vld [vmem:[#allocation11 + $0x188] sm:$0xf]  ;;  %v10502_v21 = vor.u32 %v11486_v32, %v10499_v38  ;;  %v10481_v27 = vld [vmem:[#allocation11 + $0x20] sm:$0xf]  ;;  %v11484_v39 = vld [vmem:[#allocation11 + $0x2c] sm:$0xf0]  ;;  %v10670_v26 = vor.u32 %v11527_v33, %v10667_v24 }
 0x670   :  { %11774 = vrcp.f32 %v13098_v30  ;;  %v6430_v48 = vpop.f32.mrf.mxu0  ;;  %7251 = vmatpush.bf16.msrb.mxu0 %v10498_v60  ;;  %v10666_v40 = vor.u32 %v11529_v12, %v10665_v59  ;;  %v10482_v45 = vor.u32 %v11484_v39, %v10481_v27  ;;  %v6487_v50 = vand.u32 2147483647, %v13098_v30  ;;  %v11507_v32 = vld [vmem:[#allocation11 + $0xec] sm:$0xf]  ;;  %v10587_v59 = vld [vmem:[#allocation11 + $0xf8] sm:$0xf0] }
 0x671   :  { %v10461_v57 = vmul.f32 -1.442695, %v6790_v7  ;;  %v6431_v16 = vadd.f32 %v6430_v48, %v12226_v5  ;;  %7277 = vmatpush.bf16.msrb.mxu2 %v10502_v21  ;;  %v10633_v12 = vld [vmem:[#allocation11 + $0x148] sm:$0xf]  ;;  %vm6483_vm15 = vweird.f32 %v13098_v30  ;;  %v11519_v60 = vld [vmem:[#allocation11 + $0x14c] sm:$0xf]  ;;  %v10590_v39 = vor.u32 %v11507_v32, %v10587_v59 }
 0x672   :  { %7312 = vmatpush.bf16.msrb.mxu1 %v10698_v15  ;;  %vm13132_vm0 = vcmp.eq.f32.partialorder %v6487_v50, 8.507059e+37  ;;  %v10635_v21 = vld [vmem:[#allocation11 + $0x158] sm:$0xf0]  ;;  %v10537_v32 = vld [vmem:[#allocation11 + $0x88] sm:$0xf] }
 0x673   :  { %11776 = vpow2.f32 %v10461_v57  ;;  %v11773_v13 = vpop.eup %11772  ;;  %7338 = vmatpush.bf16.msra.mxu3 %v10702_v1  ;;  %v11525_v57 = vld [vmem:[#allocation11 + $0x174] sm:$0xf0]  ;;  %v10619_v50 = vld [vmem:[#allocation11 + $0x138] sm:$0xf0]  ;;  %v11495_v59 = vld [vmem:[#allocation11 + $0x8c] sm:$0xf] }
 0x674   :  { %v13103_v34 = vadd.f32 1.0, %v11773_v13  ;;  %v6785_v11 = vpop.f32.mrf.mxu3  ;;  %v10650_v48 = vor.u32 %v11525_v57, %v10649_v28  ;;  %v10651_v13 = vld [vmem:[#allocation11 + $0x178] sm:$0xf0]  ;;  %7252 = vmatpush.bf16.msrb.mxu0 %v10482_v45  ;;  %v11503_v57 = vld [vmem:[#allocation11 + $0xcc] sm:$0xf] }
 0x675   :  { %v6792_v53 = vadd.f32 %v6785_v11, %v352_v49  ;;  %v6444_v49 = vadd.f32 %v13089_v9, %v6431_v16  ;;  %v10654_v56 = vor.u32 %v11523_v20, %v10651_v13  ;;  %v11480_v11 = vld [vmem:[#allocation11 + $0xc] sm:$0xf0] }
 0x676   :  { %v6761_v25 = vpop.f32.mrf.mxu1  ;;  %v13105_v3 = vpop.eup %11774  ;;  %11778 = vrcp.f32 %v13103_v34  ;;  %7313 = vmatpush.bf16.msrb.mxu1 %v10682_v36  ;;  %v11478_v36 = vld [vmem:[#allocation11 + $0x4] sm:$0xf]  ;;  %v6508_v10 = vand.u32 2147483648, %v13103_v34  ;;  %v10466_v55 = vor.u32 %v11480_v11, %v10465_v14  ;;  %v6506_v9 = vand.u32 2147483647, %v13103_v34 }
 0x677   :  { %v6456_v22 = vpop.f32.mrf.mxu2  ;;  %v6479_v41 = vmul.f32 %v13105_v3, %v13098_v30  ;;  %v10462_v43 = vmul.f32 -1.442695, %v6792_v53  ;;  %7339 = vmatpush.bf16.msra.mxu3 %v10686_v19  ;;  %v10467_v53 = vld [vmem:[#allocation11 + $0x10] sm:$0xf0]  ;;  %v10585_v25 = vld [vmem:[#allocation11 + $0xe8] sm:$0xf]  ;;  %vm6484_vm14 = vweird.f32 %v13105_v3  ;;  %vm6502_vm1 = vweird.f32 %v13103_v34 }
 0x678   :  { %v6457_v62 = vadd.f32 %v6456_v22, %v12218_v35  ;;  %v6432_v8 = vpop.f32.mrf.mxu0  ;;  %v10470_v44 = vor.u32 %v11478_v36, %v10467_v53  ;;  %7253 = vmatpush.bf16.msrb.mxu0 %v10466_v55  ;;  %v6509_v24 = vor.u32 1.1754944e-38, %v6508_v10  ;;  %vm13140_vm2 = vmor %vm6483_vm15, %vm6484_vm14  ;;  %vm6507_vm4 = vcmp.eq.f32.partialorder %v6506_v9, 8.507059e+37  ;;  %v11499_v36 = vld [vmem:[#allocation11 + $0xac] sm:$0xf]  ;;  %v10601_v10 = vld [vmem:[#allocation11 + $0x108] sm:$0xf] }
 0x679   :  { %v11777_v47 = vpop.eup %11776  ;;  %v6480_v52 = vsub.f32 1.0, %v6479_v41  ;;  %11780 = vpow2.f32 %v10462_v43  ;;  %v6489_v8 = vand.u32 2147483648, %v13098_v30  ;;  %v10569_v30 = vld [vmem:[#allocation11 + $0xc8] sm:$0xf]  ;;  %v11513_v53 = vld [vmem:[#allocation11 + $0x114] sm:$0xf0] }
 0x67a   :  { %v6470_v7 = vadd.f32 %v13092_v51, %v6457_v62  ;;  %v13113_v54 = vadd.f32 1.0, %v11777_v47  ;;  %7314 = vmatpush.bf16.msrb.mxu1 %v10666_v40  ;;  %v10486_v51 = vor.u32 %v11482_v42, %v10483_v29  ;;  %v10586_v62 = vor.u32 %v11509_v31, %v10585_v25  ;;  %v11521_v47 = vld [vmem:[#allocation11 + $0x154] sm:$0xf0]  ;;  %v11511_v25 = vld [vmem:[#allocation11 + $0x10c] sm:$0xf] }
 0x67b   :  { %7340 = vmatpush.bf16.msra.mxu3 %v10670_v26  ;;  %v6481_v58 = vmul.f32 %v13105_v3, %v6480_v52  ;;  %v10634_v40 = vor.u32 %v11521_v47, %v10633_v12  ;;  %v11505_v26 = vld [vmem:[#allocation11 + $0xd4] sm:$0xf0]  ;;  %v10603_v9 = vld [vmem:[#allocation11 + $0x118] sm:$0xf0] }
 0x67c   :  { %v13115_v17 = vpop.eup %11778  ;;  %v10331_v15 = vmul.f32 -1.442695, %v6470_v7  ;;  %v6787_v1 = vpop.f32.mrf.mxu3  ;;  %7278 = vmatpush.bf16.msrb.mxu2 %v10486_v51  ;;  %7298 = vmatpush.bf16.msra.mxu0 %v10586_v62  ;;  %v10570_v20 = vor.u32 %v11505_v26, %v10569_v30  ;;  %v10539_v12 = vld [vmem:[#allocation11 + $0x98] sm:$0xf0]  ;;  %v11491_v30 = vld [vmem:[#allocation11 + $0x6c] sm:$0xf]  ;;  %vm6822_vm6 = vweird.f32 %v13113_v54 }
 0x67d   :  { %v6498_v4 = vmul.f32 %v13115_v17, %v13103_v34  ;;  %vm6503_vm13 = vweird.f32 %v13115_v17  ;;  %v6482_v38 = vadd.f32 %v13105_v3, %v6481_v58  ;;  %v10638_v34 = vor.u32 %v11519_v60, %v10635_v21 }
 0x67e   :  { %11782 = vpow2.f32 %v10331_v15  ;;  %7315 = vmatpush.bf16.msrb.mxu1 %v10650_v48  ;;  %vm6504_vm3 = vmor %vm6502_vm1, %vm6503_vm13  ;;  %v10571_v15 = vld [vmem:[#allocation11 + $0xd8] sm:$0xf0]  ;;  %v6490_v1 = vor.u32 1.1754944e-38, %v6489_v8  ;;  %v10602_v8 = vor.u32 %v11513_v53, %v10601_v10  ;;  %v10606_v60 = vor.u32 %v11511_v25, %v10603_v9 }
 0x67f   :  { %v6458_v61 = vpop.f32.mrf.mxu2  ;;  %v6499_v23 = vsub.f32 1.0, %v6498_v4  ;;  %11784 = vrcp.f32 %v13113_v54  ;;  %7341 = vmatpush.bf16.msra.mxu3 %v10654_v56  ;;  %v11781_v33 = vpop.eup %11780  ;;  %v6486_v42 = vsel %vm13140_vm2, %v13105_v3, %v6482_v38  ;;  %v10617_v3 = vld [vmem:[#allocation11 + $0x128] sm:$0xf]  ;;  %v11501_v56 = vld [vmem:[#allocation11 + $0xb4] sm:$0xf0] }
 0x680   :  { %v6746_v19 = vpop.f32.mrf.mxu0  ;;  %11786 = vtanh.f32 %v6444_v49  ;;  %7279 = vmatpush.bf16.msrb.mxu2 %v10470_v44  ;;  %v13155_v48 = vadd.f32 1.0, %v11781_v33  ;;  %v6491_v13 = vsel %vm13132_vm0, %v6490_v1, %v6486_v42  ;;  %7299 = vmatpush.bf16.msra.mxu0 %v10570_v20  ;;  %v10574_v49 = vor.u32 %v11503_v57, %v10571_v15  ;;  %v10553_v61 = vld [vmem:[#allocation11 + $0xa8] sm:$0xf] }
 0x681   :  { %v6500_v22 = vmul.f32 %v13115_v17, %v6499_v23  ;;  %v6789_v41 = vadd.f32 %v6746_v19, %v265_v37  ;;  %v11517_v37 = vld [vmem:[#allocation11 + $0x134] sm:$0xf0]  ;;  %v10555_v23 = vld [vmem:[#allocation11 + $0xb8] sm:$0xf0]  ;;  %v10505_v20 = vld [vmem:[#allocation11 + $0x48] sm:$0xf] }
 0x682   :  { %7316 = vmatpush.bf16.msrb.mxu1 %v10634_v40  ;;  %v10618_v55 = vor.u32 %v11517_v37, %v10617_v3  ;;  %v10558_v62 = vor.u32 %v11499_v36, %v10555_v23  ;;  %v11489_v3 = vld [vmem:[#allocation11 + $0x54] sm:$0xf0]  ;;  %v11487_v37 = vld [vmem:[#allocation11 + $0x4c] sm:$0xf]  ;;  %vm6842_vm2 = vweird.f32 %v13155_v48 }
 0x683   :  { %v6501_v16 = vadd.f32 %v13115_v17, %v6500_v22  ;;  %v10460_v7 = vmul.f32 -1.442695, %v6789_v41  ;;  %7342 = vmatpush.bf16.msra.mxu3 %v10638_v34  ;;  %v11497_v22 = vld [vmem:[#allocation11 + $0x94] sm:$0xf0] }
 0x684   :  { %v11783_v27 = vpop.eup %11782  ;;  %7324 = vmatpush.bf16.msra.mxu2 %v10590_v39  ;;  %v10538_v33 = vor.u32 %v11497_v22, %v10537_v32  ;;  %v13326_v39 = vld [vmem:[#allocation20_spill] sm:$0xff]  ;;  %v11485_v23 = vld [vmem:[#allocation11 + $0x34] sm:$0xf0] }
 0x685   :  { %v13147_v45 = vpop.eup %11784  ;;  %v6505_v29 = vsel %vm6504_vm3, %v13115_v17, %v6501_v16  ;;  %v13153_v28 = vadd.f32 1.0, %v11783_v27  ;;  %11788 = vpow2.f32 %v10460_v7  ;;  %v11515_v17 = vld [vmem:[#allocation11 + $0x12c] sm:$0xf]  ;;  %v10542_v16 = vor.u32 %v11495_v59, %v10539_v12  ;;  %v11493_v7 = vld [vmem:[#allocation11 + $0x74] sm:$0xf0] }
 0x686   :  { %v6510_v51 = vsel %vm6507_vm4, %v6509_v24, %v6505_v29  ;;  %v11787_v4 = vpop.eup %11786  ;;  %v6818_v58 = vmul.f32 %v13147_v45, %v13113_v54  ;;  %v10622_v31 = vor.u32 %v11515_v17, %v10619_v50  ;;  %7317 = vmatpush.bf16.msrb.mxu1 %v10618_v55  ;;  %v10521_v24 = vld [vmem:[#allocation11 + $0x68] sm:$0xf]  ;;  %v10523_v27 = vld [vmem:[#allocation11 + $0x78] sm:$0xf0]  ;;  %v323_v40 = vadd.f32 %v13326_v39, %v12065_v2 }
 0x687   :  { %11790 = vrcp.f32 %v13153_v28  ;;  %v13158_v0 = vpop.f32.mrf.mxu2  ;;  %v6532_v11 = vmul.f32 %v6510_v51, %v13013_v63  ;;  %v6533_v44 = vmul.f32 %v11787_v4, %v6491_v13  ;;  %v10554_v63 = vor.u32 %v11501_v56, %v10553_v61  ;;  %v10507_v17 = vld [vmem:[#allocation11 + $0x58] sm:$0xf0] }
 0x688   :  { %v6748_v14 = vpop.f32.mrf.mxu0  ;;  %7325 = vmatpush.bf16.msra.mxu2 %v10574_v49  ;;  %11792 = vrcp.f32 %v13155_v48  ;;  %v6819_v38 = vsub.f32 1.0, %v6818_v58  ;;  %7343 = vmatpush.bf16.msra.mxu3 %v10622_v31  ;;  %v6828_v29 = vand.u32 2147483648, %v13113_v54  ;;  %v6528_v57 = vand.u32 2147483648, %v13153_v28 }
 0x689   :  { %v13168_v43 = vadd.f32 %v6533_v44, %v6532_v11  ;;  %7300 = vmatpush.bf16.msra.mxu0 %v10554_v63  ;;  %v6526_v15 = vand.u32 2147483647, %v13153_v28  ;;  %v10522_v2 = vor.u32 %v11493_v7, %v10521_v24  ;;  %v10526_v51 = vor.u32 %v11491_v30, %v10523_v27  ;;  %v10491_v44 = vld [vmem:[#allocation11 + $0x38] sm:$0xf0] }
 0x68a   :  { %v6820_v34 = vmul.f32 %v13147_v45, %v6819_v38  ;;  %7318 = vmatpush.bf16.msrb.mxu1 %v10602_v8  ;;  %vm6823_vm7 = vweird.f32 %v13147_v45  ;;  %vm6522_vm8 = vweird.f32 %v13153_v28  ;;  %v6791_v58 = vadd.f32 %v13158_v0, %v323_v40  ;;  %v10489_v0 = vld [vmem:[#allocation11 + $0x28] sm:$0xf] }
 0x68b   :  { %v11789_v19 = vpop.eup %11788  ;;  %v6826_v61 = vand.u32 2147483647, %v13113_v54  ;;  %v6529_v56 = vor.u32 1.1754944e-38, %v6528_v57  ;;  %vm6527_vm10 = vcmp.eq.f32.partialorder %v6526_v15, 8.507059e+37  ;;  %v10510_v36 = vor.u32 %v11487_v37, %v10507_v17  ;;  %vm13195_vm11 = vmor %vm6822_vm6, %vm6823_vm7 }
 0x68c   :  { %v13166_v41 = vadd.f32 1.0, %v11789_v19  ;;  %7326 = vmatpush.bf16.msra.mxu2 %v10558_v62  ;;  %7344 = vmatpush.bf16.msra.mxu3 %v10606_v60  ;;  %v6821_v13 = vadd.f32 %v13147_v45, %v6820_v34  ;;  %v6829_v53 = vor.u32 1.1754944e-38, %v6828_v29  ;;  %v11483_v19 = vld [vmem:[#allocation11 + $0x2c] sm:$0xf]  ;;  %v10490_v59 = vor.u32 %v11485_v23, %v10489_v0  ;;  %v11481_v60 = vld [vmem:[#allocation11 + $0x14] sm:$0xf0] }
 0x68d   :  { %v11791_v47 = vpop.eup %11790  ;;  %7301 = vmatpush.bf16.msra.mxu0 %v10538_v33  ;;  %vm6827_vm13 = vcmp.eq.f32.partialorder %v6826_v61, 8.507059e+37  ;;  %v10494_v12 = vor.u32 %v11483_v19, %v10491_v44  ;;  %v6848_v29 = vand.u32 2147483648, %v13155_v48  ;;  %v6846_v57 = vand.u32 2147483647, %v13155_v48 }
 0x68e   :  { %v6518_v21 = vmul.f32 %v11791_v47, %v13153_v28  ;;  %11794 = vrcp.f32 %v13166_v41  ;;  %v13175_v42 = vpop.eup %11792  ;;  %vm6523_vm5 = vweird.f32 %v11791_v47  ;;  %v10506_v28 = vor.u32 %v11489_v3, %v10505_v20 }
 0x68f   :  { %v6774_v52 = vpop.f32.mrf.mxu2  ;;  %11796 = vtanh.f32 %v13168_v43  ;;  %v6838_v49 = vmul.f32 %v13175_v42, %v13155_v48  ;;  %vm6524_vm9 = vmor %vm6522_vm8, %vm6523_vm5  ;;  %v6809_v31 = vand.u32 2147483648, %v13166_v41  ;;  %v6825_v32 = vsel %vm13195_vm11, %v13147_v45, %v6821_v13  ;;  %v10475_v45 = vld [vmem:[#allocation11 + $0x18] sm:$0xf0] }
 0x690   :  { %v6519_v26 = vsub.f32 1.0, %v6518_v21  ;;  %7327 = vmatpush.bf16.msra.mxu2 %v10542_v16  ;;  %11798 = vtanh.f32 %v6791_v58  ;;  %v6807_v54 = vand.u32 2147483647, %v13166_v41  ;;  %vm6803_vm14 = vweird.f32 %v13166_v41  ;;  %v11479_v21 = vld [vmem:[#allocation11 + $0xc] sm:$0xf] }
 0x691   :  { %7302 = vmatpush.bf16.msra.mxu0 %v10522_v2  ;;  %v6839_v38 = vsub.f32 1.0, %v6838_v49  ;;  %v6810_v33 = vor.u32 1.1754944e-38, %v6809_v31  ;;  %v6830_v24 = vsel %vm6827_vm13, %v6829_v53, %v6825_v32  ;;  %v10478_v39 = vor.u32 %v11479_v21, %v10475_v45  ;;  %v11545_v31 = vld [vmem:[%s13254_s6 + $0x18] sm:$0xff] }
 0x692   :  { %v6520_v1 = vmul.f32 %v11791_v47, %v6519_v26  ;;  %vm6808_vm0 = vcmp.eq.f32.partialorder %v6807_v54, 8.507059e+37  ;;  %vm6843_vm1 = vweird.f32 %v13175_v42  ;;  %vm6847_vm4 = vcmp.eq.f32.partialorder %v6846_v57, 8.507059e+37 }
 0x693   :  { %v6840_v52 = vmul.f32 %v13175_v42, %v6839_v38  ;;  %vm6844_vm3 = vmor %vm6842_vm2, %vm6843_vm1 }
 0x694   :  { %v11795_v4 = vpop.eup %11794  ;;  %v6521_v14 = vadd.f32 %v11791_v47, %v6520_v1  ;;  %7328 = vmatpush.bf16.msra.mxu2 %v10526_v51  ;;  %v6849_v1 = vor.u32 1.1754944e-38, %v6848_v29 }
 0x695   :  { %v6799_v50 = vmul.f32 %v11795_v4, %v13166_v41  ;;  %v11797_v10 = vpop.eup %11796  ;;  %vm6804_vm12 = vweird.f32 %v11795_v4  ;;  %7303 = vmatpush.bf16.msra.mxu0 %v10506_v28  ;;  %v6852_v41 = vmul.f32 %v6830_v24, %v13061_v6  ;;  %v6841_v26 = vadd.f32 %v13175_v42, %v6840_v52 }
 0x696   :  { %v6525_v11 = vsel %vm6524_vm9, %v11791_v47, %v6521_v14  ;;  %v10473_v47 = vld [vmem:[#allocation11 + $0x8] sm:$0xf]  ;;  %vm6805_vm15 = vmor %vm6803_vm14, %vm6804_vm12  ;;  %v11799_v7 = vpop.eup %11798 }
 0x697   :  { %v6800_v25 = vsub.f32 1.0, %v6799_v50  ;;  %v6530_v9 = vsel %vm6527_vm10, %v6529_v56, %v6525_v11  ;;  %v10474_v27 = vor.u32 %v11481_v60, %v10473_v47  ;;  %v6845_v15 = vsel %vm6844_vm3, %v13175_v42, %v6841_v26  ;;  %v11549_v11 = vld [vmem:[%s13254_s6 + $0x38] sm:$0xff] }
 0x698   :  { %v6536_v22 = vmul.f32 %v11797_v10, %v6530_v9  ;;  %7329 = vmatpush.bf16.msra.mxu2 %v10510_v36  ;;  %v6850_v2 = vsel %vm6847_vm4, %v6849_v1, %v6845_v15  ;;  %v11546_v9 = vld [vmem:[%s13254_s6 + $0x20] sm:$0xff] }
 0x699   :  { %v6801_v63 = vmul.f32 %v11795_v4, %v6800_v25  ;;  %7304 = vmatpush.bf16.msra.mxu0 %v10490_v59 }
 0x69a   :  { %v6861_v62 = vpack.c.bf16 %v6536_v22, %v6536_v22 }
 0x69b   :  { %v6802_v8 = vadd.f32 %v11795_v4, %v6801_v63 }
 0x69c   :  { %7267 = vmatmul.bf16.vlgmr.msra.gmra.mxu1 %v6861_v62  ;;  %7293 = vmatmul.bf16.vlgmr.msrb.gmra.mxu3 %v6861_v62 }
 0x69d   :  { %v6806_v16 = vsel %vm6805_vm15, %v11795_v4, %v6802_v8  ;;  %7330 = vmatpush.bf16.msra.mxu2 %v10494_v12  ;;  %7305 = vmatpush.bf16.msra.mxu0 %v10474_v27  ;;  %v11544_v12 = vld [vmem:[%s13254_s6 + $0x10] sm:$0xff] }
 0x69e   :  { %v6811_v30 = vsel %vm6808_vm0, %v6810_v33, %v6806_v16 }
 0x69f   :  { %v6853_v40 = vmul.f32 %v11799_v7, %v6811_v30 }
 0x6a1   :  { %v6854_v34 = vadd.f32 %v6853_v40, %v6852_v41  ;;  %7331 = vmatpush.bf16.msra.mxu2 %v10478_v39  ;;  %v11542_v39 = vld [vmem:[%s13254_s6] sm:$0xff] }
 0x6a3   :  { %11800 = vtanh.f32 %v6854_v34 }
 0x6a9   :  { %v11801_v6 = vpop.eup %11800 }
 0x6aa   :  { %v6856_v51 = vmul.f32 %v11801_v6, %v6850_v2 }
 0x6ac   :  { %7319 = vmatmul.bf16.vlgmr.msrb.gmra.mxu1 %v6861_v62  ;;  %7345 = vmatmul.bf16.vlgmr.msra.gmra.mxu3 %v6861_v62  ;;  %v6860_v20 = vpack.c.bf16 %v6856_v51, %v6856_v51 }
 0x6ae   :  { %7254 = vmatmul.bf16.vlgmr.msrb.gmra.mxu0 %v6860_v20  ;;  %7280 = vmatmul.bf16.vlgmr.msrb.gmra.mxu2 %v6860_v20 }
 0x6af   :  { %7485 = vmatpush.bf16.msrb.mxu0 %v11549_v11 }
 0x6be   :  { %7306 = vmatmul.bf16.vlgmr.msra.gmra.mxu0 %v6860_v20  ;;  %7332 = vmatmul.bf16.vlgmr.msra.gmra.mxu2 %v6860_v20 }
 0x719   :  { %v7268_v3 = vpop.f32.mrf.mxu1 }
 0x71f   :  { %v7294_v37 = vpop.f32.mrf.mxu3 }
 0x721   :  { %v7270_v17 = vpop.f32.mrf.mxu1 }
 0x727   :  { %v7296_v4 = vpop.f32.mrf.mxu3 }
 0x729   :  { %v7320_v48 = vpop.f32.mrf.mxu1 }
 0x72b   :  { %v7255_v58 = vpop.f32.mrf.mxu0 }
 0x72c   :  { %v7256_v42 = vadd.f32 %v7255_v58, %v12196_v46  ;;  %v11548_v46 = vld [vmem:[%s13254_s6 + $0x30] sm:$0xff] }
 0x72d   :  { %7486 = vmatpush.bf16.msrb.mxu0 %v11548_v46 }
 0x72e   :  { %v7269_v13 = vadd.f32 %v7268_v3, %v7256_v42 }
 0x72f   :  { %v7346_v14 = vpop.f32.mrf.mxu3 }
 0x730   :  { %v10719_v49 = vmul.f32 -1.442695, %v7269_v13 }
 0x731   :  { %v7322_v50 = vpop.f32.mrf.mxu1  ;;  %v7281_v61 = vpop.f32.mrf.mxu2 }
 0x732   :  { %11802 = vpow2.f32 %v10719_v49  ;;  %v7282_v56 = vadd.f32 %v7281_v61, %v12200_v18  ;;  %v11547_v18 = vld [vmem:[%s13254_s6 + $0x28] sm:$0xff] }
 0x733   :  { %v7257_v28 = vpop.f32.mrf.mxu0  ;;  %7487 = vmatpush.bf16.msrb.mxu0 %v11547_v18 }
 0x734   :  { %v7295_v36 = vadd.f32 %v7294_v37, %v7282_v56  ;;  %v11561_v28 = vld [vmem:[%s13255_s7] ss:$0 sm:$0xff] }
 0x736   :  { %v10720_v0 = vmul.f32 -1.442695, %v7295_v36 }
 0x737   :  { %v7348_v23 = vpop.f32.mrf.mxu3  ;;  %7488 = vmatpush.bf16.msrb.mxu0 %v11546_v9 }
 0x738   :  { %v11803_v10 = vpop.eup %11802  ;;  %11804 = vpow2.f32 %v10720_v0 }
 0x739   :  { %v7354_v55 = vadd.f32 1.0, %v11803_v10  ;;  %v7283_v53 = vpop.f32.mrf.mxu2 }
 0x73b   :  { %11806 = vrcp.f32 %v7354_v55  ;;  %v7307_v25 = vpop.f32.mrf.mxu0  ;;  %7489 = vmatpush.bf16.msrb.mxu0 %v11545_v31  ;;  %v7366_v27 = vand.u32 2147483648, %v7354_v55  ;;  %vm7360_vm7 = vweird.f32 %v7354_v55  ;;  %v7364_v41 = vand.u32 2147483647, %v7354_v55 }
 0x73c   :  { %v7308_v47 = vadd.f32 %v7307_v25, %v12226_v5 }
 0x73d   :  { %v7367_v15 = vor.u32 1.1754944e-38, %v7366_v27  ;;  %vm7365_vm12 = vcmp.eq.f32.partialorder %v7364_v41, 8.507059e+37 }
 0x73e   :  { %v11805_v19 = vpop.eup %11804  ;;  %v7321_v52 = vadd.f32 %v7320_v48, %v7308_v47 }
 0x73f   :  { %v7373_v44 = vadd.f32 1.0, %v11805_v19  ;;  %7490 = vmatpush.bf16.msrb.mxu0 %v11544_v12 }
 0x741   :  { %v11807_v32 = vpop.eup %11806  ;;  %11808 = vrcp.f32 %v7373_v44  ;;  %v7333_v22 = vpop.f32.mrf.mxu2  ;;  %v7385_v16 = vand.u32 2147483648, %v7373_v44  ;;  %v7383_v5 = vand.u32 2147483647, %v7373_v44  ;;  %vm7379_vm8 = vweird.f32 %v7373_v44 }
 0x742   :  { %v7356_v38 = vmul.f32 %v11807_v32, %v7354_v55  ;;  %v7334_v63 = vadd.f32 %v7333_v22, %v12218_v35  ;;  %v11543_v35 = vld [vmem:[%s13254_s6 + $0x8] sm:$0xff]  ;;  %vm7361_vm5 = vweird.f32 %v11807_v32 }
 0x743   :  { %v7309_v54 = vpop.f32.mrf.mxu0  ;;  %7491 = vmatpush.bf16.msrb.mxu0 %v11543_v35  ;;  %vm7362_vm9 = vmor %vm7360_vm7, %vm7361_vm5  ;;  %v7386_v26 = vor.u32 1.1754944e-38, %v7385_v16  ;;  %vm7384_vm11 = vcmp.eq.f32.partialorder %v7383_v5, 8.507059e+37 }
 0x744   :  { %v7357_v62 = vsub.f32 1.0, %v7356_v38  ;;  %v7347_v59 = vadd.f32 %v7346_v14, %v7334_v63 }
 0x746   :  { %v10721_v8 = vmul.f32 -1.442695, %v7347_v59  ;;  %v7358_v21 = vmul.f32 %v11807_v32, %v7357_v62 }
 0x747   :  { %v11809_v60 = vpop.eup %11808  ;;  %7492 = vmatpush.bf16.msrb.mxu0 %v11542_v39 }
 0x748   :  { %v7375_v45 = vmul.f32 %v11809_v60, %v7373_v44  ;;  %11810 = vpow2.f32 %v10721_v8  ;;  %v7359_v7 = vadd.f32 %v11807_v32, %v7358_v21  ;;  %vm7380_vm6 = vweird.f32 %v11809_v60 }
 0x749   :  { %v7335_v33 = vpop.f32.mrf.mxu2  ;;  %11812 = vtanh.f32 %v7321_v52  ;;  %vm7381_vm10 = vmor %vm7379_vm8, %vm7380_vm6 }
 0x74a   :  { %v7376_v24 = vsub.f32 1.0, %v7375_v45  ;;  %v7363_v29 = vsel %vm7362_vm9, %v11807_v32, %v7359_v7 }
 0x74b   :  { %v7368_v2 = vsel %vm7365_vm12, %v7367_v15, %v7363_v29 }
 0x74c   :  { %v7377_v30 = vmul.f32 %v11809_v60, %v7376_v24 }
 0x74e   :  { %v11811_v40 = vpop.eup %11810  ;;  %v7378_v34 = vadd.f32 %v11809_v60, %v7377_v30 }
 0x74f   :  { %v7393_v57 = vadd.f32 1.0, %v11811_v40  ;;  %v11813_v20 = vpop.eup %11812 }
 0x750   :  { %v7382_v1 = vsel %vm7381_vm10, %v11809_v60, %v7378_v34  ;;  %v7410_v3 = vmul.f32 %v11813_v20, %v7368_v2 }
 0x751   :  { %v7387_v6 = vsel %vm7384_vm11, %v7386_v26, %v7382_v1  ;;  %11814 = vrcp.f32 %v7393_v57  ;;  %v7405_v58 = vand.u32 2147483648, %v7393_v57  ;;  %v7403_v13 = vand.u32 2147483647, %v7393_v57 }
 0x752   :  { %v7409_v51 = vmul.f32 %v7387_v6, %v13168_v43  ;;  %vm7399_vm14 = vweird.f32 %v7393_v57 }
 0x753   :  { %v7406_v49 = vor.u32 1.1754944e-38, %v7405_v58  ;;  %vm7404_vm0 = vcmp.eq.f32.partialorder %v7403_v13, 8.507059e+37 }
 0x754   :  { %v7411_v17 = vadd.f32 %v7410_v3, %v7409_v51 }
 0x756   :  { %11816 = vtanh.f32 %v7411_v17 }
 0x757   :  { %v11815_v37 = vpop.eup %11814 }
 0x758   :  { %v7395_v4 = vmul.f32 %v11815_v37, %v7393_v57  ;;  %vm7400_vm13 = vweird.f32 %v11815_v37 }
 0x759   :  { %vm7401_vm15 = vmor %vm7399_vm14, %vm7400_vm13 }
 0x75a   :  { %v7396_v48 = vsub.f32 1.0, %v7395_v4 }
 0x75c   :  { %v7397_v42 = vmul.f32 %v11815_v37, %v7396_v48  ;;  %v11817_v61 = vpop.eup %11816 }
 0x75e   :  { %v7398_v14 = vadd.f32 %v11815_v37, %v7397_v42 }
 0x760   :  { %v7402_v50 = vsel %vm7401_vm15, %v11815_v37, %v7398_v14 }
 0x761   :  { %v7407_v56 = vsel %vm7404_vm0, %v7406_v49, %v7402_v50 }
 0x762   :  { %v7413_v43 = vmul.f32 %v11817_v61, %v7407_v56 }
 0x764   :  { %v7416_v11 = vpack.c.bf16 %v7413_v43, %v7413_v43 }
 0x766   :  { %7493 = vmatmul.bf16.vlgmr.msrb.gmra.mxu0 %v7416_v11 }
 0x7e3   :  { %v7494_v36 = vpop.f32.mrf.mxu0 }
 0x7e4   :  { %v7495_v0 = vadd.f32 %v11561_v28, %v7494_v36 }
 0x7e6   :  { %7498 = vst [vmem:[%s13256_s8] sm:$0xff] %v7495_v0 }
 0x7eb   :  { %v7496_v46 = vpop.f32.mrf.mxu0 }
 0x7ec   :  { %7503 = vsyncpa [#allocation8], 1 }
 0x7ed   :  { %7504 = vsyncpa [#allocation10], 1 }
 0x7ee   :  { %7505 = vsyncpa [#allocation13], 1 }

</bundles_post_ra>
